<compile_context>
chip_gen: v6e
topology: v6e:2x2x1
jax: 0.10.0
libtpu: 0.0.40
codegen_flags: <defaults>
</compile_context>

<pallas_src>
import functools

import jax
import jax.numpy as jnp
from jax.experimental import pallas as pl
from jax.experimental.pallas import tpu as pltpu

N_EMBD = 256
N_HEAD = 8
HEAD_SIZE = N_EMBD // N_HEAD
LN_EPS = 1e-5  # torch nn.LayerNorm default


def _layernorm(xf, gamma, beta):
    mu = jnp.mean(xf, axis=-1, keepdims=True)
    var = jnp.mean((xf - mu) ** 2, axis=-1, keepdims=True)
    return (xf - mu) * jax.lax.rsqrt(var + LN_EPS) * gamma + beta


def encoder_block_kernel(x_ref,
                         ln1_g_ref, ln1_b_ref,
                         wq_ref, wk_ref, wv_ref,
                         wp_ref, bp_ref,
                         ln2_g_ref, ln2_b_ref,
                         w1_ref, b1_ref, w2_ref, b2_ref,
                         o_ref, *, mm_dtype):
    bt, T, C = x_ref.shape
    M = bt * T

    def dot2(a, b):  # 2-D MXU matmul, f32 accumulation
        return jnp.dot(a.astype(mm_dtype), b.astype(mm_dtype),
                       preferred_element_type=jnp.float32)

    def bdot(a, b, dims):  # batched (single leading batch dim) MXU matmul
        return jax.lax.dot_general(a.astype(mm_dtype), b.astype(mm_dtype),
                                   dims, preferred_element_type=jnp.float32)

    x = x_ref[...].astype(jnp.float32)       # (BT, T, C)
    xf = x.reshape(M, C)                     # fold batch into M (free reshape)

    # --- LayerNorm 1 (f32) ---
    h1 = _layernorm(xf, ln1_g_ref[...], ln1_b_ref[...])

    # --- Multi-head self-attention (encoder: no causal mask) ---
    # Per-head weights are pre-split (leading head dim); 1/sqrt(C) is folded
    # into wq at the wrapper. Output projection accumulated per head (no concat).
    acc = jnp.zeros((M, C), jnp.float32)
    for hh in range(N_HEAD):                 # static unroll, NH = 8
        q = dot2(h1, wq_ref[hh])             # (M, HD), already scaled
        k = dot2(h1, wk_ref[hh])             # (M, HD)
        v = dot2(h1, wv_ref[hh])             # (M, HD)
        qb = q.reshape(bt, T, HEAD_SIZE)     # leading-dim split (free)
        kb = k.reshape(bt, T, HEAD_SIZE)
        vb = v.reshape(bt, T, HEAD_SIZE)
        # scores: contract head dim via dimension_numbers (no explicit .T)
        wei = bdot(qb, kb, (((2,), (2,)), ((0,), (0,))))    # (BT, T, T)
        wei = jax.nn.softmax(wei, axis=-1)                  # f32 softmax
        ob = bdot(wei, vb, (((2,), (1,)), ((0,), (0,))))    # (BT, T, HD)
        acc = acc + dot2(ob.reshape(M, HEAD_SIZE), wp_ref[hh])  # proj accumulate
    # TODO(synk): nn.Dropout layers are identity in eval mode and are omitted.
    x1 = xf + acc + bp_ref[...]              # residual 1 (+ proj bias)

    # --- LayerNorm 2 + FeedForward ---
    h2 = _layernorm(x1, ln2_g_ref[...], ln2_b_ref[...])
    ff = jnp.maximum(dot2(h2, w1_ref[...]) + b1_ref[...], 0.0)
    ff = dot2(ff, w2_ref[...]) + b2_ref[...]

    o_ref[...] = (x1 + ff).reshape(bt, T, C).astype(o_ref.dtype)


PARAM_ORDER = ("ln1_g", "ln1_b", "wq", "wk", "wv", "wp", "bp",
               "ln2_g", "ln2_b", "w1", "b1", "w2", "b2")


def _pick_batch_tile(B, T, target_rows=128):
    """Largest batch fold (dividing B) so each grid step feeds >= target_rows
    rows to the MXU; with small B the whole batch goes into one step."""
    if B * T <= target_rows:
        return B
    for bt in range(1, B + 1):
        if B % bt == 0 and bt * T >= target_rows:
            return bt
    return B


def encoder_block(x, params, matmul_dtype=jnp.float32):
    """matmul_dtype=jnp.bfloat16 is recommended on v6e/v7x (full-rate MXU,
    half the weight DMA); LayerNorm/softmax/residuals always stay in f32."""
    B, T, C = x.shape
    assert C == N_EMBD and C % N_HEAD == 0

    # ---- one-time weight layout prep (constant-folded under jit) ----
    scale = float(C) ** -0.5  # NOTE: torch module scales by n_embd**-0.5 (not head_size)

    def per_head_in(w):  # (C, C) -> (NH, C, HD): column block h = head h
        return w.reshape(C, N_HEAD, HEAD_SIZE).transpose(1, 0, 2)

    wq = per_head_in(params["wq"] * scale)               # fold score scale into Q
    wk = per_head_in(params["wk"])
    wv = per_head_in(params["wv"])
    wp = params["wp"].reshape(N_HEAD, HEAD_SIZE, C)      # row block h = head h

    mmd = matmul_dtype
    weights = dict(
        ln1_g=params["ln1_g"], ln1_b=params["ln1_b"],
        wq=wq.astype(mmd), wk=wk.astype(mmd), wv=wv.astype(mmd),
        wp=wp.astype(mmd), bp=params["bp"],
        ln2_g=params["ln2_g"], ln2_b=params["ln2_b"],
        w1=params["w1"].astype(mmd), b1=params["b1"],
        w2=params["w2"].astype(mmd), b2=params["b2"],
    )
    weight_args = [weights[k] for k in PARAM_ORDER]

    bt = _pick_batch_tile(B, T)
    grid = (B // bt,)

    def resident_spec(arr):
        # Full-array block + constant index map: one up-front DMA, weight stays
        # resident in VMEM across all grid steps (no per-step re-fetch).
        nd = arr.ndim
        return pl.BlockSpec(arr.shape, lambda i, _nd=nd: (0,) * _nd)

    in_specs = [pl.BlockSpec((bt, T, C), lambda i: (i, 0, 0))] \
               + [resident_spec(w) for w in weight_args]
    out_specs = pl.BlockSpec((bt, T, C), lambda i: (i, 0, 0))

    kernel = functools.partial(encoder_block_kernel, mm_dtype=matmul_dtype)

    return pl.pallas_call(
        kernel,
        out_shape=jax.ShapeDtypeStruct((B, T, C), x.dtype),
        grid=grid,
        in_specs=in_specs,
        out_specs=out_specs,
        compiler_params=pltpu.CompilerParams(
            dimension_semantics=("parallel",)),  # batch tiles split across TCs (v7x)
    )(x, *weight_args)


def init_params(key):
    ks = jax.random.split(key, 8)
    s = 0.02
    return {
        "ln1_g": jnp.ones((1, N_EMBD), jnp.float32),
        "ln1_b": jnp.zeros((1, N_EMBD), jnp.float32),
        # combined per-head projections: column block h == head h's weights
        "wq": s * jax.random.normal(ks[0], (N_EMBD, N_EMBD), jnp.float32),
        "wk": s * jax.random.normal(ks[1], (N_EMBD, N_EMBD), jnp.float32),
        "wv": s * jax.random.normal(ks[2], (N_EMBD, N_EMBD), jnp.float32),
        "wp": s * jax.random.normal(ks[3], (N_EMBD, N_EMBD), jnp.float32),
        "bp": s * jax.random.normal(ks[4], (1, N_EMBD), jnp.float32),
        "ln2_g": jnp.ones((1, N_EMBD), jnp.float32),
        "ln2_b": jnp.zeros((1, N_EMBD), jnp.float32),
        "w1": s * jax.random.normal(ks[5], (N_EMBD, 4 * N_EMBD), jnp.float32),
        "b1": s * jax.random.normal(ks[6], (1, 4 * N_EMBD), jnp.float32),
        "w2": s * jax.random.normal(ks[7], (4 * N_EMBD, N_EMBD), jnp.float32),
        "b2": jnp.zeros((1, N_EMBD), jnp.float32),
    }


def encoder_block_reference(x, p):
    """Pure-JAX reference mirroring the torch forward (eval mode)."""
    def ln(y, g, b):
        mu = y.mean(-1, keepdims=True)
        var = ((y - mu) ** 2).mean(-1, keepdims=True)
        return (y - mu) / jnp.sqrt(var + LN_EPS) * g + b

    B, T, C = x.shape
    h = ln(x, p["ln1_g"][0], p["ln1_b"][0])
    q = h @ p["wq"]
    k = h @ p["wk"]
    v = h @ p["wv"]
    qh = q.reshape(B, T, N_HEAD, HEAD_SIZE).transpose(0, 2, 1, 3)
    kh = k.reshape(B, T, N_HEAD, HEAD_SIZE).transpose(0, 2, 1, 3)
    vh = v.reshape(B, T, N_HEAD, HEAD_SIZE).transpose(0, 2, 1, 3)
    wei = jnp.einsum("bhtd,bhsd->bhts", qh, kh) * (float(C) ** -0.5)
    wei = jax.nn.softmax(wei, axis=-1)
    o = jnp.einsum("bhts,bhsd->bhtd", wei, vh).transpose(0, 2, 1, 3).reshape(B, T, C)
    sa = o @ p["wp"] + p["bp"][0]
    x1 = x + sa
    h2 = ln(x1, p["ln2_g"][0], p["ln2_b"][0])
    ff = jax.nn.relu(h2 @ p["w1"] + p["b1"][0]) @ p["w2"] + p["b2"][0]
    return x1 + ff


if __name__ == "__main__":
    key = jax.random.PRNGKey(0)
    k_x, k_p = jax.random.split(key)

    B, T = 2, 8  # small batch / sequence; channels fixed by module (n_embd=256)
    x = jax.random.normal(k_x, (B, T, N_EMBD), jnp.float32)
    params = init_params(k_p)

    ref = encoder_block_reference(x, params)

    # f32 matmul path (exact vs. reference, default)
    out = jax.block_until_ready(encoder_block(x, params))
    assert out.shape == (B, T, N_EMBD)
    assert jnp.allclose(out, ref, atol=2e-3, rtol=2e-3), "mismatch vs JAX reference"

    # bf16 matmul-operand path (recommended on v6e/v7x); f32 accumulation keeps
    # it close to the f32 reference.
    out_bf16 = jax.block_until_ready(encoder_block(x, params, matmul_dtype=jnp.bfloat16))
    assert jnp.allclose(out_bf16, ref, atol=5e-2, rtol=5e-2), "bf16 path mismatch"

    print("KERNEL_OK")
</pallas_src>

<mosaic_0001>
module attributes {stable_mosaic.version = 11 : i64} {
  func.func @encoder_block_kernel(%arg0: i32, %arg1: memref<2x8x256xf32, #tpu.memory_space<vmem>>, %arg2: memref<1x256xf32, #tpu.memory_space<vmem>>, %arg3: memref<1x256xf32, #tpu.memory_space<vmem>>, %arg4: memref<8x256x32xf32, #tpu.memory_space<vmem>>, %arg5: memref<8x256x32xf32, #tpu.memory_space<vmem>>, %arg6: memref<8x256x32xf32, #tpu.memory_space<vmem>>, %arg7: memref<8x32x256xf32, #tpu.memory_space<vmem>>, %arg8: memref<1x256xf32, #tpu.memory_space<vmem>>, %arg9: memref<1x256xf32, #tpu.memory_space<vmem>>, %arg10: memref<1x256xf32, #tpu.memory_space<vmem>>, %arg11: memref<256x1024xf32, #tpu.memory_space<vmem>>, %arg12: memref<1x1024xf32, #tpu.memory_space<vmem>>, %arg13: memref<1024x256xf32, #tpu.memory_space<vmem>>, %arg14: memref<1x256xf32, #tpu.memory_space<vmem>>, %arg15: memref<2x8x256xf32, #tpu.memory_space<vmem>>) attributes {dimension_semantics = [#tpu.dimension_semantics<parallel>], iteration_bounds = array<i64: 1>, scalar_prefetch = 0 : i64, scratch_operands = 0 : i64, tpu.core_type = #tpu.core_type<tc>, window_params = [{transform_indices = @transform_0, window_bounds = array<i64: 2, 8, 256>}, {pipeline_mode = #tpu.pipeline_mode<synchronous>, transform_indices = @transform_1, window_bounds = array<i64: 1, 256>}, {pipeline_mode = #tpu.pipeline_mode<synchronous>, transform_indices = @transform_2, window_bounds = array<i64: 1, 256>}, {pipeline_mode = #tpu.pipeline_mode<synchronous>, transform_indices = @transform_3, window_bounds = array<i64: 8, 256, 32>}, {pipeline_mode = #tpu.pipeline_mode<synchronous>, transform_indices = @transform_4, window_bounds = array<i64: 8, 256, 32>}, {pipeline_mode = #tpu.pipeline_mode<synchronous>, transform_indices = @transform_5, window_bounds = array<i64: 8, 256, 32>}, {pipeline_mode = #tpu.pipeline_mode<synchronous>, transform_indices = @transform_6, window_bounds = array<i64: 8, 32, 256>}, {pipeline_mode = #tpu.pipeline_mode<synchronous>, transform_indices = @transform_7, window_bounds = array<i64: 1, 256>}, {pipeline_mode = #tpu.pipeline_mode<synchronous>, transform_indices = @transform_8, window_bounds = array<i64: 1, 256>}, {pipeline_mode = #tpu.pipeline_mode<synchronous>, transform_indices = @transform_9, window_bounds = array<i64: 1, 256>}, {pipeline_mode = #tpu.pipeline_mode<synchronous>, transform_indices = @transform_10, window_bounds = array<i64: 256, 1024>}, {pipeline_mode = #tpu.pipeline_mode<synchronous>, transform_indices = @transform_11, window_bounds = array<i64: 1, 1024>}, {pipeline_mode = #tpu.pipeline_mode<synchronous>, transform_indices = @transform_12, window_bounds = array<i64: 1024, 256>}, {pipeline_mode = #tpu.pipeline_mode<synchronous>, transform_indices = @transform_13, window_bounds = array<i64: 1, 256>}, {transform_indices = @transform_14, window_bounds = array<i64: 2, 8, 256>}]} {
    %c0 = arith.constant 0 : index
    %c0_0 = arith.constant 0 : index
    %c0_1 = arith.constant 0 : index
    %0 = vector.load %arg1[%c0, %c0_0, %c0_1] : memref<2x8x256xf32, #tpu.memory_space<vmem>>, vector<2x8x256xf32>
    %1 = vector.shape_cast %0 : vector<2x8x256xf32> to vector<16x256xf32>
    %c0_2 = arith.constant 0 : index
    %c0_3 = arith.constant 0 : index
    %2 = vector.load %arg2[%c0_2, %c0_3] : memref<1x256xf32, #tpu.memory_space<vmem>>, vector<1x256xf32>
    %c0_4 = arith.constant 0 : index
    %c0_5 = arith.constant 0 : index
    %3 = vector.load %arg3[%c0_4, %c0_5] : memref<1x256xf32, #tpu.memory_space<vmem>>, vector<1x256xf32>
    %cst = arith.constant dense<0.000000e+00> : vector<16xf32>
    %4 = vector.multi_reduction <add>, %1, %cst [1] : vector<16x256xf32> to vector<16xf32>
    %5 = vector.shape_cast %4 : vector<16xf32> to vector<16x1xf32>
    %cst_6 = arith.constant 2.560000e+02 : f32
    %6 = vector.broadcast %cst_6 : f32 to vector<16x1xf32>
    %7 = arith.divf %5, %6 : vector<16x1xf32>
    %8 = vector.broadcast %7 : vector<16x1xf32> to vector<16x256xf32>
    %9 = arith.subf %1, %8 : vector<16x256xf32>
    %10 = arith.mulf %9, %9 : vector<16x256xf32>
    %cst_7 = arith.constant dense<0.000000e+00> : vector<16xf32>
    %11 = vector.multi_reduction <add>, %10, %cst_7 [1] : vector<16x256xf32> to vector<16xf32>
    %12 = vector.shape_cast %11 : vector<16xf32> to vector<16x1xf32>
    %cst_8 = arith.constant 2.560000e+02 : f32
    %13 = vector.broadcast %cst_8 : f32 to vector<16x1xf32>
    %14 = arith.divf %12, %13 : vector<16x1xf32>
    %15 = vector.broadcast %7 : vector<16x1xf32> to vector<16x256xf32>
    %16 = arith.subf %1, %15 : vector<16x256xf32>
    %cst_9 = arith.constant 9.99999974E-6 : f32
    %17 = vector.broadcast %cst_9 : f32 to vector<16x1xf32>
    %18 = arith.addf %14, %17 : vector<16x1xf32>
    %19 = math.rsqrt %18 : vector<16x1xf32>
    %20 = vector.broadcast %19 : vector<16x1xf32> to vector<16x256xf32>
    %21 = arith.mulf %16, %20 : vector<16x256xf32>
    %22 = vector.broadcast %2 : vector<1x256xf32> to vector<16x256xf32>
    %23 = arith.mulf %21, %22 : vector<16x256xf32>
    %24 = vector.broadcast %3 : vector<1x256xf32> to vector<16x256xf32>
    %25 = arith.addf %23, %24 : vector<16x256xf32>
    %cst_10 = arith.constant 0.000000e+00 : f32
    %26 = vector.broadcast %cst_10 : f32 to vector<16x256xf32>
    %c0_11 = arith.constant 0 : index
    %c0_12 = arith.constant 0 : index
    %c0_13 = arith.constant 0 : index
    %27 = vector.load %arg4[%c0_11, %c0_12, %c0_13] : memref<8x256x32xf32, #tpu.memory_space<vmem>>, vector<1x256x32xf32>
    %28 = vector.shape_cast %27 : vector<1x256x32xf32> to vector<256x32xf32>
    %cst_14 = arith.constant dense<0.000000e+00> : vector<16x32xf32>
    %29 = tpu.matmul %25, %28, %cst_14 {dimension_numbers = #tpu.dot_dimension_numbers<[1], [0], [0], [1], [0, 0, 1, 1], [], []>} : vector<16x256xf32>, vector<256x32xf32>, vector<16x32xf32> -> vector<16x32xf32>
    %c0_15 = arith.constant 0 : index
    %c0_16 = arith.constant 0 : index
    %c0_17 = arith.constant 0 : index
    %30 = vector.load %arg5[%c0_15, %c0_16, %c0_17] : memref<8x256x32xf32, #tpu.memory_space<vmem>>, vector<1x256x32xf32>
    %31 = vector.shape_cast %30 : vector<1x256x32xf32> to vector<256x32xf32>
    %cst_18 = arith.constant dense<0.000000e+00> : vector<16x32xf32>
    %32 = tpu.matmul %25, %31, %cst_18 {dimension_numbers = #tpu.dot_dimension_numbers<[1], [0], [0], [1], [0, 0, 1, 1], [], []>} : vector<16x256xf32>, vector<256x32xf32>, vector<16x32xf32> -> vector<16x32xf32>
    %c0_19 = arith.constant 0 : index
    %c0_20 = arith.constant 0 : index
    %c0_21 = arith.constant 0 : index
    %33 = vector.load %arg6[%c0_19, %c0_20, %c0_21] : memref<8x256x32xf32, #tpu.memory_space<vmem>>, vector<1x256x32xf32>
    %34 = vector.shape_cast %33 : vector<1x256x32xf32> to vector<256x32xf32>
    %cst_22 = arith.constant dense<0.000000e+00> : vector<16x32xf32>
    %35 = tpu.matmul %25, %34, %cst_22 {dimension_numbers = #tpu.dot_dimension_numbers<[1], [0], [0], [1], [0, 0, 1, 1], [], []>} : vector<16x256xf32>, vector<256x32xf32>, vector<16x32xf32> -> vector<16x32xf32>
    %36 = vector.shape_cast %29 : vector<16x32xf32> to vector<2x8x32xf32>
    %37 = vector.shape_cast %32 : vector<16x32xf32> to vector<2x8x32xf32>
    %38 = vector.shape_cast %35 : vector<16x32xf32> to vector<2x8x32xf32>
    %cst_23 = arith.constant dense<0.000000e+00> : vector<2x8x8xf32>
    %39 = tpu.matmul %36, %37, %cst_23 {dimension_numbers = #tpu.dot_dimension_numbers<[2], [2], [1], [1], [0, 0, 0, 1, 1, 1], [0], [0]>} : vector<2x8x32xf32>, vector<2x8x32xf32>, vector<2x8x8xf32> -> vector<2x8x8xf32>
    %cst_24 = arith.constant dense<0xFF800000> : vector<2x8xf32>
    %40 = vector.multi_reduction <maximumf>, %39, %cst_24 [2] : vector<2x8x8xf32> to vector<2x8xf32>
    %cst_25 = arith.constant 0xFF800000 : f32
    %41 = vector.broadcast %cst_25 : f32 to vector<2x8xf32>
    %42 = arith.maximumf %41, %40 : vector<2x8xf32>
    %43 = vector.shape_cast %42 : vector<2x8xf32> to vector<2x8x1xf32>
    %44 = vector.broadcast %43 : vector<2x8x1xf32> to vector<2x8x8xf32>
    %45 = arith.subf %39, %44 : vector<2x8x8xf32>
    %46 = math.exp %45 : vector<2x8x8xf32>
    %cst_26 = arith.constant dense<0.000000e+00> : vector<2x8xf32>
    %47 = vector.multi_reduction <add>, %46, %cst_26 [2] : vector<2x8x8xf32> to vector<2x8xf32>
    %48 = vector.shape_cast %47 : vector<2x8xf32> to vector<2x8x1xf32>
    %49 = vector.broadcast %48 : vector<2x8x1xf32> to vector<2x8x8xf32>
    %50 = arith.divf %46, %49 : vector<2x8x8xf32>
    %cst_27 = arith.constant dense<0.000000e+00> : vector<2x8x32xf32>
    %51 = tpu.matmul %50, %38, %cst_27 {dimension_numbers = #tpu.dot_dimension_numbers<[2], [1], [1], [2], [0, 0, 0, 1, 1, 2], [0], [0]>} : vector<2x8x8xf32>, vector<2x8x32xf32>, vector<2x8x32xf32> -> vector<2x8x32xf32>
    %52 = vector.shape_cast %51 : vector<2x8x32xf32> to vector<16x32xf32>
    %c0_28 = arith.constant 0 : index
    %c0_29 = arith.constant 0 : index
    %c0_30 = arith.constant 0 : index
    %53 = vector.load %arg7[%c0_28, %c0_29, %c0_30] : memref<8x32x256xf32, #tpu.memory_space<vmem>>, vector<1x32x256xf32>
    %54 = vector.shape_cast %53 : vector<1x32x256xf32> to vector<32x256xf32>
    %cst_31 = arith.constant dense<0.000000e+00> : vector<16x256xf32>
    %55 = tpu.matmul %52, %54, %cst_31 {dimension_numbers = #tpu.dot_dimension_numbers<[1], [0], [0], [1], [0, 0, 1, 1], [], []>} : vector<16x32xf32>, vector<32x256xf32>, vector<16x256xf32> -> vector<16x256xf32>
    %56 = arith.addf %26, %55 : vector<16x256xf32>
    %c1 = arith.constant 1 : index
    %c0_32 = arith.constant 0 : index
    %c0_33 = arith.constant 0 : index
    %57 = vector.load %arg4[%c1, %c0_32, %c0_33] : memref<8x256x32xf32, #tpu.memory_space<vmem>>, vector<1x256x32xf32>
    %58 = vector.shape_cast %57 : vector<1x256x32xf32> to vector<256x32xf32>
    %cst_34 = arith.constant dense<0.000000e+00> : vector<16x32xf32>
    %59 = tpu.matmul %25, %58, %cst_34 {dimension_numbers = #tpu.dot_dimension_numbers<[1], [0], [0], [1], [0, 0, 1, 1], [], []>} : vector<16x256xf32>, vector<256x32xf32>, vector<16x32xf32> -> vector<16x32xf32>
    %c1_35 = arith.constant 1 : index
    %c0_36 = arith.constant 0 : index
    %c0_37 = arith.constant 0 : index
    %60 = vector.load %arg5[%c1_35, %c0_36, %c0_37] : memref<8x256x32xf32, #tpu.memory_space<vmem>>, vector<1x256x32xf32>
    %61 = vector.shape_cast %60 : vector<1x256x32xf32> to vector<256x32xf32>
    %cst_38 = arith.constant dense<0.000000e+00> : vector<16x32xf32>
    %62 = tpu.matmul %25, %61, %cst_38 {dimension_numbers = #tpu.dot_dimension_numbers<[1], [0], [0], [1], [0, 0, 1, 1], [], []>} : vector<16x256xf32>, vector<256x32xf32>, vector<16x32xf32> -> vector<16x32xf32>
    %c1_39 = arith.constant 1 : index
    %c0_40 = arith.constant 0 : index
    %c0_41 = arith.constant 0 : index
    %63 = vector.load %arg6[%c1_39, %c0_40, %c0_41] : memref<8x256x32xf32, #tpu.memory_space<vmem>>, vector<1x256x32xf32>
    %64 = vector.shape_cast %63 : vector<1x256x32xf32> to vector<256x32xf32>
    %cst_42 = arith.constant dense<0.000000e+00> : vector<16x32xf32>
    %65 = tpu.matmul %25, %64, %cst_42 {dimension_numbers = #tpu.dot_dimension_numbers<[1], [0], [0], [1], [0, 0, 1, 1], [], []>} : vector<16x256xf32>, vector<256x32xf32>, vector<16x32xf32> -> vector<16x32xf32>
    %66 = vector.shape_cast %59 : vector<16x32xf32> to vector<2x8x32xf32>
    %67 = vector.shape_cast %62 : vector<16x32xf32> to vector<2x8x32xf32>
    %68 = vector.shape_cast %65 : vector<16x32xf32> to vector<2x8x32xf32>
    %cst_43 = arith.constant dense<0.000000e+00> : vector<2x8x8xf32>
    %69 = tpu.matmul %66, %67, %cst_43 {dimension_numbers = #tpu.dot_dimension_numbers<[2], [2], [1], [1], [0, 0, 0, 1, 1, 1], [0], [0]>} : vector<2x8x32xf32>, vector<2x8x32xf32>, vector<2x8x8xf32> -> vector<2x8x8xf32>
    %cst_44 = arith.constant dense<0xFF800000> : vector<2x8xf32>
    %70 = vector.multi_reduction <maximumf>, %69, %cst_44 [2] : vector<2x8x8xf32> to vector<2x8xf32>
    %cst_45 = arith.constant 0xFF800000 : f32
    %71 = vector.broadcast %cst_45 : f32 to vector<2x8xf32>
    %72 = arith.maximumf %71, %70 : vector<2x8xf32>
    %73 = vector.shape_cast %72 : vector<2x8xf32> to vector<2x8x1xf32>
    %74 = vector.broadcast %73 : vector<2x8x1xf32> to vector<2x8x8xf32>
    %75 = arith.subf %69, %74 : vector<2x8x8xf32>
    %76 = math.exp %75 : vector<2x8x8xf32>
    %cst_46 = arith.constant dense<0.000000e+00> : vector<2x8xf32>
    %77 = vector.multi_reduction <add>, %76, %cst_46 [2] : vector<2x8x8xf32> to vector<2x8xf32>
    %78 = vector.shape_cast %77 : vector<2x8xf32> to vector<2x8x1xf32>
    %79 = vector.broadcast %78 : vector<2x8x1xf32> to vector<2x8x8xf32>
    %80 = arith.divf %76, %79 : vector<2x8x8xf32>
    %cst_47 = arith.constant dense<0.000000e+00> : vector<2x8x32xf32>
    %81 = tpu.matmul %80, %68, %cst_47 {dimension_numbers = #tpu.dot_dimension_numbers<[2], [1], [1], [2], [0, 0, 0, 1, 1, 2], [0], [0]>} : vector<2x8x8xf32>, vector<2x8x32xf32>, vector<2x8x32xf32> -> vector<2x8x32xf32>
    %82 = vector.shape_cast %81 : vector<2x8x32xf32> to vector<16x32xf32>
    %c1_48 = arith.constant 1 : index
    %c0_49 = arith.constant 0 : index
    %c0_50 = arith.constant 0 : index
    %83 = vector.load %arg7[%c1_48, %c0_49, %c0_50] : memref<8x32x256xf32, #tpu.memory_space<vmem>>, vector<1x32x256xf32>
    %84 = vector.shape_cast %83 : vector<1x32x256xf32> to vector<32x256xf32>
    %cst_51 = arith.constant dense<0.000000e+00> : vector<16x256xf32>
    %85 = tpu.matmul %82, %84, %cst_51 {dimension_numbers = #tpu.dot_dimension_numbers<[1], [0], [0], [1], [0, 0, 1, 1], [], []>} : vector<16x32xf32>, vector<32x256xf32>, vector<16x256xf32> -> vector<16x256xf32>
    %86 = arith.addf %56, %85 : vector<16x256xf32>
    %c2 = arith.constant 2 : index
    %c0_52 = arith.constant 0 : index
    %c0_53 = arith.constant 0 : index
    %87 = vector.load %arg4[%c2, %c0_52, %c0_53] : memref<8x256x32xf32, #tpu.memory_space<vmem>>, vector<1x256x32xf32>
    %88 = vector.shape_cast %87 : vector<1x256x32xf32> to vector<256x32xf32>
    %cst_54 = arith.constant dense<0.000000e+00> : vector<16x32xf32>
    %89 = tpu.matmul %25, %88, %cst_54 {dimension_numbers = #tpu.dot_dimension_numbers<[1], [0], [0], [1], [0, 0, 1, 1], [], []>} : vector<16x256xf32>, vector<256x32xf32>, vector<16x32xf32> -> vector<16x32xf32>
    %c2_55 = arith.constant 2 : index
    %c0_56 = arith.constant 0 : index
    %c0_57 = arith.constant 0 : index
    %90 = vector.load %arg5[%c2_55, %c0_56, %c0_57] : memref<8x256x32xf32, #tpu.memory_space<vmem>>, vector<1x256x32xf32>
    %91 = vector.shape_cast %90 : vector<1x256x32xf32> to vector<256x32xf32>
    %cst_58 = arith.constant dense<0.000000e+00> : vector<16x32xf32>
    %92 = tpu.matmul %25, %91, %cst_58 {dimension_numbers = #tpu.dot_dimension_numbers<[1], [0], [0], [1], [0, 0, 1, 1], [], []>} : vector<16x256xf32>, vector<256x32xf32>, vector<16x32xf32> -> vector<16x32xf32>
    %c2_59 = arith.constant 2 : index
    %c0_60 = arith.constant 0 : index
    %c0_61 = arith.constant 0 : index
    %93 = vector.load %arg6[%c2_59, %c0_60, %c0_61] : memref<8x256x32xf32, #tpu.memory_space<vmem>>, vector<1x256x32xf32>
    %94 = vector.shape_cast %93 : vector<1x256x32xf32> to vector<256x32xf32>
    %cst_62 = arith.constant dense<0.000000e+00> : vector<16x32xf32>
    %95 = tpu.matmul %25, %94, %cst_62 {dimension_numbers = #tpu.dot_dimension_numbers<[1], [0], [0], [1], [0, 0, 1, 1], [], []>} : vector<16x256xf32>, vector<256x32xf32>, vector<16x32xf32> -> vector<16x32xf32>
    %96 = vector.shape_cast %89 : vector<16x32xf32> to vector<2x8x32xf32>
    %97 = vector.shape_cast %92 : vector<16x32xf32> to vector<2x8x32xf32>
    %98 = vector.shape_cast %95 : vector<16x32xf32> to vector<2x8x32xf32>
    %cst_63 = arith.constant dense<0.000000e+00> : vector<2x8x8xf32>
    %99 = tpu.matmul %96, %97, %cst_63 {dimension_numbers = #tpu.dot_dimension_numbers<[2], [2], [1], [1], [0, 0, 0, 1, 1, 1], [0], [0]>} : vector<2x8x32xf32>, vector<2x8x32xf32>, vector<2x8x8xf32> -> vector<2x8x8xf32>
    %cst_64 = arith.constant dense<0xFF800000> : vector<2x8xf32>
    %100 = vector.multi_reduction <maximumf>, %99, %cst_64 [2] : vector<2x8x8xf32> to vector<2x8xf32>
    %cst_65 = arith.constant 0xFF800000 : f32
    %101 = vector.broadcast %cst_65 : f32 to vector<2x8xf32>
    %102 = arith.maximumf %101, %100 : vector<2x8xf32>
    %103 = vector.shape_cast %102 : vector<2x8xf32> to vector<2x8x1xf32>
    %104 = vector.broadcast %103 : vector<2x8x1xf32> to vector<2x8x8xf32>
    %105 = arith.subf %99, %104 : vector<2x8x8xf32>
    %106 = math.exp %105 : vector<2x8x8xf32>
    %cst_66 = arith.constant dense<0.000000e+00> : vector<2x8xf32>
    %107 = vector.multi_reduction <add>, %106, %cst_66 [2] : vector<2x8x8xf32> to vector<2x8xf32>
    %108 = vector.shape_cast %107 : vector<2x8xf32> to vector<2x8x1xf32>
    %109 = vector.broadcast %108 : vector<2x8x1xf32> to vector<2x8x8xf32>
    %110 = arith.divf %106, %109 : vector<2x8x8xf32>
    %cst_67 = arith.constant dense<0.000000e+00> : vector<2x8x32xf32>
    %111 = tpu.matmul %110, %98, %cst_67 {dimension_numbers = #tpu.dot_dimension_numbers<[2], [1], [1], [2], [0, 0, 0, 1, 1, 2], [0], [0]>} : vector<2x8x8xf32>, vector<2x8x32xf32>, vector<2x8x32xf32> -> vector<2x8x32xf32>
    %112 = vector.shape_cast %111 : vector<2x8x32xf32> to vector<16x32xf32>
    %c2_68 = arith.constant 2 : index
    %c0_69 = arith.constant 0 : index
    %c0_70 = arith.constant 0 : index
    %113 = vector.load %arg7[%c2_68, %c0_69, %c0_70] : memref<8x32x256xf32, #tpu.memory_space<vmem>>, vector<1x32x256xf32>
    %114 = vector.shape_cast %113 : vector<1x32x256xf32> to vector<32x256xf32>
    %cst_71 = arith.constant dense<0.000000e+00> : vector<16x256xf32>
    %115 = tpu.matmul %112, %114, %cst_71 {dimension_numbers = #tpu.dot_dimension_numbers<[1], [0], [0], [1], [0, 0, 1, 1], [], []>} : vector<16x32xf32>, vector<32x256xf32>, vector<16x256xf32> -> vector<16x256xf32>
    %116 = arith.addf %86, %115 : vector<16x256xf32>
    %c3 = arith.constant 3 : index
    %c0_72 = arith.constant 0 : index
    %c0_73 = arith.constant 0 : index
    %117 = vector.load %arg4[%c3, %c0_72, %c0_73] : memref<8x256x32xf32, #tpu.memory_space<vmem>>, vector<1x256x32xf32>
    %118 = vector.shape_cast %117 : vector<1x256x32xf32> to vector<256x32xf32>
    %cst_74 = arith.constant dense<0.000000e+00> : vector<16x32xf32>
    %119 = tpu.matmul %25, %118, %cst_74 {dimension_numbers = #tpu.dot_dimension_numbers<[1], [0], [0], [1], [0, 0, 1, 1], [], []>} : vector<16x256xf32>, vector<256x32xf32>, vector<16x32xf32> -> vector<16x32xf32>
    %c3_75 = arith.constant 3 : index
    %c0_76 = arith.constant 0 : index
    %c0_77 = arith.constant 0 : index
    %120 = vector.load %arg5[%c3_75, %c0_76, %c0_77] : memref<8x256x32xf32, #tpu.memory_space<vmem>>, vector<1x256x32xf32>
    %121 = vector.shape_cast %120 : vector<1x256x32xf32> to vector<256x32xf32>
    %cst_78 = arith.constant dense<0.000000e+00> : vector<16x32xf32>
    %122 = tpu.matmul %25, %121, %cst_78 {dimension_numbers = #tpu.dot_dimension_numbers<[1], [0], [0], [1], [0, 0, 1, 1], [], []>} : vector<16x256xf32>, vector<256x32xf32>, vector<16x32xf32> -> vector<16x32xf32>
    %c3_79 = arith.constant 3 : index
    %c0_80 = arith.constant 0 : index
    %c0_81 = arith.constant 0 : index
    %123 = vector.load %arg6[%c3_79, %c0_80, %c0_81] : memref<8x256x32xf32, #tpu.memory_space<vmem>>, vector<1x256x32xf32>
    %124 = vector.shape_cast %123 : vector<1x256x32xf32> to vector<256x32xf32>
    %cst_82 = arith.constant dense<0.000000e+00> : vector<16x32xf32>
    %125 = tpu.matmul %25, %124, %cst_82 {dimension_numbers = #tpu.dot_dimension_numbers<[1], [0], [0], [1], [0, 0, 1, 1], [], []>} : vector<16x256xf32>, vector<256x32xf32>, vector<16x32xf32> -> vector<16x32xf32>
    %126 = vector.shape_cast %119 : vector<16x32xf32> to vector<2x8x32xf32>
    %127 = vector.shape_cast %122 : vector<16x32xf32> to vector<2x8x32xf32>
    %128 = vector.shape_cast %125 : vector<16x32xf32> to vector<2x8x32xf32>
    %cst_83 = arith.constant dense<0.000000e+00> : vector<2x8x8xf32>
    %129 = tpu.matmul %126, %127, %cst_83 {dimension_numbers = #tpu.dot_dimension_numbers<[2], [2], [1], [1], [0, 0, 0, 1, 1, 1], [0], [0]>} : vector<2x8x32xf32>, vector<2x8x32xf32>, vector<2x8x8xf32> -> vector<2x8x8xf32>
    %cst_84 = arith.constant dense<0xFF800000> : vector<2x8xf32>
    %130 = vector.multi_reduction <maximumf>, %129, %cst_84 [2] : vector<2x8x8xf32> to vector<2x8xf32>
    %cst_85 = arith.constant 0xFF800000 : f32
    %131 = vector.broadcast %cst_85 : f32 to vector<2x8xf32>
    %132 = arith.maximumf %131, %130 : vector<2x8xf32>
    %133 = vector.shape_cast %132 : vector<2x8xf32> to vector<2x8x1xf32>
    %134 = vector.broadcast %133 : vector<2x8x1xf32> to vector<2x8x8xf32>
    %135 = arith.subf %129, %134 : vector<2x8x8xf32>
    %136 = math.exp %135 : vector<2x8x8xf32>
    %cst_86 = arith.constant dense<0.000000e+00> : vector<2x8xf32>
    %137 = vector.multi_reduction <add>, %136, %cst_86 [2] : vector<2x8x8xf32> to vector<2x8xf32>
    %138 = vector.shape_cast %137 : vector<2x8xf32> to vector<2x8x1xf32>
    %139 = vector.broadcast %138 : vector<2x8x1xf32> to vector<2x8x8xf32>
    %140 = arith.divf %136, %139 : vector<2x8x8xf32>
    %cst_87 = arith.constant dense<0.000000e+00> : vector<2x8x32xf32>
    %141 = tpu.matmul %140, %128, %cst_87 {dimension_numbers = #tpu.dot_dimension_numbers<[2], [1], [1], [2], [0, 0, 0, 1, 1, 2], [0], [0]>} : vector<2x8x8xf32>, vector<2x8x32xf32>, vector<2x8x32xf32> -> vector<2x8x32xf32>
    %142 = vector.shape_cast %141 : vector<2x8x32xf32> to vector<16x32xf32>
    %c3_88 = arith.constant 3 : index
    %c0_89 = arith.constant 0 : index
    %c0_90 = arith.constant 0 : index
    %143 = vector.load %arg7[%c3_88, %c0_89, %c0_90] : memref<8x32x256xf32, #tpu.memory_space<vmem>>, vector<1x32x256xf32>
    %144 = vector.shape_cast %143 : vector<1x32x256xf32> to vector<32x256xf32>
    %cst_91 = arith.constant dense<0.000000e+00> : vector<16x256xf32>
    %145 = tpu.matmul %142, %144, %cst_91 {dimension_numbers = #tpu.dot_dimension_numbers<[1], [0], [0], [1], [0, 0, 1, 1], [], []>} : vector<16x32xf32>, vector<32x256xf32>, vector<16x256xf32> -> vector<16x256xf32>
    %146 = arith.addf %116, %145 : vector<16x256xf32>
    %c4 = arith.constant 4 : index
    %c0_92 = arith.constant 0 : index
    %c0_93 = arith.constant 0 : index
    %147 = vector.load %arg4[%c4, %c0_92, %c0_93] : memref<8x256x32xf32, #tpu.memory_space<vmem>>, vector<1x256x32xf32>
    %148 = vector.shape_cast %147 : vector<1x256x32xf32> to vector<256x32xf32>
    %cst_94 = arith.constant dense<0.000000e+00> : vector<16x32xf32>
    %149 = tpu.matmul %25, %148, %cst_94 {dimension_numbers = #tpu.dot_dimension_numbers<[1], [0], [0], [1], [0, 0, 1, 1], [], []>} : vector<16x256xf32>, vector<256x32xf32>, vector<16x32xf32> -> vector<16x32xf32>
    %c4_95 = arith.constant 4 : index
    %c0_96 = arith.constant 0 : index
    %c0_97 = arith.constant 0 : index
    %150 = vector.load %arg5[%c4_95, %c0_96, %c0_97] : memref<8x256x32xf32, #tpu.memory_space<vmem>>, vector<1x256x32xf32>
    %151 = vector.shape_cast %150 : vector<1x256x32xf32> to vector<256x32xf32>
    %cst_98 = arith.constant dense<0.000000e+00> : vector<16x32xf32>
    %152 = tpu.matmul %25, %151, %cst_98 {dimension_numbers = #tpu.dot_dimension_numbers<[1], [0], [0], [1], [0, 0, 1, 1], [], []>} : vector<16x256xf32>, vector<256x32xf32>, vector<16x32xf32> -> vector<16x32xf32>
    %c4_99 = arith.constant 4 : index
    %c0_100 = arith.constant 0 : index
    %c0_101 = arith.constant 0 : index
    %153 = vector.load %arg6[%c4_99, %c0_100, %c0_101] : memref<8x256x32xf32, #tpu.memory_space<vmem>>, vector<1x256x32xf32>
    %154 = vector.shape_cast %153 : vector<1x256x32xf32> to vector<256x32xf32>
    %cst_102 = arith.constant dense<0.000000e+00> : vector<16x32xf32>
    %155 = tpu.matmul %25, %154, %cst_102 {dimension_numbers = #tpu.dot_dimension_numbers<[1], [0], [0], [1], [0, 0, 1, 1], [], []>} : vector<16x256xf32>, vector<256x32xf32>, vector<16x32xf32> -> vector<16x32xf32>
    %156 = vector.shape_cast %149 : vector<16x32xf32> to vector<2x8x32xf32>
    %157 = vector.shape_cast %152 : vector<16x32xf32> to vector<2x8x32xf32>
    %158 = vector.shape_cast %155 : vector<16x32xf32> to vector<2x8x32xf32>
    %cst_103 = arith.constant dense<0.000000e+00> : vector<2x8x8xf32>
    %159 = tpu.matmul %156, %157, %cst_103 {dimension_numbers = #tpu.dot_dimension_numbers<[2], [2], [1], [1], [0, 0, 0, 1, 1, 1], [0], [0]>} : vector<2x8x32xf32>, vector<2x8x32xf32>, vector<2x8x8xf32> -> vector<2x8x8xf32>
    %cst_104 = arith.constant dense<0xFF800000> : vector<2x8xf32>
    %160 = vector.multi_reduction <maximumf>, %159, %cst_104 [2] : vector<2x8x8xf32> to vector<2x8xf32>
    %cst_105 = arith.constant 0xFF800000 : f32
    %161 = vector.broadcast %cst_105 : f32 to vector<2x8xf32>
    %162 = arith.maximumf %161, %160 : vector<2x8xf32>
    %163 = vector.shape_cast %162 : vector<2x8xf32> to vector<2x8x1xf32>
    %164 = vector.broadcast %163 : vector<2x8x1xf32> to vector<2x8x8xf32>
    %165 = arith.subf %159, %164 : vector<2x8x8xf32>
    %166 = math.exp %165 : vector<2x8x8xf32>
    %cst_106 = arith.constant dense<0.000000e+00> : vector<2x8xf32>
    %167 = vector.multi_reduction <add>, %166, %cst_106 [2] : vector<2x8x8xf32> to vector<2x8xf32>
    %168 = vector.shape_cast %167 : vector<2x8xf32> to vector<2x8x1xf32>
    %169 = vector.broadcast %168 : vector<2x8x1xf32> to vector<2x8x8xf32>
    %170 = arith.divf %166, %169 : vector<2x8x8xf32>
    %cst_107 = arith.constant dense<0.000000e+00> : vector<2x8x32xf32>
    %171 = tpu.matmul %170, %158, %cst_107 {dimension_numbers = #tpu.dot_dimension_numbers<[2], [1], [1], [2], [0, 0, 0, 1, 1, 2], [0], [0]>} : vector<2x8x8xf32>, vector<2x8x32xf32>, vector<2x8x32xf32> -> vector<2x8x32xf32>
    %172 = vector.shape_cast %171 : vector<2x8x32xf32> to vector<16x32xf32>
    %c4_108 = arith.constant 4 : index
    %c0_109 = arith.constant 0 : index
    %c0_110 = arith.constant 0 : index
    %173 = vector.load %arg7[%c4_108, %c0_109, %c0_110] : memref<8x32x256xf32, #tpu.memory_space<vmem>>, vector<1x32x256xf32>
    %174 = vector.shape_cast %173 : vector<1x32x256xf32> to vector<32x256xf32>
    %cst_111 = arith.constant dense<0.000000e+00> : vector<16x256xf32>
    %175 = tpu.matmul %172, %174, %cst_111 {dimension_numbers = #tpu.dot_dimension_numbers<[1], [0], [0], [1], [0, 0, 1, 1], [], []>} : vector<16x32xf32>, vector<32x256xf32>, vector<16x256xf32> -> vector<16x256xf32>
    %176 = arith.addf %146, %175 : vector<16x256xf32>
    %c5 = arith.constant 5 : index
    %c0_112 = arith.constant 0 : index
    %c0_113 = arith.constant 0 : index
    %177 = vector.load %arg4[%c5, %c0_112, %c0_113] : memref<8x256x32xf32, #tpu.memory_space<vmem>>, vector<1x256x32xf32>
    %178 = vector.shape_cast %177 : vector<1x256x32xf32> to vector<256x32xf32>
    %cst_114 = arith.constant dense<0.000000e+00> : vector<16x32xf32>
    %179 = tpu.matmul %25, %178, %cst_114 {dimension_numbers = #tpu.dot_dimension_numbers<[1], [0], [0], [1], [0, 0, 1, 1], [], []>} : vector<16x256xf32>, vector<256x32xf32>, vector<16x32xf32> -> vector<16x32xf32>
    %c5_115 = arith.constant 5 : index
    %c0_116 = arith.constant 0 : index
    %c0_117 = arith.constant 0 : index
    %180 = vector.load %arg5[%c5_115, %c0_116, %c0_117] : memref<8x256x32xf32, #tpu.memory_space<vmem>>, vector<1x256x32xf32>
    %181 = vector.shape_cast %180 : vector<1x256x32xf32> to vector<256x32xf32>
    %cst_118 = arith.constant dense<0.000000e+00> : vector<16x32xf32>
    %182 = tpu.matmul %25, %181, %cst_118 {dimension_numbers = #tpu.dot_dimension_numbers<[1], [0], [0], [1], [0, 0, 1, 1], [], []>} : vector<16x256xf32>, vector<256x32xf32>, vector<16x32xf32> -> vector<16x32xf32>
    %c5_119 = arith.constant 5 : index
    %c0_120 = arith.constant 0 : index
    %c0_121 = arith.constant 0 : index
    %183 = vector.load %arg6[%c5_119, %c0_120, %c0_121] : memref<8x256x32xf32, #tpu.memory_space<vmem>>, vector<1x256x32xf32>
    %184 = vector.shape_cast %183 : vector<1x256x32xf32> to vector<256x32xf32>
    %cst_122 = arith.constant dense<0.000000e+00> : vector<16x32xf32>
    %185 = tpu.matmul %25, %184, %cst_122 {dimension_numbers = #tpu.dot_dimension_numbers<[1], [0], [0], [1], [0, 0, 1, 1], [], []>} : vector<16x256xf32>, vector<256x32xf32>, vector<16x32xf32> -> vector<16x32xf32>
    %186 = vector.shape_cast %179 : vector<16x32xf32> to vector<2x8x32xf32>
    %187 = vector.shape_cast %182 : vector<16x32xf32> to vector<2x8x32xf32>
    %188 = vector.shape_cast %185 : vector<16x32xf32> to vector<2x8x32xf32>
    %cst_123 = arith.constant dense<0.000000e+00> : vector<2x8x8xf32>
    %189 = tpu.matmul %186, %187, %cst_123 {dimension_numbers = #tpu.dot_dimension_numbers<[2], [2], [1], [1], [0, 0, 0, 1, 1, 1], [0], [0]>} : vector<2x8x32xf32>, vector<2x8x32xf32>, vector<2x8x8xf32> -> vector<2x8x8xf32>
    %cst_124 = arith.constant dense<0xFF800000> : vector<2x8xf32>
    %190 = vector.multi_reduction <maximumf>, %189, %cst_124 [2] : vector<2x8x8xf32> to vector<2x8xf32>
    %cst_125 = arith.constant 0xFF800000 : f32
    %191 = vector.broadcast %cst_125 : f32 to vector<2x8xf32>
    %192 = arith.maximumf %191, %190 : vector<2x8xf32>
    %193 = vector.shape_cast %192 : vector<2x8xf32> to vector<2x8x1xf32>
    %194 = vector.broadcast %193 : vector<2x8x1xf32> to vector<2x8x8xf32>
    %195 = arith.subf %189, %194 : vector<2x8x8xf32>
    %196 = math.exp %195 : vector<2x8x8xf32>
    %cst_126 = arith.constant dense<0.000000e+00> : vector<2x8xf32>
    %197 = vector.multi_reduction <add>, %196, %cst_126 [2] : vector<2x8x8xf32> to vector<2x8xf32>
    %198 = vector.shape_cast %197 : vector<2x8xf32> to vector<2x8x1xf32>
    %199 = vector.broadcast %198 : vector<2x8x1xf32> to vector<2x8x8xf32>
    %200 = arith.divf %196, %199 : vector<2x8x8xf32>
    %cst_127 = arith.constant dense<0.000000e+00> : vector<2x8x32xf32>
    %201 = tpu.matmul %200, %188, %cst_127 {dimension_numbers = #tpu.dot_dimension_numbers<[2], [1], [1], [2], [0, 0, 0, 1, 1, 2], [0], [0]>} : vector<2x8x8xf32>, vector<2x8x32xf32>, vector<2x8x32xf32> -> vector<2x8x32xf32>
    %202 = vector.shape_cast %201 : vector<2x8x32xf32> to vector<16x32xf32>
    %c5_128 = arith.constant 5 : index
    %c0_129 = arith.constant 0 : index
    %c0_130 = arith.constant 0 : index
    %203 = vector.load %arg7[%c5_128, %c0_129, %c0_130] : memref<8x32x256xf32, #tpu.memory_space<vmem>>, vector<1x32x256xf32>
    %204 = vector.shape_cast %203 : vector<1x32x256xf32> to vector<32x256xf32>
    %cst_131 = arith.constant dense<0.000000e+00> : vector<16x256xf32>
    %205 = tpu.matmul %202, %204, %cst_131 {dimension_numbers = #tpu.dot_dimension_numbers<[1], [0], [0], [1], [0, 0, 1, 1], [], []>} : vector<16x32xf32>, vector<32x256xf32>, vector<16x256xf32> -> vector<16x256xf32>
    %206 = arith.addf %176, %205 : vector<16x256xf32>
    %c6 = arith.constant 6 : index
    %c0_132 = arith.constant 0 : index
    %c0_133 = arith.constant 0 : index
    %207 = vector.load %arg4[%c6, %c0_132, %c0_133] : memref<8x256x32xf32, #tpu.memory_space<vmem>>, vector<1x256x32xf32>
    %208 = vector.shape_cast %207 : vector<1x256x32xf32> to vector<256x32xf32>
    %cst_134 = arith.constant dense<0.000000e+00> : vector<16x32xf32>
    %209 = tpu.matmul %25, %208, %cst_134 {dimension_numbers = #tpu.dot_dimension_numbers<[1], [0], [0], [1], [0, 0, 1, 1], [], []>} : vector<16x256xf32>, vector<256x32xf32>, vector<16x32xf32> -> vector<16x32xf32>
    %c6_135 = arith.constant 6 : index
    %c0_136 = arith.constant 0 : index
    %c0_137 = arith.constant 0 : index
    %210 = vector.load %arg5[%c6_135, %c0_136, %c0_137] : memref<8x256x32xf32, #tpu.memory_space<vmem>>, vector<1x256x32xf32>
    %211 = vector.shape_cast %210 : vector<1x256x32xf32> to vector<256x32xf32>
    %cst_138 = arith.constant dense<0.000000e+00> : vector<16x32xf32>
    %212 = tpu.matmul %25, %211, %cst_138 {dimension_numbers = #tpu.dot_dimension_numbers<[1], [0], [0], [1], [0, 0, 1, 1], [], []>} : vector<16x256xf32>, vector<256x32xf32>, vector<16x32xf32> -> vector<16x32xf32>
    %c6_139 = arith.constant 6 : index
    %c0_140 = arith.constant 0 : index
    %c0_141 = arith.constant 0 : index
    %213 = vector.load %arg6[%c6_139, %c0_140, %c0_141] : memref<8x256x32xf32, #tpu.memory_space<vmem>>, vector<1x256x32xf32>
    %214 = vector.shape_cast %213 : vector<1x256x32xf32> to vector<256x32xf32>
    %cst_142 = arith.constant dense<0.000000e+00> : vector<16x32xf32>
    %215 = tpu.matmul %25, %214, %cst_142 {dimension_numbers = #tpu.dot_dimension_numbers<[1], [0], [0], [1], [0, 0, 1, 1], [], []>} : vector<16x256xf32>, vector<256x32xf32>, vector<16x32xf32> -> vector<16x32xf32>
    %216 = vector.shape_cast %209 : vector<16x32xf32> to vector<2x8x32xf32>
    %217 = vector.shape_cast %212 : vector<16x32xf32> to vector<2x8x32xf32>
    %218 = vector.shape_cast %215 : vector<16x32xf32> to vector<2x8x32xf32>
    %cst_143 = arith.constant dense<0.000000e+00> : vector<2x8x8xf32>
    %219 = tpu.matmul %216, %217, %cst_143 {dimension_numbers = #tpu.dot_dimension_numbers<[2], [2], [1], [1], [0, 0, 0, 1, 1, 1], [0], [0]>} : vector<2x8x32xf32>, vector<2x8x32xf32>, vector<2x8x8xf32> -> vector<2x8x8xf32>
    %cst_144 = arith.constant dense<0xFF800000> : vector<2x8xf32>
    %220 = vector.multi_reduction <maximumf>, %219, %cst_144 [2] : vector<2x8x8xf32> to vector<2x8xf32>
    %cst_145 = arith.constant 0xFF800000 : f32
    %221 = vector.broadcast %cst_145 : f32 to vector<2x8xf32>
    %222 = arith.maximumf %221, %220 : vector<2x8xf32>
    %223 = vector.shape_cast %222 : vector<2x8xf32> to vector<2x8x1xf32>
    %224 = vector.broadcast %223 : vector<2x8x1xf32> to vector<2x8x8xf32>
    %225 = arith.subf %219, %224 : vector<2x8x8xf32>
    %226 = math.exp %225 : vector<2x8x8xf32>
    %cst_146 = arith.constant dense<0.000000e+00> : vector<2x8xf32>
    %227 = vector.multi_reduction <add>, %226, %cst_146 [2] : vector<2x8x8xf32> to vector<2x8xf32>
    %228 = vector.shape_cast %227 : vector<2x8xf32> to vector<2x8x1xf32>
    %229 = vector.broadcast %228 : vector<2x8x1xf32> to vector<2x8x8xf32>
    %230 = arith.divf %226, %229 : vector<2x8x8xf32>
    %cst_147 = arith.constant dense<0.000000e+00> : vector<2x8x32xf32>
    %231 = tpu.matmul %230, %218, %cst_147 {dimension_numbers = #tpu.dot_dimension_numbers<[2], [1], [1], [2], [0, 0, 0, 1, 1, 2], [0], [0]>} : vector<2x8x8xf32>, vector<2x8x32xf32>, vector<2x8x32xf32> -> vector<2x8x32xf32>
    %232 = vector.shape_cast %231 : vector<2x8x32xf32> to vector<16x32xf32>
    %c6_148 = arith.constant 6 : index
    %c0_149 = arith.constant 0 : index
    %c0_150 = arith.constant 0 : index
    %233 = vector.load %arg7[%c6_148, %c0_149, %c0_150] : memref<8x32x256xf32, #tpu.memory_space<vmem>>, vector<1x32x256xf32>
    %234 = vector.shape_cast %233 : vector<1x32x256xf32> to vector<32x256xf32>
    %cst_151 = arith.constant dense<0.000000e+00> : vector<16x256xf32>
    %235 = tpu.matmul %232, %234, %cst_151 {dimension_numbers = #tpu.dot_dimension_numbers<[1], [0], [0], [1], [0, 0, 1, 1], [], []>} : vector<16x32xf32>, vector<32x256xf32>, vector<16x256xf32> -> vector<16x256xf32>
    %236 = arith.addf %206, %235 : vector<16x256xf32>
    %c7 = arith.constant 7 : index
    %c0_152 = arith.constant 0 : index
    %c0_153 = arith.constant 0 : index
    %237 = vector.load %arg4[%c7, %c0_152, %c0_153] : memref<8x256x32xf32, #tpu.memory_space<vmem>>, vector<1x256x32xf32>
    %238 = vector.shape_cast %237 : vector<1x256x32xf32> to vector<256x32xf32>
    %cst_154 = arith.constant dense<0.000000e+00> : vector<16x32xf32>
    %239 = tpu.matmul %25, %238, %cst_154 {dimension_numbers = #tpu.dot_dimension_numbers<[1], [0], [0], [1], [0, 0, 1, 1], [], []>} : vector<16x256xf32>, vector<256x32xf32>, vector<16x32xf32> -> vector<16x32xf32>
    %c7_155 = arith.constant 7 : index
    %c0_156 = arith.constant 0 : index
    %c0_157 = arith.constant 0 : index
    %240 = vector.load %arg5[%c7_155, %c0_156, %c0_157] : memref<8x256x32xf32, #tpu.memory_space<vmem>>, vector<1x256x32xf32>
    %241 = vector.shape_cast %240 : vector<1x256x32xf32> to vector<256x32xf32>
    %cst_158 = arith.constant dense<0.000000e+00> : vector<16x32xf32>
    %242 = tpu.matmul %25, %241, %cst_158 {dimension_numbers = #tpu.dot_dimension_numbers<[1], [0], [0], [1], [0, 0, 1, 1], [], []>} : vector<16x256xf32>, vector<256x32xf32>, vector<16x32xf32> -> vector<16x32xf32>
    %c7_159 = arith.constant 7 : index
    %c0_160 = arith.constant 0 : index
    %c0_161 = arith.constant 0 : index
    %243 = vector.load %arg6[%c7_159, %c0_160, %c0_161] : memref<8x256x32xf32, #tpu.memory_space<vmem>>, vector<1x256x32xf32>
    %244 = vector.shape_cast %243 : vector<1x256x32xf32> to vector<256x32xf32>
    %cst_162 = arith.constant dense<0.000000e+00> : vector<16x32xf32>
    %245 = tpu.matmul %25, %244, %cst_162 {dimension_numbers = #tpu.dot_dimension_numbers<[1], [0], [0], [1], [0, 0, 1, 1], [], []>} : vector<16x256xf32>, vector<256x32xf32>, vector<16x32xf32> -> vector<16x32xf32>
    %246 = vector.shape_cast %239 : vector<16x32xf32> to vector<2x8x32xf32>
    %247 = vector.shape_cast %242 : vector<16x32xf32> to vector<2x8x32xf32>
    %248 = vector.shape_cast %245 : vector<16x32xf32> to vector<2x8x32xf32>
    %cst_163 = arith.constant dense<0.000000e+00> : vector<2x8x8xf32>
    %249 = tpu.matmul %246, %247, %cst_163 {dimension_numbers = #tpu.dot_dimension_numbers<[2], [2], [1], [1], [0, 0, 0, 1, 1, 1], [0], [0]>} : vector<2x8x32xf32>, vector<2x8x32xf32>, vector<2x8x8xf32> -> vector<2x8x8xf32>
    %cst_164 = arith.constant dense<0xFF800000> : vector<2x8xf32>
    %250 = vector.multi_reduction <maximumf>, %249, %cst_164 [2] : vector<2x8x8xf32> to vector<2x8xf32>
    %cst_165 = arith.constant 0xFF800000 : f32
    %251 = vector.broadcast %cst_165 : f32 to vector<2x8xf32>
    %252 = arith.maximumf %251, %250 : vector<2x8xf32>
    %253 = vector.shape_cast %252 : vector<2x8xf32> to vector<2x8x1xf32>
    %254 = vector.broadcast %253 : vector<2x8x1xf32> to vector<2x8x8xf32>
    %255 = arith.subf %249, %254 : vector<2x8x8xf32>
    %256 = math.exp %255 : vector<2x8x8xf32>
    %cst_166 = arith.constant dense<0.000000e+00> : vector<2x8xf32>
    %257 = vector.multi_reduction <add>, %256, %cst_166 [2] : vector<2x8x8xf32> to vector<2x8xf32>
    %258 = vector.shape_cast %257 : vector<2x8xf32> to vector<2x8x1xf32>
    %259 = vector.broadcast %258 : vector<2x8x1xf32> to vector<2x8x8xf32>
    %260 = arith.divf %256, %259 : vector<2x8x8xf32>
    %cst_167 = arith.constant dense<0.000000e+00> : vector<2x8x32xf32>
    %261 = tpu.matmul %260, %248, %cst_167 {dimension_numbers = #tpu.dot_dimension_numbers<[2], [1], [1], [2], [0, 0, 0, 1, 1, 2], [0], [0]>} : vector<2x8x8xf32>, vector<2x8x32xf32>, vector<2x8x32xf32> -> vector<2x8x32xf32>
    %262 = vector.shape_cast %261 : vector<2x8x32xf32> to vector<16x32xf32>
    %c7_168 = arith.constant 7 : index
    %c0_169 = arith.constant 0 : index
    %c0_170 = arith.constant 0 : index
    %263 = vector.load %arg7[%c7_168, %c0_169, %c0_170] : memref<8x32x256xf32, #tpu.memory_space<vmem>>, vector<1x32x256xf32>
    %264 = vector.shape_cast %263 : vector<1x32x256xf32> to vector<32x256xf32>
    %cst_171 = arith.constant dense<0.000000e+00> : vector<16x256xf32>
    %265 = tpu.matmul %262, %264, %cst_171 {dimension_numbers = #tpu.dot_dimension_numbers<[1], [0], [0], [1], [0, 0, 1, 1], [], []>} : vector<16x32xf32>, vector<32x256xf32>, vector<16x256xf32> -> vector<16x256xf32>
    %266 = arith.addf %236, %265 : vector<16x256xf32>
    %267 = arith.addf %1, %266 : vector<16x256xf32>
    %c0_172 = arith.constant 0 : index
    %c0_173 = arith.constant 0 : index
    %268 = vector.load %arg8[%c0_172, %c0_173] : memref<1x256xf32, #tpu.memory_space<vmem>>, vector<1x256xf32>
    %269 = vector.broadcast %268 : vector<1x256xf32> to vector<16x256xf32>
    %270 = arith.addf %267, %269 : vector<16x256xf32>
    %c0_174 = arith.constant 0 : index
    %c0_175 = arith.constant 0 : index
    %271 = vector.load %arg9[%c0_174, %c0_175] : memref<1x256xf32, #tpu.memory_space<vmem>>, vector<1x256xf32>
    %c0_176 = arith.constant 0 : index
    %c0_177 = arith.constant 0 : index
    %272 = vector.load %arg10[%c0_176, %c0_177] : memref<1x256xf32, #tpu.memory_space<vmem>>, vector<1x256xf32>
    %cst_178 = arith.constant dense<0.000000e+00> : vector<16xf32>
    %273 = vector.multi_reduction <add>, %270, %cst_178 [1] : vector<16x256xf32> to vector<16xf32>
    %274 = vector.shape_cast %273 : vector<16xf32> to vector<16x1xf32>
    %cst_179 = arith.constant 2.560000e+02 : f32
    %275 = vector.broadcast %cst_179 : f32 to vector<16x1xf32>
    %276 = arith.divf %274, %275 : vector<16x1xf32>
    %277 = vector.broadcast %276 : vector<16x1xf32> to vector<16x256xf32>
    %278 = arith.subf %270, %277 : vector<16x256xf32>
    %279 = arith.mulf %278, %278 : vector<16x256xf32>
    %cst_180 = arith.constant dense<0.000000e+00> : vector<16xf32>
    %280 = vector.multi_reduction <add>, %279, %cst_180 [1] : vector<16x256xf32> to vector<16xf32>
    %281 = vector.shape_cast %280 : vector<16xf32> to vector<16x1xf32>
    %cst_181 = arith.constant 2.560000e+02 : f32
    %282 = vector.broadcast %cst_181 : f32 to vector<16x1xf32>
    %283 = arith.divf %281, %282 : vector<16x1xf32>
    %284 = vector.broadcast %276 : vector<16x1xf32> to vector<16x256xf32>
    %285 = arith.subf %270, %284 : vector<16x256xf32>
    %cst_182 = arith.constant 9.99999974E-6 : f32
    %286 = vector.broadcast %cst_182 : f32 to vector<16x1xf32>
    %287 = arith.addf %283, %286 : vector<16x1xf32>
    %288 = math.rsqrt %287 : vector<16x1xf32>
    %289 = vector.broadcast %288 : vector<16x1xf32> to vector<16x256xf32>
    %290 = arith.mulf %285, %289 : vector<16x256xf32>
    %291 = vector.broadcast %271 : vector<1x256xf32> to vector<16x256xf32>
    %292 = arith.mulf %290, %291 : vector<16x256xf32>
    %293 = vector.broadcast %272 : vector<1x256xf32> to vector<16x256xf32>
    %294 = arith.addf %292, %293 : vector<16x256xf32>
    %c0_183 = arith.constant 0 : index
    %c0_184 = arith.constant 0 : index
    %295 = vector.load %arg11[%c0_183, %c0_184] : memref<256x1024xf32, #tpu.memory_space<vmem>>, vector<256x1024xf32>
    %cst_185 = arith.constant dense<0.000000e+00> : vector<16x1024xf32>
    %296 = tpu.matmul %294, %295, %cst_185 {dimension_numbers = #tpu.dot_dimension_numbers<[1], [0], [0], [1], [0, 0, 1, 1], [], []>} : vector<16x256xf32>, vector<256x1024xf32>, vector<16x1024xf32> -> vector<16x1024xf32>
    %c0_186 = arith.constant 0 : index
    %c0_187 = arith.constant 0 : index
    %297 = vector.load %arg12[%c0_186, %c0_187] : memref<1x1024xf32, #tpu.memory_space<vmem>>, vector<1x1024xf32>
    %298 = vector.broadcast %297 : vector<1x1024xf32> to vector<16x1024xf32>
    %299 = arith.addf %296, %298 : vector<16x1024xf32>
    %cst_188 = arith.constant 0.000000e+00 : f32
    %300 = vector.broadcast %cst_188 : f32 to vector<16x1024xf32>
    %301 = arith.maximumf %299, %300 : vector<16x1024xf32>
    %c0_189 = arith.constant 0 : index
    %c0_190 = arith.constant 0 : index
    %302 = vector.load %arg13[%c0_189, %c0_190] : memref<1024x256xf32, #tpu.memory_space<vmem>>, vector<1024x256xf32>
    %cst_191 = arith.constant dense<0.000000e+00> : vector<16x256xf32>
    %303 = tpu.matmul %301, %302, %cst_191 {dimension_numbers = #tpu.dot_dimension_numbers<[1], [0], [0], [1], [0, 0, 1, 1], [], []>} : vector<16x1024xf32>, vector<1024x256xf32>, vector<16x256xf32> -> vector<16x256xf32>
    %c0_192 = arith.constant 0 : index
    %c0_193 = arith.constant 0 : index
    %304 = vector.load %arg14[%c0_192, %c0_193] : memref<1x256xf32, #tpu.memory_space<vmem>>, vector<1x256xf32>
    %305 = vector.broadcast %304 : vector<1x256xf32> to vector<16x256xf32>
    %306 = arith.addf %303, %305 : vector<16x256xf32>
    %307 = arith.addf %270, %306 : vector<16x256xf32>
    %308 = vector.shape_cast %307 : vector<16x256xf32> to vector<2x8x256xf32>
    %c0_194 = arith.constant 0 : index
    %c0_195 = arith.constant 0 : index
    %c0_196 = arith.constant 0 : index
    %309 = vector.load %arg15[%c0_194, %c0_195, %c0_196] : memref<2x8x256xf32, #tpu.memory_space<vmem>>, vector<2x8x256xf32>
    tpu.vector_store %arg15[%c0_194, %c0_195, %c0_196], %308 {strides = array<i32>} : memref<2x8x256xf32, #tpu.memory_space<vmem>>, vector<2x8x256xf32>,
    return
  }
  func.func @transform_0(%arg0: i32) -> (i32, i32, i32) {
    %c0_i32 = arith.constant 0 : i32
    %c0_i32_0 = arith.constant 0 : i32
    %c0_i32_1 = arith.constant 0 : i32
    return %arg0, %c0_i32, %c0_i32_0 : i32, i32, i32
  }
  func.func @transform_1(%arg0: i32) -> (i32, i32) {
    %c0_i32 = arith.constant 0 : i32
    %c0_i32_0 = arith.constant 0 : i32
    %c0_i32_1 = arith.constant 0 : i32
    return %c0_i32, %c0_i32_0 : i32, i32
  }
  func.func @transform_2(%arg0: i32) -> (i32, i32) {
    %c0_i32 = arith.constant 0 : i32
    %c0_i32_0 = arith.constant 0 : i32
    %c0_i32_1 = arith.constant 0 : i32
    return %c0_i32, %c0_i32_0 : i32, i32
  }
  func.func @transform_3(%arg0: i32) -> (i32, i32, i32) {
    %c0_i32 = arith.constant 0 : i32
    %c0_i32_0 = arith.constant 0 : i32
    %c0_i32_1 = arith.constant 0 : i32
    %c0_i32_2 = arith.constant 0 : i32
    return %c0_i32, %c0_i32_0, %c0_i32_1 : i32, i32, i32
  }
  func.func @transform_4(%arg0: i32) -> (i32, i32, i32) {
    %c0_i32 = arith.constant 0 : i32
    %c0_i32_0 = arith.constant 0 : i32
    %c0_i32_1 = arith.constant 0 : i32
    %c0_i32_2 = arith.constant 0 : i32
    return %c0_i32, %c0_i32_0, %c0_i32_1 : i32, i32, i32
  }
  func.func @transform_5(%arg0: i32) -> (i32, i32, i32) {
    %c0_i32 = arith.constant 0 : i32
    %c0_i32_0 = arith.constant 0 : i32
    %c0_i32_1 = arith.constant 0 : i32
    %c0_i32_2 = arith.constant 0 : i32
    return %c0_i32, %c0_i32_0, %c0_i32_1 : i32, i32, i32
  }
  func.func @transform_6(%arg0: i32) -> (i32, i32, i32) {
    %c0_i32 = arith.constant 0 : i32
    %c0_i32_0 = arith.constant 0 : i32
    %c0_i32_1 = arith.constant 0 : i32
    %c0_i32_2 = arith.constant 0 : i32
    return %c0_i32, %c0_i32_0, %c0_i32_1 : i32, i32, i32
  }
  func.func @transform_7(%arg0: i32) -> (i32, i32) {
    %c0_i32 = arith.constant 0 : i32
    %c0_i32_0 = arith.constant 0 : i32
    %c0_i32_1 = arith.constant 0 : i32
    return %c0_i32, %c0_i32_0 : i32, i32
  }
  func.func @transform_8(%arg0: i32) -> (i32, i32) {
    %c0_i32 = arith.constant 0 : i32
    %c0_i32_0 = arith.constant 0 : i32
    %c0_i32_1 = arith.constant 0 : i32
    return %c0_i32, %c0_i32_0 : i32, i32
  }
  func.func @transform_9(%arg0: i32) -> (i32, i32) {
    %c0_i32 = arith.constant 0 : i32
    %c0_i32_0 = arith.constant 0 : i32
    %c0_i32_1 = arith.constant 0 : i32
    return %c0_i32, %c0_i32_0 : i32, i32
  }
  func.func @transform_10(%arg0: i32) -> (i32, i32) {
    %c0_i32 = arith.constant 0 : i32
    %c0_i32_0 = arith.constant 0 : i32
    %c0_i32_1 = arith.constant 0 : i32
    return %c0_i32, %c0_i32_0 : i32, i32
  }
  func.func @transform_11(%arg0: i32) -> (i32, i32) {
    %c0_i32 = arith.constant 0 : i32
    %c0_i32_0 = arith.constant 0 : i32
    %c0_i32_1 = arith.constant 0 : i32
    return %c0_i32, %c0_i32_0 : i32, i32
  }
  func.func @transform_12(%arg0: i32) -> (i32, i32) {
    %c0_i32 = arith.constant 0 : i32
    %c0_i32_0 = arith.constant 0 : i32
    %c0_i32_1 = arith.constant 0 : i32
    return %c0_i32, %c0_i32_0 : i32, i32
  }
  func.func @transform_13(%arg0: i32) -> (i32, i32) {
    %c0_i32 = arith.constant 0 : i32
    %c0_i32_0 = arith.constant 0 : i32
    %c0_i32_1 = arith.constant 0 : i32
    return %c0_i32, %c0_i32_0 : i32, i32
  }
  func.func @transform_14(%arg0: i32) -> (i32, i32, i32) {
    %c0_i32 = arith.constant 0 : i32
    %c0_i32_0 = arith.constant 0 : i32
    %c0_i32_1 = arith.constant 0 : i32
    return %arg0, %c0_i32, %c0_i32_0 : i32, i32, i32
  }
}

</mosaic_0001>

<bundles_post_ra>
// kernel: tpu_custom_call.1
= control target key start
LH: loop header
LB: loop body
LE: loop exit
PB: predicated region body
PF: predicated region fallthrough
CT: control target
= control target key end

     0   :  { %s14036_s0 = inlined_call_operand.vmem [shape: f32[2,8,256], index: 0, kind: input, shape index: {}]   ;;  %s14037_s1 = inlined_call_operand.vmem [shape: f32[1,256], index: 1, kind: input, shape index: {}]   ;;  %s14038_s2 = inlined_call_operand.vmem [shape: f32[1,256], index: 2, kind: input, shape index: {}]   ;;  %s14039_s3 = inlined_call_operand.vmem [shape: f32[8,256,32], index: 3, kind: input, shape index: {}]   ;;  %s14040_s4 = inlined_call_operand.vmem [shape: f32[8,256,32], index: 4, kind: input, shape index: {}]   ;;  %s14041_s5 = inlined_call_operand.vmem [shape: f32[8,256,32], index: 5, kind: input, shape index: {}]   ;;  %s14042_s6 = inlined_call_operand.vmem [shape: f32[8,32,256], index: 6, kind: input, shape index: {}]   ;;  %s14043_s7 = inlined_call_operand.vmem [shape: f32[1,256], index: 7, kind: input, shape index: {}]   ;;  %s14044_s8 = inlined_call_operand.vmem [shape: f32[1,256], index: 8, kind: input, shape index: {}]   ;;  %s14045_s9 = inlined_call_operand.vmem [shape: f32[1,256], index: 9, kind: input, shape index: {}]   ;;  %s14046_s10 = inlined_call_operand.vmem [shape: f32[256,1024], index: 10, kind: input, shape index: {}]   ;;  %s14047_s11 = inlined_call_operand.vmem [shape: f32[1,1024], index: 11, kind: input, shape index: {}]   ;;  %s14048_s12 = inlined_call_operand.vmem [shape: f32[1024,256], index: 12, kind: input, shape index: {}]   ;;  %s14049_s13 = inlined_call_operand.vmem [shape: f32[1,256], index: 13, kind: input, shape index: {}]   ;;  %s14050_s14 = inlined_call_operand.hbm [shape: f32[2,8,256], index: 14, kind: output, shape index: {}]  }
   0x1   :  { %v48_v0 = vld [vmem:[%s14036_s0] sm:$0xff]  ;;  %v49_v1 = vld [vmem:[%s14036_s0 + $0x8] sm:$0xff]  ;;  %v50_v2 = vld [vmem:[%s14036_s0 + $0x10] sm:$0xff] }
   0x2   :  { %v54_v3 = vadd.f32 %v49_v1, %v48_v0  ;;  %v51_v4 = vld [vmem:[%s14036_s0 + $0x18] sm:$0xff] }
   0x3   :  { %19 = vsyncpa [#allocation3], 0  ;;  %v57_v5 = vadd.f32 %v51_v4, %v50_v2  ;;  %v148_v6 = vld [vmem:[%s14039_s3 + $0xf8] sm:$0xff]  ;;  %v147_v9 = vld [vmem:[%s14039_s3 + $0xf0] sm:$0xff]  ;;  %vm9365_vm0 = vmmov 0   ;;  %vm438_vm1 = vcmask 261120  }
   0x4   :  { %55 = vadd.xlane.f32.xlu0 %v54_v3  ;;  %v132_v7 = vld [vmem:[%s14039_s3 + $0x78] sm:$0xff]  ;;  %8125 = vmatprep.subr.mxu0 %v148_v6  ;;  %v131_v11 = vld [vmem:[%s14039_s3 + $0x70] sm:$0xff]  ;;  %v146_v13 = vld [vmem:[%s14039_s3 + $0xe8] sm:$0xff]  ;;  %vm591_vm2 = vcmask 64512  }
   0x5   :  { %v255_v8 = vld [vmem:[%s14040_s4 + $0xf8] sm:$0xff]  ;;  %8126 = vmatpush3.msra.mxu0 %v132_v7  ;;  %v254_v12 = vld [vmem:[%s14040_s4 + $0xf0] sm:$0xff]  ;;  %v130_v15 = vld [vmem:[%s14039_s3 + $0x68] sm:$0xff] }
   0x6   :  { %8163 = vmatprep.subr.mxu1 %v255_v8  ;;  %v239_v10 = vld [vmem:[%s14040_s4 + $0x78] sm:$0xff]  ;;  %v238_v14 = vld [vmem:[%s14040_s4 + $0x70] sm:$0xff]  ;;  %8127 = vmatprep.subr.mxu0 %v147_v9  ;;  %v253_v16 = vld [vmem:[%s14040_s4 + $0xe8] sm:$0xff] }
   0x7   :  { %8164 = vmatpush3.msra.mxu1 %v239_v10  ;;  %8128 = vmatpush3.msra.mxu0 %v131_v11  ;;  %v145_v17 = vld [vmem:[%s14039_s3 + $0xe0] sm:$0xff]  ;;  %v237_v18 = vld [vmem:[%s14040_s4 + $0x68] sm:$0xff]  ;;  %v144_v35 = vld [vmem:[%s14039_s3 + $0xd8] sm:$0xff] }
   0x8   :  { %58 = vadd.xlane.f32.xlu0 %v57_v5  ;;  %8165 = vmatprep.subr.mxu1 %v254_v12  ;;  %v252_v19 = vld [vmem:[%s14040_s4 + $0xe0] sm:$0xff]  ;;  %v128_v37 = vld [vmem:[%s14039_s3 + $0x58] sm:$0xff]  ;;  %v143_v39 = vld [vmem:[%s14039_s3 + $0xd0] sm:$0xff] }
   0x9   :  { %8166 = vmatpush3.msra.mxu1 %v238_v14  ;;  %8129 = vmatprep.subr.mxu0 %v146_v13  ;;  %v129_v20 = vld [vmem:[%s14039_s3 + $0x60] sm:$0xff]  ;;  %v251_v38 = vld [vmem:[%s14040_s4 + $0xd8] sm:$0xff]  ;;  %v127_v41 = vld [vmem:[%s14039_s3 + $0x50] sm:$0xff] }
   0xa   :  { %8167 = vmatprep.subr.mxu1 %v253_v16  ;;  %8130 = vmatpush3.msra.mxu0 %v130_v15  ;;  %v236_v36 = vld [vmem:[%s14040_s4 + $0x60] sm:$0xff]  ;;  %v235_v40 = vld [vmem:[%s14040_s4 + $0x58] sm:$0xff]  ;;  %v250_v42 = vld [vmem:[%s14040_s4 + $0xd0] sm:$0xff] }
   0xb   :  { %8168 = vmatpush3.msra.mxu1 %v237_v18  ;;  %8131 = vmatprep.subr.mxu0 %v145_v17  ;;  %v142_v43 = vld [vmem:[%s14039_s3 + $0xc8] sm:$0xff]  ;;  %v234_v44 = vld [vmem:[%s14040_s4 + $0x50] sm:$0xff]  ;;  %v141_v47 = vld [vmem:[%s14039_s3 + $0xc0] sm:$0xff] }
   0xc   :  { %8169 = vmatprep.subr.mxu1 %v252_v19  ;;  %8132 = vmatpush3.msra.mxu0 %v129_v20  ;;  %v126_v45 = vld [vmem:[%s14039_s3 + $0x48] sm:$0xff]  ;;  %v125_v49 = vld [vmem:[%s14039_s3 + $0x40] sm:$0xff]  ;;  %v140_v51 = vld [vmem:[%s14039_s3 + $0xb8] sm:$0xff] }
   0xd   :  { %8133 = vmatprep.subr.mxu0 %v144_v35  ;;  %8170 = vmatpush3.msra.mxu1 %v236_v36  ;;  %v249_v46 = vld [vmem:[%s14040_s4 + $0xc8] sm:$0xff]  ;;  %v248_v50 = vld [vmem:[%s14040_s4 + $0xc0] sm:$0xff]  ;;  %v124_v53 = vld [vmem:[%s14039_s3 + $0x38] sm:$0xff] }
   0xe   :  { %8134 = vmatpush3.msra.mxu0 %v128_v37  ;;  %8171 = vmatprep.subr.mxu1 %v251_v38  ;;  %v233_v48 = vld [vmem:[%s14040_s4 + $0x48] sm:$0xff]  ;;  %v232_v52 = vld [vmem:[%s14040_s4 + $0x40] sm:$0xff]  ;;  %v247_v54 = vld [vmem:[%s14040_s4 + $0xb8] sm:$0xff] }
   0xf   :  { %8135 = vmatprep.subr.mxu0 %v143_v39  ;;  %8172 = vmatpush3.msra.mxu1 %v235_v40  ;;  %v139_v55 = vld [vmem:[%s14039_s3 + $0xb0] sm:$0xff]  ;;  %v231_v56 = vld [vmem:[%s14040_s4 + $0x38] sm:$0xff]  ;;  %v138_v59 = vld [vmem:[%s14039_s3 + $0xa8] sm:$0xff] }
  0x10   :  { %8136 = vmatpush3.msra.mxu0 %v127_v41  ;;  %8173 = vmatprep.subr.mxu1 %v250_v42  ;;  %v123_v57 = vld [vmem:[%s14039_s3 + $0x30] sm:$0xff]  ;;  %v122_v61 = vld [vmem:[%s14039_s3 + $0x28] sm:$0xff]  ;;  %v137_v63 = vld [vmem:[%s14039_s3 + $0xa0] sm:$0xff] }
  0x11   :  { %8137 = vmatprep.subr.mxu0 %v142_v43  ;;  %8174 = vmatpush3.msra.mxu1 %v234_v44  ;;  %v246_v58 = vld [vmem:[%s14040_s4 + $0xb0] sm:$0xff]  ;;  %v245_v62 = vld [vmem:[%s14040_s4 + $0xa8] sm:$0xff]  ;;  %v136_v3 = vld [vmem:[%s14039_s3 + $0x98] sm:$0xff] }
  0x12   :  { %8138 = vmatpush3.msra.mxu0 %v126_v45  ;;  %8175 = vmatprep.subr.mxu1 %v249_v46  ;;  %v230_v60 = vld [vmem:[%s14040_s4 + $0x30] sm:$0xff]  ;;  %v120_v5 = vld [vmem:[%s14039_s3 + $0x18] sm:$0xff]  ;;  %v134_v11 = vld [vmem:[%s14039_s3 + $0x88] sm:$0xff] }
  0x13   :  { %8139 = vmatprep.subr.mxu0 %v141_v47  ;;  %8176 = vmatpush3.msra.mxu1 %v233_v48  ;;  %v243_v6 = vld [vmem:[%s14040_s4 + $0x98] sm:$0xff]  ;;  %v135_v7 = vld [vmem:[%s14039_s3 + $0x90] sm:$0xff]  ;;  %v118_v13 = vld [vmem:[%s14039_s3 + $0x8] sm:$0xff] }
  0x14   :  { %8140 = vmatpush3.msra.mxu0 %v125_v49  ;;  %8177 = vmatprep.subr.mxu1 %v248_v50  ;;  %v227_v8 = vld [vmem:[%s14040_s4 + $0x18] sm:$0xff]  ;;  %v119_v9 = vld [vmem:[%s14039_s3 + $0x10] sm:$0xff]  ;;  %v241_v14 = vld [vmem:[%s14040_s4 + $0x88] sm:$0xff] }
  0x15   :  { %8141 = vmatprep.subr.mxu0 %v140_v51  ;;  %8178 = vmatpush3.msra.mxu1 %v232_v52  ;;  %v242_v10 = vld [vmem:[%s14040_s4 + $0x90] sm:$0xff]  ;;  %v133_v15 = vld [vmem:[%s14039_s3 + $0x80] sm:$0xff]  ;;  %v225_v16 = vld [vmem:[%s14040_s4 + $0x8] sm:$0xff] }
  0x16   :  { %8142 = vmatpush3.msra.mxu0 %v124_v53  ;;  %8179 = vmatprep.subr.mxu1 %v247_v54  ;;  %v226_v12 = vld [vmem:[%s14040_s4 + $0x10] sm:$0xff]  ;;  %v117_v17 = vld [vmem:[%s14039_s3] sm:$0xff]  ;;  %v362_v20 = vld [vmem:[%s14041_s5 + $0xf8] sm:$0xff] }
  0x17   :  { %8143 = vmatprep.subr.mxu0 %v139_v55  ;;  %8180 = vmatpush3.msra.mxu1 %v231_v56  ;;  %v240_v18 = vld [vmem:[%s14040_s4 + $0x80] sm:$0xff]  ;;  %v346_v51 = vld [vmem:[%s14041_s5 + $0x78] sm:$0xff]  ;;  %v360_v54 = vld [vmem:[%s14041_s5 + $0xe8] sm:$0xff] }
  0x18   :  { %8144 = vmatpush3.msra.mxu0 %v123_v57  ;;  %8181 = vmatprep.subr.mxu1 %v246_v58  ;;  %v224_v19 = vld [vmem:[%s14040_s4] sm:$0xff]  ;;  %v344_v55 = vld [vmem:[%s14041_s5 + $0x68] sm:$0xff]  ;;  %v358_v58 = vld [vmem:[%s14041_s5 + $0xd8] sm:$0xff] }
  0x19   :  { %8145 = vmatprep.subr.mxu0 %v138_v59  ;;  %8182 = vmatpush3.msra.mxu1 %v230_v60  ;;  %v52_v35 = vld [vmem:[%s14037_s1] sm:$0x3]  ;;  %v342_v59 = vld [vmem:[%s14041_s5 + $0x58] sm:$0xff]  ;;  %v357_v60 = vld [vmem:[%s14041_s5 + $0xd0] sm:$0xff] }
  0x1a   :  { %8146 = vmatpush3.msra.mxu0 %v122_v61  ;;  %8183 = vmatprep.subr.mxu1 %v245_v62  ;;  %v53_v36 = vld [vmem:[%s14038_s2] sm:$0x3]  ;;  %v341_v61 = vld [vmem:[%s14041_s5 + $0x50] sm:$0xff]  ;;  %v356_v62 = vld [vmem:[%s14041_s5 + $0xc8] sm:$0xff] }
  0x1b   :  { %8147 = vmatprep.subr.mxu0 %v137_v63  ;;  %v359_v56 = vld [vmem:[%s14041_s5 + $0xe0] sm:$0xff]  ;;  %v340_v63 = vld [vmem:[%s14041_s5 + $0x48] sm:$0xff] }
  0x1c   :  { %v343_v57 = vld [vmem:[%s14041_s5 + $0x60] sm:$0xff] }
  0x8d   :  { %v56_v21 = vpop.xlane.xlu0 %55 }
  0x8e   :  { %v61_v22 = vmul.f32 0.00390625, %v56_v21 }
  0x90   :  { %v9501_v23 = vsub.f32 %v48_v0, %v61_v22  ;;  %v9503_v24 = vsub.f32 %v49_v1, %v61_v22  ;;  %v229_v0 = vld [vmem:[%s14040_s4 + $0x28] sm:$0xff]  ;;  %v121_v1 = vld [vmem:[%s14039_s3 + $0x20] sm:$0xff] }
  0x91   :  { %v59_v25 = vpop.xlane.xlu0 %58  ;;  %8184 = vmatpush3.msra.mxu1 %v229_v0  ;;  %8148 = vmatpush3.msra.mxu0 %v121_v1  ;;  %v355_v0 = vld [vmem:[%s14041_s5 + $0xc0] sm:$0xff] }
  0x92   :  { %v62_v26 = vmul.f32 0.00390625, %v59_v25  ;;  %v67_v27 = vmul.f32 %v9501_v23, %v9501_v23  ;;  %v68_v28 = vmul.f32 %v9503_v24, %v9503_v24  ;;  %8149 = vmatprep.subr.mxu0 %v136_v3  ;;  %v339_v1 = vld [vmem:[%s14041_s5 + $0x40] sm:$0xff]  ;;  %v338_v3 = vld [vmem:[%s14041_s5 + $0x38] sm:$0xff] }
  0x93   :  { %8150 = vmatpush3.msra.mxu0 %v120_v5  ;;  %v337_v5 = vld [vmem:[%s14041_s5 + $0x30] sm:$0xff] }
  0x94   :  { %v9509_v29 = vsub.f32 %v50_v2, %v62_v26  ;;  %v9511_v30 = vsub.f32 %v51_v4, %v62_v26  ;;  %v71_v31 = vadd.f32 %v68_v28, %v67_v27  ;;  %v244_v2 = vld [vmem:[%s14040_s4 + $0xa0] sm:$0xff]  ;;  %8151 = vmatprep.subr.mxu0 %v135_v7  ;;  %v88_v27 = vlaneseq  ;;  %v336_v7 = vld [vmem:[%s14041_s5 + $0x28] sm:$0xff] }
  0x95   :  { %8185 = vmatprep.subr.mxu1 %v244_v2  ;;  %v228_v4 = vld [vmem:[%s14040_s4 + $0x20] sm:$0xff]  ;;  %8152 = vmatpush3.msra.mxu0 %v119_v9  ;;  %v354_v2 = vld [vmem:[%s14041_s5 + $0xb8] sm:$0xff] }
  0x96   :  { %72 = vadd.xlane.f32.xlu1 %v71_v31  ;;  %v69_v32 = vmul.f32 %v9509_v29, %v9509_v29  ;;  %v70_v33 = vmul.f32 %v9511_v30, %v9511_v30  ;;  %8186 = vmatpush3.msra.mxu1 %v228_v4  ;;  %v353_v4 = vld [vmem:[%s14041_s5 + $0xb0] sm:$0xff]  ;;  %v335_v9 = vld [vmem:[%s14041_s5 + $0x20] sm:$0xff] }
  0x97   :  { %8187 = vmatprep.subr.mxu1 %v243_v6  ;;  %8153 = vmatprep.subr.mxu0 %v134_v11  ;;  %v352_v6 = vld [vmem:[%s14041_s5 + $0xa8] sm:$0xff]  ;;  %v334_v11 = vld [vmem:[%s14041_s5 + $0x18] sm:$0xff] }
  0x98   :  { %v74_v34 = vadd.f32 %v70_v33, %v69_v32  ;;  %8188 = vmatpush3.msra.mxu1 %v227_v8  ;;  %8154 = vmatpush3.msra.mxu0 %v118_v13  ;;  %v9667_v32 = vshrl.u32 %v88_v27, 7  ;;  %v351_v8 = vld [vmem:[%s14041_s5 + $0xa0] sm:$0xff]  ;;  %v333_v13 = vld [vmem:[%s14041_s5 + $0x10] sm:$0xff] }
  0x99   :  { %8189 = vmatprep.subr.mxu1 %v242_v10  ;;  %8155 = vmatprep.subr.mxu0 %v133_v15  ;;  %v350_v10 = vld [vmem:[%s14041_s5 + $0x98] sm:$0xff]  ;;  %v332_v15 = vld [vmem:[%s14041_s5 + $0x8] sm:$0xff]  ;;  %v7383_v27 = vld [vmem:[%s14040_s4 + $0x160] sm:$0xff] }
  0x9a   :  { %75 = vadd.xlane.f32.xlu1 %v74_v34  ;;  %8190 = vmatpush3.msra.mxu1 %v226_v12  ;;  %v9670_v33 = vsub.s32 0, %v9667_v32  ;;  %v9673_v34 = vsub.s32 1, %v9667_v32  ;;  %v349_v12 = vld [vmem:[%s14041_s5 + $0x90] sm:$0xff] }
  0x9b   :  { %8191 = vmatprep.subr.mxu1 %v241_v14  ;;  %8156 = vmatpush3.msra.mxu0 %v117_v17  ;;  %v348_v14 = vld [vmem:[%s14041_s5 + $0x88] sm:$0xff]  ;;  %v331_v17 = vld [vmem:[%s14041_s5] sm:$0xff] }
  0x9c   :  { %8192 = vmatpush3.msra.mxu1 %v225_v16  ;;  %8201 = vmatprep.subr.mxu0 %v362_v20  ;;  %v91_v37 = vrot.slane %v52_v35, %v9670_v33  ;;  %v95_v38 = vrot.slane %v52_v35, %v9673_v34  ;;  %v106_v40 = vrot.slane %v53_v36, %v9670_v33  ;;  %v347_v16 = vld [vmem:[%s14041_s5 + $0x80] sm:$0xff]  ;;  %v7401_v20 = vld [vmem:[%s14040_s4 + $0x1f0] sm:$0xff] }
  0x9d   :  { %8193 = vmatprep.subr.mxu1 %v240_v18  ;;  %v110_v41 = vrot.slane %v53_v36, %v9673_v34  ;;  %v7402_v18 = vld [vmem:[%s14040_s4 + $0x1f8] sm:$0xff]  ;;  %v7397_v35 = vld [vmem:[%s14040_s4 + $0x1d0] sm:$0xff] }
  0x9e   :  { %8194 = vmatpush3.msra.mxu1 %v224_v19  ;;  %v7386_v19 = vld [vmem:[%s14040_s4 + $0x178] sm:$0xff]  ;;  %v7381_v36 = vld [vmem:[%s14040_s4 + $0x150] sm:$0xff] }
 0x11f   :  { %v73_v21 = vpop.xlane.xlu1 %72 }
 0x120   :  { %v77_v22 = vmul.f32 0.00390625, %v73_v21  ;;  %v7385_v21 = vld [vmem:[%s14040_s4 + $0x170] sm:$0xff] }
 0x122   :  { %v79_v25 = vadd.f32 1e-05, %v77_v22  ;;  %v7400_v22 = vld [vmem:[%s14040_s4 + $0x1e8] sm:$0xff] }
 0x123   :  { %v76_v26 = vpop.xlane.xlu1 %75 }
 0x124   :  { %9266 = vrsqrt.f32 %v79_v25  ;;  %v78_v28 = vmul.f32 0.00390625, %v76_v26  ;;  %v7384_v25 = vld [vmem:[%s14040_s4 + $0x168] sm:$0xff]  ;;  %v7399_v26 = vld [vmem:[%s14040_s4 + $0x1e0] sm:$0xff] }
 0x126   :  { %v80_v31 = vadd.f32 1e-05, %v78_v28  ;;  %v7398_v28 = vld [vmem:[%s14040_s4 + $0x1d8] sm:$0xff] }
 0x128   :  { %9268 = vrsqrt.f32 %v80_v31  ;;  %v7382_v31 = vld [vmem:[%s14040_s4 + $0x158] sm:$0xff] }
 0x131   :  { %v9267_v39 = vpop.eup %9266 }
 0x132   :  { %v83_v42 = vmul.f32 %v9267_v39, %v9501_v23  ;;  %v84_v43 = vmul.f32 %v9267_v39, %v9503_v24  ;;  %v361_v23 = vld [vmem:[%s14041_s5 + $0xf0] sm:$0xff]  ;;  %v7395_v39 = vld [vmem:[%s14040_s4 + $0x1c0] sm:$0xff] }
 0x133   :  { %v345_v24 = vld [vmem:[%s14041_s5 + $0x70] sm:$0xff] }
 0x134   :  { %v98_v44 = vmul.f32 %v91_v37, %v83_v42  ;;  %v99_v45 = vmul.f32 %v95_v38, %v84_v43  ;;  %v7378_v42 = vld [vmem:[%s14040_s4 + $0x138] sm:$0xff]  ;;  %v7393_v43 = vld [vmem:[%s14040_s4 + $0x1b0] sm:$0xff] }
 0x135   :  { %v9269_v46 = vpop.eup %9268 }
 0x136   :  { %v9687_v47 = vadd.f32 %v106_v40, %v98_v44  ;;  %v9689_v48 = vadd.f32 %v110_v41, %v99_v45  ;;  %v85_v49 = vmul.f32 %v9269_v46, %v9509_v29  ;;  %v86_v50 = vmul.f32 %v9269_v46, %v9511_v30  ;;  %v7377_v44 = vld [vmem:[%s14040_s4 + $0x130] sm:$0xff]  ;;  %v7392_v45 = vld [vmem:[%s14040_s4 + $0x1a8] sm:$0xff] }
 0x137   :  { %v7376_v46 = vld [vmem:[%s14040_s4 + $0x128] sm:$0xff] }
 0x138   :  { %v100_v52 = vmul.f32 %v91_v37, %v85_v49  ;;  %v101_v53 = vmul.f32 %v95_v38, %v86_v50  ;;  %213 = vmatprep.mubr.f32.mxu0 %v9689_v48  ;;  %320 = vmatprep.mubr.f32.mxu1 %v9689_v48  ;;  %v7396_v37 = vld [vmem:[%s14040_s4 + $0x1c8] sm:$0xff]  ;;  %v7391_v49 = vld [vmem:[%s14040_s4 + $0x1a0] sm:$0xff] }
 0x139   :  { %214 = vmatmul.mubr.f32.vlgmr.msra.gmra.mxu0 %v9687_v47  ;;  %321 = vmatmul.mubr.f32.vlgmr.msra.gmra.mxu1 %v9687_v47  ;;  %v7380_v38 = vld [vmem:[%s14040_s4 + $0x148] sm:$0xff]  ;;  %v7375_v50 = vld [vmem:[%s14040_s4 + $0x120] sm:$0xff] }
 0x13a   :  { %v9706_v29 = vadd.f32 %v106_v40, %v100_v52  ;;  %v9708_v30 = vadd.f32 %v110_v41, %v101_v53  ;;  %8202 = vmatpush3.msra.mxu0 %v346_v51  ;;  %v7379_v40 = vld [vmem:[%s14040_s4 + $0x140] sm:$0xff]  ;;  %v7394_v41 = vld [vmem:[%s14040_s4 + $0x1b8] sm:$0xff]  ;;  %v7389_v53 = vld [vmem:[%s14040_s4 + $0x190] sm:$0xff] }
 0x13b   :  { %8203 = vmatprep.subr.mxu0 %v361_v23  ;;  %v7390_v51 = vld [vmem:[%s14040_s4 + $0x198] sm:$0xff]  ;;  %v7373_v23 = vld [vmem:[%s14040_s4 + $0x110] sm:$0xff] }
 0x13c   :  { %8204 = vmatpush3.msra.mxu0 %v345_v24  ;;  %218 = vmatprep.mubr.f32.mxu0 %v9708_v30  ;;  %v7374_v52 = vld [vmem:[%s14040_s4 + $0x118] sm:$0xff]  ;;  %v7388_v24 = vld [vmem:[%s14040_s4 + $0x188] sm:$0xff] }
 0x13d   :  { %325 = vmatprep.mubr.f32.mxu1 %v9708_v30  ;;  %8205 = vmatprep.subr.mxu0 %v360_v54  ;;  %v7372_v54 = vld [vmem:[%s14040_s4 + $0x108] sm:$0xff] }
 0x13e   :  { %219 = vmatmul.mubr.f32.gmra.mxu0 %v9706_v29  ;;  %326 = vmatmul.mubr.f32.gmra.mxu1 %v9706_v29 }
 0x13f   :  { %8206 = vmatpush3.msra.mxu0 %v344_v55  ;;  %427 = vmatprep.mubr.f32.mxu0 %v9689_v48  ;;  %v7387_v55 = vld [vmem:[%s14040_s4 + $0x180] sm:$0xff] }
 0x140   :  { %8207 = vmatprep.subr.mxu0 %v359_v56  ;;  %v7371_v56 = vld [vmem:[%s14040_s4 + $0x100] sm:$0xff] }
 0x141   :  { %8208 = vmatpush3.msra.mxu0 %v343_v57  ;;  %v9364_v57 = vmov 0.0  }
 0x142   :  { %8209 = vmatprep.subr.mxu0 %v358_v58  ;;  %9101 = vmatprep.subr.mxu1 %v9364_v57 }
 0x143   :  { %8210 = vmatpush3.msra.mxu0 %v342_v59  ;;  %9103 = vmatprep.mubr.msk.f32.mxu1 %vm9365_vm0, %v9364_v57 }
 0x144   :  { %8211 = vmatprep.subr.mxu0 %v357_v60 }
 0x145   :  { %8212 = vmatpush3.msra.mxu0 %v341_v61 }
 0x146   :  { %8213 = vmatprep.subr.mxu0 %v356_v62 }
 0x147   :  { %8214 = vmatpush3.msra.mxu0 %v340_v63 }
 0x148   :  { %8215 = vmatprep.subr.mxu0 %v355_v0 }
 0x149   :  { %8216 = vmatpush3.msra.mxu0 %v339_v1 }
 0x14a   :  { %8217 = vmatprep.subr.mxu0 %v354_v2 }
 0x14b   :  { %8218 = vmatpush3.msra.mxu0 %v338_v3 }
 0x14c   :  { %8219 = vmatprep.subr.mxu0 %v353_v4 }
 0x14d   :  { %8220 = vmatpush3.msra.mxu0 %v337_v5 }
 0x14e   :  { %8221 = vmatprep.subr.mxu0 %v352_v6 }
 0x14f   :  { %8222 = vmatpush3.msra.mxu0 %v336_v7 }
 0x150   :  { %8223 = vmatprep.subr.mxu0 %v351_v8 }
 0x151   :  { %8224 = vmatpush3.msra.mxu0 %v335_v9 }
 0x152   :  { %8225 = vmatprep.subr.mxu0 %v350_v10 }
 0x153   :  { %8226 = vmatpush3.msra.mxu0 %v334_v11 }
 0x154   :  { %8227 = vmatprep.subr.mxu0 %v349_v12 }
 0x155   :  { %8228 = vmatpush3.msra.mxu0 %v333_v13 }
 0x156   :  { %8229 = vmatprep.subr.mxu0 %v348_v14 }
 0x157   :  { %8230 = vmatpush3.msra.mxu0 %v332_v15 }
 0x158   :  { %8231 = vmatprep.subr.mxu0 %v347_v16 }
 0x159   :  { %8232 = vmatpush3.msra.mxu0 %v331_v17 }
 0x15a   :  { %428 = vmatmul.mubr.f32.vlgmr.msra.gmra.mxu0 %v9687_v47  ;;  %8285 = vmatprep.subr.mxu0 %v7402_v18 }
 0x15b   :  { %432 = vmatprep.mubr.f32.mxu0 %v9708_v30  ;;  %8286 = vmatpush3.msra.mxu0 %v7386_v19 }
 0x15c   :  { %8287 = vmatprep.subr.mxu0 %v7401_v20 }
 0x15d   :  { %8288 = vmatpush3.msra.mxu0 %v7385_v21 }
 0x15e   :  { %433 = vmatmul.mubr.f32.gmra.mxu0 %v9706_v29  ;;  %8289 = vmatprep.subr.mxu0 %v7400_v22 }
 0x15f   :  { %8290 = vmatpush3.msra.mxu0 %v7384_v25  ;;  %973 = vmatprep.mubr.f32.mxu0 %v9689_v48 }
 0x160   :  { %8291 = vmatprep.subr.mxu0 %v7399_v26 }
 0x161   :  { %8292 = vmatpush3.msra.mxu0 %v7383_v27 }
 0x162   :  { %8293 = vmatprep.subr.mxu0 %v7398_v28 }
 0x163   :  { %8294 = vmatpush3.msra.mxu0 %v7382_v31 }
 0x164   :  { %8295 = vmatprep.subr.mxu0 %v7397_v35 }
 0x165   :  { %8296 = vmatpush3.msra.mxu0 %v7381_v36 }
 0x166   :  { %8297 = vmatprep.subr.mxu0 %v7396_v37 }
 0x167   :  { %8298 = vmatpush3.msra.mxu0 %v7380_v38 }
 0x168   :  { %8299 = vmatprep.subr.mxu0 %v7395_v39 }
 0x169   :  { %8300 = vmatpush3.msra.mxu0 %v7379_v40 }
 0x16a   :  { %8301 = vmatprep.subr.mxu0 %v7394_v41 }
 0x16b   :  { %8302 = vmatpush3.msra.mxu0 %v7378_v42  ;;  %v7370_v42 = vld [vmem:[%s14039_s3 + $0x1f8] sm:$0xff] }
 0x16c   :  { %8303 = vmatprep.subr.mxu0 %v7393_v43 }
 0x16d   :  { %8304 = vmatpush3.msra.mxu0 %v7377_v44 }
 0x16e   :  { %8305 = vmatprep.subr.mxu0 %v7392_v45  ;;  %v7354_v45 = vld [vmem:[%s14039_s3 + $0x178] sm:$0xff] }
 0x16f   :  { %8306 = vmatpush3.msra.mxu0 %v7376_v46  ;;  %v7369_v46 = vld [vmem:[%s14039_s3 + $0x1f0] sm:$0xff] }
 0x170   :  { %8307 = vmatprep.subr.mxu0 %v7391_v49  ;;  %v7353_v49 = vld [vmem:[%s14039_s3 + $0x170] sm:$0xff] }
 0x171   :  { %8308 = vmatpush3.msra.mxu0 %v7375_v50  ;;  %v7368_v50 = vld [vmem:[%s14039_s3 + $0x1e8] sm:$0xff] }
 0x172   :  { %8309 = vmatprep.subr.mxu0 %v7390_v51  ;;  %v7352_v51 = vld [vmem:[%s14039_s3 + $0x168] sm:$0xff] }
 0x173   :  { %8310 = vmatpush3.msra.mxu0 %v7374_v52  ;;  %v7367_v52 = vld [vmem:[%s14039_s3 + $0x1e0] sm:$0xff] }
 0x174   :  { %8311 = vmatprep.subr.mxu0 %v7389_v53  ;;  %v7351_v53 = vld [vmem:[%s14039_s3 + $0x160] sm:$0xff] }
 0x175   :  { %8312 = vmatpush3.msra.mxu0 %v7373_v23  ;;  %v7366_v23 = vld [vmem:[%s14039_s3 + $0x1d8] sm:$0xff] }
 0x176   :  { %8313 = vmatprep.subr.mxu0 %v7388_v24  ;;  %v7350_v24 = vld [vmem:[%s14039_s3 + $0x158] sm:$0xff] }
 0x177   :  { %8314 = vmatpush3.msra.mxu0 %v7372_v54  ;;  %v7365_v54 = vld [vmem:[%s14039_s3 + $0x1d0] sm:$0xff] }
 0x178   :  { %8315 = vmatprep.subr.mxu0 %v7387_v55  ;;  %v7349_v55 = vld [vmem:[%s14039_s3 + $0x150] sm:$0xff] }
 0x179   :  { %8316 = vmatpush3.msra.mxu0 %v7371_v56  ;;  %v7364_v56 = vld [vmem:[%s14039_s3 + $0x1c8] sm:$0xff] }
 0x17a   :  { %974 = vmatmul.mubr.f32.vlgmr.msra.gmra.mxu0 %v9687_v47  ;;  %9121 = vmatprep.subr.mxu0 %v9364_v57 }
 0x17b   :  { %978 = vmatprep.mubr.f32.mxu0 %v9708_v30 }
 0x17e   :  { %979 = vmatmul.mubr.f32.gmra.mxu0 %v9706_v29 }
 0x17f   :  { %9123 = vmatprep.mubr.msk.f32.mxu0 %vm9365_vm0, %v9364_v57 }
 0x1f9   :  { %v8157_v58 = vpop.f32.mrf.mxu0  ;;  %v8195_v59 = vpop.f32.mrf.mxu1 }
 0x1fb   :  { %v8158_v60 = vpop.f32.mrf.mxu0  ;;  %v8196_v61 = vpop.f32.mrf.mxu1 }
 0x1fc   :  { %v8197_v62 = vadd.f32 %v8196_v61, %v8195_v59  ;;  %v8159_v1 = vadd.f32 %v8158_v60, %v8157_v58  ;;  %v7348_v58 = vld [vmem:[%s14039_s3 + $0x148] sm:$0xff]  ;;  %v7363_v59 = vld [vmem:[%s14039_s3 + $0x1c0] sm:$0xff]  ;;  %v7362_v61 = vld [vmem:[%s14039_s3 + $0x1b8] sm:$0xff] }
 0x1fd   :  { %v7347_v60 = vld [vmem:[%s14039_s3 + $0x140] sm:$0xff] }
 0x1fe   :  { %v8160_v63 = vpop.f32.mrf.mxu0  ;;  %v8198_v0 = vpop.f32.mrf.mxu1  ;;  %9102 = vmatpush3.xpose.msk.msra.mxu1 %vm438_vm1, %v8197_v62  ;;  %v7346_v62 = vld [vmem:[%s14039_s3 + $0x138] sm:$0xff] }
 0x1ff   :  { %9106 = vmatprep.subr.mxu1 %v9364_v57 }
 0x200   :  { %v8199_v2 = vpop.f32.mrf.mxu1  ;;  %v8161_v3 = vpop.f32.mrf.mxu0 }
 0x201   :  { %v8200_v4 = vadd.f32 %v8199_v2, %v8198_v0  ;;  %9104 = vmatmul.mubr.msk.f32.vlgmr.msra.gmra.mxu1 %vm438_vm1, %v8159_v1  ;;  %v8162_v5 = vadd.f32 %v8161_v3, %v8160_v63  ;;  %v7361_v63 = vld [vmem:[%s14039_s3 + $0x1b0] sm:$0xff]  ;;  %v7360_v1 = vld [vmem:[%s14039_s3 + $0x1a8] sm:$0xff]  ;;  %v7359_v3 = vld [vmem:[%s14039_s3 + $0x1a0] sm:$0xff] }
 0x202   :  { %9108 = vmatprep.mubr.msk.f32.mxu1 %vm9365_vm0, %v9364_v57  ;;  %v7345_v0 = vld [vmem:[%s14039_s3 + $0x130] sm:$0xff]  ;;  %v7344_v2 = vld [vmem:[%s14039_s3 + $0x128] sm:$0xff] }
 0x203   :  { %9107 = vmatpush3.xpose.msk.msra.mxu1 %vm438_vm1, %v8200_v4  ;;  %v7343_v4 = vld [vmem:[%s14039_s3 + $0x120] sm:$0xff] }
 0x204   :  { %9111 = vmatprep.subr.mxu1 %v9364_v57 }
 0x206   :  { %9109 = vmatmul.mubr.msk.f32.vlgmr.msra.gmra.mxu1 %vm438_vm1, %v8162_v5  ;;  %v7358_v5 = vld [vmem:[%s14039_s3 + $0x198] sm:$0xff] }
 0x207   :  { %9113 = vmatprep.mubr.msk.f32.mxu1 %vm9365_vm0, %v9364_v57 }
 0x21a   :  { %v8233_v6 = vpop.f32.mrf.mxu0 }
 0x21c   :  { %v8234_v7 = vpop.f32.mrf.mxu0 }
 0x21d   :  { %v8235_v8 = vadd.f32 %v8234_v7, %v8233_v6  ;;  %v7342_v6 = vld [vmem:[%s14039_s3 + $0x118] sm:$0xff]  ;;  %v7357_v7 = vld [vmem:[%s14039_s3 + $0x190] sm:$0xff] }
 0x21e   :  { %v8236_v9 = vpop.f32.mrf.mxu0 }
 0x21f   :  { %9112 = vmatpush3.msra.mxu1 %v8235_v8  ;;  %v7341_v8 = vld [vmem:[%s14039_s3 + $0x110] sm:$0xff] }
 0x220   :  { %v8237_v10 = vpop.f32.mrf.mxu0  ;;  %9116 = vmatprep.subr.mxu1 %v9364_v57 }
 0x221   :  { %v8238_v11 = vadd.f32 %v8237_v10, %v8236_v9  ;;  %v7356_v9 = vld [vmem:[%s14039_s3 + $0x188] sm:$0xff] }
 0x222   :  { %v7340_v10 = vld [vmem:[%s14039_s3 + $0x108] sm:$0xff] }
 0x23a   :  { %v8317_v12 = vpop.f32.mrf.mxu0 }
 0x23c   :  { %v8318_v13 = vpop.f32.mrf.mxu0 }
 0x23d   :  { %v8319_v14 = vadd.f32 %v8318_v13, %v8317_v12  ;;  %v7339_v12 = vld [vmem:[%s14039_s3 + $0x100] sm:$0xff]  ;;  %v7434_v13 = vld [vmem:[%s14041_s5 + $0x1f8] sm:$0xff] }
 0x23f   :  { %9122 = vmatpush3.xpose.msk.msra.mxu0 %vm438_vm1, %v8319_v14  ;;  %v7418_v14 = vld [vmem:[%s14041_s5 + $0x178] sm:$0xff] }
 0x240   :  { %9126 = vmatprep.subr.mxu0 %v9364_v57 }
 0x2c1   :  { %v511_v15 = vpop.f32.mrf.mxu1 }
 0x2c2   :  { %v592_v16 = vsel %vm591_vm2, %v511_v15, -inf }
 0x2c3   :  { %593 = vmax.xlane.f32.xlu0 %v592_v16  ;;  %v9105_v17 = vpop.f32.mrf.mxu1  ;;  %v7417_v16 = vld [vmem:[%s14041_s5 + $0x170] sm:$0xff] }
 0x2c4   :  { %v7432_v17 = vld [vmem:[%s14041_s5 + $0x1e8] sm:$0xff] }
 0x2c6   :  { %v587_v18 = vpop.f32.mrf.mxu1 }
 0x2c7   :  { %v595_v19 = vsel %vm591_vm2, %v587_v18, -inf }
 0x2c8   :  { %596 = vmax.xlane.f32.xlu1 %v595_v19  ;;  %v9110_v20 = vpop.f32.mrf.mxu1  ;;  %v7431_v19 = vld [vmem:[%s14041_s5 + $0x1e0] sm:$0xff] }
 0x2c9   :  { %v7415_v20 = vld [vmem:[%s14041_s5 + $0x160] sm:$0xff] }
 0x34c   :  { %v594_v21 = vpop.xlane.xlu0 %593 }
 0x34d   :  { %v598_v22 = vsub.f32 %v511_v15, %v594_v21  ;;  %v7433_v15 = vld [vmem:[%s14041_s5 + $0x1f0] sm:$0xff]  ;;  %v7430_v21 = vld [vmem:[%s14041_s5 + $0x1d8] sm:$0xff] }
 0x34f   :  { %v600_v25 = vmul.f32 1.442695, %v598_v22  ;;  %v7414_v22 = vld [vmem:[%s14041_s5 + $0x158] sm:$0xff] }
 0x351   :  { %9270 = vpow2.f32 %v600_v25  ;;  %v597_v26 = vpop.xlane.xlu1 %596  ;;  %v7429_v25 = vld [vmem:[%s14041_s5 + $0x1d0] sm:$0xff] }
 0x352   :  { %v599_v27 = vsub.f32 %v587_v18, %v597_v26  ;;  %v7416_v18 = vld [vmem:[%s14041_s5 + $0x168] sm:$0xff]  ;;  %v7413_v26 = vld [vmem:[%s14041_s5 + $0x150] sm:$0xff] }
 0x354   :  { %v602_v28 = vmul.f32 1.442695, %v599_v27  ;;  %v7428_v27 = vld [vmem:[%s14041_s5 + $0x1c8] sm:$0xff] }
 0x356   :  { %9272 = vpow2.f32 %v602_v28  ;;  %v7412_v28 = vld [vmem:[%s14041_s5 + $0x148] sm:$0xff] }
 0x35e   :  { %v9271_v31 = vpop.eup %9270 }
 0x35f   :  { %v604_v35 = vsel %vm591_vm2, %v9271_v31, 0.0 }
 0x360   :  { %605 = vadd.xlane.f32.xlu0 %v604_v35  ;;  %v7411_v35 = vld [vmem:[%s14041_s5 + $0x140] sm:$0xff] }
 0x363   :  { %v9273_v36 = vpop.eup %9272 }
 0x364   :  { %v607_v37 = vsel %vm591_vm2, %v9273_v36, 0.0 }
 0x365   :  { %608 = vadd.xlane.f32.xlu1 %v607_v37  ;;  %v7410_v37 = vld [vmem:[%s14041_s5 + $0x138] sm:$0xff] }
 0x3e9   :  { %v606_v38 = vpop.xlane.xlu0 %605 }
 0x3ea   :  { %9274 = vrcp.f32 %v606_v38  ;;  %v7425_v38 = vld [vmem:[%s14041_s5 + $0x1b0] sm:$0xff] }
 0x3ee   :  { %v609_v39 = vpop.xlane.xlu1 %608 }
 0x3ef   :  { %9276 = vrcp.f32 %v609_v39  ;;  %v7409_v39 = vld [vmem:[%s14041_s5 + $0x130] sm:$0xff] }
 0x3f7   :  { %v9275_v40 = vpop.eup %9274 }
 0x3f8   :  { %v611_v41 = vmul.f32 %v9275_v40, %v9271_v31  ;;  %v7427_v31 = vld [vmem:[%s14041_s5 + $0x1c0] sm:$0xff]  ;;  %v7424_v40 = vld [vmem:[%s14041_s5 + $0x1a8] sm:$0xff] }
 0x3fa   :  { %9114 = vmatmul.mubr.msk.f32.vlgmr.msra.gmra.mxu1 %vm591_vm2, %v611_v41  ;;  %v7408_v41 = vld [vmem:[%s14041_s5 + $0x128] sm:$0xff] }
 0x3fb   :  { %9117 = vmatpush3.msra.mxu1 %v8238_v11  ;;  %9118 = vmatprep.mubr.msk.f32.mxu1 %vm9365_vm0, %v9364_v57  ;;  %v7355_v11 = vld [vmem:[%s14039_s3 + $0x180] sm:$0xff] }
 0x3fc   :  { %v9277_v43 = vpop.eup %9276  ;;  %8247 = vmatprep.subr.mxu1 %v7370_v42  ;;  %v7423_v42 = vld [vmem:[%s14041_s5 + $0x1a0] sm:$0xff] }
 0x3fd   :  { %v613_v44 = vmul.f32 %v9277_v43, %v9273_v36  ;;  %v7426_v36 = vld [vmem:[%s14041_s5 + $0x1b8] sm:$0xff]  ;;  %v7407_v43 = vld [vmem:[%s14041_s5 + $0x120] sm:$0xff] }
 0x3ff   :  { %9119 = vmatmul.mubr.msk.f32.vlgmr.msra.gmra.mxu1 %vm591_vm2, %v613_v44  ;;  %v7422_v44 = vld [vmem:[%s14041_s5 + $0x198] sm:$0xff] }
 0x400   :  { %8248 = vmatpush3.msra.mxu1 %v7354_v45  ;;  %865 = vmatprep.mubr.f32.mxu1 %v9689_v48  ;;  %v7406_v45 = vld [vmem:[%s14041_s5 + $0x118] sm:$0xff] }
 0x401   :  { %8249 = vmatprep.subr.mxu1 %v7369_v46  ;;  %v7421_v46 = vld [vmem:[%s14041_s5 + $0x190] sm:$0xff] }
 0x402   :  { %8250 = vmatpush3.msra.mxu1 %v7353_v49  ;;  %v7405_v49 = vld [vmem:[%s14041_s5 + $0x110] sm:$0xff] }
 0x403   :  { %8251 = vmatprep.subr.mxu1 %v7368_v50  ;;  %v7420_v50 = vld [vmem:[%s14041_s5 + $0x188] sm:$0xff] }
 0x404   :  { %8252 = vmatpush3.msra.mxu1 %v7352_v51  ;;  %v7404_v51 = vld [vmem:[%s14041_s5 + $0x108] sm:$0xff] }
 0x405   :  { %8253 = vmatprep.subr.mxu1 %v7367_v52  ;;  %v7419_v52 = vld [vmem:[%s14041_s5 + $0x180] sm:$0xff] }
 0x406   :  { %8254 = vmatpush3.msra.mxu1 %v7351_v53  ;;  %v7403_v53 = vld [vmem:[%s14041_s5 + $0x100] sm:$0xff] }
 0x407   :  { %8255 = vmatprep.subr.mxu1 %v7366_v23  ;;  %v767_v23 = vld [vmem:[%s14042_s6 + $0x38] sm:$0xff] }
 0x408   :  { %8256 = vmatpush3.msra.mxu1 %v7350_v24  ;;  %v766_v24 = vld [vmem:[%s14042_s6 + $0x30] sm:$0xff] }
 0x409   :  { %8257 = vmatprep.subr.mxu1 %v7365_v54  ;;  %v765_v54 = vld [vmem:[%s14042_s6 + $0x28] sm:$0xff] }
 0x40a   :  { %8258 = vmatpush3.msra.mxu1 %v7349_v55  ;;  %v764_v55 = vld [vmem:[%s14042_s6 + $0x20] sm:$0xff] }
 0x40b   :  { %8259 = vmatprep.subr.mxu1 %v7364_v56  ;;  %v763_v56 = vld [vmem:[%s14042_s6 + $0x18] sm:$0xff] }
 0x40c   :  { %8260 = vmatpush3.msra.mxu1 %v7348_v58  ;;  %v762_v58 = vld [vmem:[%s14042_s6 + $0x10] sm:$0xff] }
 0x40d   :  { %8261 = vmatprep.subr.mxu1 %v7363_v59  ;;  %v761_v59 = vld [vmem:[%s14042_s6 + $0x8] sm:$0xff] }
 0x40e   :  { %8262 = vmatpush3.msra.mxu1 %v7347_v60  ;;  %v760_v60 = vld [vmem:[%s14042_s6] sm:$0xff] }
 0x40f   :  { %8263 = vmatprep.subr.mxu1 %v7362_v61  ;;  %v7516_v61 = vld [vmem:[%s14040_s4 + $0x2f8] sm:$0xff] }
 0x410   :  { %8264 = vmatpush3.msra.mxu1 %v7346_v62  ;;  %v7500_v62 = vld [vmem:[%s14040_s4 + $0x278] sm:$0xff] }
 0x411   :  { %8265 = vmatprep.subr.mxu1 %v7361_v63 }
 0x412   :  { %8266 = vmatpush3.msra.mxu1 %v7345_v0  ;;  %v7515_v0 = vld [vmem:[%s14040_s4 + $0x2f0] sm:$0xff] }
 0x413   :  { %8267 = vmatprep.subr.mxu1 %v7360_v1  ;;  %v7499_v1 = vld [vmem:[%s14040_s4 + $0x270] sm:$0xff] }
 0x414   :  { %8268 = vmatpush3.msra.mxu1 %v7344_v2 }
 0x415   :  { %8269 = vmatprep.subr.mxu1 %v7359_v3  ;;  %v7514_v3 = vld [vmem:[%s14040_s4 + $0x2e8] sm:$0xff] }
 0x416   :  { %8270 = vmatpush3.msra.mxu1 %v7343_v4  ;;  %v7498_v4 = vld [vmem:[%s14040_s4 + $0x268] sm:$0xff] }
 0x417   :  { %8271 = vmatprep.subr.mxu1 %v7358_v5 }
 0x418   :  { %8272 = vmatpush3.msra.mxu1 %v7342_v6  ;;  %v7513_v6 = vld [vmem:[%s14040_s4 + $0x2e0] sm:$0xff] }
 0x419   :  { %8273 = vmatprep.subr.mxu1 %v7357_v7  ;;  %v7497_v7 = vld [vmem:[%s14040_s4 + $0x260] sm:$0xff] }
 0x41a   :  { %8274 = vmatpush3.msra.mxu1 %v7341_v8 }
 0x41b   :  { %8275 = vmatprep.subr.mxu1 %v7356_v9  ;;  %v7512_v9 = vld [vmem:[%s14040_s4 + $0x2d8] sm:$0xff] }
 0x41c   :  { %8276 = vmatpush3.msra.mxu1 %v7340_v10  ;;  %v7496_v10 = vld [vmem:[%s14040_s4 + $0x258] sm:$0xff] }
 0x41d   :  { %8277 = vmatprep.subr.mxu1 %v7355_v11  ;;  %v7511_v11 = vld [vmem:[%s14040_s4 + $0x2d0] sm:$0xff] }
 0x41e   :  { %8278 = vmatpush3.msra.mxu1 %v7339_v12  ;;  %v7495_v12 = vld [vmem:[%s14040_s4 + $0x250] sm:$0xff] }
 0x41f   :  { %866 = vmatmul.mubr.f32.vlgmr.msra.gmra.mxu1 %v9687_v47  ;;  %8323 = vmatprep.subr.mxu1 %v7434_v13  ;;  %v7510_v13 = vld [vmem:[%s14040_s4 + $0x2c8] sm:$0xff] }
 0x420   :  { %870 = vmatprep.mubr.f32.mxu1 %v9708_v30  ;;  %8324 = vmatpush3.msra.mxu1 %v7418_v14  ;;  %v7494_v14 = vld [vmem:[%s14040_s4 + $0x248] sm:$0xff] }
 0x421   :  { %8325 = vmatprep.subr.mxu1 %v7433_v15  ;;  %v7509_v15 = vld [vmem:[%s14040_s4 + $0x2c0] sm:$0xff] }
 0x422   :  { %8326 = vmatpush3.msra.mxu1 %v7417_v16  ;;  %v7493_v16 = vld [vmem:[%s14040_s4 + $0x240] sm:$0xff] }
 0x423   :  { %871 = vmatmul.mubr.f32.gmra.mxu1 %v9706_v29  ;;  %8327 = vmatprep.subr.mxu1 %v7432_v17  ;;  %v7508_v17 = vld [vmem:[%s14040_s4 + $0x2b8] sm:$0xff] }
 0x424   :  { %8328 = vmatpush3.msra.mxu1 %v7416_v18  ;;  %1081 = vmatprep.mubr.f32.mxu1 %v9689_v48  ;;  %v7492_v18 = vld [vmem:[%s14040_s4 + $0x238] sm:$0xff] }
 0x425   :  { %8329 = vmatprep.subr.mxu1 %v7431_v19  ;;  %v7507_v19 = vld [vmem:[%s14040_s4 + $0x2b0] sm:$0xff] }
 0x426   :  { %8330 = vmatpush3.msra.mxu1 %v7415_v20  ;;  %v7491_v20 = vld [vmem:[%s14040_s4 + $0x230] sm:$0xff] }
 0x427   :  { %8331 = vmatprep.subr.mxu1 %v7430_v21  ;;  %v7506_v21 = vld [vmem:[%s14040_s4 + $0x2a8] sm:$0xff] }
 0x428   :  { %8332 = vmatpush3.msra.mxu1 %v7414_v22  ;;  %v7490_v22 = vld [vmem:[%s14040_s4 + $0x228] sm:$0xff] }
 0x429   :  { %8333 = vmatprep.subr.mxu1 %v7429_v25  ;;  %v7505_v25 = vld [vmem:[%s14040_s4 + $0x2a0] sm:$0xff] }
 0x42a   :  { %8334 = vmatpush3.msra.mxu1 %v7413_v26  ;;  %v7489_v26 = vld [vmem:[%s14040_s4 + $0x220] sm:$0xff] }
 0x42b   :  { %8335 = vmatprep.subr.mxu1 %v7428_v27  ;;  %v7504_v27 = vld [vmem:[%s14040_s4 + $0x298] sm:$0xff] }
 0x42c   :  { %8336 = vmatpush3.msra.mxu1 %v7412_v28  ;;  %v7488_v28 = vld [vmem:[%s14040_s4 + $0x218] sm:$0xff] }
 0x42d   :  { %8337 = vmatprep.subr.mxu1 %v7427_v31  ;;  %v7503_v31 = vld [vmem:[%s14040_s4 + $0x290] sm:$0xff] }
 0x42e   :  { %8338 = vmatpush3.msra.mxu1 %v7411_v35  ;;  %v7487_v35 = vld [vmem:[%s14040_s4 + $0x210] sm:$0xff] }
 0x42f   :  { %8339 = vmatprep.subr.mxu1 %v7426_v36  ;;  %v7502_v36 = vld [vmem:[%s14040_s4 + $0x288] sm:$0xff] }
 0x430   :  { %8340 = vmatpush3.msra.mxu1 %v7410_v37  ;;  %v7486_v37 = vld [vmem:[%s14040_s4 + $0x208] sm:$0xff] }
 0x431   :  { %8341 = vmatprep.subr.mxu1 %v7425_v38  ;;  %v7501_v38 = vld [vmem:[%s14040_s4 + $0x280] sm:$0xff] }
 0x432   :  { %8342 = vmatpush3.msra.mxu1 %v7409_v39  ;;  %v7485_v39 = vld [vmem:[%s14040_s4 + $0x200] sm:$0xff] }
 0x433   :  { %8343 = vmatprep.subr.mxu1 %v7424_v40  ;;  %v8320_v40 = vpop.f32.mrf.mxu0 }
 0x434   :  { %8344 = vmatpush3.msra.mxu1 %v7408_v41 }
 0x435   :  { %8345 = vmatprep.subr.mxu1 %v7423_v42  ;;  %v8321_v42 = vpop.f32.mrf.mxu0 }
 0x436   :  { %8346 = vmatpush3.msra.mxu1 %v7407_v43 }
 0x437   :  { %8347 = vmatprep.subr.mxu1 %v7422_v44 }
 0x438   :  { %8348 = vmatpush3.msra.mxu1 %v7406_v45  ;;  %v8322_v45 = vadd.f32 %v8321_v42, %v8320_v40  ;;  %v7467_v40 = vld [vmem:[%s14039_s3 + $0x270] sm:$0xff]  ;;  %v7482_v42 = vld [vmem:[%s14039_s3 + $0x2e8] sm:$0xff] }
 0x439   :  { %8349 = vmatprep.subr.mxu1 %v7421_v46 }
 0x43a   :  { %8350 = vmatpush3.msra.mxu1 %v7405_v49 }
 0x43b   :  { %8351 = vmatprep.subr.mxu1 %v7420_v50 }
 0x43c   :  { %8352 = vmatpush3.msra.mxu1 %v7404_v51 }
 0x43d   :  { %8353 = vmatprep.subr.mxu1 %v7419_v52 }
 0x43e   :  { %8354 = vmatpush3.msra.mxu1 %v7403_v53 }
 0x43f   :  { %1082 = vmatmul.mubr.f32.vlgmr.msra.gmra.mxu1 %v9687_v47  ;;  %1534 = vmatprep.subr.mxu1 %v767_v23 }
 0x440   :  { %1086 = vmatprep.mubr.f32.mxu1 %v9708_v30  ;;  %1535 = vmatpush1.msra.mxu1 %v766_v24 }
 0x441   :  { %1536 = vmatprep.subr.mxu1 %v765_v54 }
 0x442   :  { %1537 = vmatpush1.msra.mxu1 %v764_v55 }
 0x443   :  { %1087 = vmatmul.mubr.f32.gmra.mxu1 %v9706_v29  ;;  %1538 = vmatprep.subr.mxu1 %v763_v56 }
 0x444   :  { %1539 = vmatpush1.msra.mxu1 %v762_v58  ;;  %1574 = vmatprep.mubr.f32.mxu1 %v9364_v57 }
 0x445   :  { %1540 = vmatprep.subr.mxu1 %v761_v59 }
 0x446   :  { %1541 = vmatpush1.msra.mxu1 %v760_v60 }
 0x447   :  { %8407 = vmatprep.subr.mxu1 %v7516_v61 }
 0x4ba   :  { %v683_v63 = vpop.f32.mrf.mxu1 }
 0x4bb   :  { %7451 = vmatmul.mubr.msk.f32.vlgmr.msra.gmra.mxu1 %vm438_vm1, %v683_v63 }
 0x4bc   :  { %8408 = vmatpush3.msra.mxu1 %v7500_v62  ;;  %v9115_v2 = vpop.f32.mrf.mxu1  ;;  %1580 = vmatprep.mubr.f32.mxu1 %v9364_v57 }
 0x4bd   :  { %8409 = vmatprep.subr.mxu1 %v7515_v0 }
 0x4be   :  { %8410 = vmatpush3.msra.mxu1 %v7499_v1 }
 0x4bf   :  { %v756_v5 = vpop.f32.mrf.mxu1  ;;  %8411 = vmatprep.subr.mxu1 %v7514_v3 }
 0x4c0   :  { %7452 = vmatmul.mubr.msk.f32.gmra.mxu1 %vm438_vm1, %v756_v5 }
 0x4c1   :  { %8412 = vmatpush3.msra.mxu1 %v7498_v4  ;;  %v9120_v8 = vpop.f32.mrf.mxu1  ;;  %1792 = vmatprep.mubr.f32.mxu1 %v9689_v48 }
 0x4c2   :  { %8413 = vmatprep.subr.mxu1 %v7513_v6 }
 0x4c3   :  { %8414 = vmatpush3.msra.mxu1 %v7497_v7 }
 0x4c4   :  { %8415 = vmatprep.subr.mxu1 %v7512_v9 }
 0x4c5   :  { %8416 = vmatpush3.msra.mxu1 %v7496_v10 }
 0x4c6   :  { %8417 = vmatprep.subr.mxu1 %v7511_v11 }
 0x4c7   :  { %8418 = vmatpush3.msra.mxu1 %v7495_v12 }
 0x4c8   :  { %8419 = vmatprep.subr.mxu1 %v7510_v13 }
 0x4c9   :  { %8420 = vmatpush3.msra.mxu1 %v7494_v14 }
 0x4ca   :  { %8421 = vmatprep.subr.mxu1 %v7509_v15 }
 0x4cb   :  { %8422 = vmatpush3.msra.mxu1 %v7493_v16 }
 0x4cc   :  { %8423 = vmatprep.subr.mxu1 %v7508_v17 }
 0x4cd   :  { %8424 = vmatpush3.msra.mxu1 %v7492_v18 }
 0x4ce   :  { %8425 = vmatprep.subr.mxu1 %v7507_v19  ;;  %v7448_v19 = vld [vmem:[%s14042_s6 + $0x78] sm:$0xff] }
 0x4cf   :  { %8426 = vmatpush3.msra.mxu1 %v7491_v20 }
 0x4d0   :  { %8427 = vmatprep.subr.mxu1 %v7506_v21 }
 0x4d1   :  { %8428 = vmatpush3.msra.mxu1 %v7490_v22  ;;  %v7447_v22 = vld [vmem:[%s14042_s6 + $0x70] sm:$0xff] }
 0x4d2   :  { %8429 = vmatprep.subr.mxu1 %v7505_v25  ;;  %v7446_v25 = vld [vmem:[%s14042_s6 + $0x68] sm:$0xff] }
 0x4d3   :  { %8430 = vmatpush3.msra.mxu1 %v7489_v26  ;;  %v7445_v26 = vld [vmem:[%s14042_s6 + $0x60] sm:$0xff] }
 0x4d4   :  { %8431 = vmatprep.subr.mxu1 %v7504_v27  ;;  %v7444_v27 = vld [vmem:[%s14042_s6 + $0x58] sm:$0xff] }
 0x4d5   :  { %8432 = vmatpush3.msra.mxu1 %v7488_v28  ;;  %v7443_v28 = vld [vmem:[%s14042_s6 + $0x50] sm:$0xff] }
 0x4d6   :  { %8433 = vmatprep.subr.mxu1 %v7503_v31  ;;  %v7442_v31 = vld [vmem:[%s14042_s6 + $0x48] sm:$0xff] }
 0x4d7   :  { %8434 = vmatpush3.msra.mxu1 %v7487_v35  ;;  %v7441_v35 = vld [vmem:[%s14042_s6 + $0x40] sm:$0xff] }
 0x4d8   :  { %8435 = vmatprep.subr.mxu1 %v7502_v36  ;;  %v7484_v36 = vld [vmem:[%s14039_s3 + $0x2f8] sm:$0xff] }
 0x4d9   :  { %8436 = vmatpush3.msra.mxu1 %v7486_v37  ;;  %v7468_v37 = vld [vmem:[%s14039_s3 + $0x278] sm:$0xff] }
 0x4da   :  { %8437 = vmatprep.subr.mxu1 %v7501_v38 }
 0x4db   :  { %8438 = vmatpush3.msra.mxu1 %v7485_v39  ;;  %v7483_v39 = vld [vmem:[%s14039_s3 + $0x2f0] sm:$0xff] }
 0x4dc   :  { %1793 = vmatmul.mubr.f32.vlgmr.msra.gmra.mxu1 %v9687_v47  ;;  %9141 = vmatprep.subr.mxu1 %v9364_v57 }
 0x4dd   :  { %1797 = vmatprep.mubr.f32.mxu1 %v9708_v30 }
 0x4df   :  { %v8279_v41 = vpop.f32.mrf.mxu1 }
 0x4e0   :  { %1798 = vmatmul.mubr.f32.gmra.mxu1 %v9706_v29 }
 0x4e1   :  { %v8280_v43 = vpop.f32.mrf.mxu1  ;;  %9143 = vmatprep.mubr.msk.f32.mxu1 %vm9365_vm0, %v9364_v57 }
 0x4e2   :  { %v8281_v44 = vadd.f32 %v8280_v43, %v8279_v41  ;;  %v7466_v43 = vld [vmem:[%s14039_s3 + $0x268] sm:$0xff] }
 0x4e3   :  { %v8282_v46 = vpop.f32.mrf.mxu1 }
 0x4e4   :  { %9124 = vmatmul.mubr.msk.f32.vlgmr.msra.gmra.mxu0 %vm438_vm1, %v8281_v44 }
 0x4e5   :  { %9127 = vmatpush3.xpose.msk.msra.mxu0 %vm438_vm1, %v8322_v45  ;;  %v8283_v49 = vpop.f32.mrf.mxu1  ;;  %9128 = vmatprep.mubr.msk.f32.mxu0 %vm9365_vm0, %v9364_v57  ;;  %v7481_v45 = vld [vmem:[%s14039_s3 + $0x2e0] sm:$0xff] }
 0x4e6   :  { %v8284_v50 = vadd.f32 %v8283_v49, %v8282_v46  ;;  %9131 = vmatprep.subr.mxu0 %v9364_v57  ;;  %v7465_v46 = vld [vmem:[%s14039_s3 + $0x260] sm:$0xff] }
 0x4e8   :  { %9129 = vmatmul.mubr.msk.f32.vlgmr.msra.gmra.mxu0 %vm438_vm1, %v8284_v50  ;;  %v7480_v50 = vld [vmem:[%s14039_s3 + $0x2d8] sm:$0xff] }
 0x4e9   :  { %9133 = vmatprep.mubr.msk.f32.mxu0 %vm9365_vm0, %v9364_v57 }
 0x4ff   :  { %v8355_v51 = vpop.f32.mrf.mxu1 }
 0x501   :  { %v8356_v52 = vpop.f32.mrf.mxu1 }
 0x502   :  { %v8357_v53 = vadd.f32 %v8356_v52, %v8355_v51  ;;  %v7464_v51 = vld [vmem:[%s14039_s3 + $0x258] sm:$0xff]  ;;  %v7479_v52 = vld [vmem:[%s14039_s3 + $0x2d0] sm:$0xff] }
 0x503   :  { %v8358_v23 = vpop.f32.mrf.mxu1 }
 0x504   :  { %9132 = vmatpush3.msra.mxu0 %v8357_v53  ;;  %v7463_v53 = vld [vmem:[%s14039_s3 + $0x250] sm:$0xff] }
 0x505   :  { %9136 = vmatprep.subr.mxu0 %v9364_v57  ;;  %v8359_v24 = vpop.f32.mrf.mxu1 }
 0x506   :  { %v8360_v18 = vadd.f32 %v8359_v24, %v8358_v23  ;;  %v7478_v23 = vld [vmem:[%s14039_s3 + $0x2c8] sm:$0xff] }
 0x507   :  { %v7462_v24 = vld [vmem:[%s14039_s3 + $0x248] sm:$0xff] }
 0x57b   :  { %v10269_v54 = vpop.f32.mrf.mxu1 }
 0x57d   :  { %v10271_v55 = vpop.f32.mrf.mxu1 }
 0x580   :  { %v10273_v56 = vpop.f32.mrf.mxu1 }
 0x582   :  { %v10275_v58 = vpop.f32.mrf.mxu1 }
 0x59c   :  { %v8439_v59 = vpop.f32.mrf.mxu1 }
 0x59e   :  { %v8440_v60 = vpop.f32.mrf.mxu1 }
 0x59f   :  { %v8441_v61 = vadd.f32 %v8440_v60, %v8439_v59  ;;  %v7477_v59 = vld [vmem:[%s14039_s3 + $0x2c0] sm:$0xff] }
 0x5a0   :  { %v7461_v60 = vld [vmem:[%s14039_s3 + $0x240] sm:$0xff] }
 0x5a1   :  { %9142 = vmatpush3.xpose.msk.msra.mxu1 %vm438_vm1, %v8441_v61  ;;  %v7476_v61 = vld [vmem:[%s14039_s3 + $0x2b8] sm:$0xff] }
 0x5a2   :  { %9146 = vmatprep.subr.mxu1 %v9364_v57 }
 0x5a4   :  { %v1164_v62 = vpop.f32.mrf.mxu0 }
 0x5a5   :  { %v1244_v63 = vsel %vm591_vm2, %v1164_v62, -inf }
 0x5a6   :  { %1245 = vmax.xlane.f32.xlu0 %v1244_v63  ;;  %v9125_v0 = vpop.f32.mrf.mxu0  ;;  %v7475_v63 = vld [vmem:[%s14039_s3 + $0x2b0] sm:$0xff] }
 0x5a7   :  { %v7459_v0 = vld [vmem:[%s14039_s3 + $0x230] sm:$0xff] }
 0x5a8   :  { %v1240_v1 = vpop.f32.mrf.mxu0 }
 0x5a9   :  { %v1247_v2 = vsel %vm591_vm2, %v1240_v1, -inf }
 0x5aa   :  { %1248 = vmax.xlane.f32.xlu1 %v1247_v2  ;;  %v9130_v3 = vpop.f32.mrf.mxu0  ;;  %v7458_v2 = vld [vmem:[%s14039_s3 + $0x228] sm:$0xff] }
 0x5ab   :  { %v7473_v3 = vld [vmem:[%s14039_s3 + $0x2a0] sm:$0xff] }
 0x62f   :  { %v1246_v4 = vpop.xlane.xlu0 %1245 }
 0x630   :  { %v1250_v5 = vsub.f32 %v1164_v62, %v1246_v4  ;;  %v7460_v62 = vld [vmem:[%s14039_s3 + $0x238] sm:$0xff]  ;;  %v7457_v4 = vld [vmem:[%s14039_s3 + $0x220] sm:$0xff] }
 0x632   :  { %v1252_v6 = vmul.f32 1.442695, %v1250_v5  ;;  %v7472_v5 = vld [vmem:[%s14039_s3 + $0x298] sm:$0xff] }
 0x633   :  { %v1249_v7 = vpop.xlane.xlu1 %1248 }
 0x634   :  { %9278 = vpow2.f32 %v1252_v6  ;;  %v1251_v8 = vsub.f32 %v1240_v1, %v1249_v7  ;;  %v7474_v1 = vld [vmem:[%s14039_s3 + $0x2a8] sm:$0xff]  ;;  %v7456_v6 = vld [vmem:[%s14039_s3 + $0x218] sm:$0xff]  ;;  %v7471_v7 = vld [vmem:[%s14039_s3 + $0x290] sm:$0xff] }
 0x636   :  { %v1254_v9 = vmul.f32 1.442695, %v1251_v8  ;;  %v7455_v8 = vld [vmem:[%s14039_s3 + $0x210] sm:$0xff] }
 0x638   :  { %9280 = vpow2.f32 %v1254_v9  ;;  %v7470_v9 = vld [vmem:[%s14039_s3 + $0x288] sm:$0xff] }
 0x641   :  { %v9279_v10 = vpop.eup %9278 }
 0x642   :  { %v1256_v11 = vsel %vm591_vm2, %v9279_v10, 0.0 }
 0x643   :  { %1257 = vadd.xlane.f32.xlu0 %v1256_v11  ;;  %v7469_v11 = vld [vmem:[%s14039_s3 + $0x280] sm:$0xff] }
 0x645   :  { %v9281_v12 = vpop.eup %9280 }
 0x646   :  { %v1259_v13 = vsel %vm591_vm2, %v9281_v12, 0.0 }
 0x647   :  { %1260 = vadd.xlane.f32.xlu1 %v1259_v13  ;;  %v7548_v13 = vld [vmem:[%s14041_s5 + $0x2f8] sm:$0xff] }
 0x6cc   :  { %v1258_v14 = vpop.xlane.xlu0 %1257 }
 0x6cd   :  { %9282 = vrcp.f32 %v1258_v14  ;;  %v7532_v14 = vld [vmem:[%s14041_s5 + $0x278] sm:$0xff] }
 0x6d0   :  { %v1261_v15 = vpop.xlane.xlu1 %1260 }
 0x6d1   :  { %9284 = vrcp.f32 %v1261_v15  ;;  %v7547_v15 = vld [vmem:[%s14041_s5 + $0x2f0] sm:$0xff] }
 0x6da   :  { %v9283_v16 = vpop.eup %9282 }
 0x6db   :  { %v1263_v17 = vmul.f32 %v9283_v16, %v9279_v10  ;;  %v7454_v10 = vld [vmem:[%s14039_s3 + $0x208] sm:$0xff]  ;;  %v7531_v16 = vld [vmem:[%s14041_s5 + $0x270] sm:$0xff] }
 0x6dd   :  { %9134 = vmatmul.mubr.msk.f32.vlgmr.msra.gmra.mxu0 %vm591_vm2, %v1263_v17  ;;  %v7546_v17 = vld [vmem:[%s14041_s5 + $0x2e8] sm:$0xff] }
 0x6de   :  { %v9285_v20 = vpop.eup %9284  ;;  %9137 = vmatpush3.msra.mxu0 %v8360_v18  ;;  %9138 = vmatprep.mubr.msk.f32.mxu0 %vm9365_vm0, %v9364_v57  ;;  %v7530_v18 = vld [vmem:[%s14041_s5 + $0x268] sm:$0xff] }
 0x6df   :  { %v1265_v21 = vmul.f32 %v9285_v20, %v9281_v12  ;;  %1451 = vmatprep.subr.mxu0 %v7448_v19  ;;  %v7453_v12 = vld [vmem:[%s14039_s3 + $0x200] sm:$0xff] }
 0x6e0   :  { %v7545_v19 = vld [vmem:[%s14041_s5 + $0x2e0] sm:$0xff] }
 0x6e1   :  { %9139 = vmatmul.mubr.msk.f32.vlgmr.msra.gmra.mxu0 %vm591_vm2, %v1265_v21  ;;  %v7529_v20 = vld [vmem:[%s14041_s5 + $0x260] sm:$0xff]  ;;  %v7544_v21 = vld [vmem:[%s14041_s5 + $0x2d8] sm:$0xff] }
 0x6e2   :  { %1452 = vmatpush1.msra.mxu0 %v7447_v22  ;;  %1491 = vmatprep.mubr.f32.mxu0 %v9364_v57  ;;  %v7528_v22 = vld [vmem:[%s14041_s5 + $0x258] sm:$0xff] }
 0x6e3   :  { %1453 = vmatprep.subr.mxu0 %v7446_v25  ;;  %v7543_v25 = vld [vmem:[%s14041_s5 + $0x2d0] sm:$0xff] }
 0x6e4   :  { %1454 = vmatpush1.msra.mxu0 %v7445_v26  ;;  %v7527_v26 = vld [vmem:[%s14041_s5 + $0x250] sm:$0xff] }
 0x6e5   :  { %1455 = vmatprep.subr.mxu0 %v7444_v27  ;;  %v7542_v27 = vld [vmem:[%s14041_s5 + $0x2c8] sm:$0xff] }
 0x6e6   :  { %1456 = vmatpush1.msra.mxu0 %v7443_v28  ;;  %v7526_v28 = vld [vmem:[%s14041_s5 + $0x248] sm:$0xff] }
 0x6e7   :  { %1457 = vmatprep.subr.mxu0 %v7442_v31  ;;  %v7541_v31 = vld [vmem:[%s14041_s5 + $0x2c0] sm:$0xff] }
 0x6e8   :  { %1458 = vmatpush1.msra.mxu0 %v7441_v35  ;;  %v7525_v35 = vld [vmem:[%s14041_s5 + $0x240] sm:$0xff] }
 0x6e9   :  { %8369 = vmatprep.subr.mxu0 %v7484_v36  ;;  %v7540_v36 = vld [vmem:[%s14041_s5 + $0x2b8] sm:$0xff] }
 0x79d   :  { %v1335_v38 = vpop.f32.mrf.mxu0 }
 0x79e   :  { %7449 = vmatmul.mubr.msk.f32.vlgmr.msra.gmra.mxu0 %vm438_vm1, %v1335_v38  ;;  %v7539_v38 = vld [vmem:[%s14041_s5 + $0x2b0] sm:$0xff] }
 0x79f   :  { %8370 = vmatpush3.msra.mxu0 %v7468_v37  ;;  %v9135_v41 = vpop.f32.mrf.mxu0  ;;  %1497 = vmatprep.mubr.f32.mxu0 %v9364_v57  ;;  %v7524_v37 = vld [vmem:[%s14041_s5 + $0x238] sm:$0xff] }
 0x7a0   :  { %8371 = vmatprep.subr.mxu0 %v7483_v39  ;;  %v7523_v39 = vld [vmem:[%s14041_s5 + $0x230] sm:$0xff]  ;;  %v7522_v41 = vld [vmem:[%s14041_s5 + $0x228] sm:$0xff] }
 0x7a1   :  { %8372 = vmatpush3.msra.mxu0 %v7467_v40  ;;  %v1408_v44 = vpop.f32.mrf.mxu0  ;;  %v7538_v40 = vld [vmem:[%s14041_s5 + $0x2a8] sm:$0xff] }
 0x7a2   :  { %8373 = vmatprep.subr.mxu0 %v7482_v42  ;;  %7450 = vmatmul.mubr.msk.f32.gmra.mxu0 %vm438_vm1, %v1408_v44  ;;  %v7537_v42 = vld [vmem:[%s14041_s5 + $0x2a0] sm:$0xff]  ;;  %v7536_v44 = vld [vmem:[%s14041_s5 + $0x298] sm:$0xff] }
 0x7a3   :  { %8374 = vmatpush3.msra.mxu0 %v7466_v43  ;;  %v9140_v49 = vpop.f32.mrf.mxu0  ;;  %1684 = vmatprep.mubr.f32.mxu0 %v9689_v48  ;;  %v7521_v43 = vld [vmem:[%s14041_s5 + $0x220] sm:$0xff] }
 0x7a4   :  { %8375 = vmatprep.subr.mxu0 %v7481_v45  ;;  %v7520_v45 = vld [vmem:[%s14041_s5 + $0x218] sm:$0xff]  ;;  %v7519_v49 = vld [vmem:[%s14041_s5 + $0x210] sm:$0xff] }
 0x7a5   :  { %8376 = vmatpush3.msra.mxu0 %v7465_v46  ;;  %v7535_v46 = vld [vmem:[%s14041_s5 + $0x290] sm:$0xff] }
 0x7a6   :  { %8377 = vmatprep.subr.mxu0 %v7480_v50  ;;  %v7534_v50 = vld [vmem:[%s14041_s5 + $0x288] sm:$0xff] }
 0x7a7   :  { %8378 = vmatpush3.msra.mxu0 %v7464_v51  ;;  %v7518_v51 = vld [vmem:[%s14041_s5 + $0x208] sm:$0xff] }
 0x7a8   :  { %8379 = vmatprep.subr.mxu0 %v7479_v52  ;;  %v7533_v52 = vld [vmem:[%s14041_s5 + $0x280] sm:$0xff] }
 0x7a9   :  { %8380 = vmatpush3.msra.mxu0 %v7463_v53  ;;  %v7517_v53 = vld [vmem:[%s14041_s5 + $0x200] sm:$0xff] }
 0x7aa   :  { %8381 = vmatprep.subr.mxu0 %v7478_v23  ;;  %v7628_v23 = vld [vmem:[%s14040_s4 + $0x3f8] sm:$0xff] }
 0x7ab   :  { %8382 = vmatpush3.msra.mxu0 %v7462_v24  ;;  %v7612_v24 = vld [vmem:[%s14040_s4 + $0x378] sm:$0xff] }
 0x7ac   :  { %8383 = vmatprep.subr.mxu0 %v7477_v59  ;;  %v7627_v59 = vld [vmem:[%s14040_s4 + $0x3f0] sm:$0xff] }
 0x7ad   :  { %8384 = vmatpush3.msra.mxu0 %v7461_v60  ;;  %v7611_v60 = vld [vmem:[%s14040_s4 + $0x370] sm:$0xff] }
 0x7ae   :  { %8385 = vmatprep.subr.mxu0 %v7476_v61  ;;  %v7626_v61 = vld [vmem:[%s14040_s4 + $0x3e8] sm:$0xff] }
 0x7af   :  { %8386 = vmatpush3.msra.mxu0 %v7460_v62  ;;  %v7610_v62 = vld [vmem:[%s14040_s4 + $0x368] sm:$0xff] }
 0x7b0   :  { %8387 = vmatprep.subr.mxu0 %v7475_v63  ;;  %v7625_v63 = vld [vmem:[%s14040_s4 + $0x3e0] sm:$0xff] }
 0x7b1   :  { %8388 = vmatpush3.msra.mxu0 %v7459_v0  ;;  %v7609_v0 = vld [vmem:[%s14040_s4 + $0x360] sm:$0xff] }
 0x7b2   :  { %8389 = vmatprep.subr.mxu0 %v7474_v1  ;;  %v7624_v1 = vld [vmem:[%s14040_s4 + $0x3d8] sm:$0xff] }
 0x7b3   :  { %8390 = vmatpush3.msra.mxu0 %v7458_v2  ;;  %v7608_v2 = vld [vmem:[%s14040_s4 + $0x358] sm:$0xff] }
 0x7b4   :  { %8391 = vmatprep.subr.mxu0 %v7473_v3  ;;  %v7623_v3 = vld [vmem:[%s14040_s4 + $0x3d0] sm:$0xff] }
 0x7b5   :  { %8392 = vmatpush3.msra.mxu0 %v7457_v4  ;;  %v7607_v4 = vld [vmem:[%s14040_s4 + $0x350] sm:$0xff] }
 0x7b6   :  { %8393 = vmatprep.subr.mxu0 %v7472_v5  ;;  %v7622_v5 = vld [vmem:[%s14040_s4 + $0x3c8] sm:$0xff] }
 0x7b7   :  { %8394 = vmatpush3.msra.mxu0 %v7456_v6  ;;  %v7606_v6 = vld [vmem:[%s14040_s4 + $0x348] sm:$0xff] }
 0x7b8   :  { %8395 = vmatprep.subr.mxu0 %v7471_v7  ;;  %v7621_v7 = vld [vmem:[%s14040_s4 + $0x3c0] sm:$0xff] }
 0x7b9   :  { %8396 = vmatpush3.msra.mxu0 %v7455_v8  ;;  %v7605_v8 = vld [vmem:[%s14040_s4 + $0x340] sm:$0xff] }
 0x7ba   :  { %8397 = vmatprep.subr.mxu0 %v7470_v9  ;;  %v7620_v9 = vld [vmem:[%s14040_s4 + $0x3b8] sm:$0xff] }
 0x7bb   :  { %8398 = vmatpush3.msra.mxu0 %v7454_v10  ;;  %v7604_v10 = vld [vmem:[%s14040_s4 + $0x338] sm:$0xff] }
 0x7bc   :  { %8399 = vmatprep.subr.mxu0 %v7469_v11  ;;  %v7619_v11 = vld [vmem:[%s14040_s4 + $0x3b0] sm:$0xff] }
 0x7bd   :  { %8400 = vmatpush3.msra.mxu0 %v7453_v12  ;;  %v7603_v12 = vld [vmem:[%s14040_s4 + $0x330] sm:$0xff] }
 0x7be   :  { %1685 = vmatmul.mubr.f32.vlgmr.msra.gmra.mxu0 %v9687_v47  ;;  %8445 = vmatprep.subr.mxu0 %v7548_v13  ;;  %v7618_v13 = vld [vmem:[%s14040_s4 + $0x3a8] sm:$0xff] }
 0x7bf   :  { %1689 = vmatprep.mubr.f32.mxu0 %v9708_v30  ;;  %8446 = vmatpush3.msra.mxu0 %v7532_v14  ;;  %v7602_v14 = vld [vmem:[%s14040_s4 + $0x328] sm:$0xff] }
 0x7c0   :  { %8447 = vmatprep.subr.mxu0 %v7547_v15  ;;  %v7617_v15 = vld [vmem:[%s14040_s4 + $0x3a0] sm:$0xff] }
 0x7c1   :  { %8448 = vmatpush3.msra.mxu0 %v7531_v16  ;;  %v7601_v16 = vld [vmem:[%s14040_s4 + $0x320] sm:$0xff] }
 0x7c2   :  { %1690 = vmatmul.mubr.f32.gmra.mxu0 %v9706_v29  ;;  %8449 = vmatprep.subr.mxu0 %v7546_v17  ;;  %v7616_v17 = vld [vmem:[%s14040_s4 + $0x398] sm:$0xff] }
 0x7c3   :  { %8450 = vmatpush3.msra.mxu0 %v7530_v18  ;;  %1900 = vmatprep.mubr.f32.mxu0 %v9689_v48  ;;  %v7600_v18 = vld [vmem:[%s14040_s4 + $0x318] sm:$0xff] }
 0x7c4   :  { %8451 = vmatprep.subr.mxu0 %v7545_v19  ;;  %v7615_v19 = vld [vmem:[%s14040_s4 + $0x390] sm:$0xff] }
 0x7c5   :  { %8452 = vmatpush3.msra.mxu0 %v7529_v20  ;;  %v7599_v20 = vld [vmem:[%s14040_s4 + $0x310] sm:$0xff] }
 0x7c6   :  { %8453 = vmatprep.subr.mxu0 %v7544_v21  ;;  %v7614_v21 = vld [vmem:[%s14040_s4 + $0x388] sm:$0xff] }
 0x7c7   :  { %8454 = vmatpush3.msra.mxu0 %v7528_v22  ;;  %v7598_v22 = vld [vmem:[%s14040_s4 + $0x308] sm:$0xff] }
 0x7c8   :  { %8455 = vmatprep.subr.mxu0 %v7543_v25  ;;  %v7613_v25 = vld [vmem:[%s14040_s4 + $0x380] sm:$0xff] }
 0x7c9   :  { %8456 = vmatpush3.msra.mxu0 %v7527_v26  ;;  %v7597_v26 = vld [vmem:[%s14040_s4 + $0x300] sm:$0xff] }
 0x7ca   :  { %8457 = vmatprep.subr.mxu0 %v7542_v27 }
 0x7cb   :  { %8458 = vmatpush3.msra.mxu0 %v7526_v28 }
 0x7cc   :  { %8459 = vmatprep.subr.mxu0 %v7541_v31 }
 0x7cd   :  { %8460 = vmatpush3.msra.mxu0 %v7525_v35  ;;  %v8442_v35 = vpop.f32.mrf.mxu1 }
 0x7ce   :  { %8461 = vmatprep.subr.mxu0 %v7540_v36 }
 0x7cf   :  { %8462 = vmatpush3.msra.mxu0 %v7524_v37 }
 0x7d0   :  { %8463 = vmatprep.subr.mxu0 %v7539_v38  ;;  %v8443_v38 = vpop.f32.mrf.mxu1 }
 0x7d1   :  { %8464 = vmatpush3.msra.mxu0 %v7523_v39 }
 0x7d2   :  { %8465 = vmatprep.subr.mxu0 %v7538_v40 }
 0x7d3   :  { %8466 = vmatpush3.msra.mxu0 %v7522_v41  ;;  %v8444_v41 = vadd.f32 %v8443_v38, %v8442_v35  ;;  %v7596_v35 = vld [vmem:[%s14039_s3 + $0x3f8] sm:$0xff] }
 0x7d4   :  { %8467 = vmatprep.subr.mxu0 %v7537_v42 }
 0x7d5   :  { %8468 = vmatpush3.msra.mxu0 %v7521_v43 }
 0x7d6   :  { %8469 = vmatprep.subr.mxu0 %v7536_v44 }
 0x7d7   :  { %8470 = vmatpush3.msra.mxu0 %v7520_v45 }
 0x7d8   :  { %8471 = vmatprep.subr.mxu0 %v7535_v46 }
 0x7d9   :  { %8472 = vmatpush3.msra.mxu0 %v7519_v49 }
 0x7da   :  { %8473 = vmatprep.subr.mxu0 %v7534_v50 }
 0x7db   :  { %8474 = vmatpush3.msra.mxu0 %v7518_v51 }
 0x7dc   :  { %8475 = vmatprep.subr.mxu0 %v7533_v52 }
 0x7dd   :  { %8476 = vmatpush3.msra.mxu0 %v7517_v53 }
 0x7de   :  { %1901 = vmatmul.mubr.f32.vlgmr.msra.gmra.mxu0 %v9687_v47  ;;  %8529 = vmatprep.subr.mxu0 %v7628_v23 }
 0x7df   :  { %1905 = vmatprep.mubr.f32.mxu0 %v9708_v30  ;;  %8530 = vmatpush3.msra.mxu0 %v7612_v24 }
 0x7e0   :  { %8531 = vmatprep.subr.mxu0 %v7627_v59 }
 0x7e1   :  { %8532 = vmatpush3.msra.mxu0 %v7611_v60 }
 0x7e2   :  { %1906 = vmatmul.mubr.f32.gmra.mxu0 %v9706_v29  ;;  %8533 = vmatprep.subr.mxu0 %v7626_v61 }
 0x7e3   :  { %8534 = vmatpush3.msra.mxu0 %v7610_v62  ;;  %2532 = vmatprep.mubr.f32.mxu0 %v9689_v48 }
 0x7e4   :  { %8535 = vmatprep.subr.mxu0 %v7625_v63 }
 0x7e5   :  { %8536 = vmatpush3.msra.mxu0 %v7609_v0 }
 0x7e6   :  { %8537 = vmatprep.subr.mxu0 %v7624_v1 }
 0x7e7   :  { %8538 = vmatpush3.msra.mxu0 %v7608_v2 }
 0x7e8   :  { %8539 = vmatprep.subr.mxu0 %v7623_v3 }
 0x7e9   :  { %8540 = vmatpush3.msra.mxu0 %v7607_v4 }
 0x7ea   :  { %8541 = vmatprep.subr.mxu0 %v7622_v5 }
 0x7eb   :  { %8542 = vmatpush3.msra.mxu0 %v7606_v6 }
 0x7ec   :  { %8543 = vmatprep.subr.mxu0 %v7621_v7 }
 0x7ed   :  { %8544 = vmatpush3.msra.mxu0 %v7605_v8 }
 0x7ee   :  { %8545 = vmatprep.subr.mxu0 %v7620_v9 }
 0x7ef   :  { %8546 = vmatpush3.msra.mxu0 %v7604_v10 }
 0x7f0   :  { %8547 = vmatprep.subr.mxu0 %v7619_v11 }
 0x7f1   :  { %8548 = vmatpush3.msra.mxu0 %v7603_v12 }
 0x7f2   :  { %8549 = vmatprep.subr.mxu0 %v7618_v13 }
 0x7f3   :  { %8550 = vmatpush3.msra.mxu0 %v7602_v14 }
 0x7f4   :  { %8551 = vmatprep.subr.mxu0 %v7617_v15  ;;  %v7562_v15 = vld [vmem:[%s14042_s6 + $0xb8] sm:$0xff] }
 0x7f5   :  { %8552 = vmatpush3.msra.mxu0 %v7601_v16 }
 0x7f6   :  { %8553 = vmatprep.subr.mxu0 %v7616_v17 }
 0x7f7   :  { %8554 = vmatpush3.msra.mxu0 %v7600_v18  ;;  %v7561_v18 = vld [vmem:[%s14042_s6 + $0xb0] sm:$0xff] }
 0x7f8   :  { %8555 = vmatprep.subr.mxu0 %v7615_v19  ;;  %v7560_v19 = vld [vmem:[%s14042_s6 + $0xa8] sm:$0xff] }
 0x7f9   :  { %8556 = vmatpush3.msra.mxu0 %v7599_v20  ;;  %v7559_v20 = vld [vmem:[%s14042_s6 + $0xa0] sm:$0xff] }
 0x7fa   :  { %8557 = vmatprep.subr.mxu0 %v7614_v21  ;;  %v7558_v21 = vld [vmem:[%s14042_s6 + $0x98] sm:$0xff] }
 0x7fb   :  { %8558 = vmatpush3.msra.mxu0 %v7598_v22  ;;  %v7557_v22 = vld [vmem:[%s14042_s6 + $0x90] sm:$0xff] }
 0x7fc   :  { %8559 = vmatprep.subr.mxu0 %v7613_v25  ;;  %v7556_v25 = vld [vmem:[%s14042_s6 + $0x88] sm:$0xff] }
 0x7fd   :  { %8560 = vmatpush3.msra.mxu0 %v7597_v26  ;;  %v7555_v26 = vld [vmem:[%s14042_s6 + $0x80] sm:$0xff] }
 0x7fe   :  { %2533 = vmatmul.mubr.f32.vlgmr.msra.gmra.mxu0 %v9687_v47  ;;  %9161 = vmatprep.subr.mxu0 %v9364_v57 }
 0x7ff   :  { %2537 = vmatprep.mubr.f32.mxu0 %v9708_v30 }
 0x802   :  { %2538 = vmatmul.mubr.f32.gmra.mxu0 %v9706_v29 }
 0x803   :  { %9163 = vmatprep.mubr.msk.f32.mxu0 %vm9365_vm0, %v9364_v57 }
 0x85e   :  { %v10618_v27 = vpop.f32.mrf.mxu0 }
 0x860   :  { %v10620_v28 = vpop.f32.mrf.mxu0 }
 0x862   :  { %v10622_v31 = vpop.f32.mrf.mxu0 }
 0x864   :  { %v10624_v36 = vpop.f32.mrf.mxu0 }
 0x87e   :  { %v8401_v37 = vpop.f32.mrf.mxu0 }
 0x880   :  { %v8402_v39 = vpop.f32.mrf.mxu0 }
 0x881   :  { %v8403_v40 = vadd.f32 %v8402_v39, %v8401_v37  ;;  %v7580_v37 = vld [vmem:[%s14039_s3 + $0x378] sm:$0xff]  ;;  %v7595_v39 = vld [vmem:[%s14039_s3 + $0x3f0] sm:$0xff] }
 0x882   :  { %v8404_v42 = vpop.f32.mrf.mxu0 }
 0x883   :  { %9144 = vmatmul.mubr.msk.f32.vlgmr.msra.gmra.mxu1 %vm438_vm1, %v8403_v40  ;;  %v7579_v40 = vld [vmem:[%s14039_s3 + $0x370] sm:$0xff] }
 0x884   :  { %9147 = vmatpush3.xpose.msk.msra.mxu1 %vm438_vm1, %v8444_v41  ;;  %v8405_v43 = vpop.f32.mrf.mxu0  ;;  %9148 = vmatprep.mubr.msk.f32.mxu1 %vm9365_vm0, %v9364_v57 }
 0x885   :  { %v8406_v44 = vadd.f32 %v8405_v43, %v8404_v42  ;;  %9151 = vmatprep.subr.mxu1 %v9364_v57  ;;  %v7594_v42 = vld [vmem:[%s14039_s3 + $0x3e8] sm:$0xff] }
 0x886   :  { %v7578_v43 = vld [vmem:[%s14039_s3 + $0x368] sm:$0xff] }
 0x887   :  { %9149 = vmatmul.mubr.msk.f32.vlgmr.msra.gmra.mxu1 %vm438_vm1, %v8406_v44 }
 0x888   :  { %9153 = vmatprep.mubr.msk.f32.mxu1 %vm9365_vm0, %v9364_v57 }
 0x89e   :  { %v8477_v45 = vpop.f32.mrf.mxu0 }
 0x8a0   :  { %v8478_v46 = vpop.f32.mrf.mxu0 }
 0x8a1   :  { %v8479_v49 = vadd.f32 %v8478_v46, %v8477_v45  ;;  %v7593_v45 = vld [vmem:[%s14039_s3 + $0x3e0] sm:$0xff] }
 0x8a2   :  { %v8480_v50 = vpop.f32.mrf.mxu0  ;;  %v7577_v46 = vld [vmem:[%s14039_s3 + $0x360] sm:$0xff] }
 0x8a3   :  { %9152 = vmatpush3.msra.mxu1 %v8479_v49 }
 0x8a4   :  { %v8481_v51 = vpop.f32.mrf.mxu0  ;;  %9156 = vmatprep.subr.mxu1 %v9364_v57 }
 0x8a5   :  { %v8482_v52 = vadd.f32 %v8481_v51, %v8480_v50  ;;  %v7592_v50 = vld [vmem:[%s14039_s3 + $0x3d8] sm:$0xff] }
 0x8a6   :  { %v7576_v51 = vld [vmem:[%s14039_s3 + $0x358] sm:$0xff] }
 0x8be   :  { %v8561_v53 = vpop.f32.mrf.mxu0 }
 0x8c0   :  { %v8562_v23 = vpop.f32.mrf.mxu0 }
 0x8c1   :  { %v8563_v24 = vadd.f32 %v8562_v23, %v8561_v53  ;;  %v7575_v53 = vld [vmem:[%s14039_s3 + $0x350] sm:$0xff]  ;;  %v7590_v23 = vld [vmem:[%s14039_s3 + $0x3c8] sm:$0xff] }
 0x8c3   :  { %9162 = vmatpush3.xpose.msk.msra.mxu0 %vm438_vm1, %v8563_v24  ;;  %v7574_v24 = vld [vmem:[%s14039_s3 + $0x348] sm:$0xff] }
 0x8c4   :  { %9166 = vmatprep.subr.mxu0 %v9364_v57 }
 0x943   :  { %v1983_v59 = vpop.f32.mrf.mxu1 }
 0x944   :  { %v2063_v60 = vsel %vm591_vm2, %v1983_v59, -inf }
 0x945   :  { %2064 = vmax.xlane.f32.xlu0 %v2063_v60  ;;  %v9145_v61 = vpop.f32.mrf.mxu1  ;;  %v7573_v60 = vld [vmem:[%s14039_s3 + $0x340] sm:$0xff] }
 0x946   :  { %v7588_v61 = vld [vmem:[%s14039_s3 + $0x3b8] sm:$0xff] }
 0x947   :  { %v2059_v62 = vpop.f32.mrf.mxu1 }
 0x948   :  { %v2066_v63 = vsel %vm591_vm2, %v2059_v62, -inf }
 0x949   :  { %2067 = vmax.xlane.f32.xlu1 %v2066_v63  ;;  %v9150_v0 = vpop.f32.mrf.mxu1  ;;  %v7587_v63 = vld [vmem:[%s14039_s3 + $0x3b0] sm:$0xff] }
 0x94a   :  { %v7571_v0 = vld [vmem:[%s14039_s3 + $0x330] sm:$0xff] }
 0x9ce   :  { %v2065_v1 = vpop.xlane.xlu0 %2064 }
 0x9cf   :  { %v2069_v2 = vsub.f32 %v1983_v59, %v2065_v1  ;;  %v7589_v59 = vld [vmem:[%s14039_s3 + $0x3c0] sm:$0xff]  ;;  %v7586_v1 = vld [vmem:[%s14039_s3 + $0x3a8] sm:$0xff] }
 0x9d1   :  { %v2071_v3 = vmul.f32 1.442695, %v2069_v2  ;;  %v7570_v2 = vld [vmem:[%s14039_s3 + $0x328] sm:$0xff] }
 0x9d2   :  { %v2068_v4 = vpop.xlane.xlu1 %2067 }
 0x9d3   :  { %9286 = vpow2.f32 %v2071_v3  ;;  %v2070_v5 = vsub.f32 %v2059_v62, %v2068_v4  ;;  %v7572_v62 = vld [vmem:[%s14039_s3 + $0x338] sm:$0xff]  ;;  %v7585_v3 = vld [vmem:[%s14039_s3 + $0x3a0] sm:$0xff] }
 0x9d4   :  { %v7569_v4 = vld [vmem:[%s14039_s3 + $0x320] sm:$0xff] }
 0x9d5   :  { %v2073_v6 = vmul.f32 1.442695, %v2070_v5  ;;  %v7584_v5 = vld [vmem:[%s14039_s3 + $0x398] sm:$0xff] }
 0x9d7   :  { %9288 = vpow2.f32 %v2073_v6  ;;  %v7568_v6 = vld [vmem:[%s14039_s3 + $0x318] sm:$0xff] }
 0x9e0   :  { %v9287_v7 = vpop.eup %9286 }
 0x9e1   :  { %v2075_v8 = vsel %vm591_vm2, %v9287_v7, 0.0 }
 0x9e2   :  { %2076 = vadd.xlane.f32.xlu0 %v2075_v8  ;;  %v7567_v8 = vld [vmem:[%s14039_s3 + $0x310] sm:$0xff] }
 0x9e4   :  { %v9289_v9 = vpop.eup %9288 }
 0x9e5   :  { %v2078_v10 = vsel %vm591_vm2, %v9289_v9, 0.0 }
 0x9e6   :  { %2079 = vadd.xlane.f32.xlu1 %v2078_v10  ;;  %v7566_v10 = vld [vmem:[%s14039_s3 + $0x308] sm:$0xff] }
 0xa6b   :  { %v2077_v11 = vpop.xlane.xlu0 %2076 }
 0xa6c   :  { %9290 = vrcp.f32 %v2077_v11  ;;  %v7581_v11 = vld [vmem:[%s14039_s3 + $0x380] sm:$0xff] }
 0xa6f   :  { %v2080_v12 = vpop.xlane.xlu1 %2079 }
 0xa70   :  { %9292 = vrcp.f32 %v2080_v12  ;;  %v7565_v12 = vld [vmem:[%s14039_s3 + $0x300] sm:$0xff] }
 0xa79   :  { %v9291_v13 = vpop.eup %9290 }
 0xa7a   :  { %v2082_v14 = vmul.f32 %v9291_v13, %v9287_v7  ;;  %v7583_v7 = vld [vmem:[%s14039_s3 + $0x390] sm:$0xff]  ;;  %v7660_v13 = vld [vmem:[%s14041_s5 + $0x3f8] sm:$0xff] }
 0xa7c   :  { %9154 = vmatmul.mubr.msk.f32.vlgmr.msra.gmra.mxu1 %vm591_vm2, %v2082_v14  ;;  %v7644_v14 = vld [vmem:[%s14041_s5 + $0x378] sm:$0xff] }
 0xa7d   :  { %v9293_v16 = vpop.eup %9292  ;;  %9157 = vmatpush3.msra.mxu1 %v8482_v52  ;;  %9158 = vmatprep.mubr.msk.f32.mxu1 %vm9365_vm0, %v9364_v57  ;;  %v7591_v52 = vld [vmem:[%s14039_s3 + $0x3d0] sm:$0xff] }
 0xa7e   :  { %v2084_v17 = vmul.f32 %v9293_v16, %v9289_v9  ;;  %2270 = vmatprep.subr.mxu1 %v7562_v15  ;;  %v7582_v9 = vld [vmem:[%s14039_s3 + $0x388] sm:$0xff]  ;;  %v7659_v15 = vld [vmem:[%s14041_s5 + $0x3f0] sm:$0xff] }
 0xa7f   :  { %v7643_v16 = vld [vmem:[%s14041_s5 + $0x370] sm:$0xff] }
 0xa80   :  { %9159 = vmatmul.mubr.msk.f32.vlgmr.msra.gmra.mxu1 %vm591_vm2, %v2084_v17  ;;  %v7658_v17 = vld [vmem:[%s14041_s5 + $0x3e8] sm:$0xff] }
 0xa81   :  { %2271 = vmatpush1.msra.mxu1 %v7561_v18  ;;  %2310 = vmatprep.mubr.f32.mxu1 %v9364_v57  ;;  %v7642_v18 = vld [vmem:[%s14041_s5 + $0x368] sm:$0xff] }
 0xa82   :  { %2272 = vmatprep.subr.mxu1 %v7560_v19  ;;  %v7657_v19 = vld [vmem:[%s14041_s5 + $0x3e0] sm:$0xff] }
 0xa83   :  { %2273 = vmatpush1.msra.mxu1 %v7559_v20  ;;  %v7641_v20 = vld [vmem:[%s14041_s5 + $0x360] sm:$0xff] }
 0xa84   :  { %2274 = vmatprep.subr.mxu1 %v7558_v21  ;;  %v7656_v21 = vld [vmem:[%s14041_s5 + $0x3d8] sm:$0xff] }
 0xa85   :  { %2275 = vmatpush1.msra.mxu1 %v7557_v22  ;;  %v7640_v22 = vld [vmem:[%s14041_s5 + $0x358] sm:$0xff] }
 0xa86   :  { %2276 = vmatprep.subr.mxu1 %v7556_v25  ;;  %v7655_v25 = vld [vmem:[%s14041_s5 + $0x3d0] sm:$0xff] }
 0xa87   :  { %2277 = vmatpush1.msra.mxu1 %v7555_v26  ;;  %v7639_v26 = vld [vmem:[%s14041_s5 + $0x350] sm:$0xff] }
 0xa88   :  { %8491 = vmatprep.subr.mxu1 %v7596_v35  ;;  %v7654_v35 = vld [vmem:[%s14041_s5 + $0x3c8] sm:$0xff] }
 0xb3c   :  { %v2154_v38 = vpop.f32.mrf.mxu1 }
 0xb3d   :  { %7563 = vmatmul.mubr.msk.f32.vlgmr.msra.gmra.mxu1 %vm438_vm1, %v2154_v38  ;;  %v7653_v38 = vld [vmem:[%s14041_s5 + $0x3c0] sm:$0xff] }
 0xb3e   :  { %8492 = vmatpush3.msra.mxu1 %v7580_v37  ;;  %v9155_v41 = vpop.f32.mrf.mxu1  ;;  %2316 = vmatprep.mubr.f32.mxu1 %v9364_v57  ;;  %v7638_v37 = vld [vmem:[%s14041_s5 + $0x348] sm:$0xff] }
 0xb3f   :  { %8493 = vmatprep.subr.mxu1 %v7595_v39  ;;  %v7637_v39 = vld [vmem:[%s14041_s5 + $0x340] sm:$0xff]  ;;  %v7636_v41 = vld [vmem:[%s14041_s5 + $0x338] sm:$0xff] }
 0xb40   :  { %8494 = vmatpush3.msra.mxu1 %v7579_v40  ;;  %v2227_v44 = vpop.f32.mrf.mxu1  ;;  %v7652_v40 = vld [vmem:[%s14041_s5 + $0x3b8] sm:$0xff] }
 0xb41   :  { %8495 = vmatprep.subr.mxu1 %v7594_v42  ;;  %7564 = vmatmul.mubr.msk.f32.gmra.mxu1 %vm438_vm1, %v2227_v44  ;;  %v7651_v42 = vld [vmem:[%s14041_s5 + $0x3b0] sm:$0xff]  ;;  %v7650_v44 = vld [vmem:[%s14041_s5 + $0x3a8] sm:$0xff] }
 0xb42   :  { %8496 = vmatpush3.msra.mxu1 %v7578_v43  ;;  %v9160_v49 = vpop.f32.mrf.mxu1  ;;  %2424 = vmatprep.mubr.f32.mxu1 %v9689_v48  ;;  %v7635_v43 = vld [vmem:[%s14041_s5 + $0x330] sm:$0xff] }
 0xb43   :  { %8497 = vmatprep.subr.mxu1 %v7593_v45  ;;  %v7634_v45 = vld [vmem:[%s14041_s5 + $0x328] sm:$0xff]  ;;  %v7633_v49 = vld [vmem:[%s14041_s5 + $0x320] sm:$0xff] }
 0xb44   :  { %8498 = vmatpush3.msra.mxu1 %v7577_v46  ;;  %v7649_v46 = vld [vmem:[%s14041_s5 + $0x3a0] sm:$0xff] }
 0xb45   :  { %8499 = vmatprep.subr.mxu1 %v7592_v50  ;;  %v7648_v50 = vld [vmem:[%s14041_s5 + $0x398] sm:$0xff] }
 0xb46   :  { %8500 = vmatpush3.msra.mxu1 %v7576_v51  ;;  %v7632_v51 = vld [vmem:[%s14041_s5 + $0x318] sm:$0xff] }
 0xb47   :  { %8501 = vmatprep.subr.mxu1 %v7591_v52  ;;  %v7647_v52 = vld [vmem:[%s14041_s5 + $0x390] sm:$0xff] }
 0xb48   :  { %8502 = vmatpush3.msra.mxu1 %v7575_v53  ;;  %v7631_v53 = vld [vmem:[%s14041_s5 + $0x310] sm:$0xff] }
 0xb49   :  { %8503 = vmatprep.subr.mxu1 %v7590_v23  ;;  %v7646_v23 = vld [vmem:[%s14041_s5 + $0x388] sm:$0xff] }
 0xb4a   :  { %8504 = vmatpush3.msra.mxu1 %v7574_v24  ;;  %v7630_v24 = vld [vmem:[%s14041_s5 + $0x308] sm:$0xff] }
 0xb4b   :  { %8505 = vmatprep.subr.mxu1 %v7589_v59  ;;  %v7645_v59 = vld [vmem:[%s14041_s5 + $0x380] sm:$0xff] }
 0xb4c   :  { %8506 = vmatpush3.msra.mxu1 %v7573_v60  ;;  %v7629_v60 = vld [vmem:[%s14041_s5 + $0x300] sm:$0xff] }
 0xb4d   :  { %8507 = vmatprep.subr.mxu1 %v7588_v61  ;;  %v7740_v61 = vld [vmem:[%s14040_s4 + $0x4f8] sm:$0xff] }
 0xb4e   :  { %8508 = vmatpush3.msra.mxu1 %v7572_v62  ;;  %v7724_v62 = vld [vmem:[%s14040_s4 + $0x478] sm:$0xff] }
 0xb4f   :  { %8509 = vmatprep.subr.mxu1 %v7587_v63  ;;  %v7739_v63 = vld [vmem:[%s14040_s4 + $0x4f0] sm:$0xff] }
 0xb50   :  { %8510 = vmatpush3.msra.mxu1 %v7571_v0  ;;  %v7723_v0 = vld [vmem:[%s14040_s4 + $0x470] sm:$0xff] }
 0xb51   :  { %8511 = vmatprep.subr.mxu1 %v7586_v1  ;;  %v7738_v1 = vld [vmem:[%s14040_s4 + $0x4e8] sm:$0xff] }
 0xb52   :  { %8512 = vmatpush3.msra.mxu1 %v7570_v2  ;;  %v7722_v2 = vld [vmem:[%s14040_s4 + $0x468] sm:$0xff] }
 0xb53   :  { %8513 = vmatprep.subr.mxu1 %v7585_v3  ;;  %v7737_v3 = vld [vmem:[%s14040_s4 + $0x4e0] sm:$0xff] }
 0xb54   :  { %8514 = vmatpush3.msra.mxu1 %v7569_v4  ;;  %v7721_v4 = vld [vmem:[%s14040_s4 + $0x460] sm:$0xff] }
 0xb55   :  { %8515 = vmatprep.subr.mxu1 %v7584_v5  ;;  %v7736_v5 = vld [vmem:[%s14040_s4 + $0x4d8] sm:$0xff] }
 0xb56   :  { %8516 = vmatpush3.msra.mxu1 %v7568_v6  ;;  %v7720_v6 = vld [vmem:[%s14040_s4 + $0x458] sm:$0xff] }
 0xb57   :  { %8517 = vmatprep.subr.mxu1 %v7583_v7  ;;  %v7735_v7 = vld [vmem:[%s14040_s4 + $0x4d0] sm:$0xff] }
 0xb58   :  { %8518 = vmatpush3.msra.mxu1 %v7567_v8  ;;  %v7719_v8 = vld [vmem:[%s14040_s4 + $0x450] sm:$0xff] }
 0xb59   :  { %8519 = vmatprep.subr.mxu1 %v7582_v9  ;;  %v7734_v9 = vld [vmem:[%s14040_s4 + $0x4c8] sm:$0xff] }
 0xb5a   :  { %8520 = vmatpush3.msra.mxu1 %v7566_v10  ;;  %v7718_v10 = vld [vmem:[%s14040_s4 + $0x448] sm:$0xff] }
 0xb5b   :  { %8521 = vmatprep.subr.mxu1 %v7581_v11  ;;  %v7733_v11 = vld [vmem:[%s14040_s4 + $0x4c0] sm:$0xff] }
 0xb5c   :  { %8522 = vmatpush3.msra.mxu1 %v7565_v12  ;;  %v7717_v12 = vld [vmem:[%s14040_s4 + $0x440] sm:$0xff] }
 0xb5d   :  { %2425 = vmatmul.mubr.f32.vlgmr.msra.gmra.mxu1 %v9687_v47  ;;  %8567 = vmatprep.subr.mxu1 %v7660_v13  ;;  %v7732_v13 = vld [vmem:[%s14040_s4 + $0x4b8] sm:$0xff] }
 0xb5e   :  { %2429 = vmatprep.mubr.f32.mxu1 %v9708_v30  ;;  %8568 = vmatpush3.msra.mxu1 %v7644_v14  ;;  %v7716_v14 = vld [vmem:[%s14040_s4 + $0x438] sm:$0xff] }
 0xb5f   :  { %8569 = vmatprep.subr.mxu1 %v7659_v15  ;;  %v7731_v15 = vld [vmem:[%s14040_s4 + $0x4b0] sm:$0xff] }
 0xb60   :  { %8570 = vmatpush3.msra.mxu1 %v7643_v16  ;;  %v7715_v16 = vld [vmem:[%s14040_s4 + $0x430] sm:$0xff] }
 0xb61   :  { %2430 = vmatmul.mubr.f32.gmra.mxu1 %v9706_v29  ;;  %8571 = vmatprep.subr.mxu1 %v7658_v17  ;;  %v7730_v17 = vld [vmem:[%s14040_s4 + $0x4a8] sm:$0xff] }
 0xb62   :  { %8572 = vmatpush3.msra.mxu1 %v7642_v18  ;;  %2640 = vmatprep.mubr.f32.mxu1 %v9689_v48  ;;  %v7714_v18 = vld [vmem:[%s14040_s4 + $0x428] sm:$0xff] }
 0xb63   :  { %8573 = vmatprep.subr.mxu1 %v7657_v19  ;;  %v7729_v19 = vld [vmem:[%s14040_s4 + $0x4a0] sm:$0xff] }
 0xb64   :  { %8574 = vmatpush3.msra.mxu1 %v7641_v20  ;;  %v7713_v20 = vld [vmem:[%s14040_s4 + $0x420] sm:$0xff] }
 0xb65   :  { %8575 = vmatprep.subr.mxu1 %v7656_v21  ;;  %v7728_v21 = vld [vmem:[%s14040_s4 + $0x498] sm:$0xff] }
 0xb66   :  { %8576 = vmatpush3.msra.mxu1 %v7640_v22  ;;  %v7712_v22 = vld [vmem:[%s14040_s4 + $0x418] sm:$0xff] }
 0xb67   :  { %8577 = vmatprep.subr.mxu1 %v7655_v25  ;;  %v7727_v25 = vld [vmem:[%s14040_s4 + $0x490] sm:$0xff] }
 0xb68   :  { %8578 = vmatpush3.msra.mxu1 %v7639_v26  ;;  %v7711_v26 = vld [vmem:[%s14040_s4 + $0x410] sm:$0xff] }
 0xb69   :  { %8579 = vmatprep.subr.mxu1 %v7654_v35  ;;  %v7726_v35 = vld [vmem:[%s14040_s4 + $0x488] sm:$0xff] }
 0xb6a   :  { %8580 = vmatpush3.msra.mxu1 %v7638_v37  ;;  %v7710_v37 = vld [vmem:[%s14040_s4 + $0x408] sm:$0xff] }
 0xb6b   :  { %8581 = vmatprep.subr.mxu1 %v7653_v38  ;;  %v7725_v38 = vld [vmem:[%s14040_s4 + $0x480] sm:$0xff] }
 0xb6c   :  { %8582 = vmatpush3.msra.mxu1 %v7637_v39  ;;  %v7709_v39 = vld [vmem:[%s14040_s4 + $0x400] sm:$0xff] }
 0xb6d   :  { %8583 = vmatprep.subr.mxu1 %v7652_v40  ;;  %v1577_v40 = vadd.f32 %v10269_v54, %v10618_v27  ;;  %v8564_v27 = vpop.f32.mrf.mxu0 }
 0xb6e   :  { %8584 = vmatpush3.msra.mxu1 %v7636_v41 }
 0xb6f   :  { %8585 = vmatprep.subr.mxu1 %v7651_v42  ;;  %v1579_v42 = vadd.f32 %v10271_v55, %v10620_v28  ;;  %v8565_v55 = vpop.f32.mrf.mxu0 }
 0xb70   :  { %8586 = vmatpush3.msra.mxu1 %v7635_v43 }
 0xb71   :  { %8587 = vmatprep.subr.mxu1 %v7650_v44 }
 0xb72   :  { %8588 = vmatpush3.msra.mxu1 %v7634_v45  ;;  %v1583_v45 = vadd.f32 %v10273_v56, %v10622_v31 }
 0xb73   :  { %8589 = vmatprep.subr.mxu1 %v7649_v46 }
 0xb74   :  { %8590 = vmatpush3.msra.mxu1 %v7633_v49 }
 0xb75   :  { %8591 = vmatprep.subr.mxu1 %v7648_v50  ;;  %v1585_v50 = vadd.f32 %v10275_v58, %v10624_v36 }
 0xb76   :  { %8592 = vmatpush3.msra.mxu1 %v7632_v51 }
 0xb77   :  { %8593 = vmatprep.subr.mxu1 %v7647_v52 }
 0xb78   :  { %8594 = vmatpush3.msra.mxu1 %v7631_v53 }
 0xb79   :  { %8595 = vmatprep.subr.mxu1 %v7646_v23 }
 0xb7a   :  { %8596 = vmatpush3.msra.mxu1 %v7630_v24  ;;  %v8566_v24 = vadd.f32 %v8565_v55, %v8564_v27  ;;  %v7691_v27 = vld [vmem:[%s14039_s3 + $0x470] sm:$0xff]  ;;  %v7706_v55 = vld [vmem:[%s14039_s3 + $0x4e8] sm:$0xff] }
 0xb7b   :  { %8597 = vmatprep.subr.mxu1 %v7645_v59 }
 0xb7c   :  { %8598 = vmatpush3.msra.mxu1 %v7629_v60 }
 0xb7d   :  { %2641 = vmatmul.mubr.f32.vlgmr.msra.gmra.mxu1 %v9687_v47  ;;  %8651 = vmatprep.subr.mxu1 %v7740_v61 }
 0xb7e   :  { %2645 = vmatprep.mubr.f32.mxu1 %v9708_v30  ;;  %8652 = vmatpush3.msra.mxu1 %v7724_v62 }
 0xb7f   :  { %8653 = vmatprep.subr.mxu1 %v7739_v63 }
 0xb80   :  { %8654 = vmatpush3.msra.mxu1 %v7723_v0 }
 0xb81   :  { %2646 = vmatmul.mubr.f32.gmra.mxu1 %v9706_v29  ;;  %8655 = vmatprep.subr.mxu1 %v7738_v1 }
 0xb82   :  { %8656 = vmatpush3.msra.mxu1 %v7722_v2  ;;  %3272 = vmatprep.mubr.f32.mxu1 %v9689_v48 }
 0xb83   :  { %8657 = vmatprep.subr.mxu1 %v7737_v3 }
 0xb84   :  { %8658 = vmatpush3.msra.mxu1 %v7721_v4 }
 0xb85   :  { %8659 = vmatprep.subr.mxu1 %v7736_v5 }
 0xb86   :  { %8660 = vmatpush3.msra.mxu1 %v7720_v6 }
 0xb87   :  { %8661 = vmatprep.subr.mxu1 %v7735_v7 }
 0xb88   :  { %8662 = vmatpush3.msra.mxu1 %v7719_v8 }
 0xb89   :  { %8663 = vmatprep.subr.mxu1 %v7734_v9 }
 0xb8a   :  { %8664 = vmatpush3.msra.mxu1 %v7718_v10 }
 0xb8b   :  { %8665 = vmatprep.subr.mxu1 %v7733_v11 }
 0xb8c   :  { %8666 = vmatpush3.msra.mxu1 %v7717_v12 }
 0xb8d   :  { %8667 = vmatprep.subr.mxu1 %v7732_v13 }
 0xb8e   :  { %8668 = vmatpush3.msra.mxu1 %v7716_v14 }
 0xb8f   :  { %8669 = vmatprep.subr.mxu1 %v7731_v15 }
 0xb90   :  { %8670 = vmatpush3.msra.mxu1 %v7715_v16 }
 0xb91   :  { %8671 = vmatprep.subr.mxu1 %v7730_v17 }
 0xb92   :  { %8672 = vmatpush3.msra.mxu1 %v7714_v18 }
 0xb93   :  { %8673 = vmatprep.subr.mxu1 %v7729_v19 }
 0xb94   :  { %8674 = vmatpush3.msra.mxu1 %v7713_v20 }
 0xb95   :  { %8675 = vmatprep.subr.mxu1 %v7728_v21 }
 0xb96   :  { %8676 = vmatpush3.msra.mxu1 %v7712_v22 }
 0xb97   :  { %8677 = vmatprep.subr.mxu1 %v7727_v25  ;;  %v7674_v25 = vld [vmem:[%s14042_s6 + $0xf8] sm:$0xff] }
 0xb98   :  { %8678 = vmatpush3.msra.mxu1 %v7711_v26 }
 0xb99   :  { %8679 = vmatprep.subr.mxu1 %v7726_v35 }
 0xb9a   :  { %8680 = vmatpush3.msra.mxu1 %v7710_v37  ;;  %v7673_v37 = vld [vmem:[%s14042_s6 + $0xf0] sm:$0xff] }
 0xb9b   :  { %8681 = vmatprep.subr.mxu1 %v7725_v38  ;;  %v7672_v38 = vld [vmem:[%s14042_s6 + $0xe8] sm:$0xff] }
 0xb9c   :  { %8682 = vmatpush3.msra.mxu1 %v7709_v39  ;;  %v7671_v39 = vld [vmem:[%s14042_s6 + $0xe0] sm:$0xff] }
 0xb9d   :  { %3273 = vmatmul.mubr.f32.vlgmr.msra.gmra.mxu1 %v9687_v47  ;;  %9181 = vmatprep.subr.mxu1 %v9364_v57 }
 0xb9e   :  { %3277 = vmatprep.mubr.f32.mxu1 %v9708_v30 }
 0xba1   :  { %3278 = vmatmul.mubr.f32.gmra.mxu1 %v9706_v29 }
 0xba2   :  { %9183 = vmatprep.mubr.msk.f32.mxu1 %vm9365_vm0, %v9364_v57 }
 0xbfd   :  { %v2312_v41 = vpop.f32.mrf.mxu1 }
 0xbfe   :  { %v10980_v43 = vadd.f32 %v2312_v41, %v1577_v40  ;;  %v7670_v40 = vld [vmem:[%s14042_s6 + $0xd8] sm:$0xff]  ;;  %v7669_v41 = vld [vmem:[%s14042_s6 + $0xd0] sm:$0xff] }
 0xbff   :  { %v2314_v44 = vpop.f32.mrf.mxu1 }
 0xc00   :  { %v10984_v46 = vadd.f32 %v2314_v44, %v1579_v42  ;;  %v7668_v42 = vld [vmem:[%s14042_s6 + $0xc8] sm:$0xff]  ;;  %v7667_v44 = vld [vmem:[%s14042_s6 + $0xc0] sm:$0xff] }
 0xc01   :  { %v2318_v49 = vpop.f32.mrf.mxu1 }
 0xc02   :  { %v10988_v51 = vadd.f32 %v2318_v49, %v1583_v45  ;;  %v7708_v45 = vld [vmem:[%s14039_s3 + $0x4f8] sm:$0xff] }
 0xc03   :  { %v2320_v52 = vpop.f32.mrf.mxu1  ;;  %v7692_v49 = vld [vmem:[%s14039_s3 + $0x478] sm:$0xff] }
 0xc04   :  { %v10990_v54 = vadd.f32 %v2320_v52, %v1585_v50  ;;  %v7707_v52 = vld [vmem:[%s14039_s3 + $0x4f0] sm:$0xff] }
 0xc1d   :  { %v8523_v53 = vpop.f32.mrf.mxu1 }
 0xc1f   :  { %v8524_v28 = vpop.f32.mrf.mxu1 }
 0xc20   :  { %v8525_v23 = vadd.f32 %v8524_v28, %v8523_v53  ;;  %v7690_v28 = vld [vmem:[%s14039_s3 + $0x468] sm:$0xff] }
 0xc21   :  { %v8526_v59 = vpop.f32.mrf.mxu1 }
 0xc22   :  { %9164 = vmatmul.mubr.msk.f32.vlgmr.msra.gmra.mxu0 %vm438_vm1, %v8525_v23 }
 0xc23   :  { %9167 = vmatpush3.xpose.msk.msra.mxu0 %vm438_vm1, %v8566_v24  ;;  %v8527_v56 = vpop.f32.mrf.mxu1  ;;  %9168 = vmatprep.mubr.msk.f32.mxu0 %vm9365_vm0, %v9364_v57  ;;  %v7705_v24 = vld [vmem:[%s14039_s3 + $0x4e0] sm:$0xff] }
 0xc24   :  { %v8528_v58 = vadd.f32 %v8527_v56, %v8526_v59  ;;  %9171 = vmatprep.subr.mxu0 %v9364_v57  ;;  %v7689_v59 = vld [vmem:[%s14039_s3 + $0x460] sm:$0xff] }
 0xc26   :  { %9169 = vmatmul.mubr.msk.f32.vlgmr.msra.gmra.mxu0 %vm438_vm1, %v8528_v58  ;;  %v7704_v58 = vld [vmem:[%s14039_s3 + $0x4d8] sm:$0xff] }
 0xc27   :  { %9173 = vmatprep.mubr.msk.f32.mxu0 %vm9365_vm0, %v9364_v57 }
 0xc3d   :  { %v8599_v31 = vpop.f32.mrf.mxu1 }
 0xc3f   :  { %v8600_v36 = vpop.f32.mrf.mxu1 }
 0xc40   :  { %v8601_v60 = vadd.f32 %v8600_v36, %v8599_v31  ;;  %v7688_v31 = vld [vmem:[%s14039_s3 + $0x458] sm:$0xff]  ;;  %v7703_v36 = vld [vmem:[%s14039_s3 + $0x4d0] sm:$0xff] }
 0xc41   :  { %v8602_v61 = vpop.f32.mrf.mxu1 }
 0xc42   :  { %9172 = vmatpush3.msra.mxu0 %v8601_v60  ;;  %v7687_v60 = vld [vmem:[%s14039_s3 + $0x450] sm:$0xff] }
 0xc43   :  { %v8603_v62 = vpop.f32.mrf.mxu1  ;;  %9176 = vmatprep.subr.mxu0 %v9364_v57 }
 0xc44   :  { %v8604_v63 = vadd.f32 %v8603_v62, %v8602_v61  ;;  %v7702_v61 = vld [vmem:[%s14039_s3 + $0x4c8] sm:$0xff] }
 0xc45   :  { %v7686_v62 = vld [vmem:[%s14039_s3 + $0x448] sm:$0xff] }
 0xc5d   :  { %v8683_v0 = vpop.f32.mrf.mxu1 }
 0xc5f   :  { %v8684_v1 = vpop.f32.mrf.mxu1 }
 0xc60   :  { %v8685_v2 = vadd.f32 %v8684_v1, %v8683_v0  ;;  %v7685_v0 = vld [vmem:[%s14039_s3 + $0x440] sm:$0xff]  ;;  %v7700_v1 = vld [vmem:[%s14039_s3 + $0x4b8] sm:$0xff] }
 0xc62   :  { %9182 = vmatpush3.xpose.msk.msra.mxu1 %vm438_vm1, %v8685_v2  ;;  %v7684_v2 = vld [vmem:[%s14039_s3 + $0x438] sm:$0xff] }
 0xc63   :  { %9186 = vmatprep.subr.mxu1 %v9364_v57 }
 0xce2   :  { %v2723_v3 = vpop.f32.mrf.mxu0 }
 0xce3   :  { %v2803_v4 = vsel %vm591_vm2, %v2723_v3, -inf }
 0xce4   :  { %2804 = vmax.xlane.f32.xlu0 %v2803_v4  ;;  %v9165_v5 = vpop.f32.mrf.mxu0  ;;  %v7683_v4 = vld [vmem:[%s14039_s3 + $0x430] sm:$0xff] }
 0xce5   :  { %v7698_v5 = vld [vmem:[%s14039_s3 + $0x4a8] sm:$0xff] }
 0xce6   :  { %v2799_v6 = vpop.f32.mrf.mxu0 }
 0xce7   :  { %v2806_v7 = vsel %vm591_vm2, %v2799_v6, -inf }
 0xce8   :  { %2807 = vmax.xlane.f32.xlu1 %v2806_v7  ;;  %v9170_v8 = vpop.f32.mrf.mxu0  ;;  %v7697_v7 = vld [vmem:[%s14039_s3 + $0x4a0] sm:$0xff] }
 0xce9   :  { %v7681_v8 = vld [vmem:[%s14039_s3 + $0x420] sm:$0xff] }
 0xd6d   :  { %v2805_v9 = vpop.xlane.xlu0 %2804 }
 0xd6e   :  { %v2809_v10 = vsub.f32 %v2723_v3, %v2805_v9  ;;  %v7699_v3 = vld [vmem:[%s14039_s3 + $0x4b0] sm:$0xff]  ;;  %v7696_v9 = vld [vmem:[%s14039_s3 + $0x498] sm:$0xff] }
 0xd70   :  { %v2811_v11 = vmul.f32 1.442695, %v2809_v10  ;;  %v7680_v10 = vld [vmem:[%s14039_s3 + $0x418] sm:$0xff] }
 0xd71   :  { %v2808_v12 = vpop.xlane.xlu1 %2807 }
 0xd72   :  { %9294 = vpow2.f32 %v2811_v11  ;;  %v2810_v13 = vsub.f32 %v2799_v6, %v2808_v12  ;;  %v7682_v6 = vld [vmem:[%s14039_s3 + $0x428] sm:$0xff]  ;;  %v7695_v11 = vld [vmem:[%s14039_s3 + $0x490] sm:$0xff] }
 0xd73   :  { %v7679_v12 = vld [vmem:[%s14039_s3 + $0x410] sm:$0xff] }
 0xd74   :  { %v2813_v14 = vmul.f32 1.442695, %v2810_v13  ;;  %v7694_v13 = vld [vmem:[%s14039_s3 + $0x488] sm:$0xff] }
 0xd76   :  { %9296 = vpow2.f32 %v2813_v14  ;;  %v7678_v14 = vld [vmem:[%s14039_s3 + $0x408] sm:$0xff] }
 0xd7f   :  { %v9295_v15 = vpop.eup %9294 }
 0xd80   :  { %v2815_v16 = vsel %vm591_vm2, %v9295_v15, 0.0 }
 0xd81   :  { %2816 = vadd.xlane.f32.xlu0 %v2815_v16  ;;  %v7677_v16 = vld [vmem:[%s14039_s3 + $0x400] sm:$0xff] }
 0xd83   :  { %v9297_v17 = vpop.eup %9296 }
 0xd84   :  { %v2818_v18 = vsel %vm591_vm2, %v9297_v17, 0.0 }
 0xd85   :  { %2819 = vadd.xlane.f32.xlu1 %v2818_v18  ;;  %v7756_v18 = vld [vmem:[%s14041_s5 + $0x478] sm:$0xff] }
 0xe0a   :  { %v2817_v19 = vpop.xlane.xlu0 %2816 }
 0xe0b   :  { %9298 = vrcp.f32 %v2817_v19  ;;  %v7771_v19 = vld [vmem:[%s14041_s5 + $0x4f0] sm:$0xff] }
 0xe0e   :  { %v2820_v20 = vpop.xlane.xlu1 %2819 }
 0xe0f   :  { %9300 = vrcp.f32 %v2820_v20  ;;  %v7755_v20 = vld [vmem:[%s14041_s5 + $0x470] sm:$0xff] }
 0xe18   :  { %v9299_v21 = vpop.eup %9298 }
 0xe19   :  { %v2822_v22 = vmul.f32 %v9299_v21, %v9295_v15  ;;  %v7693_v15 = vld [vmem:[%s14039_s3 + $0x480] sm:$0xff]  ;;  %v7770_v21 = vld [vmem:[%s14041_s5 + $0x4e8] sm:$0xff] }
 0xe1b   :  { %9174 = vmatmul.mubr.msk.f32.vlgmr.msra.gmra.mxu0 %vm591_vm2, %v2822_v22  ;;  %v7754_v22 = vld [vmem:[%s14041_s5 + $0x468] sm:$0xff] }
 0xe1c   :  { %v9301_v26 = vpop.eup %9300  ;;  %9177 = vmatpush3.msra.mxu0 %v8604_v63  ;;  %9178 = vmatprep.mubr.msk.f32.mxu0 %vm9365_vm0, %v9364_v57  ;;  %v7701_v63 = vld [vmem:[%s14039_s3 + $0x4c0] sm:$0xff] }
 0xe1d   :  { %v2824_v35 = vmul.f32 %v9301_v26, %v9297_v17  ;;  %3010 = vmatprep.subr.mxu0 %v7674_v25  ;;  %v7772_v17 = vld [vmem:[%s14041_s5 + $0x4f8] sm:$0xff]  ;;  %v7769_v25 = vld [vmem:[%s14041_s5 + $0x4e0] sm:$0xff] }
 0xe1e   :  { %v7753_v26 = vld [vmem:[%s14041_s5 + $0x460] sm:$0xff] }
 0xe1f   :  { %9179 = vmatmul.mubr.msk.f32.vlgmr.msra.gmra.mxu0 %vm591_vm2, %v2824_v35  ;;  %v7768_v35 = vld [vmem:[%s14041_s5 + $0x4d8] sm:$0xff] }
 0xe20   :  { %3011 = vmatpush1.msra.mxu0 %v7673_v37  ;;  %3050 = vmatprep.mubr.f32.mxu0 %v9364_v57  ;;  %v7752_v37 = vld [vmem:[%s14041_s5 + $0x458] sm:$0xff] }
 0xe21   :  { %3012 = vmatprep.subr.mxu0 %v7672_v38  ;;  %v7767_v38 = vld [vmem:[%s14041_s5 + $0x4d0] sm:$0xff] }
 0xe22   :  { %3013 = vmatpush1.msra.mxu0 %v7671_v39  ;;  %v7751_v39 = vld [vmem:[%s14041_s5 + $0x450] sm:$0xff] }
 0xe23   :  { %3014 = vmatprep.subr.mxu0 %v7670_v40  ;;  %v7766_v40 = vld [vmem:[%s14041_s5 + $0x4c8] sm:$0xff] }
 0xe24   :  { %3015 = vmatpush1.msra.mxu0 %v7669_v41  ;;  %v7750_v41 = vld [vmem:[%s14041_s5 + $0x448] sm:$0xff] }
 0xe25   :  { %3016 = vmatprep.subr.mxu0 %v7668_v42  ;;  %v7765_v42 = vld [vmem:[%s14041_s5 + $0x4c0] sm:$0xff] }
 0xe26   :  { %3017 = vmatpush1.msra.mxu0 %v7667_v44  ;;  %v7749_v44 = vld [vmem:[%s14041_s5 + $0x440] sm:$0xff] }
 0xe27   :  { %8613 = vmatprep.subr.mxu0 %v7708_v45  ;;  %v7764_v45 = vld [vmem:[%s14041_s5 + $0x4b8] sm:$0xff] }
 0xedb   :  { %v2894_v50 = vpop.f32.mrf.mxu0 }
 0xedc   :  { %7675 = vmatmul.mubr.msk.f32.vlgmr.msra.gmra.mxu0 %vm438_vm1, %v2894_v50  ;;  %v7763_v50 = vld [vmem:[%s14041_s5 + $0x4b0] sm:$0xff] }
 0xedd   :  { %8614 = vmatpush3.msra.mxu0 %v7692_v49  ;;  %v9175_v53 = vpop.f32.mrf.mxu0  ;;  %3056 = vmatprep.mubr.f32.mxu0 %v9364_v57  ;;  %v7748_v49 = vld [vmem:[%s14041_s5 + $0x438] sm:$0xff] }
 0xede   :  { %8615 = vmatprep.subr.mxu0 %v7707_v52  ;;  %v7747_v52 = vld [vmem:[%s14041_s5 + $0x430] sm:$0xff]  ;;  %v7746_v53 = vld [vmem:[%s14041_s5 + $0x428] sm:$0xff] }
 0xedf   :  { %8616 = vmatpush3.msra.mxu0 %v7691_v27  ;;  %v2967_v23 = vpop.f32.mrf.mxu0  ;;  %v7762_v27 = vld [vmem:[%s14041_s5 + $0x4a8] sm:$0xff] }
 0xee0   :  { %8617 = vmatprep.subr.mxu0 %v7706_v55  ;;  %7676 = vmatmul.mubr.msk.f32.gmra.mxu0 %vm438_vm1, %v2967_v23  ;;  %v7761_v55 = vld [vmem:[%s14041_s5 + $0x4a0] sm:$0xff]  ;;  %v7760_v23 = vld [vmem:[%s14041_s5 + $0x498] sm:$0xff] }
 0xee1   :  { %8618 = vmatpush3.msra.mxu0 %v7690_v28  ;;  %v9180_v56 = vpop.f32.mrf.mxu0  ;;  %3164 = vmatprep.mubr.f32.mxu0 %v9689_v48  ;;  %v7745_v28 = vld [vmem:[%s14041_s5 + $0x420] sm:$0xff] }
 0xee2   :  { %8619 = vmatprep.subr.mxu0 %v7705_v24  ;;  %v7744_v24 = vld [vmem:[%s14041_s5 + $0x418] sm:$0xff]  ;;  %v7743_v56 = vld [vmem:[%s14041_s5 + $0x410] sm:$0xff] }
 0xee3   :  { %8620 = vmatpush3.msra.mxu0 %v7689_v59  ;;  %v7759_v59 = vld [vmem:[%s14041_s5 + $0x490] sm:$0xff] }
 0xee4   :  { %8621 = vmatprep.subr.mxu0 %v7704_v58  ;;  %v7758_v58 = vld [vmem:[%s14041_s5 + $0x488] sm:$0xff] }
 0xee5   :  { %8622 = vmatpush3.msra.mxu0 %v7688_v31  ;;  %v7742_v31 = vld [vmem:[%s14041_s5 + $0x408] sm:$0xff] }
 0xee6   :  { %8623 = vmatprep.subr.mxu0 %v7703_v36  ;;  %v7757_v36 = vld [vmem:[%s14041_s5 + $0x480] sm:$0xff] }
 0xee7   :  { %8624 = vmatpush3.msra.mxu0 %v7687_v60  ;;  %v7741_v60 = vld [vmem:[%s14041_s5 + $0x400] sm:$0xff] }
 0xee8   :  { %8625 = vmatprep.subr.mxu0 %v7702_v61  ;;  %v7852_v61 = vld [vmem:[%s14040_s4 + $0x5f8] sm:$0xff] }
 0xee9   :  { %8626 = vmatpush3.msra.mxu0 %v7686_v62  ;;  %v7836_v62 = vld [vmem:[%s14040_s4 + $0x578] sm:$0xff] }
 0xeea   :  { %8627 = vmatprep.subr.mxu0 %v7701_v63  ;;  %v7851_v63 = vld [vmem:[%s14040_s4 + $0x5f0] sm:$0xff] }
 0xeeb   :  { %8628 = vmatpush3.msra.mxu0 %v7685_v0  ;;  %v7835_v0 = vld [vmem:[%s14040_s4 + $0x570] sm:$0xff] }
 0xeec   :  { %8629 = vmatprep.subr.mxu0 %v7700_v1  ;;  %v7850_v1 = vld [vmem:[%s14040_s4 + $0x5e8] sm:$0xff] }
 0xeed   :  { %8630 = vmatpush3.msra.mxu0 %v7684_v2  ;;  %v7834_v2 = vld [vmem:[%s14040_s4 + $0x568] sm:$0xff] }
 0xeee   :  { %8631 = vmatprep.subr.mxu0 %v7699_v3  ;;  %v7849_v3 = vld [vmem:[%s14040_s4 + $0x5e0] sm:$0xff] }
 0xeef   :  { %8632 = vmatpush3.msra.mxu0 %v7683_v4  ;;  %v7833_v4 = vld [vmem:[%s14040_s4 + $0x560] sm:$0xff] }
 0xef0   :  { %8633 = vmatprep.subr.mxu0 %v7698_v5  ;;  %v7848_v5 = vld [vmem:[%s14040_s4 + $0x5d8] sm:$0xff] }
 0xef1   :  { %8634 = vmatpush3.msra.mxu0 %v7682_v6  ;;  %v7832_v6 = vld [vmem:[%s14040_s4 + $0x558] sm:$0xff] }
 0xef2   :  { %8635 = vmatprep.subr.mxu0 %v7697_v7  ;;  %v7847_v7 = vld [vmem:[%s14040_s4 + $0x5d0] sm:$0xff] }
 0xef3   :  { %8636 = vmatpush3.msra.mxu0 %v7681_v8  ;;  %v7831_v8 = vld [vmem:[%s14040_s4 + $0x550] sm:$0xff] }
 0xef4   :  { %8637 = vmatprep.subr.mxu0 %v7696_v9  ;;  %v7846_v9 = vld [vmem:[%s14040_s4 + $0x5c8] sm:$0xff] }
 0xef5   :  { %8638 = vmatpush3.msra.mxu0 %v7680_v10  ;;  %v7830_v10 = vld [vmem:[%s14040_s4 + $0x548] sm:$0xff] }
 0xef6   :  { %8639 = vmatprep.subr.mxu0 %v7695_v11  ;;  %v7845_v11 = vld [vmem:[%s14040_s4 + $0x5c0] sm:$0xff] }
 0xef7   :  { %8640 = vmatpush3.msra.mxu0 %v7679_v12  ;;  %v7829_v12 = vld [vmem:[%s14040_s4 + $0x540] sm:$0xff] }
 0xef8   :  { %8641 = vmatprep.subr.mxu0 %v7694_v13  ;;  %v7844_v13 = vld [vmem:[%s14040_s4 + $0x5b8] sm:$0xff] }
 0xef9   :  { %8642 = vmatpush3.msra.mxu0 %v7678_v14  ;;  %v7828_v14 = vld [vmem:[%s14040_s4 + $0x538] sm:$0xff] }
 0xefa   :  { %8643 = vmatprep.subr.mxu0 %v7693_v15  ;;  %v7843_v15 = vld [vmem:[%s14040_s4 + $0x5b0] sm:$0xff] }
 0xefb   :  { %8644 = vmatpush3.msra.mxu0 %v7677_v16  ;;  %v7827_v16 = vld [vmem:[%s14040_s4 + $0x530] sm:$0xff] }
 0xefc   :  { %3165 = vmatmul.mubr.f32.vlgmr.msra.gmra.mxu0 %v9687_v47  ;;  %8689 = vmatprep.subr.mxu0 %v7772_v17  ;;  %v7842_v17 = vld [vmem:[%s14040_s4 + $0x5a8] sm:$0xff] }
 0xefd   :  { %3169 = vmatprep.mubr.f32.mxu0 %v9708_v30  ;;  %8690 = vmatpush3.msra.mxu0 %v7756_v18  ;;  %v7826_v18 = vld [vmem:[%s14040_s4 + $0x528] sm:$0xff] }
 0xefe   :  { %8691 = vmatprep.subr.mxu0 %v7771_v19  ;;  %v7841_v19 = vld [vmem:[%s14040_s4 + $0x5a0] sm:$0xff] }
 0xeff   :  { %8692 = vmatpush3.msra.mxu0 %v7755_v20  ;;  %v7825_v20 = vld [vmem:[%s14040_s4 + $0x520] sm:$0xff] }
 0xf00   :  { %3170 = vmatmul.mubr.f32.gmra.mxu0 %v9706_v29  ;;  %8693 = vmatprep.subr.mxu0 %v7770_v21  ;;  %v7840_v21 = vld [vmem:[%s14040_s4 + $0x598] sm:$0xff] }
 0xf01   :  { %8694 = vmatpush3.msra.mxu0 %v7754_v22  ;;  %3380 = vmatprep.mubr.f32.mxu0 %v9689_v48  ;;  %v7824_v22 = vld [vmem:[%s14040_s4 + $0x518] sm:$0xff] }
 0xf02   :  { %8695 = vmatprep.subr.mxu0 %v7769_v25  ;;  %v7839_v25 = vld [vmem:[%s14040_s4 + $0x590] sm:$0xff] }
 0xf03   :  { %8696 = vmatpush3.msra.mxu0 %v7753_v26  ;;  %v7823_v26 = vld [vmem:[%s14040_s4 + $0x510] sm:$0xff] }
 0xf04   :  { %8697 = vmatprep.subr.mxu0 %v7768_v35  ;;  %v7838_v35 = vld [vmem:[%s14040_s4 + $0x588] sm:$0xff] }
 0xf05   :  { %8698 = vmatpush3.msra.mxu0 %v7752_v37  ;;  %v7822_v37 = vld [vmem:[%s14040_s4 + $0x508] sm:$0xff] }
 0xf06   :  { %8699 = vmatprep.subr.mxu0 %v7767_v38  ;;  %v7837_v38 = vld [vmem:[%s14040_s4 + $0x580] sm:$0xff] }
 0xf07   :  { %8700 = vmatpush3.msra.mxu0 %v7751_v39  ;;  %v7821_v39 = vld [vmem:[%s14040_s4 + $0x500] sm:$0xff] }
 0xf08   :  { %8701 = vmatprep.subr.mxu0 %v7766_v40 }
 0xf09   :  { %8702 = vmatpush3.msra.mxu0 %v7750_v41 }
 0xf0a   :  { %8703 = vmatprep.subr.mxu0 %v7765_v42 }
 0xf0b   :  { %8704 = vmatpush3.msra.mxu0 %v7749_v44 }
 0xf0c   :  { %8705 = vmatprep.subr.mxu0 %v7764_v45 }
 0xf0d   :  { %8706 = vmatpush3.msra.mxu0 %v7748_v49 }
 0xf0e   :  { %8707 = vmatprep.subr.mxu0 %v7763_v50 }
 0xf0f   :  { %8708 = vmatpush3.msra.mxu0 %v7747_v52 }
 0xf10   :  { %8709 = vmatprep.subr.mxu0 %v7762_v27  ;;  %v8686_v27 = vpop.f32.mrf.mxu1 }
 0xf11   :  { %8710 = vmatpush3.msra.mxu0 %v7746_v53 }
 0xf12   :  { %8711 = vmatprep.subr.mxu0 %v7761_v55  ;;  %v8687_v55 = vpop.f32.mrf.mxu1 }
 0xf13   :  { %8712 = vmatpush3.msra.mxu0 %v7745_v28 }
 0xf14   :  { %8713 = vmatprep.subr.mxu0 %v7760_v23 }
 0xf15   :  { %8714 = vmatpush3.msra.mxu0 %v7744_v24  ;;  %v8688_v24 = vadd.f32 %v8687_v55, %v8686_v27  ;;  %v7803_v27 = vld [vmem:[%s14039_s3 + $0x570] sm:$0xff]  ;;  %v7818_v55 = vld [vmem:[%s14039_s3 + $0x5e8] sm:$0xff] }
 0xf16   :  { %8715 = vmatprep.subr.mxu0 %v7759_v59 }
 0xf17   :  { %8716 = vmatpush3.msra.mxu0 %v7743_v56 }
 0xf18   :  { %8717 = vmatprep.subr.mxu0 %v7758_v58 }
 0xf19   :  { %8718 = vmatpush3.msra.mxu0 %v7742_v31 }
 0xf1a   :  { %8719 = vmatprep.subr.mxu0 %v7757_v36 }
 0xf1b   :  { %8720 = vmatpush3.msra.mxu0 %v7741_v60 }
 0xf1c   :  { %3381 = vmatmul.mubr.f32.vlgmr.msra.gmra.mxu0 %v9687_v47  ;;  %8773 = vmatprep.subr.mxu0 %v7852_v61 }
 0xf1d   :  { %3385 = vmatprep.mubr.f32.mxu0 %v9708_v30  ;;  %8774 = vmatpush3.msra.mxu0 %v7836_v62 }
 0xf1e   :  { %8775 = vmatprep.subr.mxu0 %v7851_v63 }
 0xf1f   :  { %8776 = vmatpush3.msra.mxu0 %v7835_v0 }
 0xf20   :  { %3386 = vmatmul.mubr.f32.gmra.mxu0 %v9706_v29  ;;  %8777 = vmatprep.subr.mxu0 %v7850_v1 }
 0xf21   :  { %8778 = vmatpush3.msra.mxu0 %v7834_v2  ;;  %4012 = vmatprep.mubr.f32.mxu0 %v9689_v48 }
 0xf22   :  { %8779 = vmatprep.subr.mxu0 %v7849_v3 }
 0xf23   :  { %8780 = vmatpush3.msra.mxu0 %v7833_v4 }
 0xf24   :  { %8781 = vmatprep.subr.mxu0 %v7848_v5 }
 0xf25   :  { %8782 = vmatpush3.msra.mxu0 %v7832_v6 }
 0xf26   :  { %8783 = vmatprep.subr.mxu0 %v7847_v7 }
 0xf27   :  { %8784 = vmatpush3.msra.mxu0 %v7831_v8 }
 0xf28   :  { %8785 = vmatprep.subr.mxu0 %v7846_v9 }
 0xf29   :  { %8786 = vmatpush3.msra.mxu0 %v7830_v10 }
 0xf2a   :  { %8787 = vmatprep.subr.mxu0 %v7845_v11 }
 0xf2b   :  { %8788 = vmatpush3.msra.mxu0 %v7829_v12 }
 0xf2c   :  { %8789 = vmatprep.subr.mxu0 %v7844_v13 }
 0xf2d   :  { %8790 = vmatpush3.msra.mxu0 %v7828_v14 }
 0xf2e   :  { %8791 = vmatprep.subr.mxu0 %v7843_v15 }
 0xf2f   :  { %8792 = vmatpush3.msra.mxu0 %v7827_v16 }
 0xf30   :  { %8793 = vmatprep.subr.mxu0 %v7842_v17 }
 0xf31   :  { %8794 = vmatpush3.msra.mxu0 %v7826_v18 }
 0xf32   :  { %8795 = vmatprep.subr.mxu0 %v7841_v19  ;;  %v7786_v19 = vld [vmem:[%s14042_s6 + $0x138] sm:$0xff] }
 0xf33   :  { %8796 = vmatpush3.msra.mxu0 %v7825_v20 }
 0xf34   :  { %8797 = vmatprep.subr.mxu0 %v7840_v21 }
 0xf35   :  { %8798 = vmatpush3.msra.mxu0 %v7824_v22  ;;  %v7785_v22 = vld [vmem:[%s14042_s6 + $0x130] sm:$0xff] }
 0xf36   :  { %8799 = vmatprep.subr.mxu0 %v7839_v25  ;;  %v7784_v25 = vld [vmem:[%s14042_s6 + $0x128] sm:$0xff] }
 0xf37   :  { %8800 = vmatpush3.msra.mxu0 %v7823_v26  ;;  %v7783_v26 = vld [vmem:[%s14042_s6 + $0x120] sm:$0xff] }
 0xf38   :  { %8801 = vmatprep.subr.mxu0 %v7838_v35  ;;  %v7782_v35 = vld [vmem:[%s14042_s6 + $0x118] sm:$0xff] }
 0xf39   :  { %8802 = vmatpush3.msra.mxu0 %v7822_v37  ;;  %v7781_v37 = vld [vmem:[%s14042_s6 + $0x110] sm:$0xff] }
 0xf3a   :  { %8803 = vmatprep.subr.mxu0 %v7837_v38  ;;  %v7780_v38 = vld [vmem:[%s14042_s6 + $0x108] sm:$0xff] }
 0xf3b   :  { %8804 = vmatpush3.msra.mxu0 %v7821_v39  ;;  %v7779_v39 = vld [vmem:[%s14042_s6 + $0x100] sm:$0xff] }
 0xf3c   :  { %4013 = vmatmul.mubr.f32.vlgmr.msra.gmra.mxu0 %v9687_v47  ;;  %9201 = vmatprep.subr.mxu0 %v9364_v57 }
 0xf3d   :  { %4017 = vmatprep.mubr.f32.mxu0 %v9708_v30 }
 0xf40   :  { %4018 = vmatmul.mubr.f32.gmra.mxu0 %v9706_v29 }
 0xf41   :  { %9203 = vmatprep.mubr.msk.f32.mxu0 %vm9365_vm0, %v9364_v57 }
 0xf9c   :  { %v3052_v40 = vpop.f32.mrf.mxu0 }
 0xf9d   :  { %v11343_v41 = vadd.f32 %v3052_v40, %v10980_v43  ;;  %v7820_v40 = vld [vmem:[%s14039_s3 + $0x5f8] sm:$0xff] }
 0xf9e   :  { %v3054_v42 = vpop.f32.mrf.mxu0 }
 0xf9f   :  { %v11346_v44 = vadd.f32 %v3054_v42, %v10984_v46  ;;  %v7804_v42 = vld [vmem:[%s14039_s3 + $0x578] sm:$0xff] }
 0xfa0   :  { %v3058_v45 = vpop.f32.mrf.mxu0 }
 0xfa1   :  { %v11349_v49 = vadd.f32 %v3058_v45, %v10988_v51 }
 0xfa2   :  { %v3060_v50 = vpop.f32.mrf.mxu0 }
 0xfa3   :  { %v11352_v52 = vadd.f32 %v3060_v50, %v10990_v54  ;;  %v7819_v50 = vld [vmem:[%s14039_s3 + $0x5f0] sm:$0xff] }
 0xfbc   :  { %v8645_v53 = vpop.f32.mrf.mxu0 }
 0xfbe   :  { %v8646_v28 = vpop.f32.mrf.mxu0 }
 0xfbf   :  { %v8647_v23 = vadd.f32 %v8646_v28, %v8645_v53  ;;  %v7802_v28 = vld [vmem:[%s14039_s3 + $0x568] sm:$0xff] }
 0xfc0   :  { %v8648_v43 = vpop.f32.mrf.mxu0 }
 0xfc1   :  { %9184 = vmatmul.mubr.msk.f32.vlgmr.msra.gmra.mxu1 %vm438_vm1, %v8647_v23 }
 0xfc2   :  { %9187 = vmatpush3.xpose.msk.msra.mxu1 %vm438_vm1, %v8688_v24  ;;  %v8649_v46 = vpop.f32.mrf.mxu0  ;;  %9188 = vmatprep.mubr.msk.f32.mxu1 %vm9365_vm0, %v9364_v57  ;;  %v7817_v24 = vld [vmem:[%s14039_s3 + $0x5e0] sm:$0xff] }
 0xfc3   :  { %v8650_v51 = vadd.f32 %v8649_v46, %v8648_v43  ;;  %9191 = vmatprep.subr.mxu1 %v9364_v57  ;;  %v7801_v43 = vld [vmem:[%s14039_s3 + $0x560] sm:$0xff] }
 0xfc5   :  { %9189 = vmatmul.mubr.msk.f32.vlgmr.msra.gmra.mxu1 %vm438_vm1, %v8650_v51  ;;  %v7816_v51 = vld [vmem:[%s14039_s3 + $0x5d8] sm:$0xff] }
 0xfc6   :  { %9193 = vmatprep.mubr.msk.f32.mxu1 %vm9365_vm0, %v9364_v57 }
 0xfdc   :  { %v8721_v54 = vpop.f32.mrf.mxu0 }
 0xfde   :  { %v8722_v59 = vpop.f32.mrf.mxu0 }
 0xfdf   :  { %v8723_v56 = vadd.f32 %v8722_v59, %v8721_v54  ;;  %v7800_v54 = vld [vmem:[%s14039_s3 + $0x558] sm:$0xff]  ;;  %v7815_v59 = vld [vmem:[%s14039_s3 + $0x5d0] sm:$0xff] }
 0xfe0   :  { %v8724_v58 = vpop.f32.mrf.mxu0 }
 0xfe1   :  { %9192 = vmatpush3.msra.mxu1 %v8723_v56  ;;  %v7799_v56 = vld [vmem:[%s14039_s3 + $0x550] sm:$0xff] }
 0xfe2   :  { %v8725_v31 = vpop.f32.mrf.mxu0  ;;  %9196 = vmatprep.subr.mxu1 %v9364_v57 }
 0xfe3   :  { %v8726_v36 = vadd.f32 %v8725_v31, %v8724_v58  ;;  %v7814_v58 = vld [vmem:[%s14039_s3 + $0x5c8] sm:$0xff] }
 0xfe4   :  { %v7798_v31 = vld [vmem:[%s14039_s3 + $0x548] sm:$0xff] }
 0xffc   :  { %v8805_v60 = vpop.f32.mrf.mxu0 }
 0xffe   :  { %v8806_v61 = vpop.f32.mrf.mxu0 }
 0xfff   :  { %v8807_v62 = vadd.f32 %v8806_v61, %v8805_v60  ;;  %v7797_v60 = vld [vmem:[%s14039_s3 + $0x540] sm:$0xff]  ;;  %v7812_v61 = vld [vmem:[%s14039_s3 + $0x5b8] sm:$0xff] }
0x1001   :  { %9202 = vmatpush3.xpose.msk.msra.mxu0 %vm438_vm1, %v8807_v62  ;;  %v7796_v62 = vld [vmem:[%s14039_s3 + $0x538] sm:$0xff] }
0x1002   :  { %9206 = vmatprep.subr.mxu0 %v9364_v57 }
0x1081   :  { %v3463_v63 = vpop.f32.mrf.mxu1 }
0x1082   :  { %v3543_v0 = vsel %vm591_vm2, %v3463_v63, -inf }
0x1083   :  { %3544 = vmax.xlane.f32.xlu0 %v3543_v0  ;;  %v9185_v1 = vpop.f32.mrf.mxu1  ;;  %v7795_v0 = vld [vmem:[%s14039_s3 + $0x530] sm:$0xff] }
0x1084   :  { %v7810_v1 = vld [vmem:[%s14039_s3 + $0x5a8] sm:$0xff] }
0x1085   :  { %v3539_v2 = vpop.f32.mrf.mxu1 }
0x1086   :  { %v3546_v3 = vsel %vm591_vm2, %v3539_v2, -inf }
0x1087   :  { %3547 = vmax.xlane.f32.xlu1 %v3546_v3  ;;  %v9190_v4 = vpop.f32.mrf.mxu1  ;;  %v7809_v3 = vld [vmem:[%s14039_s3 + $0x5a0] sm:$0xff] }
0x1088   :  { %v7793_v4 = vld [vmem:[%s14039_s3 + $0x520] sm:$0xff] }
0x110c   :  { %v3545_v5 = vpop.xlane.xlu0 %3544 }
0x110d   :  { %v3549_v6 = vsub.f32 %v3463_v63, %v3545_v5  ;;  %v7811_v63 = vld [vmem:[%s14039_s3 + $0x5b0] sm:$0xff]  ;;  %v7808_v5 = vld [vmem:[%s14039_s3 + $0x598] sm:$0xff] }
0x110f   :  { %v3551_v7 = vmul.f32 1.442695, %v3549_v6  ;;  %v7792_v6 = vld [vmem:[%s14039_s3 + $0x518] sm:$0xff] }
0x1110   :  { %v3548_v8 = vpop.xlane.xlu1 %3547 }
0x1111   :  { %9302 = vpow2.f32 %v3551_v7  ;;  %v3550_v9 = vsub.f32 %v3539_v2, %v3548_v8  ;;  %v7794_v2 = vld [vmem:[%s14039_s3 + $0x528] sm:$0xff]  ;;  %v7807_v7 = vld [vmem:[%s14039_s3 + $0x590] sm:$0xff] }
0x1112   :  { %v7791_v8 = vld [vmem:[%s14039_s3 + $0x510] sm:$0xff] }
0x1113   :  { %v3553_v10 = vmul.f32 1.442695, %v3550_v9  ;;  %v7806_v9 = vld [vmem:[%s14039_s3 + $0x588] sm:$0xff] }
0x1115   :  { %9304 = vpow2.f32 %v3553_v10  ;;  %v7790_v10 = vld [vmem:[%s14039_s3 + $0x508] sm:$0xff] }
0x111e   :  { %v9303_v11 = vpop.eup %9302 }
0x111f   :  { %v3555_v12 = vsel %vm591_vm2, %v9303_v11, 0.0 }
0x1120   :  { %3556 = vadd.xlane.f32.xlu0 %v3555_v12  ;;  %v7789_v12 = vld [vmem:[%s14039_s3 + $0x500] sm:$0xff] }
0x1122   :  { %v9305_v13 = vpop.eup %9304 }
0x1123   :  { %v3558_v14 = vsel %vm591_vm2, %v9305_v13, 0.0 }
0x1124   :  { %3559 = vadd.xlane.f32.xlu1 %v3558_v14  ;;  %v7868_v14 = vld [vmem:[%s14041_s5 + $0x578] sm:$0xff] }
0x11a9   :  { %v3557_v15 = vpop.xlane.xlu0 %3556 }
0x11aa   :  { %9306 = vrcp.f32 %v3557_v15  ;;  %v7883_v15 = vld [vmem:[%s14041_s5 + $0x5f0] sm:$0xff] }
0x11ad   :  { %v3560_v16 = vpop.xlane.xlu1 %3559 }
0x11ae   :  { %9308 = vrcp.f32 %v3560_v16  ;;  %v7867_v16 = vld [vmem:[%s14041_s5 + $0x570] sm:$0xff] }
0x11b7   :  { %v9307_v17 = vpop.eup %9306 }
0x11b8   :  { %v3562_v18 = vmul.f32 %v9307_v17, %v9303_v11  ;;  %v7805_v11 = vld [vmem:[%s14039_s3 + $0x580] sm:$0xff]  ;;  %v7882_v17 = vld [vmem:[%s14041_s5 + $0x5e8] sm:$0xff] }
0x11ba   :  { %9194 = vmatmul.mubr.msk.f32.vlgmr.msra.gmra.mxu1 %vm591_vm2, %v3562_v18  ;;  %v7866_v18 = vld [vmem:[%s14041_s5 + $0x568] sm:$0xff] }
0x11bb   :  { %v9309_v20 = vpop.eup %9308  ;;  %9197 = vmatpush3.msra.mxu1 %v8726_v36  ;;  %9198 = vmatprep.mubr.msk.f32.mxu1 %vm9365_vm0, %v9364_v57  ;;  %v7813_v36 = vld [vmem:[%s14039_s3 + $0x5c0] sm:$0xff] }
0x11bc   :  { %v3564_v21 = vmul.f32 %v9309_v20, %v9305_v13  ;;  %3750 = vmatprep.subr.mxu1 %v7786_v19  ;;  %v7884_v13 = vld [vmem:[%s14041_s5 + $0x5f8] sm:$0xff]  ;;  %v7881_v19 = vld [vmem:[%s14041_s5 + $0x5e0] sm:$0xff] }
0x11bd   :  { %v7865_v20 = vld [vmem:[%s14041_s5 + $0x560] sm:$0xff] }
0x11be   :  { %9199 = vmatmul.mubr.msk.f32.vlgmr.msra.gmra.mxu1 %vm591_vm2, %v3564_v21  ;;  %v7880_v21 = vld [vmem:[%s14041_s5 + $0x5d8] sm:$0xff] }
0x11bf   :  { %3751 = vmatpush1.msra.mxu1 %v7785_v22  ;;  %3790 = vmatprep.mubr.f32.mxu1 %v9364_v57  ;;  %v7864_v22 = vld [vmem:[%s14041_s5 + $0x558] sm:$0xff] }
0x11c0   :  { %3752 = vmatprep.subr.mxu1 %v7784_v25  ;;  %v7879_v25 = vld [vmem:[%s14041_s5 + $0x5d0] sm:$0xff] }
0x11c1   :  { %3753 = vmatpush1.msra.mxu1 %v7783_v26  ;;  %v7863_v26 = vld [vmem:[%s14041_s5 + $0x550] sm:$0xff] }
0x11c2   :  { %3754 = vmatprep.subr.mxu1 %v7782_v35  ;;  %v7878_v35 = vld [vmem:[%s14041_s5 + $0x5c8] sm:$0xff] }
0x11c3   :  { %3755 = vmatpush1.msra.mxu1 %v7781_v37  ;;  %v7862_v37 = vld [vmem:[%s14041_s5 + $0x548] sm:$0xff] }
0x11c4   :  { %3756 = vmatprep.subr.mxu1 %v7780_v38  ;;  %v7877_v38 = vld [vmem:[%s14041_s5 + $0x5c0] sm:$0xff] }
0x11c5   :  { %3757 = vmatpush1.msra.mxu1 %v7779_v39  ;;  %v7861_v39 = vld [vmem:[%s14041_s5 + $0x540] sm:$0xff] }
0x11c6   :  { %8735 = vmatprep.subr.mxu1 %v7820_v40  ;;  %v7876_v40 = vld [vmem:[%s14041_s5 + $0x5b8] sm:$0xff] }
0x127a   :  { %v3634_v45 = vpop.f32.mrf.mxu1 }
0x127b   :  { %7787 = vmatmul.mubr.msk.f32.vlgmr.msra.gmra.mxu1 %vm438_vm1, %v3634_v45  ;;  %v7875_v45 = vld [vmem:[%s14041_s5 + $0x5b0] sm:$0xff] }
0x127c   :  { %8736 = vmatpush3.msra.mxu1 %v7804_v42  ;;  %v9195_v53 = vpop.f32.mrf.mxu1  ;;  %3796 = vmatprep.mubr.f32.mxu1 %v9364_v57  ;;  %v7860_v42 = vld [vmem:[%s14041_s5 + $0x538] sm:$0xff] }
0x127d   :  { %8737 = vmatprep.subr.mxu1 %v7819_v50  ;;  %v7859_v50 = vld [vmem:[%s14041_s5 + $0x530] sm:$0xff]  ;;  %v7858_v53 = vld [vmem:[%s14041_s5 + $0x528] sm:$0xff] }
0x127e   :  { %8738 = vmatpush3.msra.mxu1 %v7803_v27  ;;  %v3707_v23 = vpop.f32.mrf.mxu1  ;;  %v7874_v27 = vld [vmem:[%s14041_s5 + $0x5a8] sm:$0xff] }
0x127f   :  { %8739 = vmatprep.subr.mxu1 %v7818_v55  ;;  %7788 = vmatmul.mubr.msk.f32.gmra.mxu1 %vm438_vm1, %v3707_v23  ;;  %v7873_v55 = vld [vmem:[%s14041_s5 + $0x5a0] sm:$0xff]  ;;  %v7872_v23 = vld [vmem:[%s14041_s5 + $0x598] sm:$0xff] }
0x1280   :  { %8740 = vmatpush3.msra.mxu1 %v7802_v28  ;;  %v9200_v46 = vpop.f32.mrf.mxu1  ;;  %3904 = vmatprep.mubr.f32.mxu1 %v9689_v48  ;;  %v7857_v28 = vld [vmem:[%s14041_s5 + $0x520] sm:$0xff] }
0x1281   :  { %8741 = vmatprep.subr.mxu1 %v7817_v24  ;;  %v7856_v24 = vld [vmem:[%s14041_s5 + $0x518] sm:$0xff]  ;;  %v7855_v46 = vld [vmem:[%s14041_s5 + $0x510] sm:$0xff] }
0x1282   :  { %8742 = vmatpush3.msra.mxu1 %v7801_v43  ;;  %v7871_v43 = vld [vmem:[%s14041_s5 + $0x590] sm:$0xff] }
0x1283   :  { %8743 = vmatprep.subr.mxu1 %v7816_v51  ;;  %v7870_v51 = vld [vmem:[%s14041_s5 + $0x588] sm:$0xff] }
0x1284   :  { %8744 = vmatpush3.msra.mxu1 %v7800_v54  ;;  %v7854_v54 = vld [vmem:[%s14041_s5 + $0x508] sm:$0xff] }
0x1285   :  { %8745 = vmatprep.subr.mxu1 %v7815_v59  ;;  %v7869_v59 = vld [vmem:[%s14041_s5 + $0x580] sm:$0xff] }
0x1286   :  { %8746 = vmatpush3.msra.mxu1 %v7799_v56  ;;  %v7853_v56 = vld [vmem:[%s14041_s5 + $0x500] sm:$0xff] }
0x1287   :  { %8747 = vmatprep.subr.mxu1 %v7814_v58  ;;  %v7964_v58 = vld [vmem:[%s14040_s4 + $0x6f8] sm:$0xff] }
0x1288   :  { %8748 = vmatpush3.msra.mxu1 %v7798_v31  ;;  %v7948_v31 = vld [vmem:[%s14040_s4 + $0x678] sm:$0xff] }
0x1289   :  { %8749 = vmatprep.subr.mxu1 %v7813_v36  ;;  %v7963_v36 = vld [vmem:[%s14040_s4 + $0x6f0] sm:$0xff] }
0x128a   :  { %8750 = vmatpush3.msra.mxu1 %v7797_v60  ;;  %v7947_v60 = vld [vmem:[%s14040_s4 + $0x670] sm:$0xff] }
0x128b   :  { %8751 = vmatprep.subr.mxu1 %v7812_v61  ;;  %v7962_v61 = vld [vmem:[%s14040_s4 + $0x6e8] sm:$0xff] }
0x128c   :  { %8752 = vmatpush3.msra.mxu1 %v7796_v62  ;;  %v7946_v62 = vld [vmem:[%s14040_s4 + $0x668] sm:$0xff] }
0x128d   :  { %8753 = vmatprep.subr.mxu1 %v7811_v63  ;;  %v7961_v63 = vld [vmem:[%s14040_s4 + $0x6e0] sm:$0xff] }
0x128e   :  { %8754 = vmatpush3.msra.mxu1 %v7795_v0  ;;  %v7945_v0 = vld [vmem:[%s14040_s4 + $0x660] sm:$0xff] }
0x128f   :  { %8755 = vmatprep.subr.mxu1 %v7810_v1  ;;  %v7960_v1 = vld [vmem:[%s14040_s4 + $0x6d8] sm:$0xff] }
0x1290   :  { %8756 = vmatpush3.msra.mxu1 %v7794_v2  ;;  %v7944_v2 = vld [vmem:[%s14040_s4 + $0x658] sm:$0xff] }
0x1291   :  { %8757 = vmatprep.subr.mxu1 %v7809_v3  ;;  %v7959_v3 = vld [vmem:[%s14040_s4 + $0x6d0] sm:$0xff] }
0x1292   :  { %8758 = vmatpush3.msra.mxu1 %v7793_v4  ;;  %v7943_v4 = vld [vmem:[%s14040_s4 + $0x650] sm:$0xff] }
0x1293   :  { %8759 = vmatprep.subr.mxu1 %v7808_v5  ;;  %v7958_v5 = vld [vmem:[%s14040_s4 + $0x6c8] sm:$0xff] }
0x1294   :  { %8760 = vmatpush3.msra.mxu1 %v7792_v6  ;;  %v7942_v6 = vld [vmem:[%s14040_s4 + $0x648] sm:$0xff] }
0x1295   :  { %8761 = vmatprep.subr.mxu1 %v7807_v7  ;;  %v7957_v7 = vld [vmem:[%s14040_s4 + $0x6c0] sm:$0xff] }
0x1296   :  { %8762 = vmatpush3.msra.mxu1 %v7791_v8  ;;  %v7941_v8 = vld [vmem:[%s14040_s4 + $0x640] sm:$0xff] }
0x1297   :  { %8763 = vmatprep.subr.mxu1 %v7806_v9  ;;  %v7956_v9 = vld [vmem:[%s14040_s4 + $0x6b8] sm:$0xff] }
0x1298   :  { %8764 = vmatpush3.msra.mxu1 %v7790_v10  ;;  %v7940_v10 = vld [vmem:[%s14040_s4 + $0x638] sm:$0xff] }
0x1299   :  { %8765 = vmatprep.subr.mxu1 %v7805_v11  ;;  %v7955_v11 = vld [vmem:[%s14040_s4 + $0x6b0] sm:$0xff] }
0x129a   :  { %8766 = vmatpush3.msra.mxu1 %v7789_v12  ;;  %v7939_v12 = vld [vmem:[%s14040_s4 + $0x630] sm:$0xff] }
0x129b   :  { %3905 = vmatmul.mubr.f32.vlgmr.msra.gmra.mxu1 %v9687_v47  ;;  %8811 = vmatprep.subr.mxu1 %v7884_v13  ;;  %v7954_v13 = vld [vmem:[%s14040_s4 + $0x6a8] sm:$0xff] }
0x129c   :  { %3909 = vmatprep.mubr.f32.mxu1 %v9708_v30  ;;  %8812 = vmatpush3.msra.mxu1 %v7868_v14  ;;  %v7938_v14 = vld [vmem:[%s14040_s4 + $0x628] sm:$0xff] }
0x129d   :  { %8813 = vmatprep.subr.mxu1 %v7883_v15  ;;  %v7953_v15 = vld [vmem:[%s14040_s4 + $0x6a0] sm:$0xff] }
0x129e   :  { %8814 = vmatpush3.msra.mxu1 %v7867_v16  ;;  %v7937_v16 = vld [vmem:[%s14040_s4 + $0x620] sm:$0xff] }
0x129f   :  { %3910 = vmatmul.mubr.f32.gmra.mxu1 %v9706_v29  ;;  %8815 = vmatprep.subr.mxu1 %v7882_v17  ;;  %v7952_v17 = vld [vmem:[%s14040_s4 + $0x698] sm:$0xff] }
0x12a0   :  { %8816 = vmatpush3.msra.mxu1 %v7866_v18  ;;  %4120 = vmatprep.mubr.f32.mxu1 %v9689_v48  ;;  %v7936_v18 = vld [vmem:[%s14040_s4 + $0x618] sm:$0xff] }
0x12a1   :  { %8817 = vmatprep.subr.mxu1 %v7881_v19  ;;  %v7951_v19 = vld [vmem:[%s14040_s4 + $0x690] sm:$0xff] }
0x12a2   :  { %8818 = vmatpush3.msra.mxu1 %v7865_v20  ;;  %v7935_v20 = vld [vmem:[%s14040_s4 + $0x610] sm:$0xff] }
0x12a3   :  { %8819 = vmatprep.subr.mxu1 %v7880_v21  ;;  %v7950_v21 = vld [vmem:[%s14040_s4 + $0x688] sm:$0xff] }
0x12a4   :  { %8820 = vmatpush3.msra.mxu1 %v7864_v22  ;;  %v7934_v22 = vld [vmem:[%s14040_s4 + $0x608] sm:$0xff] }
0x12a5   :  { %8821 = vmatprep.subr.mxu1 %v7879_v25  ;;  %v7949_v25 = vld [vmem:[%s14040_s4 + $0x680] sm:$0xff] }
0x12a6   :  { %8822 = vmatpush3.msra.mxu1 %v7863_v26  ;;  %v7933_v26 = vld [vmem:[%s14040_s4 + $0x600] sm:$0xff] }
0x12a7   :  { %8823 = vmatprep.subr.mxu1 %v7878_v35 }
0x12a8   :  { %8824 = vmatpush3.msra.mxu1 %v7862_v37 }
0x12a9   :  { %8825 = vmatprep.subr.mxu1 %v7877_v38 }
0x12aa   :  { %8826 = vmatpush3.msra.mxu1 %v7861_v39 }
0x12ab   :  { %8827 = vmatprep.subr.mxu1 %v7876_v40 }
0x12ac   :  { %8828 = vmatpush3.msra.mxu1 %v7860_v42 }
0x12ad   :  { %8829 = vmatprep.subr.mxu1 %v7875_v45 }
0x12ae   :  { %8830 = vmatpush3.msra.mxu1 %v7859_v50 }
0x12af   :  { %8831 = vmatprep.subr.mxu1 %v7874_v27  ;;  %v8808_v27 = vpop.f32.mrf.mxu0 }
0x12b0   :  { %8832 = vmatpush3.msra.mxu1 %v7858_v53 }
0x12b1   :  { %8833 = vmatprep.subr.mxu1 %v7873_v55  ;;  %v8809_v55 = vpop.f32.mrf.mxu0 }
0x12b2   :  { %8834 = vmatpush3.msra.mxu1 %v7857_v28 }
0x12b3   :  { %8835 = vmatprep.subr.mxu1 %v7872_v23 }
0x12b4   :  { %8836 = vmatpush3.msra.mxu1 %v7856_v24  ;;  %v8810_v24 = vadd.f32 %v8809_v55, %v8808_v27  ;;  %v7915_v27 = vld [vmem:[%s14039_s3 + $0x670] sm:$0xff]  ;;  %v7930_v55 = vld [vmem:[%s14039_s3 + $0x6e8] sm:$0xff] }
0x12b5   :  { %8837 = vmatprep.subr.mxu1 %v7871_v43 }
0x12b6   :  { %8838 = vmatpush3.msra.mxu1 %v7855_v46 }
0x12b7   :  { %8839 = vmatprep.subr.mxu1 %v7870_v51 }
0x12b8   :  { %8840 = vmatpush3.msra.mxu1 %v7854_v54 }
0x12b9   :  { %8841 = vmatprep.subr.mxu1 %v7869_v59 }
0x12ba   :  { %8842 = vmatpush3.msra.mxu1 %v7853_v56 }
0x12bb   :  { %4121 = vmatmul.mubr.f32.vlgmr.msra.gmra.mxu1 %v9687_v47  ;;  %8895 = vmatprep.subr.mxu1 %v7964_v58 }
0x12bc   :  { %4125 = vmatprep.mubr.f32.mxu1 %v9708_v30  ;;  %8896 = vmatpush3.msra.mxu1 %v7948_v31 }
0x12bd   :  { %8897 = vmatprep.subr.mxu1 %v7963_v36 }
0x12be   :  { %8898 = vmatpush3.msra.mxu1 %v7947_v60 }
0x12bf   :  { %4126 = vmatmul.mubr.f32.gmra.mxu1 %v9706_v29  ;;  %8899 = vmatprep.subr.mxu1 %v7962_v61 }
0x12c0   :  { %8900 = vmatpush3.msra.mxu1 %v7946_v62  ;;  %4752 = vmatprep.mubr.f32.mxu1 %v9689_v48 }
0x12c1   :  { %8901 = vmatprep.subr.mxu1 %v7961_v63 }
0x12c2   :  { %8902 = vmatpush3.msra.mxu1 %v7945_v0 }
0x12c3   :  { %8903 = vmatprep.subr.mxu1 %v7960_v1 }
0x12c4   :  { %8904 = vmatpush3.msra.mxu1 %v7944_v2 }
0x12c5   :  { %8905 = vmatprep.subr.mxu1 %v7959_v3 }
0x12c6   :  { %8906 = vmatpush3.msra.mxu1 %v7943_v4 }
0x12c7   :  { %8907 = vmatprep.subr.mxu1 %v7958_v5 }
0x12c8   :  { %8908 = vmatpush3.msra.mxu1 %v7942_v6 }
0x12c9   :  { %8909 = vmatprep.subr.mxu1 %v7957_v7 }
0x12ca   :  { %8910 = vmatpush3.msra.mxu1 %v7941_v8 }
0x12cb   :  { %8911 = vmatprep.subr.mxu1 %v7956_v9 }
0x12cc   :  { %8912 = vmatpush3.msra.mxu1 %v7940_v10 }
0x12cd   :  { %8913 = vmatprep.subr.mxu1 %v7955_v11 }
0x12ce   :  { %8914 = vmatpush3.msra.mxu1 %v7939_v12 }
0x12cf   :  { %8915 = vmatprep.subr.mxu1 %v7954_v13 }
0x12d0   :  { %8916 = vmatpush3.msra.mxu1 %v7938_v14 }
0x12d1   :  { %8917 = vmatprep.subr.mxu1 %v7953_v15  ;;  %v7898_v15 = vld [vmem:[%s14042_s6 + $0x178] sm:$0xff] }
0x12d2   :  { %8918 = vmatpush3.msra.mxu1 %v7937_v16 }
0x12d3   :  { %8919 = vmatprep.subr.mxu1 %v7952_v17 }
0x12d4   :  { %8920 = vmatpush3.msra.mxu1 %v7936_v18  ;;  %v7897_v18 = vld [vmem:[%s14042_s6 + $0x170] sm:$0xff] }
0x12d5   :  { %8921 = vmatprep.subr.mxu1 %v7951_v19  ;;  %v7896_v19 = vld [vmem:[%s14042_s6 + $0x168] sm:$0xff] }
0x12d6   :  { %8922 = vmatpush3.msra.mxu1 %v7935_v20  ;;  %v7895_v20 = vld [vmem:[%s14042_s6 + $0x160] sm:$0xff] }
0x12d7   :  { %8923 = vmatprep.subr.mxu1 %v7950_v21  ;;  %v7894_v21 = vld [vmem:[%s14042_s6 + $0x158] sm:$0xff] }
0x12d8   :  { %8924 = vmatpush3.msra.mxu1 %v7934_v22  ;;  %v7893_v22 = vld [vmem:[%s14042_s6 + $0x150] sm:$0xff] }
0x12d9   :  { %8925 = vmatprep.subr.mxu1 %v7949_v25  ;;  %v7892_v25 = vld [vmem:[%s14042_s6 + $0x148] sm:$0xff] }
0x12da   :  { %8926 = vmatpush3.msra.mxu1 %v7933_v26  ;;  %v7891_v26 = vld [vmem:[%s14042_s6 + $0x140] sm:$0xff] }
0x12db   :  { %4753 = vmatmul.mubr.f32.vlgmr.msra.gmra.mxu1 %v9687_v47  ;;  %9221 = vmatprep.subr.mxu1 %v9364_v57 }
0x12dc   :  { %4757 = vmatprep.mubr.f32.mxu1 %v9708_v30 }
0x12df   :  { %4758 = vmatmul.mubr.f32.gmra.mxu1 %v9706_v29 }
0x12e0   :  { %9223 = vmatprep.mubr.msk.f32.mxu1 %vm9365_vm0, %v9364_v57 }
0x133b   :  { %v3792_v35 = vpop.f32.mrf.mxu1 }
0x133c   :  { %v11705_v37 = vadd.f32 %v3792_v35, %v11343_v41  ;;  %v7932_v35 = vld [vmem:[%s14039_s3 + $0x6f8] sm:$0xff] }
0x133d   :  { %v3794_v38 = vpop.f32.mrf.mxu1 }
0x133e   :  { %v11708_v39 = vadd.f32 %v3794_v38, %v11346_v44  ;;  %v7916_v38 = vld [vmem:[%s14039_s3 + $0x678] sm:$0xff] }
0x133f   :  { %v3798_v40 = vpop.f32.mrf.mxu1 }
0x1340   :  { %v11711_v42 = vadd.f32 %v3798_v40, %v11349_v49 }
0x1341   :  { %v3800_v45 = vpop.f32.mrf.mxu1 }
0x1342   :  { %v11714_v50 = vadd.f32 %v3800_v45, %v11352_v52  ;;  %v7931_v45 = vld [vmem:[%s14039_s3 + $0x6f0] sm:$0xff] }
0x135b   :  { %v8767_v53 = vpop.f32.mrf.mxu1 }
0x135d   :  { %v8768_v28 = vpop.f32.mrf.mxu1 }
0x135e   :  { %v8769_v23 = vadd.f32 %v8768_v28, %v8767_v53  ;;  %v7914_v28 = vld [vmem:[%s14039_s3 + $0x668] sm:$0xff] }
0x135f   :  { %v8770_v41 = vpop.f32.mrf.mxu1 }
0x1360   :  { %9204 = vmatmul.mubr.msk.f32.vlgmr.msra.gmra.mxu0 %vm438_vm1, %v8769_v23 }
0x1361   :  { %9207 = vmatpush3.xpose.msk.msra.mxu0 %vm438_vm1, %v8810_v24  ;;  %v8771_v44 = vpop.f32.mrf.mxu1  ;;  %9208 = vmatprep.mubr.msk.f32.mxu0 %vm9365_vm0, %v9364_v57  ;;  %v7929_v24 = vld [vmem:[%s14039_s3 + $0x6e0] sm:$0xff] }
0x1362   :  { %v8772_v49 = vadd.f32 %v8771_v44, %v8770_v41  ;;  %9211 = vmatprep.subr.mxu0 %v9364_v57  ;;  %v7913_v41 = vld [vmem:[%s14039_s3 + $0x660] sm:$0xff] }
0x1364   :  { %9209 = vmatmul.mubr.msk.f32.vlgmr.msra.gmra.mxu0 %vm438_vm1, %v8772_v49  ;;  %v7928_v49 = vld [vmem:[%s14039_s3 + $0x6d8] sm:$0xff] }
0x1365   :  { %9213 = vmatprep.mubr.msk.f32.mxu0 %vm9365_vm0, %v9364_v57 }
0x137b   :  { %v8843_v52 = vpop.f32.mrf.mxu1 }
0x137d   :  { %v8844_v43 = vpop.f32.mrf.mxu1 }
0x137e   :  { %v8845_v46 = vadd.f32 %v8844_v43, %v8843_v52  ;;  %v7912_v52 = vld [vmem:[%s14039_s3 + $0x658] sm:$0xff]  ;;  %v7927_v43 = vld [vmem:[%s14039_s3 + $0x6d0] sm:$0xff] }
0x137f   :  { %v8846_v51 = vpop.f32.mrf.mxu1 }
0x1380   :  { %9212 = vmatpush3.msra.mxu0 %v8845_v46  ;;  %v7911_v46 = vld [vmem:[%s14039_s3 + $0x650] sm:$0xff] }
0x1381   :  { %v8847_v54 = vpop.f32.mrf.mxu1  ;;  %9216 = vmatprep.subr.mxu0 %v9364_v57 }
0x1382   :  { %v8848_v59 = vadd.f32 %v8847_v54, %v8846_v51  ;;  %v7926_v51 = vld [vmem:[%s14039_s3 + $0x6c8] sm:$0xff] }
0x1383   :  { %v7910_v54 = vld [vmem:[%s14039_s3 + $0x648] sm:$0xff] }
0x139b   :  { %v8927_v56 = vpop.f32.mrf.mxu1 }
0x139d   :  { %v8928_v58 = vpop.f32.mrf.mxu1 }
0x139e   :  { %v8929_v31 = vadd.f32 %v8928_v58, %v8927_v56  ;;  %v7909_v56 = vld [vmem:[%s14039_s3 + $0x640] sm:$0xff]  ;;  %v7924_v58 = vld [vmem:[%s14039_s3 + $0x6b8] sm:$0xff] }
0x13a0   :  { %9222 = vmatpush3.xpose.msk.msra.mxu1 %vm438_vm1, %v8929_v31  ;;  %v7908_v31 = vld [vmem:[%s14039_s3 + $0x638] sm:$0xff] }
0x13a1   :  { %9226 = vmatprep.subr.mxu1 %v9364_v57 }
0x1420   :  { %v4203_v36 = vpop.f32.mrf.mxu0 }
0x1421   :  { %v4283_v60 = vsel %vm591_vm2, %v4203_v36, -inf }
0x1422   :  { %4284 = vmax.xlane.f32.xlu0 %v4283_v60  ;;  %v9205_v61 = vpop.f32.mrf.mxu0  ;;  %v7907_v60 = vld [vmem:[%s14039_s3 + $0x630] sm:$0xff] }
0x1423   :  { %v7922_v61 = vld [vmem:[%s14039_s3 + $0x6a8] sm:$0xff] }
0x1424   :  { %v4279_v62 = vpop.f32.mrf.mxu0 }
0x1425   :  { %v4286_v63 = vsel %vm591_vm2, %v4279_v62, -inf }
0x1426   :  { %4287 = vmax.xlane.f32.xlu1 %v4286_v63  ;;  %v9210_v0 = vpop.f32.mrf.mxu0  ;;  %v7921_v63 = vld [vmem:[%s14039_s3 + $0x6a0] sm:$0xff] }
0x1427   :  { %v7905_v0 = vld [vmem:[%s14039_s3 + $0x620] sm:$0xff] }
0x14ab   :  { %v4285_v1 = vpop.xlane.xlu0 %4284 }
0x14ac   :  { %v4289_v2 = vsub.f32 %v4203_v36, %v4285_v1  ;;  %v7923_v36 = vld [vmem:[%s14039_s3 + $0x6b0] sm:$0xff]  ;;  %v7920_v1 = vld [vmem:[%s14039_s3 + $0x698] sm:$0xff] }
0x14ae   :  { %v4291_v3 = vmul.f32 1.442695, %v4289_v2  ;;  %v7904_v2 = vld [vmem:[%s14039_s3 + $0x618] sm:$0xff] }
0x14af   :  { %v4288_v4 = vpop.xlane.xlu1 %4287 }
0x14b0   :  { %9310 = vpow2.f32 %v4291_v3  ;;  %v4290_v5 = vsub.f32 %v4279_v62, %v4288_v4  ;;  %v7906_v62 = vld [vmem:[%s14039_s3 + $0x628] sm:$0xff]  ;;  %v7919_v3 = vld [vmem:[%s14039_s3 + $0x690] sm:$0xff] }
0x14b1   :  { %v7903_v4 = vld [vmem:[%s14039_s3 + $0x610] sm:$0xff] }
0x14b2   :  { %v4293_v6 = vmul.f32 1.442695, %v4290_v5  ;;  %v7918_v5 = vld [vmem:[%s14039_s3 + $0x688] sm:$0xff] }
0x14b4   :  { %9312 = vpow2.f32 %v4293_v6  ;;  %v7902_v6 = vld [vmem:[%s14039_s3 + $0x608] sm:$0xff] }
0x14bd   :  { %v9311_v7 = vpop.eup %9310 }
0x14be   :  { %v4295_v8 = vsel %vm591_vm2, %v9311_v7, 0.0 }
0x14bf   :  { %4296 = vadd.xlane.f32.xlu0 %v4295_v8  ;;  %v7901_v8 = vld [vmem:[%s14039_s3 + $0x600] sm:$0xff] }
0x14c1   :  { %v9313_v9 = vpop.eup %9312 }
0x14c2   :  { %v4298_v10 = vsel %vm591_vm2, %v9313_v9, 0.0 }
0x14c3   :  { %4299 = vadd.xlane.f32.xlu1 %v4298_v10  ;;  %v7980_v10 = vld [vmem:[%s14041_s5 + $0x678] sm:$0xff] }
0x1548   :  { %v4297_v11 = vpop.xlane.xlu0 %4296 }
0x1549   :  { %9314 = vrcp.f32 %v4297_v11  ;;  %v7995_v11 = vld [vmem:[%s14041_s5 + $0x6f0] sm:$0xff] }
0x154c   :  { %v4300_v12 = vpop.xlane.xlu1 %4299 }
0x154d   :  { %9316 = vrcp.f32 %v4300_v12  ;;  %v7979_v12 = vld [vmem:[%s14041_s5 + $0x670] sm:$0xff] }
0x1556   :  { %v9315_v13 = vpop.eup %9314 }
0x1557   :  { %v4302_v14 = vmul.f32 %v9315_v13, %v9311_v7  ;;  %v7917_v7 = vld [vmem:[%s14039_s3 + $0x680] sm:$0xff]  ;;  %v7994_v13 = vld [vmem:[%s14041_s5 + $0x6e8] sm:$0xff] }
0x1559   :  { %9214 = vmatmul.mubr.msk.f32.vlgmr.msra.gmra.mxu0 %vm591_vm2, %v4302_v14  ;;  %v7978_v14 = vld [vmem:[%s14041_s5 + $0x668] sm:$0xff] }
0x155a   :  { %v9317_v16 = vpop.eup %9316  ;;  %9217 = vmatpush3.msra.mxu0 %v8848_v59  ;;  %9218 = vmatprep.mubr.msk.f32.mxu0 %vm9365_vm0, %v9364_v57  ;;  %v7925_v59 = vld [vmem:[%s14039_s3 + $0x6c0] sm:$0xff] }
0x155b   :  { %v4304_v17 = vmul.f32 %v9317_v16, %v9313_v9  ;;  %4490 = vmatprep.subr.mxu0 %v7898_v15  ;;  %v7996_v9 = vld [vmem:[%s14041_s5 + $0x6f8] sm:$0xff]  ;;  %v7993_v15 = vld [vmem:[%s14041_s5 + $0x6e0] sm:$0xff] }
0x155c   :  { %v7977_v16 = vld [vmem:[%s14041_s5 + $0x660] sm:$0xff] }
0x155d   :  { %9219 = vmatmul.mubr.msk.f32.vlgmr.msra.gmra.mxu0 %vm591_vm2, %v4304_v17  ;;  %v7992_v17 = vld [vmem:[%s14041_s5 + $0x6d8] sm:$0xff] }
0x155e   :  { %4491 = vmatpush1.msra.mxu0 %v7897_v18  ;;  %4530 = vmatprep.mubr.f32.mxu0 %v9364_v57  ;;  %v7976_v18 = vld [vmem:[%s14041_s5 + $0x658] sm:$0xff] }
0x155f   :  { %4492 = vmatprep.subr.mxu0 %v7896_v19  ;;  %v7991_v19 = vld [vmem:[%s14041_s5 + $0x6d0] sm:$0xff] }
0x1560   :  { %4493 = vmatpush1.msra.mxu0 %v7895_v20  ;;  %v7975_v20 = vld [vmem:[%s14041_s5 + $0x650] sm:$0xff] }
0x1561   :  { %4494 = vmatprep.subr.mxu0 %v7894_v21  ;;  %v7990_v21 = vld [vmem:[%s14041_s5 + $0x6c8] sm:$0xff] }
0x1562   :  { %4495 = vmatpush1.msra.mxu0 %v7893_v22  ;;  %v7974_v22 = vld [vmem:[%s14041_s5 + $0x648] sm:$0xff] }
0x1563   :  { %4496 = vmatprep.subr.mxu0 %v7892_v25  ;;  %v7989_v25 = vld [vmem:[%s14041_s5 + $0x6c0] sm:$0xff] }
0x1564   :  { %4497 = vmatpush1.msra.mxu0 %v7891_v26  ;;  %v7973_v26 = vld [vmem:[%s14041_s5 + $0x640] sm:$0xff] }
0x1565   :  { %8857 = vmatprep.subr.mxu0 %v7932_v35  ;;  %v7988_v35 = vld [vmem:[%s14041_s5 + $0x6b8] sm:$0xff] }
0x1619   :  { %v4374_v40 = vpop.f32.mrf.mxu0 }
0x161a   :  { %7899 = vmatmul.mubr.msk.f32.vlgmr.msra.gmra.mxu0 %vm438_vm1, %v4374_v40  ;;  %v7987_v40 = vld [vmem:[%s14041_s5 + $0x6b0] sm:$0xff] }
0x161b   :  { %8858 = vmatpush3.msra.mxu0 %v7916_v38  ;;  %v9215_v53 = vpop.f32.mrf.mxu0  ;;  %4536 = vmatprep.mubr.f32.mxu0 %v9364_v57  ;;  %v7972_v38 = vld [vmem:[%s14041_s5 + $0x638] sm:$0xff] }
0x161c   :  { %8859 = vmatprep.subr.mxu0 %v7931_v45  ;;  %v7971_v45 = vld [vmem:[%s14041_s5 + $0x630] sm:$0xff]  ;;  %v7970_v53 = vld [vmem:[%s14041_s5 + $0x628] sm:$0xff] }
0x161d   :  { %8860 = vmatpush3.msra.mxu0 %v7915_v27  ;;  %v4447_v23 = vpop.f32.mrf.mxu0  ;;  %v7986_v27 = vld [vmem:[%s14041_s5 + $0x6a8] sm:$0xff] }
0x161e   :  { %8861 = vmatprep.subr.mxu0 %v7930_v55  ;;  %7900 = vmatmul.mubr.msk.f32.gmra.mxu0 %vm438_vm1, %v4447_v23  ;;  %v7985_v55 = vld [vmem:[%s14041_s5 + $0x6a0] sm:$0xff]  ;;  %v7984_v23 = vld [vmem:[%s14041_s5 + $0x698] sm:$0xff] }
0x161f   :  { %8862 = vmatpush3.msra.mxu0 %v7914_v28  ;;  %v9220_v44 = vpop.f32.mrf.mxu0  ;;  %4644 = vmatprep.mubr.f32.mxu0 %v9689_v48  ;;  %v7969_v28 = vld [vmem:[%s14041_s5 + $0x620] sm:$0xff] }
0x1620   :  { %8863 = vmatprep.subr.mxu0 %v7929_v24  ;;  %v7968_v24 = vld [vmem:[%s14041_s5 + $0x618] sm:$0xff]  ;;  %v7967_v44 = vld [vmem:[%s14041_s5 + $0x610] sm:$0xff] }
0x1621   :  { %8864 = vmatpush3.msra.mxu0 %v7913_v41  ;;  %v7983_v41 = vld [vmem:[%s14041_s5 + $0x690] sm:$0xff] }
0x1622   :  { %8865 = vmatprep.subr.mxu0 %v7928_v49  ;;  %v7982_v49 = vld [vmem:[%s14041_s5 + $0x688] sm:$0xff] }
0x1623   :  { %8866 = vmatpush3.msra.mxu0 %v7912_v52  ;;  %v7966_v52 = vld [vmem:[%s14041_s5 + $0x608] sm:$0xff] }
0x1624   :  { %8867 = vmatprep.subr.mxu0 %v7927_v43  ;;  %v7981_v43 = vld [vmem:[%s14041_s5 + $0x680] sm:$0xff] }
0x1625   :  { %8868 = vmatpush3.msra.mxu0 %v7911_v46  ;;  %v7965_v46 = vld [vmem:[%s14041_s5 + $0x600] sm:$0xff] }
0x1626   :  { %8869 = vmatprep.subr.mxu0 %v7926_v51  ;;  %v8076_v51 = vld [vmem:[%s14040_s4 + $0x7f8] sm:$0xff] }
0x1627   :  { %8870 = vmatpush3.msra.mxu0 %v7910_v54  ;;  %v8060_v54 = vld [vmem:[%s14040_s4 + $0x778] sm:$0xff] }
0x1628   :  { %8871 = vmatprep.subr.mxu0 %v7925_v59  ;;  %v8075_v59 = vld [vmem:[%s14040_s4 + $0x7f0] sm:$0xff] }
0x1629   :  { %8872 = vmatpush3.msra.mxu0 %v7909_v56  ;;  %v8059_v56 = vld [vmem:[%s14040_s4 + $0x770] sm:$0xff] }
0x162a   :  { %8873 = vmatprep.subr.mxu0 %v7924_v58  ;;  %v8074_v58 = vld [vmem:[%s14040_s4 + $0x7e8] sm:$0xff] }
0x162b   :  { %8874 = vmatpush3.msra.mxu0 %v7908_v31  ;;  %v8058_v31 = vld [vmem:[%s14040_s4 + $0x768] sm:$0xff] }
0x162c   :  { %8875 = vmatprep.subr.mxu0 %v7923_v36  ;;  %v8073_v36 = vld [vmem:[%s14040_s4 + $0x7e0] sm:$0xff] }
0x162d   :  { %8876 = vmatpush3.msra.mxu0 %v7907_v60  ;;  %v8057_v60 = vld [vmem:[%s14040_s4 + $0x760] sm:$0xff] }
0x162e   :  { %8877 = vmatprep.subr.mxu0 %v7922_v61  ;;  %v8072_v61 = vld [vmem:[%s14040_s4 + $0x7d8] sm:$0xff] }
0x162f   :  { %8878 = vmatpush3.msra.mxu0 %v7906_v62  ;;  %v8056_v62 = vld [vmem:[%s14040_s4 + $0x758] sm:$0xff] }
0x1630   :  { %8879 = vmatprep.subr.mxu0 %v7921_v63  ;;  %v8071_v63 = vld [vmem:[%s14040_s4 + $0x7d0] sm:$0xff] }
0x1631   :  { %8880 = vmatpush3.msra.mxu0 %v7905_v0  ;;  %v8055_v0 = vld [vmem:[%s14040_s4 + $0x750] sm:$0xff] }
0x1632   :  { %8881 = vmatprep.subr.mxu0 %v7920_v1  ;;  %v8070_v1 = vld [vmem:[%s14040_s4 + $0x7c8] sm:$0xff] }
0x1633   :  { %8882 = vmatpush3.msra.mxu0 %v7904_v2  ;;  %v8054_v2 = vld [vmem:[%s14040_s4 + $0x748] sm:$0xff] }
0x1634   :  { %8883 = vmatprep.subr.mxu0 %v7919_v3  ;;  %v8069_v3 = vld [vmem:[%s14040_s4 + $0x7c0] sm:$0xff] }
0x1635   :  { %8884 = vmatpush3.msra.mxu0 %v7903_v4  ;;  %v8053_v4 = vld [vmem:[%s14040_s4 + $0x740] sm:$0xff] }
0x1636   :  { %8885 = vmatprep.subr.mxu0 %v7918_v5  ;;  %v8068_v5 = vld [vmem:[%s14040_s4 + $0x7b8] sm:$0xff] }
0x1637   :  { %8886 = vmatpush3.msra.mxu0 %v7902_v6  ;;  %v8052_v6 = vld [vmem:[%s14040_s4 + $0x738] sm:$0xff] }
0x1638   :  { %8887 = vmatprep.subr.mxu0 %v7917_v7  ;;  %v8067_v7 = vld [vmem:[%s14040_s4 + $0x7b0] sm:$0xff] }
0x1639   :  { %8888 = vmatpush3.msra.mxu0 %v7901_v8  ;;  %v8051_v8 = vld [vmem:[%s14040_s4 + $0x730] sm:$0xff] }
0x163a   :  { %4645 = vmatmul.mubr.f32.vlgmr.msra.gmra.mxu0 %v9687_v47  ;;  %8933 = vmatprep.subr.mxu0 %v7996_v9  ;;  %v8066_v9 = vld [vmem:[%s14040_s4 + $0x7a8] sm:$0xff] }
0x163b   :  { %4649 = vmatprep.mubr.f32.mxu0 %v9708_v30  ;;  %8934 = vmatpush3.msra.mxu0 %v7980_v10  ;;  %v8050_v10 = vld [vmem:[%s14040_s4 + $0x728] sm:$0xff] }
0x163c   :  { %8935 = vmatprep.subr.mxu0 %v7995_v11  ;;  %v8065_v11 = vld [vmem:[%s14040_s4 + $0x7a0] sm:$0xff] }
0x163d   :  { %8936 = vmatpush3.msra.mxu0 %v7979_v12  ;;  %v8049_v12 = vld [vmem:[%s14040_s4 + $0x720] sm:$0xff] }
0x163e   :  { %4650 = vmatmul.mubr.f32.gmra.mxu0 %v9706_v29  ;;  %8937 = vmatprep.subr.mxu0 %v7994_v13  ;;  %v8064_v13 = vld [vmem:[%s14040_s4 + $0x798] sm:$0xff] }
0x163f   :  { %8938 = vmatpush3.msra.mxu0 %v7978_v14  ;;  %4860 = vmatprep.mubr.f32.mxu0 %v9689_v48  ;;  %v8048_v14 = vld [vmem:[%s14040_s4 + $0x718] sm:$0xff] }
0x1640   :  { %8939 = vmatprep.subr.mxu0 %v7993_v15  ;;  %v8063_v15 = vld [vmem:[%s14040_s4 + $0x790] sm:$0xff] }
0x1641   :  { %8940 = vmatpush3.msra.mxu0 %v7977_v16  ;;  %v8047_v16 = vld [vmem:[%s14040_s4 + $0x710] sm:$0xff] }
0x1642   :  { %8941 = vmatprep.subr.mxu0 %v7992_v17  ;;  %v8062_v17 = vld [vmem:[%s14040_s4 + $0x788] sm:$0xff] }
0x1643   :  { %8942 = vmatpush3.msra.mxu0 %v7976_v18  ;;  %v8046_v18 = vld [vmem:[%s14040_s4 + $0x708] sm:$0xff] }
0x1644   :  { %8943 = vmatprep.subr.mxu0 %v7991_v19  ;;  %v8061_v19 = vld [vmem:[%s14040_s4 + $0x780] sm:$0xff] }
0x1645   :  { %8944 = vmatpush3.msra.mxu0 %v7975_v20  ;;  %v8045_v20 = vld [vmem:[%s14040_s4 + $0x700] sm:$0xff] }
0x1646   :  { %8945 = vmatprep.subr.mxu0 %v7990_v21 }
0x1647   :  { %8946 = vmatpush3.msra.mxu0 %v7974_v22 }
0x1648   :  { %8947 = vmatprep.subr.mxu0 %v7989_v25 }
0x1649   :  { %8948 = vmatpush3.msra.mxu0 %v7973_v26 }
0x164a   :  { %8949 = vmatprep.subr.mxu0 %v7988_v35 }
0x164b   :  { %8950 = vmatpush3.msra.mxu0 %v7972_v38 }
0x164c   :  { %8951 = vmatprep.subr.mxu0 %v7987_v40 }
0x164d   :  { %8952 = vmatpush3.msra.mxu0 %v7971_v45 }
0x164e   :  { %8953 = vmatprep.subr.mxu0 %v7986_v27  ;;  %v8930_v27 = vpop.f32.mrf.mxu1 }
0x164f   :  { %8954 = vmatpush3.msra.mxu0 %v7970_v53 }
0x1650   :  { %8955 = vmatprep.subr.mxu0 %v7985_v55  ;;  %v8931_v55 = vpop.f32.mrf.mxu1 }
0x1651   :  { %8956 = vmatpush3.msra.mxu0 %v7969_v28 }
0x1652   :  { %8957 = vmatprep.subr.mxu0 %v7984_v23 }
0x1653   :  { %8958 = vmatpush3.msra.mxu0 %v7968_v24  ;;  %v8932_v24 = vadd.f32 %v8931_v55, %v8930_v27  ;;  %v8027_v27 = vld [vmem:[%s14039_s3 + $0x770] sm:$0xff]  ;;  %v8042_v55 = vld [vmem:[%s14039_s3 + $0x7e8] sm:$0xff] }
0x1654   :  { %8959 = vmatprep.subr.mxu0 %v7983_v41 }
0x1655   :  { %8960 = vmatpush3.msra.mxu0 %v7967_v44 }
0x1656   :  { %8961 = vmatprep.subr.mxu0 %v7982_v49 }
0x1657   :  { %8962 = vmatpush3.msra.mxu0 %v7966_v52 }
0x1658   :  { %8963 = vmatprep.subr.mxu0 %v7981_v43 }
0x1659   :  { %8964 = vmatpush3.msra.mxu0 %v7965_v46 }
0x165a   :  { %4861 = vmatmul.mubr.f32.vlgmr.msra.gmra.mxu0 %v9687_v47  ;;  %9017 = vmatprep.subr.mxu0 %v8076_v51 }
0x165b   :  { %4865 = vmatprep.mubr.f32.mxu0 %v9708_v30  ;;  %9018 = vmatpush3.msra.mxu0 %v8060_v54 }
0x165c   :  { %9019 = vmatprep.subr.mxu0 %v8075_v59 }
0x165d   :  { %9020 = vmatpush3.msra.mxu0 %v8059_v56 }
0x165e   :  { %4866 = vmatmul.mubr.f32.gmra.mxu0 %v9706_v29  ;;  %9021 = vmatprep.subr.mxu0 %v8074_v58 }
0x165f   :  { %9022 = vmatpush3.msra.mxu0 %v8058_v31  ;;  %5492 = vmatprep.mubr.f32.mxu0 %v9689_v48 }
0x1660   :  { %9023 = vmatprep.subr.mxu0 %v8073_v36 }
0x1661   :  { %9024 = vmatpush3.msra.mxu0 %v8057_v60 }
0x1662   :  { %9025 = vmatprep.subr.mxu0 %v8072_v61 }
0x1663   :  { %9026 = vmatpush3.msra.mxu0 %v8056_v62 }
0x1664   :  { %9027 = vmatprep.subr.mxu0 %v8071_v63 }
0x1665   :  { %9028 = vmatpush3.msra.mxu0 %v8055_v0 }
0x1666   :  { %9029 = vmatprep.subr.mxu0 %v8070_v1 }
0x1667   :  { %9030 = vmatpush3.msra.mxu0 %v8054_v2 }
0x1668   :  { %9031 = vmatprep.subr.mxu0 %v8069_v3 }
0x1669   :  { %9032 = vmatpush3.msra.mxu0 %v8053_v4 }
0x166a   :  { %9033 = vmatprep.subr.mxu0 %v8068_v5 }
0x166b   :  { %9034 = vmatpush3.msra.mxu0 %v8052_v6 }
0x166c   :  { %9035 = vmatprep.subr.mxu0 %v8067_v7 }
0x166d   :  { %9036 = vmatpush3.msra.mxu0 %v8051_v8 }
0x166e   :  { %9037 = vmatprep.subr.mxu0 %v8066_v9 }
0x166f   :  { %9038 = vmatpush3.msra.mxu0 %v8050_v10 }
0x1670   :  { %9039 = vmatprep.subr.mxu0 %v8065_v11  ;;  %v8010_v11 = vld [vmem:[%s14042_s6 + $0x1b8] sm:$0xff] }
0x1671   :  { %9040 = vmatpush3.msra.mxu0 %v8049_v12 }
0x1672   :  { %9041 = vmatprep.subr.mxu0 %v8064_v13 }
0x1673   :  { %9042 = vmatpush3.msra.mxu0 %v8048_v14  ;;  %v8009_v14 = vld [vmem:[%s14042_s6 + $0x1b0] sm:$0xff] }
0x1674   :  { %9043 = vmatprep.subr.mxu0 %v8063_v15  ;;  %v8008_v15 = vld [vmem:[%s14042_s6 + $0x1a8] sm:$0xff] }
0x1675   :  { %9044 = vmatpush3.msra.mxu0 %v8047_v16  ;;  %v8007_v16 = vld [vmem:[%s14042_s6 + $0x1a0] sm:$0xff] }
0x1676   :  { %9045 = vmatprep.subr.mxu0 %v8062_v17  ;;  %v8006_v17 = vld [vmem:[%s14042_s6 + $0x198] sm:$0xff] }
0x1677   :  { %9046 = vmatpush3.msra.mxu0 %v8046_v18  ;;  %v8005_v18 = vld [vmem:[%s14042_s6 + $0x190] sm:$0xff] }
0x1678   :  { %9047 = vmatprep.subr.mxu0 %v8061_v19  ;;  %v8004_v19 = vld [vmem:[%s14042_s6 + $0x188] sm:$0xff] }
0x1679   :  { %9048 = vmatpush3.msra.mxu0 %v8045_v20  ;;  %v8003_v20 = vld [vmem:[%s14042_s6 + $0x180] sm:$0xff] }
0x167a   :  { %5493 = vmatmul.mubr.f32.vlgmr.msra.gmra.mxu0 %v9687_v47  ;;  %9241 = vmatprep.subr.mxu0 %v9364_v57 }
0x167b   :  { %5497 = vmatprep.mubr.f32.mxu0 %v9708_v30 }
0x167e   :  { %5498 = vmatmul.mubr.f32.gmra.mxu0 %v9706_v29 }
0x167f   :  { %9243 = vmatprep.mubr.msk.f32.mxu0 %vm9365_vm0, %v9364_v57 }
0x16da   :  { %v4532_v21 = vpop.f32.mrf.mxu0 }
0x16db   :  { %v12067_v22 = vadd.f32 %v4532_v21, %v11705_v37  ;;  %v8044_v21 = vld [vmem:[%s14039_s3 + $0x7f8] sm:$0xff] }
0x16dc   :  { %v4534_v25 = vpop.f32.mrf.mxu0 }
0x16dd   :  { %v12070_v26 = vadd.f32 %v4534_v25, %v11708_v39  ;;  %v8028_v25 = vld [vmem:[%s14039_s3 + $0x778] sm:$0xff] }
0x16de   :  { %v4538_v35 = vpop.f32.mrf.mxu0 }
0x16df   :  { %v12073_v38 = vadd.f32 %v4538_v35, %v11711_v42 }
0x16e0   :  { %v4540_v40 = vpop.f32.mrf.mxu0 }
0x16e1   :  { %v12076_v45 = vadd.f32 %v4540_v40, %v11714_v50  ;;  %v8043_v40 = vld [vmem:[%s14039_s3 + $0x7f0] sm:$0xff] }
0x16fa   :  { %v8889_v53 = vpop.f32.mrf.mxu0 }
0x16fc   :  { %v8890_v28 = vpop.f32.mrf.mxu0 }
0x16fd   :  { %v8891_v23 = vadd.f32 %v8890_v28, %v8889_v53  ;;  %v8026_v28 = vld [vmem:[%s14039_s3 + $0x768] sm:$0xff] }
0x16fe   :  { %v8892_v37 = vpop.f32.mrf.mxu0 }
0x16ff   :  { %9224 = vmatmul.mubr.msk.f32.vlgmr.msra.gmra.mxu1 %vm438_vm1, %v8891_v23 }
0x1700   :  { %9227 = vmatpush3.xpose.msk.msra.mxu1 %vm438_vm1, %v8932_v24  ;;  %v8893_v39 = vpop.f32.mrf.mxu0  ;;  %9228 = vmatprep.mubr.msk.f32.mxu1 %vm9365_vm0, %v9364_v57  ;;  %v8041_v24 = vld [vmem:[%s14039_s3 + $0x7e0] sm:$0xff] }
0x1701   :  { %v8894_v42 = vadd.f32 %v8893_v39, %v8892_v37  ;;  %9231 = vmatprep.subr.mxu1 %v9364_v57  ;;  %v8025_v37 = vld [vmem:[%s14039_s3 + $0x760] sm:$0xff] }
0x1703   :  { %9229 = vmatmul.mubr.msk.f32.vlgmr.msra.gmra.mxu1 %vm438_vm1, %v8894_v42  ;;  %v8040_v42 = vld [vmem:[%s14039_s3 + $0x7d8] sm:$0xff] }
0x1704   :  { %9233 = vmatprep.mubr.msk.f32.mxu1 %vm9365_vm0, %v9364_v57 }
0x171a   :  { %v8965_v50 = vpop.f32.mrf.mxu0 }
0x171c   :  { %v8966_v41 = vpop.f32.mrf.mxu0 }
0x171d   :  { %v8967_v44 = vadd.f32 %v8966_v41, %v8965_v50  ;;  %v8024_v50 = vld [vmem:[%s14039_s3 + $0x758] sm:$0xff]  ;;  %v8039_v41 = vld [vmem:[%s14039_s3 + $0x7d0] sm:$0xff] }
0x171e   :  { %v8968_v49 = vpop.f32.mrf.mxu0 }
0x171f   :  { %9232 = vmatpush3.msra.mxu1 %v8967_v44  ;;  %v8023_v44 = vld [vmem:[%s14039_s3 + $0x750] sm:$0xff] }
0x1720   :  { %v8969_v52 = vpop.f32.mrf.mxu0  ;;  %9236 = vmatprep.subr.mxu1 %v9364_v57 }
0x1721   :  { %v8970_v43 = vadd.f32 %v8969_v52, %v8968_v49  ;;  %v8038_v49 = vld [vmem:[%s14039_s3 + $0x7c8] sm:$0xff] }
0x1722   :  { %v8022_v52 = vld [vmem:[%s14039_s3 + $0x748] sm:$0xff] }
0x173a   :  { %v9049_v46 = vpop.f32.mrf.mxu0 }
0x173c   :  { %v9050_v51 = vpop.f32.mrf.mxu0 }
0x173d   :  { %v9051_v54 = vadd.f32 %v9050_v51, %v9049_v46  ;;  %v8021_v46 = vld [vmem:[%s14039_s3 + $0x740] sm:$0xff]  ;;  %v8036_v51 = vld [vmem:[%s14039_s3 + $0x7b8] sm:$0xff] }
0x173f   :  { %9242 = vmatpush3.xpose.msk.msra.mxu0 %vm438_vm1, %v9051_v54  ;;  %v8020_v54 = vld [vmem:[%s14039_s3 + $0x738] sm:$0xff] }
0x1740   :  { %9246 = vmatprep.subr.mxu0 %v9364_v57 }
0x17bf   :  { %v4943_v59 = vpop.f32.mrf.mxu1 }
0x17c0   :  { %v5023_v56 = vsel %vm591_vm2, %v4943_v59, -inf }
0x17c1   :  { %5024 = vmax.xlane.f32.xlu0 %v5023_v56  ;;  %v9225_v58 = vpop.f32.mrf.mxu1  ;;  %v8019_v56 = vld [vmem:[%s14039_s3 + $0x730] sm:$0xff] }
0x17c2   :  { %v8034_v58 = vld [vmem:[%s14039_s3 + $0x7a8] sm:$0xff] }
0x17c3   :  { %v5019_v31 = vpop.f32.mrf.mxu1 }
0x17c4   :  { %v5026_v36 = vsel %vm591_vm2, %v5019_v31, -inf }
0x17c5   :  { %5027 = vmax.xlane.f32.xlu1 %v5026_v36  ;;  %v9230_v60 = vpop.f32.mrf.mxu1  ;;  %v8033_v36 = vld [vmem:[%s14039_s3 + $0x7a0] sm:$0xff] }
0x17c6   :  { %v8017_v60 = vld [vmem:[%s14039_s3 + $0x720] sm:$0xff] }
0x184a   :  { %v5025_v61 = vpop.xlane.xlu0 %5024 }
0x184b   :  { %v5029_v62 = vsub.f32 %v4943_v59, %v5025_v61  ;;  %v8035_v59 = vld [vmem:[%s14039_s3 + $0x7b0] sm:$0xff]  ;;  %v8032_v61 = vld [vmem:[%s14039_s3 + $0x798] sm:$0xff] }
0x184d   :  { %v5031_v63 = vmul.f32 1.442695, %v5029_v62  ;;  %v8016_v62 = vld [vmem:[%s14039_s3 + $0x718] sm:$0xff] }
0x184e   :  { %v5028_v0 = vpop.xlane.xlu1 %5027 }
0x184f   :  { %9318 = vpow2.f32 %v5031_v63  ;;  %v5030_v1 = vsub.f32 %v5019_v31, %v5028_v0  ;;  %v8018_v31 = vld [vmem:[%s14039_s3 + $0x728] sm:$0xff]  ;;  %v8031_v63 = vld [vmem:[%s14039_s3 + $0x790] sm:$0xff] }
0x1850   :  { %v8015_v0 = vld [vmem:[%s14039_s3 + $0x710] sm:$0xff] }
0x1851   :  { %v5033_v2 = vmul.f32 1.442695, %v5030_v1  ;;  %v8030_v1 = vld [vmem:[%s14039_s3 + $0x788] sm:$0xff] }
0x1853   :  { %9320 = vpow2.f32 %v5033_v2  ;;  %v8014_v2 = vld [vmem:[%s14039_s3 + $0x708] sm:$0xff] }
0x185c   :  { %v9319_v3 = vpop.eup %9318 }
0x185d   :  { %v5035_v4 = vsel %vm591_vm2, %v9319_v3, 0.0 }
0x185e   :  { %5036 = vadd.xlane.f32.xlu0 %v5035_v4  ;;  %v8013_v4 = vld [vmem:[%s14039_s3 + $0x700] sm:$0xff] }
0x1860   :  { %v9321_v5 = vpop.eup %9320 }
0x1861   :  { %v5038_v6 = vsel %vm591_vm2, %v9321_v5, 0.0 }
0x1862   :  { %5039 = vadd.xlane.f32.xlu1 %v5038_v6  ;;  %v8092_v6 = vld [vmem:[%s14041_s5 + $0x778] sm:$0xff] }
0x18e7   :  { %v5037_v7 = vpop.xlane.xlu0 %5036 }
0x18e8   :  { %9322 = vrcp.f32 %v5037_v7  ;;  %v8107_v7 = vld [vmem:[%s14041_s5 + $0x7f0] sm:$0xff] }
0x18eb   :  { %v5040_v8 = vpop.xlane.xlu1 %5039 }
0x18ec   :  { %9324 = vrcp.f32 %v5040_v8  ;;  %v8091_v8 = vld [vmem:[%s14041_s5 + $0x770] sm:$0xff] }
0x18f5   :  { %v9323_v9 = vpop.eup %9322 }
0x18f6   :  { %v5042_v10 = vmul.f32 %v9323_v9, %v9319_v3  ;;  %v8029_v3 = vld [vmem:[%s14039_s3 + $0x780] sm:$0xff]  ;;  %v8106_v9 = vld [vmem:[%s14041_s5 + $0x7e8] sm:$0xff] }
0x18f8   :  { %9234 = vmatmul.mubr.msk.f32.vlgmr.msra.gmra.mxu1 %vm591_vm2, %v5042_v10  ;;  %v8090_v10 = vld [vmem:[%s14041_s5 + $0x768] sm:$0xff] }
0x18f9   :  { %v9325_v12 = vpop.eup %9324  ;;  %9237 = vmatpush3.msra.mxu1 %v8970_v43  ;;  %9238 = vmatprep.mubr.msk.f32.mxu1 %vm9365_vm0, %v9364_v57  ;;  %v8037_v43 = vld [vmem:[%s14039_s3 + $0x7c0] sm:$0xff] }
0x18fa   :  { %v5044_v13 = vmul.f32 %v9325_v12, %v9321_v5  ;;  %5230 = vmatprep.subr.mxu1 %v8010_v11  ;;  %v8108_v5 = vld [vmem:[%s14041_s5 + $0x7f8] sm:$0xff]  ;;  %v8105_v11 = vld [vmem:[%s14041_s5 + $0x7e0] sm:$0xff] }
0x18fb   :  { %v8089_v12 = vld [vmem:[%s14041_s5 + $0x760] sm:$0xff] }
0x18fc   :  { %9239 = vmatmul.mubr.msk.f32.vlgmr.msra.gmra.mxu1 %vm591_vm2, %v5044_v13  ;;  %v8104_v13 = vld [vmem:[%s14041_s5 + $0x7d8] sm:$0xff] }
0x18fd   :  { %5231 = vmatpush1.msra.mxu1 %v8009_v14  ;;  %5270 = vmatprep.mubr.f32.mxu1 %v9364_v57  ;;  %v8088_v14 = vld [vmem:[%s14041_s5 + $0x758] sm:$0xff] }
0x18fe   :  { %5232 = vmatprep.subr.mxu1 %v8008_v15  ;;  %v8103_v15 = vld [vmem:[%s14041_s5 + $0x7d0] sm:$0xff] }
0x18ff   :  { %5233 = vmatpush1.msra.mxu1 %v8007_v16  ;;  %v8087_v16 = vld [vmem:[%s14041_s5 + $0x750] sm:$0xff] }
0x1900   :  { %5234 = vmatprep.subr.mxu1 %v8006_v17  ;;  %v8086_v17 = vld [vmem:[%s14041_s5 + $0x748] sm:$0xff] }
0x1901   :  { %5235 = vmatpush1.msra.mxu1 %v8005_v18  ;;  %v8101_v18 = vld [vmem:[%s14041_s5 + $0x7c0] sm:$0xff] }
0x1902   :  { %5236 = vmatprep.subr.mxu1 %v8004_v19  ;;  %v8085_v19 = vld [vmem:[%s14041_s5 + $0x740] sm:$0xff] }
0x1903   :  { %5237 = vmatpush1.msra.mxu1 %v8003_v20  ;;  %v8100_v20 = vld [vmem:[%s14041_s5 + $0x7b8] sm:$0xff] }
0x1904   :  { %8979 = vmatprep.subr.mxu1 %v8044_v21  ;;  %v8084_v21 = vld [vmem:[%s14041_s5 + $0x738] sm:$0xff] }
0x19b8   :  { %v5114_v35 = vpop.f32.mrf.mxu1 }
0x19b9   :  { %8011 = vmatmul.mubr.msk.f32.vlgmr.msra.gmra.mxu1 %vm438_vm1, %v5114_v35  ;;  %v8083_v35 = vld [vmem:[%s14041_s5 + $0x730] sm:$0xff] }
0x19ba   :  { %8980 = vmatpush3.msra.mxu1 %v8028_v25  ;;  %v9235_v53 = vpop.f32.mrf.mxu1  ;;  %5276 = vmatprep.mubr.f32.mxu1 %v9364_v57  ;;  %v8099_v25 = vld [vmem:[%s14041_s5 + $0x7b0] sm:$0xff] }
0x19bb   :  { %8981 = vmatprep.subr.mxu1 %v8043_v40  ;;  %v8098_v40 = vld [vmem:[%s14041_s5 + $0x7a8] sm:$0xff]  ;;  %v8097_v53 = vld [vmem:[%s14041_s5 + $0x7a0] sm:$0xff] }
0x19bc   :  { %8982 = vmatpush3.msra.mxu1 %v8027_v27  ;;  %v5187_v23 = vpop.f32.mrf.mxu1  ;;  %v8082_v27 = vld [vmem:[%s14041_s5 + $0x728] sm:$0xff] }
0x19bd   :  { %8983 = vmatprep.subr.mxu1 %v8042_v55  ;;  %8012 = vmatmul.mubr.msk.f32.gmra.mxu1 %vm438_vm1, %v5187_v23  ;;  %v8081_v55 = vld [vmem:[%s14041_s5 + $0x720] sm:$0xff]  ;;  %v8080_v23 = vld [vmem:[%s14041_s5 + $0x718] sm:$0xff] }
0x19be   :  { %8984 = vmatpush3.msra.mxu1 %v8026_v28  ;;  %v9240_v39 = vpop.f32.mrf.mxu1  ;;  %5384 = vmatprep.mubr.f32.mxu1 %v9689_v48  ;;  %v8096_v28 = vld [vmem:[%s14041_s5 + $0x798] sm:$0xff] }
0x19bf   :  { %8985 = vmatprep.subr.mxu1 %v8041_v24  ;;  %v8095_v24 = vld [vmem:[%s14041_s5 + $0x790] sm:$0xff]  ;;  %v8094_v39 = vld [vmem:[%s14041_s5 + $0x788] sm:$0xff] }
0x19c0   :  { %8986 = vmatpush3.msra.mxu1 %v8025_v37  ;;  %v8079_v37 = vld [vmem:[%s14041_s5 + $0x710] sm:$0xff] }
0x19c1   :  { %8987 = vmatprep.subr.mxu1 %v8040_v42  ;;  %v8078_v42 = vld [vmem:[%s14041_s5 + $0x708] sm:$0xff] }
0x19c2   :  { %8988 = vmatpush3.msra.mxu1 %v8024_v50  ;;  %v8093_v50 = vld [vmem:[%s14041_s5 + $0x780] sm:$0xff] }
0x19c3   :  { %8989 = vmatprep.subr.mxu1 %v8039_v41  ;;  %v8077_v41 = vld [vmem:[%s14041_s5 + $0x700] sm:$0xff] }
0x19c4   :  { %8990 = vmatpush3.msra.mxu1 %v8023_v44 }
0x19c5   :  { %8991 = vmatprep.subr.mxu1 %v8038_v49 }
0x19c6   :  { %8992 = vmatpush3.msra.mxu1 %v8022_v52 }
0x19c7   :  { %8993 = vmatprep.subr.mxu1 %v8037_v43 }
0x19c8   :  { %8994 = vmatpush3.msra.mxu1 %v8021_v46 }
0x19c9   :  { %8995 = vmatprep.subr.mxu1 %v8036_v51 }
0x19ca   :  { %8996 = vmatpush3.msra.mxu1 %v8020_v54 }
0x19cb   :  { %8997 = vmatprep.subr.mxu1 %v8035_v59 }
0x19cc   :  { %8998 = vmatpush3.msra.mxu1 %v8019_v56 }
0x19cd   :  { %8999 = vmatprep.subr.mxu1 %v8034_v58 }
0x19ce   :  { %9000 = vmatpush3.msra.mxu1 %v8018_v31 }
0x19cf   :  { %9001 = vmatprep.subr.mxu1 %v8033_v36 }
0x19d0   :  { %9002 = vmatpush3.msra.mxu1 %v8017_v60 }
0x19d1   :  { %9003 = vmatprep.subr.mxu1 %v8032_v61 }
0x19d2   :  { %9004 = vmatpush3.msra.mxu1 %v8016_v62 }
0x19d3   :  { %9005 = vmatprep.subr.mxu1 %v8031_v63 }
0x19d4   :  { %9006 = vmatpush3.msra.mxu1 %v8015_v0 }
0x19d5   :  { %9007 = vmatprep.subr.mxu1 %v8030_v1 }
0x19d6   :  { %9008 = vmatpush3.msra.mxu1 %v8014_v2 }
0x19d7   :  { %9009 = vmatprep.subr.mxu1 %v8029_v3 }
0x19d8   :  { %9010 = vmatpush3.msra.mxu1 %v8013_v4 }
0x19d9   :  { %5385 = vmatmul.mubr.f32.vlgmr.msra.gmra.mxu1 %v9687_v47  ;;  %9055 = vmatprep.subr.mxu1 %v8108_v5 }
0x19da   :  { %5389 = vmatprep.mubr.f32.mxu1 %v9708_v30  ;;  %9056 = vmatpush3.msra.mxu1 %v8092_v6 }
0x19db   :  { %9057 = vmatprep.subr.mxu1 %v8107_v7 }
0x19dc   :  { %9058 = vmatpush3.msra.mxu1 %v8091_v8 }
0x19dd   :  { %5390 = vmatmul.mubr.f32.gmra.mxu1 %v9706_v29  ;;  %9059 = vmatprep.subr.mxu1 %v8106_v9 }
0x19de   :  { %9060 = vmatpush3.msra.mxu1 %v8090_v10  ;;  %5600 = vmatprep.mubr.f32.mxu1 %v9689_v48  ;;  %v8102_v48 = vld [vmem:[%s14041_s5 + $0x7c8] sm:$0xff] }
0x19df   :  { %9061 = vmatprep.subr.mxu1 %v8105_v11 }
0x19e0   :  { %9062 = vmatpush3.msra.mxu1 %v8089_v12 }
0x19e1   :  { %9063 = vmatprep.subr.mxu1 %v8104_v13 }
0x19e2   :  { %9064 = vmatpush3.msra.mxu1 %v8088_v14 }
0x19e3   :  { %9065 = vmatprep.subr.mxu1 %v8103_v15 }
0x19e4   :  { %9066 = vmatpush3.msra.mxu1 %v8087_v16 }
0x19e5   :  { %9067 = vmatprep.subr.mxu1 %v8102_v48 }
0x19e6   :  { %9068 = vmatpush3.msra.mxu1 %v8086_v17 }
0x19e7   :  { %9069 = vmatprep.subr.mxu1 %v8101_v18 }
0x19e8   :  { %9070 = vmatpush3.msra.mxu1 %v8085_v19  ;;  %v8122_v19 = vld [vmem:[%s14042_s6 + $0x1f8] sm:$0xff] }
0x19e9   :  { %9071 = vmatprep.subr.mxu1 %v8100_v20 }
0x19ea   :  { %9072 = vmatpush3.msra.mxu1 %v8084_v21 }
0x19eb   :  { %9073 = vmatprep.subr.mxu1 %v8099_v25  ;;  %v8121_v25 = vld [vmem:[%s14042_s6 + $0x1f0] sm:$0xff] }
0x19ec   :  { %9074 = vmatpush3.msra.mxu1 %v8083_v35  ;;  %v8120_v35 = vld [vmem:[%s14042_s6 + $0x1e8] sm:$0xff] }
0x19ed   :  { %9075 = vmatprep.subr.mxu1 %v8098_v40  ;;  %v8119_v40 = vld [vmem:[%s14042_s6 + $0x1e0] sm:$0xff] }
0x19ee   :  { %9076 = vmatpush3.msra.mxu1 %v8082_v27  ;;  %v8118_v27 = vld [vmem:[%s14042_s6 + $0x1d8] sm:$0xff] }
0x19ef   :  { %9077 = vmatprep.subr.mxu1 %v8097_v53  ;;  %v8117_v53 = vld [vmem:[%s14042_s6 + $0x1d0] sm:$0xff] }
0x19f0   :  { %9078 = vmatpush3.msra.mxu1 %v8081_v55  ;;  %v8116_v55 = vld [vmem:[%s14042_s6 + $0x1c8] sm:$0xff] }
0x19f1   :  { %9079 = vmatprep.subr.mxu1 %v8096_v28  ;;  %v8115_v28 = vld [vmem:[%s14042_s6 + $0x1c0] sm:$0xff] }
0x19f2   :  { %9080 = vmatpush3.msra.mxu1 %v8080_v23 }
0x19f3   :  { %9081 = vmatprep.subr.mxu1 %v8095_v24 }
0x19f4   :  { %9082 = vmatpush3.msra.mxu1 %v8079_v37 }
0x19f5   :  { %9083 = vmatprep.subr.mxu1 %v8094_v39 }
0x19f6   :  { %9084 = vmatpush3.msra.mxu1 %v8078_v42 }
0x19f7   :  { %9085 = vmatprep.subr.mxu1 %v8093_v50  ;;  %v6031_v50 = vld [vmem:[%s14043_s7] sm:$0x3] }
0x19f8   :  { %9086 = vmatpush3.msra.mxu1 %v8077_v41 }
0x19f9   :  { %5601 = vmatmul.mubr.f32.vlgmr.msra.gmra.mxu1 %v9687_v47  ;;  %v9052_v47 = vpop.f32.mrf.mxu0 }
0x19fa   :  { %5605 = vmatprep.mubr.f32.mxu1 %v9708_v30 }
0x19fb   :  { %v9053_v56 = vpop.f32.mrf.mxu0 }
0x19fc   :  { %v9054_v31 = vadd.f32 %v9053_v56, %v9052_v47  ;;  %v6040_v47 = vrot.slane %v6031_v50, %v9673_v34  ;;  %v9339_v56 = vld [vmem:[%s14036_s0 + $0x8] sm:$0xff] }
0x19fd   :  { %5606 = vmatmul.mubr.f32.gmra.mxu1 %v9706_v29 }
0x1a79   :  { %v5272_v44 = vpop.f32.mrf.mxu1 }
0x1a7a   :  { %v12326_v49 = vadd.f32 %v5272_v44, %v12067_v22 }
0x1a7b   :  { %v5274_v52 = vpop.f32.mrf.mxu1 }
0x1a7c   :  { %v12329_v43 = vadd.f32 %v5274_v52, %v12070_v26  ;;  %v9338_v52 = vld [vmem:[%s14036_s0] sm:$0xff] }
0x1a7d   :  { %v5278_v46 = vpop.f32.mrf.mxu1 }
0x1a7e   :  { %v12332_v51 = vadd.f32 %v5278_v46, %v12073_v38 }
0x1a7f   :  { %v5280_v54 = vpop.f32.mrf.mxu1 }
0x1a80   :  { %v12335_v59 = vadd.f32 %v5280_v54, %v12076_v45  ;;  %v6036_v54 = vrot.slane %v6031_v50, %v9670_v33  ;;  %v6162_v50 = vld [vmem:[%s14046_s10 + $0x198] sm:$0xff] }
0x1a99   :  { %v9011_v30 = vpop.f32.mrf.mxu1 }
0x1a9b   :  { %v9012_v29 = vpop.f32.mrf.mxu1 }
0x1a9c   :  { %v9013_v58 = vadd.f32 %v9012_v29, %v9011_v30 }
0x1a9d   :  { %v9014_v22 = vpop.f32.mrf.mxu1 }
0x1a9e   :  { %9244 = vmatmul.mubr.msk.f32.vlgmr.msra.gmra.mxu0 %vm438_vm1, %v9013_v58 }
0x1a9f   :  { %9247 = vmatpush3.xpose.msk.msra.mxu0 %vm438_vm1, %v9054_v31  ;;  %v9015_v26 = vpop.f32.mrf.mxu1  ;;  %9248 = vmatprep.mubr.msk.f32.mxu0 %vm9365_vm0, %v9364_v57 }
0x1aa0   :  { %v9016_v38 = vadd.f32 %v9015_v26, %v9014_v22  ;;  %9251 = vmatprep.subr.mxu0 %v9364_v57  ;;  %v9340_v26 = vld [vmem:[%s14036_s0 + $0x10] sm:$0xff] }
0x1aa2   :  { %9249 = vmatmul.mubr.msk.f32.vlgmr.msra.gmra.mxu0 %vm438_vm1, %v9016_v38 }
0x1aa3   :  { %9253 = vmatprep.mubr.msk.f32.mxu0 %vm9365_vm0, %v9364_v57 }
0x1ab9   :  { %v9087_v45 = vpop.f32.mrf.mxu1 }
0x1abb   :  { %v9088_v36 = vpop.f32.mrf.mxu1 }
0x1abc   :  { %v9089_v60 = vadd.f32 %v9088_v36, %v9087_v45  ;;  %v9341_v45 = vld [vmem:[%s14036_s0 + $0x18] sm:$0xff] }
0x1abd   :  { %v9090_v15 = vpop.f32.mrf.mxu1 }
0x1abe   :  { %9252 = vmatpush3.msra.mxu0 %v9089_v60 }
0x1abf   :  { %9256 = vmatprep.subr.mxu0 %v9364_v57  ;;  %v9091_v16 = vpop.f32.mrf.mxu1 }
0x1ac0   :  { %v9092_v18 = vadd.f32 %v9091_v16, %v9090_v15  ;;  %v6202_v15 = vld [vmem:[%s14046_s10 + $0x2d8] sm:$0xff]  ;;  %v6199_v16 = vld [vmem:[%s14046_s10 + $0x2c0] sm:$0xff] }
0x1b5e   :  { %v5683_v61 = vpop.f32.mrf.mxu0 }
0x1b5f   :  { %v5763_v62 = vsel %vm591_vm2, %v5683_v61, -inf }
0x1b60   :  { %5764 = vmax.xlane.f32.xlu0 %v5763_v62  ;;  %v9245_v63 = vpop.f32.mrf.mxu0 }
0x1b61   :  { %v6234_v63 = vld [vmem:[%s14046_s10 + $0x3d8] sm:$0xff] }
0x1b62   :  { %v5759_v0 = vpop.f32.mrf.mxu0  ;;  %6486 = vmatprep.subr.mxu1 %v6234_v63  ;;  %v6119_v63 = vld [vmem:[%s14046_s10 + $0x40] sm:$0xff] }
0x1b63   :  { %v5766_v1 = vsel %vm591_vm2, %v5759_v0, -inf }
0x1b64   :  { %5767 = vmax.xlane.f32.xlu1 %v5766_v1  ;;  %v9250_v2 = vpop.f32.mrf.mxu0  ;;  %v6233_v1 = vld [vmem:[%s14046_s10 + $0x3d0] sm:$0xff] }
0x1b65   :  { %v6224_v2 = vld [vmem:[%s14046_s10 + $0x388] sm:$0xff]  ;;  %6487 = vmatpush1.msra.mxu1 %v6233_v1 }
0x1b66   :  { %v6112_v1 = vld [vmem:[%s14046_s10 + $0x8] sm:$0xff] }
0x1be9   :  { %v5765_v3 = vpop.xlane.xlu0 %5764 }
0x1bea   :  { %v5769_v4 = vsub.f32 %v5683_v61, %v5765_v3  ;;  %v6226_v3 = vld [vmem:[%s14046_s10 + $0x398] sm:$0xff] }
0x1beb   :  { %6488 = vmatprep.subr.mxu1 %v6226_v3  ;;  %v6111_v3 = vld [vmem:[%s14046_s10] sm:$0xff] }
0x1bec   :  { %v5771_v5 = vmul.f32 1.442695, %v5769_v4  ;;  %v6223_v4 = vld [vmem:[%s14046_s10 + $0x380] sm:$0xff] }
0x1bed   :  { %v5768_v6 = vpop.xlane.xlu1 %5767 }
0x1bee   :  { %9326 = vpow2.f32 %v5771_v5  ;;  %v5770_v7 = vsub.f32 %v5759_v0, %v5768_v6  ;;  %v6231_v0 = vld [vmem:[%s14046_s10 + $0x3c0] sm:$0xff]  ;;  %v6225_v5 = vld [vmem:[%s14046_s10 + $0x390] sm:$0xff]  ;;  %v6216_v6 = vld [vmem:[%s14046_s10 + $0x348] sm:$0xff] }
0x1bef   :  { %6489 = vmatpush1.msra.mxu1 %v6225_v5  ;;  %v6360_v5 = vld [vmem:[%s14046_s10 + $0x7c8] sm:$0xff] }
0x1bf0   :  { %v5773_v8 = vmul.f32 1.442695, %v5770_v7  ;;  %v6218_v7 = vld [vmem:[%s14046_s10 + $0x358] sm:$0xff] }
0x1bf1   :  { %6490 = vmatprep.subr.mxu1 %v6218_v7  ;;  %v6359_v7 = vld [vmem:[%s14046_s10 + $0x7c0] sm:$0xff] }
0x1bf2   :  { %9328 = vpow2.f32 %v5773_v8  ;;  %v6215_v8 = vld [vmem:[%s14046_s10 + $0x340] sm:$0xff] }
0x1bfb   :  { %v9327_v9 = vpop.eup %9326 }
0x1bfc   :  { %v5775_v10 = vsel %vm591_vm2, %v9327_v9, 0.0 }
0x1bfd   :  { %5776 = vadd.xlane.f32.xlu0 %v5775_v10  ;;  %v6208_v10 = vld [vmem:[%s14046_s10 + $0x308] sm:$0xff] }
0x1bff   :  { %v9329_v11 = vpop.eup %9328 }
0x1c00   :  { %v5778_v12 = vsel %vm591_vm2, %v9329_v11, 0.0 }
0x1c01   :  { %5779 = vadd.xlane.f32.xlu1 %v5778_v12  ;;  %v6207_v12 = vld [vmem:[%s14046_s10 + $0x300] sm:$0xff] }
0x1c86   :  { %v5777_v13 = vpop.xlane.xlu0 %5776 }
0x1c87   :  { %9330 = vrcp.f32 %v5777_v13  ;;  %v6209_v13 = vld [vmem:[%s14046_s10 + $0x310] sm:$0xff] }
0x1c8a   :  { %v5780_v14 = vpop.xlane.xlu1 %5779 }
0x1c8b   :  { %9332 = vrcp.f32 %v5780_v14  ;;  %v6200_v14 = vld [vmem:[%s14046_s10 + $0x2c8] sm:$0xff] }
0x1c94   :  { %v9331_v48 = vpop.eup %9330 }
0x1c95   :  { %v5782_v17 = vmul.f32 %v9331_v48, %v9327_v9  ;;  %v6217_v9 = vld [vmem:[%s14046_s10 + $0x350] sm:$0xff] }
0x1c96   :  { %6491 = vmatpush1.msra.mxu1 %v6217_v9  ;;  %v6201_v48 = vld [vmem:[%s14046_s10 + $0x2d0] sm:$0xff]  ;;  %v6352_v9 = vld [vmem:[%s14046_s10 + $0x788] sm:$0xff] }
0x1c97   :  { %9254 = vmatmul.mubr.msk.f32.vlgmr.msra.gmra.mxu0 %vm591_vm2, %v5782_v17  ;;  %v6192_v17 = vld [vmem:[%s14046_s10 + $0x288] sm:$0xff] }
0x1c98   :  { %v9333_v20 = vpop.eup %9332  ;;  %9257 = vmatpush3.msra.mxu0 %v9092_v18  ;;  %9258 = vmatprep.mubr.msk.f32.mxu0 %vm9365_vm0, %v9364_v57  ;;  %v6194_v18 = vld [vmem:[%s14046_s10 + $0x298] sm:$0xff] }
0x1c99   :  { %v5784_v21 = vmul.f32 %v9333_v20, %v9329_v11  ;;  %5970 = vmatprep.subr.mxu0 %v8122_v19  ;;  %v6210_v11 = vld [vmem:[%s14046_s10 + $0x318] sm:$0xff]  ;;  %v6191_v19 = vld [vmem:[%s14046_s10 + $0x280] sm:$0xff]  ;;  %v6193_v20 = vld [vmem:[%s14046_s10 + $0x290] sm:$0xff] }
0x1c9a   :  { %6492 = vmatprep.subr.mxu1 %v6210_v11  ;;  %v6351_v11 = vld [vmem:[%s14046_s10 + $0x780] sm:$0xff] }
0x1c9b   :  { %9259 = vmatmul.mubr.msk.f32.vlgmr.msra.gmra.mxu0 %vm591_vm2, %v5784_v21  ;;  %6493 = vmatpush1.msra.mxu1 %v6209_v13  ;;  %v6184_v21 = vld [vmem:[%s14046_s10 + $0x248] sm:$0xff] }
0x1c9c   :  { %5971 = vmatpush1.msra.mxu0 %v8121_v25  ;;  %6010 = vmatprep.mubr.f32.mxu0 %v9364_v57  ;;  %v6186_v25 = vld [vmem:[%s14046_s10 + $0x258] sm:$0xff]  ;;  %v6344_v13 = vld [vmem:[%s14046_s10 + $0x748] sm:$0xff] }
0x1c9d   :  { %5972 = vmatprep.subr.mxu0 %v8120_v35  ;;  %6494 = vmatprep.subr.mxu1 %v6202_v15  ;;  %v6183_v35 = vld [vmem:[%s14046_s10 + $0x240] sm:$0xff] }
0x1c9e   :  { %5973 = vmatpush1.msra.mxu0 %v8119_v40  ;;  %6495 = vmatpush1.msra.mxu1 %v6201_v48  ;;  %v6185_v40 = vld [vmem:[%s14046_s10 + $0x250] sm:$0xff]  ;;  %v6343_v15 = vld [vmem:[%s14046_s10 + $0x740] sm:$0xff]  ;;  %v6336_v48 = vld [vmem:[%s14046_s10 + $0x708] sm:$0xff] }
0x1c9f   :  { %5974 = vmatprep.subr.mxu0 %v8118_v27  ;;  %6496 = vmatprep.subr.mxu1 %v6194_v18  ;;  %v6176_v27 = vld [vmem:[%s14046_s10 + $0x208] sm:$0xff]  ;;  %v6335_v18 = vld [vmem:[%s14046_s10 + $0x700] sm:$0xff] }
0x1ca0   :  { %5975 = vmatpush1.msra.mxu0 %v8117_v53  ;;  %6497 = vmatpush1.msra.mxu1 %v6193_v20  ;;  %v6178_v53 = vld [vmem:[%s14046_s10 + $0x218] sm:$0xff] }
0x1ca1   :  { %5976 = vmatprep.subr.mxu0 %v8116_v55  ;;  %6498 = vmatprep.subr.mxu1 %v6186_v25  ;;  %v6175_v55 = vld [vmem:[%s14046_s10 + $0x200] sm:$0xff] }
0x1ca2   :  { %5977 = vmatpush1.msra.mxu0 %v8115_v28  ;;  %v6177_v28 = vld [vmem:[%s14046_s10 + $0x210] sm:$0xff]  ;;  %6499 = vmatpush1.msra.mxu1 %v6185_v40 }
0x1ca3   :  { %6500 = vmatprep.subr.mxu1 %v6178_v53 }
0x1ca4   :  { %6501 = vmatpush1.msra.mxu1 %v6177_v28 }
0x1d57   :  { %v5854_v23 = vpop.f32.mrf.mxu0 }
0x1d58   :  { %8123 = vmatmul.mubr.msk.f32.vlgmr.msra.gmra.mxu0 %vm438_vm1, %v5854_v23  ;;  %v6168_v23 = vld [vmem:[%s14046_s10 + $0x1c8] sm:$0xff] }
0x1d59   :  { %v9255_v24 = vpop.f32.mrf.mxu0  ;;  %6016 = vmatprep.mubr.f32.mxu0 %v9364_v57 }
0x1d5a   :  { %v6170_v24 = vld [vmem:[%s14046_s10 + $0x1d8] sm:$0xff] }
0x1d5b   :  { %v5927_v37 = vpop.f32.mrf.mxu0  ;;  %6502 = vmatprep.subr.mxu1 %v6170_v24 }
0x1d5c   :  { %8124 = vmatmul.mubr.msk.f32.gmra.mxu0 %vm438_vm1, %v5927_v37  ;;  %v6167_v37 = vld [vmem:[%s14046_s10 + $0x1c0] sm:$0xff] }
0x1d5d   :  { %v9260_v39 = vpop.f32.mrf.mxu0 }
0x1d5e   :  { %v6169_v39 = vld [vmem:[%s14046_s10 + $0x1d0] sm:$0xff] }
0x1d5f   :  { %6503 = vmatpush1.msra.mxu1 %v6169_v39 }
0x1d60   :  { %6504 = vmatprep.subr.mxu1 %v6162_v50  ;;  %v6328_v50 = vld [vmem:[%s14046_s10 + $0x6c8] sm:$0xff] }
0x1e18   :  { %v6012_v42 = vpop.f32.mrf.mxu0 }
0x1e19   :  { %v6023_v41 = vadd.f32 %v6012_v42, %v12326_v49  ;;  %v6160_v42 = vld [vmem:[%s14046_s10 + $0x188] sm:$0xff] }
0x1e1a   :  { %v6014_v44 = vpop.f32.mrf.mxu0 }
0x1e1b   :  { %v6027_v46 = vadd.f32 %v9338_v52, %v6023_v41  ;;  %v6024_v57 = vadd.f32 %v6014_v44, %v12329_v43  ;;  %v6159_v41 = vld [vmem:[%s14046_s10 + $0x180] sm:$0xff]  ;;  %v6161_v44 = vld [vmem:[%s14046_s10 + $0x190] sm:$0xff]  ;;  %v6152_v52 = vld [vmem:[%s14046_s10 + $0x148] sm:$0xff] }
0x1e1c   :  { %v6018_v30 = vpop.f32.mrf.mxu0  ;;  %6505 = vmatpush1.msra.mxu1 %v6161_v44  ;;  %v6327_v44 = vld [vmem:[%s14046_s10 + $0x6c0] sm:$0xff] }
0x1e1d   :  { %v6028_v29 = vadd.f32 %v9339_v56, %v6024_v57  ;;  %v6025_v49 = vadd.f32 %v6018_v30, %v12332_v51  ;;  %v12396_v31 = vadd.f32 %v6036_v54, %v6027_v46  ;;  %v6154_v46 = vld [vmem:[%s14046_s10 + $0x158] sm:$0xff]  ;;  %v6153_v57 = vld [vmem:[%s14046_s10 + $0x150] sm:$0xff]  ;;  %v6143_v56 = vld [vmem:[%s14046_s10 + $0x100] sm:$0xff] }
0x1e1e   :  { %v6020_v58 = vpop.f32.mrf.mxu0  ;;  %v6146_v30 = vld [vmem:[%s14046_s10 + $0x118] sm:$0xff]  ;;  %6506 = vmatprep.subr.mxu1 %v6154_v46  ;;  %v6320_v46 = vld [vmem:[%s14046_s10 + $0x688] sm:$0xff] }
0x1e1f   :  { %v12398_v22 = vadd.f32 %v6040_v47, %v6028_v29  ;;  %v6029_v43 = vadd.f32 %v9340_v26, %v6025_v49  ;;  %v6026_v38 = vadd.f32 %v6020_v58, %v12335_v59  ;;  %v6232_v59 = vld [vmem:[%s14046_s10 + $0x3c8] sm:$0xff]  ;;  %v6145_v29 = vld [vmem:[%s14046_s10 + $0x110] sm:$0xff]  ;;  %6507 = vmatpush1.msra.mxu1 %v6153_v57  ;;  %v6138_v58 = vld [vmem:[%s14046_s10 + $0xd8] sm:$0xff] }
0x1e20   :  { %6409 = vmatprep.subr.mxu0 %v6232_v59  ;;  %v6136_v49 = vld [vmem:[%s14046_s10 + $0xc8] sm:$0xff]  ;;  %6508 = vmatprep.subr.mxu1 %v6146_v30  ;;  %v6135_v26 = vld [vmem:[%s14046_s10 + $0xc0] sm:$0xff]  ;;  %v6122_v59 = vld [vmem:[%s14046_s10 + $0x58] sm:$0xff] }
0x1e21   :  { %v6030_v36 = vadd.f32 %v9341_v45, %v6026_v38  ;;  %v6049_v51 = vadd.f32 %v12398_v22, %v12396_v31  ;;  %v12409_v60 = vadd.f32 %v6036_v54, %v6029_v43  ;;  %6410 = vmatpush1.msra.mxu0 %v6231_v0  ;;  %v6151_v54 = vld [vmem:[%s14046_s10 + $0x140] sm:$0xff]  ;;  %v6137_v43 = vld [vmem:[%s14046_s10 + $0xd0] sm:$0xff]  ;;  %6509 = vmatpush1.msra.mxu1 %v6145_v29  ;;  %v6128_v38 = vld [vmem:[%s14046_s10 + $0x88] sm:$0xff] }
0x1e22   :  { %6411 = vmatprep.subr.mxu0 %v6224_v2  ;;  %v6130_v45 = vld [vmem:[%s14046_s10 + $0x98] sm:$0xff]  ;;  %6510 = vmatprep.subr.mxu1 %v6138_v58  ;;  %v6121_v0 = vld [vmem:[%s14046_s10 + $0x50] sm:$0xff]  ;;  %v6319_v57 = vld [vmem:[%s14046_s10 + $0x680] sm:$0xff] }
0x1e23   :  { %v12411_v61 = vadd.f32 %v6040_v47, %v6030_v36  ;;  %6050 = vadd.xlane.f32.xlu0 %v6049_v51  ;;  %6412 = vmatpush1.msra.mxu0 %v6223_v4  ;;  %v6144_v47 = vld [vmem:[%s14046_s10 + $0x108] sm:$0xff]  ;;  %v6127_v36 = vld [vmem:[%s14046_s10 + $0x80] sm:$0xff]  ;;  %v6129_v51 = vld [vmem:[%s14046_s10 + $0x90] sm:$0xff] }
0x1e24   :  { %6413 = vmatprep.subr.mxu0 %v6216_v6  ;;  %6511 = vmatpush1.msra.mxu1 %v6137_v43  ;;  %v6114_v2 = vld [vmem:[%s14046_s10 + $0x18] sm:$0xff]  ;;  %v6113_v4 = vld [vmem:[%s14046_s10 + $0x10] sm:$0xff]  ;;  %v6312_v30 = vld [vmem:[%s14046_s10 + $0x648] sm:$0xff] }
0x1e25   :  { %v6052_v62 = vadd.f32 %v12411_v61, %v12409_v60  ;;  %6414 = vmatpush1.msra.mxu0 %v6215_v8  ;;  %6512 = vmatprep.subr.mxu1 %v6130_v45  ;;  %v6362_v6 = vld [vmem:[%s14046_s10 + $0x7d8] sm:$0xff]  ;;  %v6361_v8 = vld [vmem:[%s14046_s10 + $0x7d0] sm:$0xff]  ;;  %v6311_v29 = vld [vmem:[%s14046_s10 + $0x640] sm:$0xff] }
0x1e26   :  { %6415 = vmatprep.subr.mxu0 %v6208_v10  ;;  %6513 = vmatpush1.msra.mxu1 %v6129_v51  ;;  %v6354_v10 = vld [vmem:[%s14046_s10 + $0x798] sm:$0xff]  ;;  %v6304_v58 = vld [vmem:[%s14046_s10 + $0x608] sm:$0xff]  ;;  %v6303_v43 = vld [vmem:[%s14046_s10 + $0x600] sm:$0xff] }
0x1e27   :  { %6053 = vadd.xlane.f32.xlu1 %v6052_v62  ;;  %6416 = vmatpush1.msra.mxu0 %v6207_v12  ;;  %v6120_v62 = vld [vmem:[%s14046_s10 + $0x48] sm:$0xff]  ;;  %v6353_v12 = vld [vmem:[%s14046_s10 + $0x790] sm:$0xff]  ;;  %v6295_v51 = vld [vmem:[%s14046_s10 + $0x5c0] sm:$0xff] }
0x1e28   :  { %6417 = vmatprep.subr.mxu0 %v6200_v14  ;;  %6514 = vmatprep.subr.mxu1 %v6122_v59  ;;  %v6346_v14 = vld [vmem:[%s14046_s10 + $0x758] sm:$0xff]  ;;  %v6296_v45 = vld [vmem:[%s14046_s10 + $0x5c8] sm:$0xff] }
0x1e29   :  { %6418 = vmatpush1.msra.mxu0 %v6199_v16  ;;  %6515 = vmatpush1.msra.mxu1 %v6121_v0  ;;  %v6345_v16 = vld [vmem:[%s14046_s10 + $0x750] sm:$0xff]  ;;  %v6288_v59 = vld [vmem:[%s14046_s10 + $0x588] sm:$0xff]  ;;  %v6287_v0 = vld [vmem:[%s14046_s10 + $0x580] sm:$0xff] }
0x1e2a   :  { %6419 = vmatprep.subr.mxu0 %v6192_v17  ;;  %6516 = vmatprep.subr.mxu1 %v6114_v2  ;;  %v6338_v17 = vld [vmem:[%s14046_s10 + $0x718] sm:$0xff]  ;;  %v6280_v2 = vld [vmem:[%s14046_s10 + $0x548] sm:$0xff] }
0x1e2b   :  { %6420 = vmatpush1.msra.mxu0 %v6191_v19  ;;  %6517 = vmatpush1.msra.mxu1 %v6113_v4  ;;  %v6337_v19 = vld [vmem:[%s14046_s10 + $0x710] sm:$0xff]  ;;  %v6279_v4 = vld [vmem:[%s14046_s10 + $0x540] sm:$0xff] }
0x1e2c   :  { %6421 = vmatprep.subr.mxu0 %v6184_v21  ;;  %6518 = vmatprep.subr.mxu1 %v6362_v6  ;;  %v6272_v6 = vld [vmem:[%s14046_s10 + $0x508] sm:$0xff] }
0x1e2d   :  { %6422 = vmatpush1.msra.mxu0 %v6183_v35  ;;  %6519 = vmatpush2.msra.mxu1 %v6361_v8  ;;  %v6271_v8 = vld [vmem:[%s14046_s10 + $0x500] sm:$0xff] }
0x1e2e   :  { %6423 = vmatprep.subr.mxu0 %v6176_v27  ;;  %6520 = vmatprep.subr.mxu1 %v6354_v10  ;;  %v6264_v10 = vld [vmem:[%s14046_s10 + $0x4c8] sm:$0xff] }
0x1e2f   :  { %6424 = vmatpush1.msra.mxu0 %v6175_v55  ;;  %6521 = vmatpush2.msra.mxu1 %v6353_v12  ;;  %v6263_v12 = vld [vmem:[%s14046_s10 + $0x4c0] sm:$0xff] }
0x1e30   :  { %6425 = vmatprep.subr.mxu0 %v6168_v23  ;;  %6522 = vmatprep.subr.mxu1 %v6346_v14  ;;  %v6256_v14 = vld [vmem:[%s14046_s10 + $0x488] sm:$0xff] }
0x1e31   :  { %6426 = vmatpush1.msra.mxu0 %v6167_v37  ;;  %6523 = vmatpush2.msra.mxu1 %v6345_v16  ;;  %v6255_v16 = vld [vmem:[%s14046_s10 + $0x480] sm:$0xff] }
0x1e32   :  { %6427 = vmatprep.subr.mxu0 %v6160_v42  ;;  %6524 = vmatprep.subr.mxu1 %v6338_v17  ;;  %v6248_v17 = vld [vmem:[%s14046_s10 + $0x448] sm:$0xff] }
0x1e33   :  { %6428 = vmatpush1.msra.mxu0 %v6159_v41  ;;  %6525 = vmatpush2.msra.mxu1 %v6337_v19  ;;  %v6330_v41 = vld [vmem:[%s14046_s10 + $0x6d8] sm:$0xff]  ;;  %v6247_v19 = vld [vmem:[%s14046_s10 + $0x440] sm:$0xff] }
0x1e34   :  { %6429 = vmatprep.subr.mxu0 %v6152_v52  ;;  %6526 = vmatprep.subr.mxu1 %v6330_v41  ;;  %v6329_v52 = vld [vmem:[%s14046_s10 + $0x6d0] sm:$0xff] }
0x1e35   :  { %6430 = vmatpush1.msra.mxu0 %v6151_v54  ;;  %6527 = vmatpush2.msra.mxu1 %v6329_v52  ;;  %v6322_v54 = vld [vmem:[%s14046_s10 + $0x698] sm:$0xff]  ;;  %v6047_v52 = vld [vmem:[%s14044_s8] sm:$0x3] }
0x1e36   :  { %6431 = vmatprep.subr.mxu0 %v6144_v47  ;;  %6528 = vmatprep.subr.mxu1 %v6322_v54  ;;  %v6321_v47 = vld [vmem:[%s14046_s10 + $0x690] sm:$0xff]  ;;  %v6085_v54 = vrot.slane %v6047_v52, %v9670_v33 }
0x1e37   :  { %6432 = vmatpush1.msra.mxu0 %v6143_v56  ;;  %6529 = vmatpush2.msra.mxu1 %v6321_v47  ;;  %v6314_v56 = vld [vmem:[%s14046_s10 + $0x658] sm:$0xff] }
0x1e38   :  { %6433 = vmatprep.subr.mxu0 %v6136_v49  ;;  %6530 = vmatprep.subr.mxu1 %v6314_v56  ;;  %v6313_v49 = vld [vmem:[%s14046_s10 + $0x650] sm:$0xff] }
0x1e39   :  { %6434 = vmatpush1.msra.mxu0 %v6135_v26  ;;  %6531 = vmatpush2.msra.mxu1 %v6313_v49  ;;  %v6306_v26 = vld [vmem:[%s14046_s10 + $0x618] sm:$0xff] }
0x1e3a   :  { %6435 = vmatprep.subr.mxu0 %v6128_v38  ;;  %6532 = vmatprep.subr.mxu1 %v6306_v26  ;;  %v6305_v38 = vld [vmem:[%s14046_s10 + $0x610] sm:$0xff] }
0x1e3b   :  { %6436 = vmatpush1.msra.mxu0 %v6127_v36  ;;  %6533 = vmatpush2.msra.mxu1 %v6305_v38  ;;  %v6298_v36 = vld [vmem:[%s14046_s10 + $0x5d8] sm:$0xff] }
0x1e3c   :  { %6437 = vmatprep.subr.mxu0 %v6120_v62  ;;  %6534 = vmatprep.subr.mxu1 %v6298_v36  ;;  %v6297_v62 = vld [vmem:[%s14046_s10 + $0x5d0] sm:$0xff] }
0x1e3d   :  { %6438 = vmatpush1.msra.mxu0 %v6119_v63  ;;  %6535 = vmatpush2.msra.mxu1 %v6297_v62  ;;  %v6290_v63 = vld [vmem:[%s14046_s10 + $0x598] sm:$0xff]  ;;  %v6228_v62 = vld [vmem:[%s14046_s10 + $0x3a8] sm:$0xff] }
0x1e3e   :  { %6439 = vmatprep.subr.mxu0 %v6112_v1  ;;  %6536 = vmatprep.subr.mxu1 %v6290_v63  ;;  %v6289_v1 = vld [vmem:[%s14046_s10 + $0x590] sm:$0xff]  ;;  %v6227_v63 = vld [vmem:[%s14046_s10 + $0x3a0] sm:$0xff] }
0x1e3f   :  { %6440 = vmatpush1.msra.mxu0 %v6111_v3  ;;  %6537 = vmatpush2.msra.mxu1 %v6289_v1  ;;  %v6282_v3 = vld [vmem:[%s14046_s10 + $0x558] sm:$0xff] }
0x1e40   :  { %6441 = vmatprep.subr.mxu0 %v6360_v5  ;;  %6538 = vmatprep.subr.mxu1 %v6282_v3  ;;  %v6281_v5 = vld [vmem:[%s14046_s10 + $0x550] sm:$0xff]  ;;  %v6222_v3 = vld [vmem:[%s14046_s10 + $0x378] sm:$0xff] }
0x1e41   :  { %6442 = vmatpush2.msra.mxu0 %v6359_v7  ;;  %6539 = vmatpush2.msra.mxu1 %v6281_v5  ;;  %v6274_v7 = vld [vmem:[%s14046_s10 + $0x518] sm:$0xff]  ;;  %v6219_v5 = vld [vmem:[%s14046_s10 + $0x360] sm:$0xff] }
0x1e42   :  { %6443 = vmatprep.subr.mxu0 %v6352_v9  ;;  %6540 = vmatprep.subr.mxu1 %v6274_v7  ;;  %v6273_v9 = vld [vmem:[%s14046_s10 + $0x510] sm:$0xff]  ;;  %v6212_v7 = vld [vmem:[%s14046_s10 + $0x328] sm:$0xff] }
0x1e43   :  { %6444 = vmatpush2.msra.mxu0 %v6351_v11  ;;  %6541 = vmatpush2.msra.mxu1 %v6273_v9  ;;  %v6266_v11 = vld [vmem:[%s14046_s10 + $0x4d8] sm:$0xff]  ;;  %v6211_v9 = vld [vmem:[%s14046_s10 + $0x320] sm:$0xff] }
0x1e44   :  { %6445 = vmatprep.subr.mxu0 %v6344_v13  ;;  %6542 = vmatprep.subr.mxu1 %v6266_v11  ;;  %v6265_v13 = vld [vmem:[%s14046_s10 + $0x4d0] sm:$0xff]  ;;  %v6204_v11 = vld [vmem:[%s14046_s10 + $0x2e8] sm:$0xff] }
0x1e45   :  { %6446 = vmatpush2.msra.mxu0 %v6343_v15  ;;  %6543 = vmatpush2.msra.mxu1 %v6265_v13  ;;  %v6258_v15 = vld [vmem:[%s14046_s10 + $0x498] sm:$0xff]  ;;  %v6203_v13 = vld [vmem:[%s14046_s10 + $0x2e0] sm:$0xff] }
0x1e46   :  { %6447 = vmatprep.subr.mxu0 %v6336_v48  ;;  %6544 = vmatprep.subr.mxu1 %v6258_v15  ;;  %v6257_v48 = vld [vmem:[%s14046_s10 + $0x490] sm:$0xff]  ;;  %v6196_v15 = vld [vmem:[%s14046_s10 + $0x2a8] sm:$0xff] }
0x1e47   :  { %6448 = vmatpush2.msra.mxu0 %v6335_v18  ;;  %v6250_v18 = vld [vmem:[%s14046_s10 + $0x458] sm:$0xff]  ;;  %6545 = vmatpush2.msra.mxu1 %v6257_v48  ;;  %v6195_v48 = vld [vmem:[%s14046_s10 + $0x2a0] sm:$0xff] }
0x1e48   :  { %6449 = vmatprep.subr.mxu0 %v6328_v50  ;;  %6546 = vmatprep.subr.mxu1 %v6250_v18  ;;  %v6188_v18 = vld [vmem:[%s14046_s10 + $0x268] sm:$0xff] }
0x1e49   :  { %6450 = vmatpush2.msra.mxu0 %v6327_v44 }
0x1e4a   :  { %6451 = vmatprep.subr.mxu0 %v6320_v46  ;;  %v6048_v46 = vld [vmem:[%s14045_s9] sm:$0x3] }
0x1e4b   :  { %6452 = vmatpush2.msra.mxu0 %v6319_v57  ;;  %v6089_v57 = vrot.slane %v6047_v52, %v9673_v34  ;;  %v6104_v49 = vrot.slane %v6048_v46, %v9673_v34  ;;  %v6165_v52 = vld [vmem:[%s14046_s10 + $0x1b0] sm:$0xff] }
0x1e4c   :  { %6453 = vmatprep.subr.mxu0 %v6312_v30 }
0x1e4d   :  { %6454 = vmatpush2.msra.mxu0 %v6311_v29  ;;  %v6100_v29 = vrot.slane %v6048_v46, %v9670_v33  ;;  %v6156_v46 = vld [vmem:[%s14046_s10 + $0x168] sm:$0xff] }
0x1e4e   :  { %6455 = vmatprep.subr.mxu0 %v6304_v58 }
0x1e4f   :  { %6456 = vmatpush2.msra.mxu0 %v6303_v43 }
0x1e50   :  { %6457 = vmatprep.subr.mxu0 %v6296_v45 }
0x1e51   :  { %6458 = vmatpush2.msra.mxu0 %v6295_v51 }
0x1e52   :  { %6459 = vmatprep.subr.mxu0 %v6288_v59 }
0x1e53   :  { %6460 = vmatpush2.msra.mxu0 %v6287_v0  ;;  %v6229_v0 = vld [vmem:[%s14046_s10 + $0x3b0] sm:$0xff] }
0x1e54   :  { %6461 = vmatprep.subr.mxu0 %v6280_v2  ;;  %v6220_v2 = vld [vmem:[%s14046_s10 + $0x368] sm:$0xff] }
0x1e55   :  { %6462 = vmatpush2.msra.mxu0 %v6279_v4 }
0x1e56   :  { %6463 = vmatprep.subr.mxu0 %v6272_v6  ;;  %v6221_v6 = vld [vmem:[%s14046_s10 + $0x370] sm:$0xff] }
0x1e57   :  { %6464 = vmatpush2.msra.mxu0 %v6271_v8  ;;  %v6214_v8 = vld [vmem:[%s14046_s10 + $0x338] sm:$0xff] }
0x1e58   :  { %6465 = vmatprep.subr.mxu0 %v6264_v10  ;;  %v6213_v10 = vld [vmem:[%s14046_s10 + $0x330] sm:$0xff] }
0x1e59   :  { %6466 = vmatpush2.msra.mxu0 %v6263_v12  ;;  %v6206_v12 = vld [vmem:[%s14046_s10 + $0x2f8] sm:$0xff] }
0x1e5a   :  { %6467 = vmatprep.subr.mxu0 %v6256_v14  ;;  %v6205_v14 = vld [vmem:[%s14046_s10 + $0x2f0] sm:$0xff] }
0x1e5b   :  { %6468 = vmatpush2.msra.mxu0 %v6255_v16  ;;  %v6198_v16 = vld [vmem:[%s14046_s10 + $0x2b8] sm:$0xff] }
0x1e5c   :  { %6469 = vmatprep.subr.mxu0 %v6248_v17  ;;  %v6197_v17 = vld [vmem:[%s14046_s10 + $0x2b0] sm:$0xff] }
0x1e5d   :  { %6470 = vmatpush2.msra.mxu0 %v6247_v19  ;;  %v6190_v19 = vld [vmem:[%s14046_s10 + $0x278] sm:$0xff] }
0x1eac   :  { %v6051_v20 = vpop.xlane.xlu0 %6050 }
0x1ead   :  { %v6055_v21 = vmul.f32 0.00390625, %v6051_v20  ;;  %v6249_v20 = vld [vmem:[%s14046_s10 + $0x450] sm:$0xff] }
0x1eae   :  { %6547 = vmatpush2.msra.mxu1 %v6249_v20  ;;  %v6187_v20 = vld [vmem:[%s14046_s10 + $0x260] sm:$0xff] }
0x1eaf   :  { %v12656_v25 = vsub.f32 %v12396_v31, %v6055_v21  ;;  %v12659_v35 = vsub.f32 %v12398_v22, %v6055_v21  ;;  %v6240_v21 = vld [vmem:[%s14046_s10 + $0x408] sm:$0xff] }
0x1eb0   :  { %v6054_v40 = vpop.xlane.xlu1 %6053  ;;  %6471 = vmatprep.subr.mxu0 %v6240_v21  ;;  %v6189_v21 = vld [vmem:[%s14046_s10 + $0x270] sm:$0xff] }
0x1eb1   :  { %v6056_v27 = vmul.f32 0.00390625, %v6054_v40  ;;  %v6061_v53 = vmul.f32 %v12656_v25, %v12656_v25  ;;  %v6062_v55 = vmul.f32 %v12659_v35, %v12659_v35  ;;  %v6242_v40 = vld [vmem:[%s14046_s10 + $0x418] sm:$0xff] }
0x1eb2   :  { %6548 = vmatprep.subr.mxu1 %v6242_v40  ;;  %v6180_v40 = vld [vmem:[%s14046_s10 + $0x228] sm:$0xff] }
0x1eb3   :  { %v12666_v28 = vsub.f32 %v12409_v60, %v6056_v27  ;;  %v12669_v23 = vsub.f32 %v12411_v61, %v6056_v27  ;;  %v6065_v24 = vadd.f32 %v6062_v55, %v6061_v53  ;;  %v6239_v27 = vld [vmem:[%s14046_s10 + $0x400] sm:$0xff]  ;;  %v6241_v53 = vld [vmem:[%s14046_s10 + $0x410] sm:$0xff]  ;;  %v6236_v55 = vld [vmem:[%s14046_s10 + $0x3e8] sm:$0xff] }
0x1eb4   :  { %6472 = vmatpush2.msra.mxu0 %v6239_v27  ;;  %6549 = vmatpush2.msra.mxu1 %v6241_v53  ;;  %v6182_v27 = vld [vmem:[%s14046_s10 + $0x238] sm:$0xff]  ;;  %v6179_v53 = vld [vmem:[%s14046_s10 + $0x220] sm:$0xff] }
0x1eb5   :  { %6066 = vadd.xlane.f32.xlu0 %v6065_v24  ;;  %v6063_v37 = vmul.f32 %v12666_v28, %v12666_v28  ;;  %v6064_v39 = vmul.f32 %v12669_v23, %v12669_v23  ;;  %v6238_v24 = vld [vmem:[%s14046_s10 + $0x3f8] sm:$0xff]  ;;  %6563 = vmatprep.subr.mxu0 %v6236_v55  ;;  %v6181_v55 = vld [vmem:[%s14046_s10 + $0x230] sm:$0xff] }
0x1eb6   :  { %6640 = vmatprep.subr.mxu1 %v6238_v24  ;;  %v6172_v24 = vld [vmem:[%s14046_s10 + $0x1e8] sm:$0xff] }
0x1eb7   :  { %v6068_v42 = vadd.f32 %v6064_v39, %v6063_v37 }
0x1eb9   :  { %6069 = vadd.xlane.f32.xlu1 %v6068_v42 }
0x1f3e   :  { %v6067_v37 = vpop.xlane.xlu0 %6066 }
0x1f3f   :  { %v6071_v39 = vmul.f32 0.00390625, %v6067_v37  ;;  %v6174_v37 = vld [vmem:[%s14046_s10 + $0x1f8] sm:$0xff] }
0x1f41   :  { %v6073_v42 = vadd.f32 1e-05, %v6071_v39  ;;  %v6171_v39 = vld [vmem:[%s14046_s10 + $0x1e0] sm:$0xff] }
0x1f42   :  { %v6070_v50 = vpop.xlane.xlu1 %6069 }
0x1f43   :  { %9334 = vrsqrt.f32 %v6073_v42  ;;  %v6072_v41 = vmul.f32 0.00390625, %v6070_v50  ;;  %v6173_v42 = vld [vmem:[%s14046_s10 + $0x1f0] sm:$0xff]  ;;  %v6164_v50 = vld [vmem:[%s14046_s10 + $0x1a8] sm:$0xff] }
0x1f45   :  { %v6074_v44 = vadd.f32 1e-05, %v6072_v41  ;;  %v6166_v41 = vld [vmem:[%s14046_s10 + $0x1b8] sm:$0xff] }
0x1f47   :  { %9336 = vrsqrt.f32 %v6074_v44  ;;  %v6163_v44 = vld [vmem:[%s14046_s10 + $0x1a0] sm:$0xff] }
0x1f50   :  { %v9335_v47 = vpop.eup %9334 }
0x1f51   :  { %v6077_v30 = vmul.f32 %v9335_v47, %v12656_v25  ;;  %v6078_v56 = vmul.f32 %v9335_v47, %v12659_v35  ;;  %v6235_v25 = vld [vmem:[%s14046_s10 + $0x3e0] sm:$0xff]  ;;  %v6237_v35 = vld [vmem:[%s14046_s10 + $0x3f0] sm:$0xff] }
0x1f52   :  { %v6157_v47 = vld [vmem:[%s14046_s10 + $0x170] sm:$0xff] }
0x1f53   :  { %v6093_v58 = vmul.f32 %v6089_v57, %v6078_v56  ;;  %v6092_v26 = vmul.f32 %v6085_v54, %v6077_v30  ;;  %v6148_v30 = vld [vmem:[%s14046_s10 + $0x128] sm:$0xff]  ;;  %v6150_v56 = vld [vmem:[%s14046_s10 + $0x138] sm:$0xff] }
0x1f54   :  { %v9337_v43 = vpop.eup %9336 }
0x1f55   :  { %v6108_v38 = vadd.f32 %v6104_v49, %v6093_v58  ;;  %v12837_v45 = vadd.f32 %v6100_v29, %v6092_v26  ;;  %v6080_v36 = vmul.f32 %v9337_v43, %v12669_v23  ;;  %v6079_v51 = vmul.f32 %v9337_v43, %v12666_v28  ;;  %v6230_v23 = vld [vmem:[%s14046_s10 + $0x3b8] sm:$0xff]  ;;  %v6140_v58 = vld [vmem:[%s14046_s10 + $0xe8] sm:$0xff]  ;;  %v6139_v43 = vld [vmem:[%s14046_s10 + $0xe0] sm:$0xff] }
0x1f56   :  { %v6142_v26 = vld [vmem:[%s14046_s10 + $0xf8] sm:$0xff] }
0x1f57   :  { %6473 = vmatprep.mubr.f32.mxu0 %v6108_v38  ;;  %6550 = vmatprep.mubr.f32.mxu1 %v6108_v38  ;;  %v6095_v59 = vmul.f32 %v6089_v57, %v6080_v36  ;;  %v6094_v28 = vmul.f32 %v6085_v54, %v6079_v51  ;;  %v6158_v54 = vld [vmem:[%s14046_s10 + $0x178] sm:$0xff]  ;;  %v6155_v57 = vld [vmem:[%s14046_s10 + $0x160] sm:$0xff]  ;;  %v6132_v36 = vld [vmem:[%s14046_s10 + $0xa8] sm:$0xff] }
0x1f58   :  { %6474 = vmatmul.mubr.f32.vlgmr.msra.gmra.mxu0 %v12837_v45  ;;  %6551 = vmatmul.mubr.f32.vlgmr.msra.gmra.mxu1 %v12837_v45  ;;  %v6134_v51 = vld [vmem:[%s14046_s10 + $0xb8] sm:$0xff] }
0x1f59   :  { %6564 = vmatpush1.msra.mxu0 %v6235_v25  ;;  %6641 = vmatpush1.msra.mxu1 %v6237_v35  ;;  %v12861_v1 = vadd.f32 %v6104_v49, %v6095_v59  ;;  %v12869_v4 = vadd.f32 %v6100_v29, %v6094_v28  ;;  %v6147_v29 = vld [vmem:[%s14046_s10 + $0x120] sm:$0xff]  ;;  %v6149_v49 = vld [vmem:[%s14046_s10 + $0x130] sm:$0xff] }
0x1f5a   :  { %6565 = vmatprep.subr.mxu0 %v6228_v62  ;;  %6642 = vmatprep.subr.mxu1 %v6230_v23  ;;  %v6131_v25 = vld [vmem:[%s14046_s10 + $0xa0] sm:$0xff]  ;;  %v6133_v35 = vld [vmem:[%s14046_s10 + $0xb0] sm:$0xff]  ;;  %v6124_v62 = vld [vmem:[%s14046_s10 + $0x68] sm:$0xff] }
0x1f5b   :  { %6566 = vmatpush1.msra.mxu0 %v6227_v63  ;;  %6643 = vmatpush1.msra.mxu1 %v6229_v0  ;;  %v6126_v23 = vld [vmem:[%s14046_s10 + $0x78] sm:$0xff]  ;;  %v6123_v59 = vld [vmem:[%s14046_s10 + $0x60] sm:$0xff]  ;;  %v6125_v28 = vld [vmem:[%s14046_s10 + $0x70] sm:$0xff] }
0x1f5c   :  { %6479 = vmatprep.mubr.f32.mxu0 %v12861_v1  ;;  %6556 = vmatprep.mubr.f32.mxu1 %v12861_v1  ;;  %v6116_v63 = vld [vmem:[%s14046_s10 + $0x28] sm:$0xff]  ;;  %v6118_v0 = vld [vmem:[%s14046_s10 + $0x38] sm:$0xff] }
0x1f5d   :  { %6567 = vmatprep.subr.mxu0 %v6220_v2  ;;  %6644 = vmatprep.subr.mxu1 %v6222_v3  ;;  %v6115_v2 = vld [vmem:[%s14046_s10 + $0x20] sm:$0xff]  ;;  %v6117_v3 = vld [vmem:[%s14046_s10 + $0x30] sm:$0xff] }
0x1f5e   :  { %6480 = vmatmul.mubr.f32.gmra.mxu0 %v12869_v4  ;;  %6557 = vmatmul.mubr.f32.gmra.mxu1 %v12869_v4 }
0x1f5f   :  { %6568 = vmatpush1.msra.mxu0 %v6219_v5  ;;  %6645 = vmatpush1.msra.mxu1 %v6221_v6  ;;  %v6364_v5 = vld [vmem:[%s14046_s10 + $0x7e8] sm:$0xff]  ;;  %v6366_v6 = vld [vmem:[%s14046_s10 + $0x7f8] sm:$0xff] }
0x1f60   :  { %6569 = vmatprep.subr.mxu0 %v6212_v7  ;;  %6627 = vmatprep.mubr.f32.mxu0 %v6108_v38  ;;  %v6363_v7 = vld [vmem:[%s14046_s10 + $0x7e0] sm:$0xff] }
0x1f61   :  { %6646 = vmatprep.subr.mxu1 %v6214_v8  ;;  %6704 = vmatprep.mubr.f32.mxu1 %v6108_v38  ;;  %v6141_v38 = vld [vmem:[%s14046_s10 + $0xf0] sm:$0xff] }
0x1f62   :  { %6570 = vmatpush1.msra.mxu0 %v6211_v9  ;;  %6647 = vmatpush1.msra.mxu1 %v6213_v10  ;;  %v6365_v8 = vld [vmem:[%s14046_s10 + $0x7f0] sm:$0xff]  ;;  %v6356_v9 = vld [vmem:[%s14046_s10 + $0x7a8] sm:$0xff]  ;;  %v6358_v10 = vld [vmem:[%s14046_s10 + $0x7b8] sm:$0xff] }
0x1f63   :  { %6571 = vmatprep.subr.mxu0 %v6204_v11  ;;  %6648 = vmatprep.subr.mxu1 %v6206_v12  ;;  %v6355_v11 = vld [vmem:[%s14046_s10 + $0x7a0] sm:$0xff]  ;;  %v6357_v12 = vld [vmem:[%s14046_s10 + $0x7b0] sm:$0xff] }
0x1f64   :  { %6572 = vmatpush1.msra.mxu0 %v6203_v13  ;;  %6649 = vmatpush1.msra.mxu1 %v6205_v14  ;;  %v6348_v13 = vld [vmem:[%s14046_s10 + $0x768] sm:$0xff]  ;;  %v6350_v14 = vld [vmem:[%s14046_s10 + $0x778] sm:$0xff] }
0x1f65   :  { %6573 = vmatprep.subr.mxu0 %v6196_v15  ;;  %6650 = vmatprep.subr.mxu1 %v6198_v16  ;;  %v6347_v15 = vld [vmem:[%s14046_s10 + $0x760] sm:$0xff]  ;;  %v6349_v16 = vld [vmem:[%s14046_s10 + $0x770] sm:$0xff] }
0x1f66   :  { %6574 = vmatpush1.msra.mxu0 %v6195_v48  ;;  %6651 = vmatpush1.msra.mxu1 %v6197_v17  ;;  %v6340_v48 = vld [vmem:[%s14046_s10 + $0x728] sm:$0xff]  ;;  %v6342_v17 = vld [vmem:[%s14046_s10 + $0x738] sm:$0xff] }
0x1f67   :  { %6575 = vmatprep.subr.mxu0 %v6188_v18  ;;  %6652 = vmatprep.subr.mxu1 %v6190_v19  ;;  %v6339_v18 = vld [vmem:[%s14046_s10 + $0x720] sm:$0xff]  ;;  %v6341_v19 = vld [vmem:[%s14046_s10 + $0x730] sm:$0xff] }
0x1f68   :  { %6576 = vmatpush1.msra.mxu0 %v6187_v20  ;;  %6653 = vmatpush1.msra.mxu1 %v6189_v21  ;;  %v6332_v20 = vld [vmem:[%s14046_s10 + $0x6e8] sm:$0xff]  ;;  %v6334_v21 = vld [vmem:[%s14046_s10 + $0x6f8] sm:$0xff] }
0x1f69   :  { %6577 = vmatprep.subr.mxu0 %v6180_v40  ;;  %6654 = vmatprep.subr.mxu1 %v6182_v27  ;;  %v6331_v40 = vld [vmem:[%s14046_s10 + $0x6e0] sm:$0xff]  ;;  %v6333_v27 = vld [vmem:[%s14046_s10 + $0x6f0] sm:$0xff] }
0x1f6a   :  { %6578 = vmatpush1.msra.mxu0 %v6179_v53  ;;  %6655 = vmatpush1.msra.mxu1 %v6181_v55  ;;  %v6324_v53 = vld [vmem:[%s14046_s10 + $0x6a8] sm:$0xff]  ;;  %v6326_v55 = vld [vmem:[%s14046_s10 + $0x6b8] sm:$0xff] }
0x1f6b   :  { %6579 = vmatprep.subr.mxu0 %v6172_v24  ;;  %6656 = vmatprep.subr.mxu1 %v6174_v37  ;;  %v6323_v24 = vld [vmem:[%s14046_s10 + $0x6a0] sm:$0xff]  ;;  %v6325_v37 = vld [vmem:[%s14046_s10 + $0x6b0] sm:$0xff] }
0x1f6c   :  { %6580 = vmatpush1.msra.mxu0 %v6171_v39  ;;  %6657 = vmatpush1.msra.mxu1 %v6173_v42  ;;  %v6316_v39 = vld [vmem:[%s14046_s10 + $0x668] sm:$0xff]  ;;  %v6318_v42 = vld [vmem:[%s14046_s10 + $0x678] sm:$0xff] }
0x1f6d   :  { %6581 = vmatprep.subr.mxu0 %v6164_v50  ;;  %6658 = vmatprep.subr.mxu1 %v6166_v41  ;;  %v6315_v50 = vld [vmem:[%s14046_s10 + $0x660] sm:$0xff]  ;;  %v6317_v41 = vld [vmem:[%s14046_s10 + $0x670] sm:$0xff] }
0x1f6e   :  { %6582 = vmatpush1.msra.mxu0 %v6163_v44  ;;  %6659 = vmatpush1.msra.mxu1 %v6165_v52  ;;  %v6308_v44 = vld [vmem:[%s14046_s10 + $0x628] sm:$0xff]  ;;  %v6310_v52 = vld [vmem:[%s14046_s10 + $0x638] sm:$0xff] }
0x1f6f   :  { %6583 = vmatprep.subr.mxu0 %v6156_v46  ;;  %6660 = vmatprep.subr.mxu1 %v6158_v54  ;;  %v6307_v46 = vld [vmem:[%s14046_s10 + $0x620] sm:$0xff]  ;;  %v6309_v54 = vld [vmem:[%s14046_s10 + $0x630] sm:$0xff] }
0x1f70   :  { %6584 = vmatpush1.msra.mxu0 %v6155_v57  ;;  %6661 = vmatpush1.msra.mxu1 %v6157_v47  ;;  %v6300_v57 = vld [vmem:[%s14046_s10 + $0x5e8] sm:$0xff]  ;;  %v6302_v47 = vld [vmem:[%s14046_s10 + $0x5f8] sm:$0xff] }
0x1f71   :  { %6585 = vmatprep.subr.mxu0 %v6148_v30  ;;  %6662 = vmatprep.subr.mxu1 %v6150_v56  ;;  %v6299_v30 = vld [vmem:[%s14046_s10 + $0x5e0] sm:$0xff]  ;;  %v6301_v56 = vld [vmem:[%s14046_s10 + $0x5f0] sm:$0xff] }
0x1f72   :  { %6586 = vmatpush1.msra.mxu0 %v6147_v29  ;;  %6663 = vmatpush1.msra.mxu1 %v6149_v49  ;;  %v6292_v29 = vld [vmem:[%s14046_s10 + $0x5a8] sm:$0xff]  ;;  %v6294_v49 = vld [vmem:[%s14046_s10 + $0x5b8] sm:$0xff] }
0x1f73   :  { %6587 = vmatprep.subr.mxu0 %v6140_v58  ;;  %6664 = vmatprep.subr.mxu1 %v6142_v26  ;;  %v6291_v58 = vld [vmem:[%s14046_s10 + $0x5a0] sm:$0xff]  ;;  %v6293_v26 = vld [vmem:[%s14046_s10 + $0x5b0] sm:$0xff] }
0x1f74   :  { %6588 = vmatpush1.msra.mxu0 %v6139_v43  ;;  %6665 = vmatpush1.msra.mxu1 %v6141_v38  ;;  %v6284_v43 = vld [vmem:[%s14046_s10 + $0x568] sm:$0xff]  ;;  %v6286_v38 = vld [vmem:[%s14046_s10 + $0x578] sm:$0xff] }
0x1f75   :  { %6589 = vmatprep.subr.mxu0 %v6132_v36  ;;  %6666 = vmatprep.subr.mxu1 %v6134_v51  ;;  %v6283_v36 = vld [vmem:[%s14046_s10 + $0x560] sm:$0xff]  ;;  %v6285_v51 = vld [vmem:[%s14046_s10 + $0x570] sm:$0xff] }
0x1f76   :  { %6590 = vmatpush1.msra.mxu0 %v6131_v25  ;;  %6667 = vmatpush1.msra.mxu1 %v6133_v35  ;;  %v6276_v25 = vld [vmem:[%s14046_s10 + $0x528] sm:$0xff]  ;;  %v6278_v35 = vld [vmem:[%s14046_s10 + $0x538] sm:$0xff] }
0x1f77   :  { %6591 = vmatprep.subr.mxu0 %v6124_v62  ;;  %6668 = vmatprep.subr.mxu1 %v6126_v23  ;;  %v6275_v62 = vld [vmem:[%s14046_s10 + $0x520] sm:$0xff]  ;;  %v6277_v23 = vld [vmem:[%s14046_s10 + $0x530] sm:$0xff] }
0x1f78   :  { %6592 = vmatpush1.msra.mxu0 %v6123_v59  ;;  %6669 = vmatpush1.msra.mxu1 %v6125_v28  ;;  %v6268_v59 = vld [vmem:[%s14046_s10 + $0x4e8] sm:$0xff]  ;;  %v6270_v28 = vld [vmem:[%s14046_s10 + $0x4f8] sm:$0xff] }
0x1f79   :  { %6593 = vmatprep.subr.mxu0 %v6116_v63  ;;  %6670 = vmatprep.subr.mxu1 %v6118_v0  ;;  %v6267_v63 = vld [vmem:[%s14046_s10 + $0x4e0] sm:$0xff]  ;;  %v6269_v0 = vld [vmem:[%s14046_s10 + $0x4f0] sm:$0xff] }
0x1f7a   :  { %6594 = vmatpush1.msra.mxu0 %v6115_v2  ;;  %6671 = vmatpush1.msra.mxu1 %v6117_v3  ;;  %v6260_v2 = vld [vmem:[%s14046_s10 + $0x4a8] sm:$0xff]  ;;  %v6262_v3 = vld [vmem:[%s14046_s10 + $0x4b8] sm:$0xff] }
0x1f7b   :  { %6595 = vmatprep.subr.mxu0 %v6364_v5  ;;  %6672 = vmatprep.subr.mxu1 %v6366_v6  ;;  %v6259_v5 = vld [vmem:[%s14046_s10 + $0x4a0] sm:$0xff]  ;;  %v6261_v6 = vld [vmem:[%s14046_s10 + $0x4b0] sm:$0xff] }
0x1f7c   :  { %6596 = vmatpush2.msra.mxu0 %v6363_v7  ;;  %6673 = vmatpush2.msra.mxu1 %v6365_v8  ;;  %v6252_v7 = vld [vmem:[%s14046_s10 + $0x468] sm:$0xff]  ;;  %v6254_v8 = vld [vmem:[%s14046_s10 + $0x478] sm:$0xff] }
0x1f7d   :  { %6597 = vmatprep.subr.mxu0 %v6356_v9  ;;  %6674 = vmatprep.subr.mxu1 %v6358_v10  ;;  %v6251_v9 = vld [vmem:[%s14046_s10 + $0x460] sm:$0xff]  ;;  %v6253_v10 = vld [vmem:[%s14046_s10 + $0x470] sm:$0xff] }
0x1f7e   :  { %6598 = vmatpush2.msra.mxu0 %v6355_v11  ;;  %6675 = vmatpush2.msra.mxu1 %v6357_v12  ;;  %v6244_v11 = vld [vmem:[%s14046_s10 + $0x428] sm:$0xff]  ;;  %v6246_v12 = vld [vmem:[%s14046_s10 + $0x438] sm:$0xff] }
0x1f7f   :  { %6599 = vmatprep.subr.mxu0 %v6348_v13  ;;  %6676 = vmatprep.subr.mxu1 %v6350_v14  ;;  %v6243_v13 = vld [vmem:[%s14046_s10 + $0x420] sm:$0xff]  ;;  %v6245_v14 = vld [vmem:[%s14046_s10 + $0x430] sm:$0xff] }
0x1f80   :  { %6600 = vmatpush2.msra.mxu0 %v6347_v15  ;;  %6677 = vmatpush2.msra.mxu1 %v6349_v16  ;;  %v6764_v15 = vld [vmem:[%s14048_s12 + $0xf8] sm:$0xff] }
0x1f81   :  { %6601 = vmatprep.subr.mxu0 %v6340_v48  ;;  %6678 = vmatprep.subr.mxu1 %v6342_v17  ;;  %v6828_v16 = vld [vmem:[%s14048_s12 + $0x2f8] sm:$0xff]  ;;  %v6763_v48 = vld [vmem:[%s14048_s12 + $0xf0] sm:$0xff] }
0x1f82   :  { %6602 = vmatpush2.msra.mxu0 %v6339_v18  ;;  %6679 = vmatpush2.msra.mxu1 %v6341_v19  ;;  %v6827_v17 = vld [vmem:[%s14048_s12 + $0x2f0] sm:$0xff]  ;;  %v6762_v18 = vld [vmem:[%s14048_s12 + $0xe8] sm:$0xff]  ;;  %v6761_v19 = vld [vmem:[%s14048_s12 + $0xe0] sm:$0xff] }
0x1f83   :  { %6603 = vmatprep.subr.mxu0 %v6332_v20  ;;  %6680 = vmatprep.subr.mxu1 %v6334_v21  ;;  %v6760_v20 = vld [vmem:[%s14048_s12 + $0xd8] sm:$0xff] }
0x1f84   :  { %6604 = vmatpush2.msra.mxu0 %v6331_v40  ;;  %6681 = vmatpush2.msra.mxu1 %v6333_v27  ;;  %v6824_v21 = vld [vmem:[%s14048_s12 + $0x2d8] sm:$0xff]  ;;  %v6759_v40 = vld [vmem:[%s14048_s12 + $0xd0] sm:$0xff] }
0x1f85   :  { %6605 = vmatprep.subr.mxu0 %v6324_v53  ;;  %6682 = vmatprep.subr.mxu1 %v6326_v55  ;;  %v6823_v27 = vld [vmem:[%s14048_s12 + $0x2d0] sm:$0xff]  ;;  %v6822_v53 = vld [vmem:[%s14048_s12 + $0x2c8] sm:$0xff]  ;;  %v6757_v55 = vld [vmem:[%s14048_s12 + $0xc0] sm:$0xff] }
0x1f86   :  { %6606 = vmatpush2.msra.mxu0 %v6323_v24  ;;  %6683 = vmatpush2.msra.mxu1 %v6325_v37  ;;  %v6821_v24 = vld [vmem:[%s14048_s12 + $0x2c0] sm:$0xff]  ;;  %v6756_v37 = vld [vmem:[%s14048_s12 + $0xb8] sm:$0xff] }
0x1f87   :  { %6607 = vmatprep.subr.mxu0 %v6316_v39  ;;  %6684 = vmatprep.subr.mxu1 %v6318_v42  ;;  %v6820_v39 = vld [vmem:[%s14048_s12 + $0x2b8] sm:$0xff]  ;;  %v6755_v42 = vld [vmem:[%s14048_s12 + $0xb0] sm:$0xff] }
0x1f88   :  { %6608 = vmatpush2.msra.mxu0 %v6315_v50  ;;  %6685 = vmatpush2.msra.mxu1 %v6317_v41  ;;  %v6819_v50 = vld [vmem:[%s14048_s12 + $0x2b0] sm:$0xff]  ;;  %v6754_v41 = vld [vmem:[%s14048_s12 + $0xa8] sm:$0xff] }
0x1f89   :  { %6609 = vmatprep.subr.mxu0 %v6308_v44  ;;  %6686 = vmatprep.subr.mxu1 %v6310_v52  ;;  %v6818_v44 = vld [vmem:[%s14048_s12 + $0x2a8] sm:$0xff]  ;;  %v6753_v52 = vld [vmem:[%s14048_s12 + $0xa0] sm:$0xff] }
0x1f8a   :  { %6610 = vmatpush2.msra.mxu0 %v6307_v46  ;;  %6687 = vmatpush2.msra.mxu1 %v6309_v54  ;;  %v6817_v46 = vld [vmem:[%s14048_s12 + $0x2a0] sm:$0xff]  ;;  %v6752_v54 = vld [vmem:[%s14048_s12 + $0x98] sm:$0xff] }
0x1f8b   :  { %6611 = vmatprep.subr.mxu0 %v6300_v57  ;;  %6688 = vmatprep.subr.mxu1 %v6302_v47  ;;  %v6816_v57 = vld [vmem:[%s14048_s12 + $0x298] sm:$0xff]  ;;  %v6751_v47 = vld [vmem:[%s14048_s12 + $0x90] sm:$0xff] }
0x1f8c   :  { %6612 = vmatpush2.msra.mxu0 %v6299_v30  ;;  %6689 = vmatpush2.msra.mxu1 %v6301_v56  ;;  %v6815_v30 = vld [vmem:[%s14048_s12 + $0x290] sm:$0xff]  ;;  %v6750_v56 = vld [vmem:[%s14048_s12 + $0x88] sm:$0xff] }
0x1f8d   :  { %6613 = vmatprep.subr.mxu0 %v6292_v29  ;;  %6690 = vmatprep.subr.mxu1 %v6294_v49  ;;  %v6814_v29 = vld [vmem:[%s14048_s12 + $0x288] sm:$0xff]  ;;  %v6749_v49 = vld [vmem:[%s14048_s12 + $0x80] sm:$0xff] }
0x1f8e   :  { %6614 = vmatpush2.msra.mxu0 %v6291_v58  ;;  %6691 = vmatpush2.msra.mxu1 %v6293_v26  ;;  %v6813_v58 = vld [vmem:[%s14048_s12 + $0x280] sm:$0xff]  ;;  %v6748_v26 = vld [vmem:[%s14048_s12 + $0x78] sm:$0xff] }
0x1f8f   :  { %6615 = vmatprep.subr.mxu0 %v6284_v43  ;;  %6692 = vmatprep.subr.mxu1 %v6286_v38  ;;  %v6812_v43 = vld [vmem:[%s14048_s12 + $0x278] sm:$0xff]  ;;  %v6747_v38 = vld [vmem:[%s14048_s12 + $0x70] sm:$0xff] }
0x1f90   :  { %6616 = vmatpush2.msra.mxu0 %v6283_v36  ;;  %6693 = vmatpush2.msra.mxu1 %v6285_v51  ;;  %v6811_v36 = vld [vmem:[%s14048_s12 + $0x270] sm:$0xff]  ;;  %v6746_v51 = vld [vmem:[%s14048_s12 + $0x68] sm:$0xff] }
0x1f91   :  { %6617 = vmatprep.subr.mxu0 %v6276_v25  ;;  %6694 = vmatprep.subr.mxu1 %v6278_v35  ;;  %v6810_v25 = vld [vmem:[%s14048_s12 + $0x268] sm:$0xff]  ;;  %v6745_v35 = vld [vmem:[%s14048_s12 + $0x60] sm:$0xff] }
0x1f92   :  { %6618 = vmatpush2.msra.mxu0 %v6275_v62  ;;  %6695 = vmatpush2.msra.mxu1 %v6277_v23  ;;  %v6809_v62 = vld [vmem:[%s14048_s12 + $0x260] sm:$0xff]  ;;  %v6744_v23 = vld [vmem:[%s14048_s12 + $0x58] sm:$0xff] }
0x1f93   :  { %6619 = vmatprep.subr.mxu0 %v6268_v59  ;;  %6696 = vmatprep.subr.mxu1 %v6270_v28  ;;  %v6808_v59 = vld [vmem:[%s14048_s12 + $0x258] sm:$0xff]  ;;  %v6743_v28 = vld [vmem:[%s14048_s12 + $0x50] sm:$0xff] }
0x1f94   :  { %6620 = vmatpush2.msra.mxu0 %v6267_v63  ;;  %6697 = vmatpush2.msra.mxu1 %v6269_v0  ;;  %v6807_v63 = vld [vmem:[%s14048_s12 + $0x250] sm:$0xff]  ;;  %v6742_v0 = vld [vmem:[%s14048_s12 + $0x48] sm:$0xff] }
0x1f95   :  { %6621 = vmatprep.subr.mxu0 %v6260_v2  ;;  %6698 = vmatprep.subr.mxu1 %v6262_v3  ;;  %v6806_v2 = vld [vmem:[%s14048_s12 + $0x248] sm:$0xff]  ;;  %v6741_v3 = vld [vmem:[%s14048_s12 + $0x40] sm:$0xff] }
0x1f96   :  { %6622 = vmatpush2.msra.mxu0 %v6259_v5  ;;  %6699 = vmatpush2.msra.mxu1 %v6261_v6  ;;  %v6805_v5 = vld [vmem:[%s14048_s12 + $0x240] sm:$0xff]  ;;  %v6740_v6 = vld [vmem:[%s14048_s12 + $0x38] sm:$0xff] }
0x1f97   :  { %6623 = vmatprep.subr.mxu0 %v6252_v7  ;;  %6700 = vmatprep.subr.mxu1 %v6254_v8  ;;  %v6804_v7 = vld [vmem:[%s14048_s12 + $0x238] sm:$0xff]  ;;  %v6739_v8 = vld [vmem:[%s14048_s12 + $0x30] sm:$0xff] }
0x1f98   :  { %6624 = vmatpush2.msra.mxu0 %v6251_v9  ;;  %6701 = vmatpush2.msra.mxu1 %v6253_v10  ;;  %v6803_v9 = vld [vmem:[%s14048_s12 + $0x230] sm:$0xff]  ;;  %v6738_v10 = vld [vmem:[%s14048_s12 + $0x28] sm:$0xff] }
0x1f99   :  { %6625 = vmatprep.subr.mxu0 %v6244_v11  ;;  %6702 = vmatprep.subr.mxu1 %v6246_v12  ;;  %v6802_v11 = vld [vmem:[%s14048_s12 + $0x228] sm:$0xff]  ;;  %v6737_v12 = vld [vmem:[%s14048_s12 + $0x20] sm:$0xff] }
0x1f9a   :  { %6626 = vmatpush2.msra.mxu0 %v6243_v13  ;;  %6703 = vmatpush2.msra.mxu1 %v6245_v14  ;;  %v6801_v13 = vld [vmem:[%s14048_s12 + $0x220] sm:$0xff]  ;;  %v6736_v14 = vld [vmem:[%s14048_s12 + $0x18] sm:$0xff] }
0x1f9b   :  { %6628 = vmatmul.mubr.f32.vlgmr.msra.gmra.mxu0 %v12837_v45  ;;  %6705 = vmatmul.mubr.f32.vlgmr.msra.gmra.mxu1 %v12837_v45  ;;  %v6826_v45 = vld [vmem:[%s14048_s12 + $0x2e8] sm:$0xff] }
0x1f9c   :  { %6633 = vmatprep.mubr.f32.mxu0 %v12861_v1  ;;  %6710 = vmatprep.mubr.f32.mxu1 %v12861_v1  ;;  %v6825_v1 = vld [vmem:[%s14048_s12 + $0x2e0] sm:$0xff] }
0x1f9d   :  { %7001 = vmatprep.subr.mxu0 %v6764_v15  ;;  %7078 = vmatprep.subr.mxu1 %v6828_v16  ;;  %v6800_v15 = vld [vmem:[%s14048_s12 + $0x218] sm:$0xff]  ;;  %v6735_v16 = vld [vmem:[%s14048_s12 + $0x10] sm:$0xff] }
0x1f9e   :  { %7002 = vmatpush1.msra.mxu0 %v6763_v48  ;;  %7079 = vmatpush1.msra.mxu1 %v6827_v17  ;;  %v6799_v48 = vld [vmem:[%s14048_s12 + $0x210] sm:$0xff]  ;;  %v6734_v17 = vld [vmem:[%s14048_s12 + $0x8] sm:$0xff] }
0x1f9f   :  { %6634 = vmatmul.mubr.f32.gmra.mxu0 %v12869_v4  ;;  %6711 = vmatmul.mubr.f32.gmra.mxu1 %v12869_v4  ;;  %v6758_v4 = vld [vmem:[%s14048_s12 + $0xc8] sm:$0xff] }
0x1fa0   :  { %7003 = vmatprep.subr.mxu0 %v6762_v18  ;;  %7080 = vmatprep.subr.mxu1 %v6826_v45  ;;  %v6798_v18 = vld [vmem:[%s14048_s12 + $0x208] sm:$0xff]  ;;  %v6733_v45 = vld [vmem:[%s14048_s12] sm:$0xff] }
0x1fa1   :  { %7004 = vmatpush1.msra.mxu0 %v6761_v19  ;;  %7081 = vmatpush1.msra.mxu1 %v6825_v1  ;;  %v6797_v19 = vld [vmem:[%s14048_s12 + $0x200] sm:$0xff]  ;;  %v6796_v1 = vld [vmem:[%s14048_s12 + $0x1f8] sm:$0xff] }
0x1fa2   :  { %7005 = vmatprep.subr.mxu0 %v6760_v20  ;;  %7082 = vmatprep.subr.mxu1 %v6824_v21  ;;  %v6860_v20 = vld [vmem:[%s14048_s12 + $0x3f8] sm:$0xff]  ;;  %v6795_v21 = vld [vmem:[%s14048_s12 + $0x1f0] sm:$0xff] }
0x1fa3   :  { %7006 = vmatpush1.msra.mxu0 %v6759_v40  ;;  %7083 = vmatpush1.msra.mxu1 %v6823_v27  ;;  %v6859_v40 = vld [vmem:[%s14048_s12 + $0x3f0] sm:$0xff]  ;;  %v6794_v27 = vld [vmem:[%s14048_s12 + $0x1e8] sm:$0xff] }
0x1fa4   :  { %7007 = vmatprep.subr.mxu0 %v6758_v4  ;;  %7084 = vmatprep.subr.mxu1 %v6822_v53  ;;  %v6858_v4 = vld [vmem:[%s14048_s12 + $0x3e8] sm:$0xff]  ;;  %v6793_v53 = vld [vmem:[%s14048_s12 + $0x1e0] sm:$0xff] }
0x1fa5   :  { %7008 = vmatpush1.msra.mxu0 %v6757_v55  ;;  %7085 = vmatpush1.msra.mxu1 %v6821_v24  ;;  %v6857_v55 = vld [vmem:[%s14048_s12 + $0x3e0] sm:$0xff]  ;;  %v6792_v24 = vld [vmem:[%s14048_s12 + $0x1d8] sm:$0xff] }
0x1fa6   :  { %7009 = vmatprep.subr.mxu0 %v6756_v37  ;;  %7086 = vmatprep.subr.mxu1 %v6820_v39  ;;  %v6856_v37 = vld [vmem:[%s14048_s12 + $0x3d8] sm:$0xff]  ;;  %v6791_v39 = vld [vmem:[%s14048_s12 + $0x1d0] sm:$0xff] }
0x1fa7   :  { %7010 = vmatpush1.msra.mxu0 %v6755_v42  ;;  %7087 = vmatpush1.msra.mxu1 %v6819_v50  ;;  %v6855_v42 = vld [vmem:[%s14048_s12 + $0x3d0] sm:$0xff]  ;;  %v6790_v50 = vld [vmem:[%s14048_s12 + $0x1c8] sm:$0xff] }
0x1fa8   :  { %7011 = vmatprep.subr.mxu0 %v6754_v41  ;;  %7088 = vmatprep.subr.mxu1 %v6818_v44  ;;  %v6854_v41 = vld [vmem:[%s14048_s12 + $0x3c8] sm:$0xff]  ;;  %v6789_v44 = vld [vmem:[%s14048_s12 + $0x1c0] sm:$0xff] }
0x1fa9   :  { %7012 = vmatpush1.msra.mxu0 %v6753_v52  ;;  %7089 = vmatpush1.msra.mxu1 %v6817_v46  ;;  %v6853_v52 = vld [vmem:[%s14048_s12 + $0x3c0] sm:$0xff]  ;;  %v6788_v46 = vld [vmem:[%s14048_s12 + $0x1b8] sm:$0xff] }
0x1faa   :  { %7013 = vmatprep.subr.mxu0 %v6752_v54  ;;  %7090 = vmatprep.subr.mxu1 %v6816_v57  ;;  %v6852_v54 = vld [vmem:[%s14048_s12 + $0x3b8] sm:$0xff]  ;;  %v6787_v57 = vld [vmem:[%s14048_s12 + $0x1b0] sm:$0xff] }
0x1fab   :  { %7014 = vmatpush1.msra.mxu0 %v6751_v47  ;;  %7091 = vmatpush1.msra.mxu1 %v6815_v30  ;;  %v6851_v47 = vld [vmem:[%s14048_s12 + $0x3b0] sm:$0xff]  ;;  %v6786_v30 = vld [vmem:[%s14048_s12 + $0x1a8] sm:$0xff] }
0x1fac   :  { %7015 = vmatprep.subr.mxu0 %v6750_v56  ;;  %7092 = vmatprep.subr.mxu1 %v6814_v29  ;;  %v6850_v56 = vld [vmem:[%s14048_s12 + $0x3a8] sm:$0xff]  ;;  %v6785_v29 = vld [vmem:[%s14048_s12 + $0x1a0] sm:$0xff] }
0x1fad   :  { %7016 = vmatpush1.msra.mxu0 %v6749_v49  ;;  %7093 = vmatpush1.msra.mxu1 %v6813_v58  ;;  %v6849_v49 = vld [vmem:[%s14048_s12 + $0x3a0] sm:$0xff]  ;;  %v6784_v58 = vld [vmem:[%s14048_s12 + $0x198] sm:$0xff] }
0x1fae   :  { %7017 = vmatprep.subr.mxu0 %v6748_v26  ;;  %7094 = vmatprep.subr.mxu1 %v6812_v43  ;;  %v6848_v26 = vld [vmem:[%s14048_s12 + $0x398] sm:$0xff]  ;;  %v6783_v43 = vld [vmem:[%s14048_s12 + $0x190] sm:$0xff] }
0x1faf   :  { %7018 = vmatpush1.msra.mxu0 %v6747_v38  ;;  %7095 = vmatpush1.msra.mxu1 %v6811_v36  ;;  %v6847_v38 = vld [vmem:[%s14048_s12 + $0x390] sm:$0xff]  ;;  %v6782_v36 = vld [vmem:[%s14048_s12 + $0x188] sm:$0xff] }
0x1fb0   :  { %7019 = vmatprep.subr.mxu0 %v6746_v51  ;;  %7096 = vmatprep.subr.mxu1 %v6810_v25  ;;  %v6846_v51 = vld [vmem:[%s14048_s12 + $0x388] sm:$0xff]  ;;  %v6781_v25 = vld [vmem:[%s14048_s12 + $0x180] sm:$0xff] }
0x1fb1   :  { %7020 = vmatpush1.msra.mxu0 %v6745_v35  ;;  %7097 = vmatpush1.msra.mxu1 %v6809_v62  ;;  %v6845_v35 = vld [vmem:[%s14048_s12 + $0x380] sm:$0xff]  ;;  %v6780_v62 = vld [vmem:[%s14048_s12 + $0x178] sm:$0xff] }
0x1fb2   :  { %7021 = vmatprep.subr.mxu0 %v6744_v23  ;;  %7098 = vmatprep.subr.mxu1 %v6808_v59  ;;  %v6844_v23 = vld [vmem:[%s14048_s12 + $0x378] sm:$0xff]  ;;  %v6779_v59 = vld [vmem:[%s14048_s12 + $0x170] sm:$0xff] }
0x1fb3   :  { %7022 = vmatpush1.msra.mxu0 %v6743_v28  ;;  %7099 = vmatpush1.msra.mxu1 %v6807_v63  ;;  %v6843_v28 = vld [vmem:[%s14048_s12 + $0x370] sm:$0xff]  ;;  %v6778_v63 = vld [vmem:[%s14048_s12 + $0x168] sm:$0xff] }
0x1fb4   :  { %7023 = vmatprep.subr.mxu0 %v6742_v0  ;;  %7100 = vmatprep.subr.mxu1 %v6806_v2  ;;  %v6842_v0 = vld [vmem:[%s14048_s12 + $0x368] sm:$0xff]  ;;  %v6777_v2 = vld [vmem:[%s14048_s12 + $0x160] sm:$0xff] }
0x1fb5   :  { %7024 = vmatpush1.msra.mxu0 %v6741_v3  ;;  %7101 = vmatpush1.msra.mxu1 %v6805_v5  ;;  %v6841_v3 = vld [vmem:[%s14048_s12 + $0x360] sm:$0xff]  ;;  %v6776_v5 = vld [vmem:[%s14048_s12 + $0x158] sm:$0xff] }
0x1fb6   :  { %7025 = vmatprep.subr.mxu0 %v6740_v6  ;;  %7102 = vmatprep.subr.mxu1 %v6804_v7  ;;  %v6840_v6 = vld [vmem:[%s14048_s12 + $0x358] sm:$0xff]  ;;  %v6775_v7 = vld [vmem:[%s14048_s12 + $0x150] sm:$0xff] }
0x1fb7   :  { %7026 = vmatpush1.msra.mxu0 %v6739_v8  ;;  %7103 = vmatpush1.msra.mxu1 %v6803_v9  ;;  %v6839_v8 = vld [vmem:[%s14048_s12 + $0x350] sm:$0xff]  ;;  %v6774_v9 = vld [vmem:[%s14048_s12 + $0x148] sm:$0xff] }
0x1fb8   :  { %7027 = vmatprep.subr.mxu0 %v6738_v10  ;;  %7104 = vmatprep.subr.mxu1 %v6802_v11  ;;  %v6838_v10 = vld [vmem:[%s14048_s12 + $0x348] sm:$0xff]  ;;  %v6773_v11 = vld [vmem:[%s14048_s12 + $0x140] sm:$0xff] }
0x1fb9   :  { %7028 = vmatpush1.msra.mxu0 %v6737_v12  ;;  %7105 = vmatpush1.msra.mxu1 %v6801_v13  ;;  %v6837_v12 = vld [vmem:[%s14048_s12 + $0x340] sm:$0xff]  ;;  %v6772_v13 = vld [vmem:[%s14048_s12 + $0x138] sm:$0xff] }
0x1fba   :  { %7029 = vmatprep.subr.mxu0 %v6736_v14  ;;  %7106 = vmatprep.subr.mxu1 %v6800_v15  ;;  %v6836_v14 = vld [vmem:[%s14048_s12 + $0x338] sm:$0xff]  ;;  %v6771_v15 = vld [vmem:[%s14048_s12 + $0x130] sm:$0xff] }
0x1fbb   :  { %7030 = vmatpush1.msra.mxu0 %v6735_v16  ;;  %7107 = vmatpush1.msra.mxu1 %v6799_v48  ;;  %v6835_v16 = vld [vmem:[%s14048_s12 + $0x330] sm:$0xff]  ;;  %v6770_v48 = vld [vmem:[%s14048_s12 + $0x128] sm:$0xff] }
0x1fbc   :  { %7031 = vmatprep.subr.mxu0 %v6734_v17  ;;  %7108 = vmatprep.subr.mxu1 %v6798_v18  ;;  %v6834_v17 = vld [vmem:[%s14048_s12 + $0x328] sm:$0xff]  ;;  %v6769_v18 = vld [vmem:[%s14048_s12 + $0x120] sm:$0xff] }
0x1fbd   :  { %7032 = vmatpush1.msra.mxu0 %v6733_v45  ;;  %7109 = vmatpush1.msra.mxu1 %v6797_v19  ;;  %v6833_v45 = vld [vmem:[%s14048_s12 + $0x320] sm:$0xff]  ;;  %v6768_v19 = vld [vmem:[%s14048_s12 + $0x118] sm:$0xff] }
0x1fbe   :  { %7033 = vmatprep.subr.mxu0 %v6796_v1  ;;  %7110 = vmatprep.subr.mxu1 %v6860_v20  ;;  %v6832_v1 = vld [vmem:[%s14048_s12 + $0x318] sm:$0xff]  ;;  %v6767_v20 = vld [vmem:[%s14048_s12 + $0x110] sm:$0xff] }
0x1fbf   :  { %7034 = vmatpush2.msra.mxu0 %v6795_v21  ;;  %7111 = vmatpush2.msra.mxu1 %v6859_v40  ;;  %v6831_v21 = vld [vmem:[%s14048_s12 + $0x310] sm:$0xff]  ;;  %v6766_v40 = vld [vmem:[%s14048_s12 + $0x108] sm:$0xff] }
0x1fc0   :  { %7035 = vmatprep.subr.mxu0 %v6794_v27  ;;  %7112 = vmatprep.subr.mxu1 %v6858_v4  ;;  %v6830_v27 = vld [vmem:[%s14048_s12 + $0x308] sm:$0xff]  ;;  %v6765_v4 = vld [vmem:[%s14048_s12 + $0x100] sm:$0xff] }
0x1fc1   :  { %7036 = vmatpush2.msra.mxu0 %v6793_v53  ;;  %7113 = vmatpush2.msra.mxu1 %v6857_v55  ;;  %v6829_v53 = vld [vmem:[%s14048_s12 + $0x300] sm:$0xff]  ;;  %v6892_v55 = vld [vmem:[%s14048_s12 + $0x4f8] sm:$0xff] }
0x1fc2   :  { %7037 = vmatprep.subr.mxu0 %v6792_v24  ;;  %7114 = vmatprep.subr.mxu1 %v6856_v37  ;;  %v6956_v24 = vld [vmem:[%s14048_s12 + $0x6f8] sm:$0xff]  ;;  %v6379_v37 = vsub.s32 2, %v9667_v32 }
0x1fc3   :  { %7038 = vmatpush2.msra.mxu0 %v6791_v39  ;;  %7115 = vmatpush2.msra.mxu1 %v6855_v42  ;;  %v13629_v39 = vld [vmem:[%s14047_s11] sm:$0xff]  ;;  %v6383_v42 = vsub.s32 3, %v9667_v32 }
0x1fc4   :  { %7039 = vmatprep.subr.mxu0 %v6790_v50  ;;  %7116 = vmatprep.subr.mxu1 %v6854_v41  ;;  %v6372_v50 = vrot.slane %v13629_v39, %v9670_v33  ;;  %v6380_v41 = vrot.slane %v13629_v39, %v6379_v37  ;;  %v6878_v37 = vld [vmem:[%s14048_s12 + $0x488] sm:$0xff] }
0x1fc5   :  { %7040 = vmatpush2.msra.mxu0 %v6789_v44  ;;  %7117 = vmatpush2.msra.mxu1 %v6853_v52  ;;  %v6376_v44 = vrot.slane %v13629_v39, %v9673_v34  ;;  %v6384_v52 = vrot.slane %v13629_v39, %v6383_v42  ;;  %v6942_v42 = vld [vmem:[%s14048_s12 + $0x688] sm:$0xff] }
0x1fc6   :  { %7041 = vmatprep.subr.mxu0 %v6788_v46  ;;  %7118 = vmatprep.subr.mxu1 %v6852_v54 }
0x1fc7   :  { %7042 = vmatpush2.msra.mxu0 %v6787_v57  ;;  %7119 = vmatpush2.msra.mxu1 %v6851_v47 }
0x1fc8   :  { %7043 = vmatprep.subr.mxu0 %v6786_v30  ;;  %7120 = vmatprep.subr.mxu1 %v6850_v56 }
0x1fc9   :  { %7044 = vmatpush2.msra.mxu0 %v6785_v29  ;;  %7121 = vmatpush2.msra.mxu1 %v6849_v49 }
0x1fca   :  { %7045 = vmatprep.subr.mxu0 %v6784_v58  ;;  %7122 = vmatprep.subr.mxu1 %v6848_v26 }
0x1fcb   :  { %7046 = vmatpush2.msra.mxu0 %v6783_v43  ;;  %7123 = vmatpush2.msra.mxu1 %v6847_v38 }
0x1fcc   :  { %7047 = vmatprep.subr.mxu0 %v6782_v36  ;;  %7124 = vmatprep.subr.mxu1 %v6846_v51 }
0x1fcd   :  { %7048 = vmatpush2.msra.mxu0 %v6781_v25  ;;  %7125 = vmatpush2.msra.mxu1 %v6845_v35  ;;  %v6891_v25 = vld [vmem:[%s14048_s12 + $0x4f0] sm:$0xff] }
0x1fce   :  { %7049 = vmatprep.subr.mxu0 %v6780_v62  ;;  %7126 = vmatprep.subr.mxu1 %v6844_v23  ;;  %v6955_v35 = vld [vmem:[%s14048_s12 + $0x6f0] sm:$0xff]  ;;  %v6890_v62 = vld [vmem:[%s14048_s12 + $0x4e8] sm:$0xff] }
0x1fcf   :  { %7050 = vmatpush2.msra.mxu0 %v6779_v59  ;;  %7127 = vmatpush2.msra.mxu1 %v6843_v28  ;;  %v6954_v23 = vld [vmem:[%s14048_s12 + $0x6e8] sm:$0xff] }
0x1fd0   :  { %7051 = vmatprep.subr.mxu0 %v6778_v63  ;;  %7128 = vmatprep.subr.mxu1 %v6842_v0 }
0x1fd1   :  { %7052 = vmatpush2.msra.mxu0 %v6777_v2  ;;  %7129 = vmatpush2.msra.mxu1 %v6841_v3  ;;  %v6889_v2 = vld [vmem:[%s14048_s12 + $0x4e0] sm:$0xff] }
0x1fd2   :  { %7053 = vmatprep.subr.mxu0 %v6776_v5  ;;  %7130 = vmatprep.subr.mxu1 %v6840_v6  ;;  %v6953_v3 = vld [vmem:[%s14048_s12 + $0x6e0] sm:$0xff] }
0x1fd3   :  { %7054 = vmatpush2.msra.mxu0 %v6775_v7  ;;  %7131 = vmatpush2.msra.mxu1 %v6839_v8  ;;  %v6888_v7 = vld [vmem:[%s14048_s12 + $0x4d8] sm:$0xff] }
0x1fd4   :  { %7055 = vmatprep.subr.mxu0 %v6774_v9  ;;  %7132 = vmatprep.subr.mxu1 %v6838_v10  ;;  %v6952_v8 = vld [vmem:[%s14048_s12 + $0x6d8] sm:$0xff] }
0x1fd5   :  { %7056 = vmatpush2.msra.mxu0 %v6773_v11  ;;  %7133 = vmatpush2.msra.mxu1 %v6837_v12 }
0x1fd6   :  { %7057 = vmatprep.subr.mxu0 %v6772_v13  ;;  %7134 = vmatprep.subr.mxu1 %v6836_v14  ;;  %v6887_v13 = vld [vmem:[%s14048_s12 + $0x4d0] sm:$0xff] }
0x1fd7   :  { %7058 = vmatpush2.msra.mxu0 %v6771_v15  ;;  %7135 = vmatpush2.msra.mxu1 %v6835_v16  ;;  %v6951_v14 = vld [vmem:[%s14048_s12 + $0x6d0] sm:$0xff]  ;;  %v6886_v15 = vld [vmem:[%s14048_s12 + $0x4c8] sm:$0xff] }
0x1fd8   :  { %7059 = vmatprep.subr.mxu0 %v6770_v48  ;;  %7136 = vmatprep.subr.mxu1 %v6834_v17  ;;  %v6950_v16 = vld [vmem:[%s14048_s12 + $0x6c8] sm:$0xff]  ;;  %v6885_v48 = vld [vmem:[%s14048_s12 + $0x4c0] sm:$0xff] }
0x1fd9   :  { %7060 = vmatpush2.msra.mxu0 %v6769_v18  ;;  %7137 = vmatpush2.msra.mxu1 %v6833_v45  ;;  %v6949_v17 = vld [vmem:[%s14048_s12 + $0x6c0] sm:$0xff]  ;;  %v6884_v18 = vld [vmem:[%s14048_s12 + $0x4b8] sm:$0xff] }
0x1fda   :  { %7061 = vmatprep.subr.mxu0 %v6768_v19  ;;  %7138 = vmatprep.subr.mxu1 %v6832_v1  ;;  %v6948_v45 = vld [vmem:[%s14048_s12 + $0x6b8] sm:$0xff]  ;;  %v6883_v19 = vld [vmem:[%s14048_s12 + $0x4b0] sm:$0xff] }
0x1fdb   :  { %7062 = vmatpush2.msra.mxu0 %v6767_v20  ;;  %7139 = vmatpush2.msra.mxu1 %v6831_v21  ;;  %v6947_v1 = vld [vmem:[%s14048_s12 + $0x6b0] sm:$0xff]  ;;  %v6882_v20 = vld [vmem:[%s14048_s12 + $0x4a8] sm:$0xff] }
0x1fdc   :  { %7063 = vmatprep.subr.mxu0 %v6766_v40  ;;  %7140 = vmatprep.subr.mxu1 %v6830_v27  ;;  %v6946_v21 = vld [vmem:[%s14048_s12 + $0x6a8] sm:$0xff]  ;;  %v6881_v40 = vld [vmem:[%s14048_s12 + $0x4a0] sm:$0xff] }
0x1fdd   :  { %7064 = vmatpush2.msra.mxu0 %v6765_v4  ;;  %7141 = vmatpush2.msra.mxu1 %v6829_v53  ;;  %v6945_v27 = vld [vmem:[%s14048_s12 + $0x6a0] sm:$0xff]  ;;  %v6880_v4 = vld [vmem:[%s14048_s12 + $0x498] sm:$0xff] }
0x1fde   :  { %7155 = vmatprep.subr.mxu0 %v6892_v55  ;;  %7232 = vmatprep.subr.mxu1 %v6956_v24  ;;  %v6944_v53 = vld [vmem:[%s14048_s12 + $0x698] sm:$0xff]  ;;  %v6879_v55 = vld [vmem:[%s14048_s12 + $0x490] sm:$0xff] }
0x1fdf   :  { %v6943_v24 = vld [vmem:[%s14048_s12 + $0x690] sm:$0xff] }
0x2018   :  { %v6475_v46 = vpop.f32.mrf.mxu0  ;;  %v6552_v54 = vpop.f32.mrf.mxu1 }
0x2019   :  { %v6476_v57 = vadd.f32 %v6475_v46, %v6372_v50  ;;  %v6553_v47 = vadd.f32 %v6552_v54, %v6380_v41  ;;  %v6875_v46 = vld [vmem:[%s14048_s12 + $0x470] sm:$0xff] }
0x201a   :  { %v6477_v30 = vpop.f32.mrf.mxu0  ;;  %v6554_v56 = vpop.f32.mrf.mxu1  ;;  %v6939_v54 = vld [vmem:[%s14048_s12 + $0x670] sm:$0xff] }
0x201b   :  { %v6478_v29 = vadd.f32 %v6477_v30, %v6376_v44  ;;  %v6555_v49 = vadd.f32 %v6554_v56, %v6384_v52  ;;  %v6717_v43 = vmax.f32 %v6476_v57, 0.0  ;;  %v6719_v38 = vmax.f32 %v6553_v47, 0.0  ;;  %v6874_v57 = vld [vmem:[%s14048_s12 + $0x468] sm:$0xff]  ;;  %v6873_v30 = vld [vmem:[%s14048_s12 + $0x460] sm:$0xff] }
0x201c   :  { %v6938_v47 = vld [vmem:[%s14048_s12 + $0x668] sm:$0xff]  ;;  %v6937_v56 = vld [vmem:[%s14048_s12 + $0x660] sm:$0xff] }
0x201d   :  { %v6718_v58 = vmax.f32 %v6478_v29, 0.0  ;;  %v6720_v26 = vmax.f32 %v6555_v49, 0.0  ;;  %v6872_v29 = vld [vmem:[%s14048_s12 + $0x458] sm:$0xff] }
0x201e   :  { %v6481_v36 = vpop.f32.mrf.mxu0  ;;  %v6558_v51 = vpop.f32.mrf.mxu1  ;;  %v6936_v49 = vld [vmem:[%s14048_s12 + $0x658] sm:$0xff] }
0x201f   :  { %7065 = vmatprep.mubr.f32.mxu0 %v6718_v58  ;;  %7142 = vmatprep.mubr.f32.mxu1 %v6720_v26  ;;  %v6482_v59 = vadd.f32 %v6481_v36, %v6372_v50  ;;  %v6559_v28 = vadd.f32 %v6558_v51, %v6380_v41  ;;  %v6877_v50 = vld [vmem:[%s14048_s12 + $0x480] sm:$0xff]  ;;  %v6871_v58 = vld [vmem:[%s14048_s12 + $0x450] sm:$0xff] }
0x2020   :  { %v6483_v63 = vpop.f32.mrf.mxu0  ;;  %v6560_v0 = vpop.f32.mrf.mxu1  ;;  %7066 = vmatmul.mubr.f32.vlgmr.msra.gmra.mxu0 %v6717_v43  ;;  %7143 = vmatmul.mubr.f32.vlgmr.msra.gmra.mxu1 %v6719_v38  ;;  %v6941_v41 = vld [vmem:[%s14048_s12 + $0x680] sm:$0xff]  ;;  %v6935_v26 = vld [vmem:[%s14048_s12 + $0x650] sm:$0xff]  ;;  %v6870_v43 = vld [vmem:[%s14048_s12 + $0x448] sm:$0xff] }
0x2021   :  { %v6484_v5 = vadd.f32 %v6483_v63, %v6376_v44  ;;  %v6561_v6 = vadd.f32 %v6560_v0, %v6384_v52  ;;  %7156 = vmatpush1.msra.mxu0 %v6891_v25  ;;  %7233 = vmatpush1.msra.mxu1 %v6955_v35  ;;  %v6725_v11 = vmax.f32 %v6482_v59, 0.0  ;;  %v6727_v12 = vmax.f32 %v6559_v28, 0.0  ;;  %v6876_v44 = vld [vmem:[%s14048_s12 + $0x478] sm:$0xff]  ;;  %v6934_v38 = vld [vmem:[%s14048_s12 + $0x648] sm:$0xff]  ;;  %v6869_v36 = vld [vmem:[%s14048_s12 + $0x440] sm:$0xff] }
0x2022   :  { %7157 = vmatprep.subr.mxu0 %v6890_v62  ;;  %7234 = vmatprep.subr.mxu1 %v6954_v23  ;;  %v6940_v52 = vld [vmem:[%s14048_s12 + $0x678] sm:$0xff]  ;;  %v6933_v51 = vld [vmem:[%s14048_s12 + $0x640] sm:$0xff]  ;;  %v6867_v62 = vld [vmem:[%s14048_s12 + $0x430] sm:$0xff] }
0x2023   :  { %v6726_v9 = vmax.f32 %v6484_v5, 0.0  ;;  %v6728_v10 = vmax.f32 %v6561_v6, 0.0  ;;  %7158 = vmatpush1.msra.mxu0 %v6889_v2  ;;  %7235 = vmatpush1.msra.mxu1 %v6953_v3  ;;  %v6868_v25 = vld [vmem:[%s14048_s12 + $0x438] sm:$0xff]  ;;  %v6931_v23 = vld [vmem:[%s14048_s12 + $0x630] sm:$0xff]  ;;  %v6866_v59 = vld [vmem:[%s14048_s12 + $0x428] sm:$0xff] }
0x2024   :  { %7159 = vmatprep.subr.mxu0 %v6888_v7  ;;  %7236 = vmatprep.subr.mxu1 %v6952_v8  ;;  %v6932_v35 = vld [vmem:[%s14048_s12 + $0x638] sm:$0xff]  ;;  %v6930_v28 = vld [vmem:[%s14048_s12 + $0x628] sm:$0xff]  ;;  %v6865_v63 = vld [vmem:[%s14048_s12 + $0x420] sm:$0xff] }
0x2025   :  { %7071 = vmatprep.mubr.f32.mxu0 %v6726_v9  ;;  %7148 = vmatprep.mubr.f32.mxu1 %v6728_v10  ;;  %v6929_v0 = vld [vmem:[%s14048_s12 + $0x620] sm:$0xff]  ;;  %v6864_v2 = vld [vmem:[%s14048_s12 + $0x418] sm:$0xff]  ;;  %v6863_v5 = vld [vmem:[%s14048_s12 + $0x410] sm:$0xff] }
0x2026   :  { %7072 = vmatmul.mubr.f32.gmra.mxu0 %v6725_v11  ;;  %7149 = vmatmul.mubr.f32.gmra.mxu1 %v6727_v12  ;;  %v6928_v3 = vld [vmem:[%s14048_s12 + $0x618] sm:$0xff]  ;;  %v6927_v6 = vld [vmem:[%s14048_s12 + $0x610] sm:$0xff]  ;;  %v6862_v7 = vld [vmem:[%s14048_s12 + $0x408] sm:$0xff] }
0x2027   :  { %7160 = vmatpush1.msra.mxu0 %v6887_v13  ;;  %7237 = vmatpush1.msra.mxu1 %v6951_v14  ;;  %v6926_v8 = vld [vmem:[%s14048_s12 + $0x608] sm:$0xff]  ;;  %v6861_v9 = vld [vmem:[%s14048_s12 + $0x400] sm:$0xff]  ;;  %v6924_v11 = vld [vmem:[%s14048_s12 + $0x5f8] sm:$0xff] }
0x2028   :  { %7161 = vmatprep.subr.mxu0 %v6886_v15  ;;  %7238 = vmatprep.subr.mxu1 %v6950_v16  ;;  %v6925_v10 = vld [vmem:[%s14048_s12 + $0x600] sm:$0xff]  ;;  %v6988_v12 = vld [vmem:[%s14048_s12 + $0x7f8] sm:$0xff]  ;;  %v6923_v13 = vld [vmem:[%s14048_s12 + $0x5f0] sm:$0xff] }
0x2029   :  { %7162 = vmatpush1.msra.mxu0 %v6885_v48  ;;  %7239 = vmatpush1.msra.mxu1 %v6949_v17  ;;  %v6987_v14 = vld [vmem:[%s14048_s12 + $0x7f0] sm:$0xff]  ;;  %v6922_v15 = vld [vmem:[%s14048_s12 + $0x5e8] sm:$0xff]  ;;  %v6921_v48 = vld [vmem:[%s14048_s12 + $0x5e0] sm:$0xff] }
0x202a   :  { %7163 = vmatprep.subr.mxu0 %v6884_v18  ;;  %7240 = vmatprep.subr.mxu1 %v6948_v45  ;;  %v6986_v16 = vld [vmem:[%s14048_s12 + $0x7e8] sm:$0xff]  ;;  %v6985_v17 = vld [vmem:[%s14048_s12 + $0x7e0] sm:$0xff]  ;;  %v6920_v18 = vld [vmem:[%s14048_s12 + $0x5d8] sm:$0xff] }
0x202b   :  { %7164 = vmatpush1.msra.mxu0 %v6883_v19  ;;  %7241 = vmatpush1.msra.mxu1 %v6947_v1  ;;  %v6984_v45 = vld [vmem:[%s14048_s12 + $0x7d8] sm:$0xff]  ;;  %v6919_v19 = vld [vmem:[%s14048_s12 + $0x5d0] sm:$0xff] }
0x202c   :  { %7165 = vmatprep.subr.mxu0 %v6882_v20  ;;  %7242 = vmatprep.subr.mxu1 %v6946_v21  ;;  %v6983_v1 = vld [vmem:[%s14048_s12 + $0x7d0] sm:$0xff]  ;;  %v6918_v20 = vld [vmem:[%s14048_s12 + $0x5c8] sm:$0xff] }
0x202d   :  { %7166 = vmatpush1.msra.mxu0 %v6881_v40  ;;  %7243 = vmatpush1.msra.mxu1 %v6945_v27  ;;  %v6982_v21 = vld [vmem:[%s14048_s12 + $0x7c8] sm:$0xff]  ;;  %v6917_v40 = vld [vmem:[%s14048_s12 + $0x5c0] sm:$0xff] }
0x202e   :  { %7167 = vmatprep.subr.mxu0 %v6880_v4  ;;  %7244 = vmatprep.subr.mxu1 %v6944_v53  ;;  %v6981_v27 = vld [vmem:[%s14048_s12 + $0x7c0] sm:$0xff]  ;;  %v6916_v4 = vld [vmem:[%s14048_s12 + $0x5b8] sm:$0xff] }
0x202f   :  { %7168 = vmatpush1.msra.mxu0 %v6879_v55  ;;  %7245 = vmatpush1.msra.mxu1 %v6943_v24  ;;  %v6980_v53 = vld [vmem:[%s14048_s12 + $0x7b8] sm:$0xff]  ;;  %v6915_v55 = vld [vmem:[%s14048_s12 + $0x5b0] sm:$0xff] }
0x2030   :  { %7169 = vmatprep.subr.mxu0 %v6878_v37  ;;  %7246 = vmatprep.subr.mxu1 %v6942_v42  ;;  %v6979_v24 = vld [vmem:[%s14048_s12 + $0x7b0] sm:$0xff]  ;;  %v6914_v37 = vld [vmem:[%s14048_s12 + $0x5a8] sm:$0xff] }
0x2031   :  { %7170 = vmatpush1.msra.mxu0 %v6877_v50  ;;  %7247 = vmatpush1.msra.mxu1 %v6941_v41  ;;  %v6978_v42 = vld [vmem:[%s14048_s12 + $0x7a8] sm:$0xff]  ;;  %v6913_v50 = vld [vmem:[%s14048_s12 + $0x5a0] sm:$0xff] }
0x2032   :  { %7171 = vmatprep.subr.mxu0 %v6876_v44  ;;  %7248 = vmatprep.subr.mxu1 %v6940_v52  ;;  %v6977_v41 = vld [vmem:[%s14048_s12 + $0x7a0] sm:$0xff]  ;;  %v6912_v44 = vld [vmem:[%s14048_s12 + $0x598] sm:$0xff] }
0x2033   :  { %7172 = vmatpush1.msra.mxu0 %v6875_v46  ;;  %7249 = vmatpush1.msra.mxu1 %v6939_v54  ;;  %v6976_v52 = vld [vmem:[%s14048_s12 + $0x798] sm:$0xff]  ;;  %v6911_v46 = vld [vmem:[%s14048_s12 + $0x590] sm:$0xff] }
0x2034   :  { %7173 = vmatprep.subr.mxu0 %v6874_v57  ;;  %7250 = vmatprep.subr.mxu1 %v6938_v47  ;;  %v6975_v54 = vld [vmem:[%s14048_s12 + $0x790] sm:$0xff]  ;;  %v6910_v57 = vld [vmem:[%s14048_s12 + $0x588] sm:$0xff] }
0x2035   :  { %7174 = vmatpush1.msra.mxu0 %v6873_v30  ;;  %7251 = vmatpush1.msra.mxu1 %v6937_v56  ;;  %v6974_v47 = vld [vmem:[%s14048_s12 + $0x788] sm:$0xff]  ;;  %v6909_v30 = vld [vmem:[%s14048_s12 + $0x580] sm:$0xff] }
0x2036   :  { %7175 = vmatprep.subr.mxu0 %v6872_v29  ;;  %7252 = vmatprep.subr.mxu1 %v6936_v49  ;;  %v6973_v56 = vld [vmem:[%s14048_s12 + $0x780] sm:$0xff]  ;;  %v6908_v29 = vld [vmem:[%s14048_s12 + $0x578] sm:$0xff] }
0x2037   :  { %7176 = vmatpush1.msra.mxu0 %v6871_v58  ;;  %7253 = vmatpush1.msra.mxu1 %v6935_v26  ;;  %v6972_v49 = vld [vmem:[%s14048_s12 + $0x778] sm:$0xff]  ;;  %v6907_v58 = vld [vmem:[%s14048_s12 + $0x570] sm:$0xff] }
0x2038   :  { %7177 = vmatprep.subr.mxu0 %v6870_v43  ;;  %7254 = vmatprep.subr.mxu1 %v6934_v38  ;;  %v6971_v26 = vld [vmem:[%s14048_s12 + $0x770] sm:$0xff]  ;;  %v6906_v43 = vld [vmem:[%s14048_s12 + $0x568] sm:$0xff] }
0x2039   :  { %7178 = vmatpush1.msra.mxu0 %v6869_v36  ;;  %7255 = vmatpush1.msra.mxu1 %v6933_v51  ;;  %v6970_v38 = vld [vmem:[%s14048_s12 + $0x768] sm:$0xff]  ;;  %v6905_v36 = vld [vmem:[%s14048_s12 + $0x560] sm:$0xff] }
0x203a   :  { %7179 = vmatprep.subr.mxu0 %v6868_v25  ;;  %7256 = vmatprep.subr.mxu1 %v6932_v35  ;;  %v6969_v51 = vld [vmem:[%s14048_s12 + $0x760] sm:$0xff]  ;;  %v6904_v25 = vld [vmem:[%s14048_s12 + $0x558] sm:$0xff] }
0x203b   :  { %7180 = vmatpush1.msra.mxu0 %v6867_v62  ;;  %7257 = vmatpush1.msra.mxu1 %v6931_v23  ;;  %v6968_v35 = vld [vmem:[%s14048_s12 + $0x758] sm:$0xff]  ;;  %v6903_v62 = vld [vmem:[%s14048_s12 + $0x550] sm:$0xff] }
0x203c   :  { %7181 = vmatprep.subr.mxu0 %v6866_v59  ;;  %7258 = vmatprep.subr.mxu1 %v6930_v28  ;;  %v6967_v23 = vld [vmem:[%s14048_s12 + $0x750] sm:$0xff]  ;;  %v6902_v59 = vld [vmem:[%s14048_s12 + $0x548] sm:$0xff] }
0x203d   :  { %7182 = vmatpush1.msra.mxu0 %v6865_v63  ;;  %7259 = vmatpush1.msra.mxu1 %v6929_v0  ;;  %v6966_v28 = vld [vmem:[%s14048_s12 + $0x748] sm:$0xff]  ;;  %v6387_v63 = vsub.s32 4, %v9667_v32  ;;  %v6395_v0 = vsub.s32 6, %v9667_v32 }
0x203e   :  { %7183 = vmatprep.subr.mxu0 %v6864_v2  ;;  %7260 = vmatprep.subr.mxu1 %v6928_v3  ;;  %v6901_v2 = vld [vmem:[%s14048_s12 + $0x540] sm:$0xff] }
0x203f   :  { %7184 = vmatpush1.msra.mxu0 %v6863_v5  ;;  %7261 = vmatpush1.msra.mxu1 %v6927_v6  ;;  %v6965_v3 = vld [vmem:[%s14048_s12 + $0x740] sm:$0xff]  ;;  %v6391_v5 = vsub.s32 5, %v9667_v32  ;;  %v6399_v6 = vsub.s32 7, %v9667_v32  ;;  %v6963_v32 = vld [vmem:[%s14048_s12 + $0x730] sm:$0xff] }
0x2040   :  { %7185 = vmatprep.subr.mxu0 %v6862_v7  ;;  %7262 = vmatprep.subr.mxu1 %v6926_v8  ;;  %v6900_v7 = vld [vmem:[%s14048_s12 + $0x538] sm:$0xff] }
0x2041   :  { %7186 = vmatpush1.msra.mxu0 %v6861_v9  ;;  %7263 = vmatpush1.msra.mxu1 %v6925_v10  ;;  %v6964_v8 = vld [vmem:[%s14048_s12 + $0x738] sm:$0xff]  ;;  %v6899_v9 = vld [vmem:[%s14048_s12 + $0x530] sm:$0xff]  ;;  %v6388_v10 = vrot.slane %v13629_v39, %v6387_v63 }
0x2042   :  { %7187 = vmatprep.subr.mxu0 %v6924_v11  ;;  %7264 = vmatprep.subr.mxu1 %v6988_v12  ;;  %v6396_v11 = vrot.slane %v13629_v39, %v6395_v0  ;;  %v6898_v12 = vld [vmem:[%s14048_s12 + $0x528] sm:$0xff] }
0x2043   :  { %7188 = vmatpush2.msra.mxu0 %v6923_v13  ;;  %7265 = vmatpush2.msra.mxu1 %v6987_v14  ;;  %v6962_v13 = vld [vmem:[%s14048_s12 + $0x728] sm:$0xff]  ;;  %v6392_v14 = vrot.slane %v13629_v39, %v6391_v5 }
0x2044   :  { %7189 = vmatprep.subr.mxu0 %v6922_v15  ;;  %7266 = vmatprep.subr.mxu1 %v6986_v16  ;;  %v6400_v15 = vrot.slane %v13629_v39, %v6399_v6  ;;  %v6897_v16 = vld [vmem:[%s14048_s12 + $0x520] sm:$0xff]  ;;  %v6960_v39 = vld [vmem:[%s14048_s12 + $0x718] sm:$0xff] }
0x2045   :  { %7190 = vmatpush2.msra.mxu0 %v6921_v48  ;;  %7267 = vmatpush2.msra.mxu1 %v6985_v17  ;;  %v6961_v48 = vld [vmem:[%s14048_s12 + $0x720] sm:$0xff] }
0x2046   :  { %7191 = vmatprep.subr.mxu0 %v6920_v18  ;;  %7268 = vmatprep.subr.mxu1 %v6984_v45  ;;  %v6896_v45 = vld [vmem:[%s14048_s12 + $0x518] sm:$0xff] }
0x2047   :  { %7192 = vmatpush2.msra.mxu0 %v6919_v19  ;;  %7269 = vmatpush2.msra.mxu1 %v6983_v1  ;;  %v6895_v19 = vld [vmem:[%s14048_s12 + $0x510] sm:$0xff] }
0x2048   :  { %7193 = vmatprep.subr.mxu0 %v6918_v20  ;;  %7270 = vmatprep.subr.mxu1 %v6982_v21  ;;  %v6959_v1 = vld [vmem:[%s14048_s12 + $0x710] sm:$0xff] }
0x2049   :  { %7194 = vmatpush2.msra.mxu0 %v6917_v40  ;;  %7271 = vmatpush2.msra.mxu1 %v6981_v27 }
0x204a   :  { %7195 = vmatprep.subr.mxu0 %v6916_v4  ;;  %7272 = vmatprep.subr.mxu1 %v6980_v53  ;;  %v6894_v4 = vld [vmem:[%s14048_s12 + $0x508] sm:$0xff] }
0x204b   :  { %7196 = vmatpush2.msra.mxu0 %v6915_v55  ;;  %7273 = vmatpush2.msra.mxu1 %v6979_v24  ;;  %v6958_v53 = vld [vmem:[%s14048_s12 + $0x708] sm:$0xff] }
0x204c   :  { %7197 = vmatprep.subr.mxu0 %v6914_v37  ;;  %7274 = vmatprep.subr.mxu1 %v6978_v42  ;;  %v6893_v37 = vld [vmem:[%s14048_s12 + $0x500] sm:$0xff] }
0x204d   :  { %7198 = vmatpush2.msra.mxu0 %v6913_v50  ;;  %7275 = vmatpush2.msra.mxu1 %v6977_v41  ;;  %v6957_v42 = vld [vmem:[%s14048_s12 + $0x700] sm:$0xff] }
0x204e   :  { %7199 = vmatprep.subr.mxu0 %v6912_v44  ;;  %7276 = vmatprep.subr.mxu1 %v6976_v52 }
0x204f   :  { %7200 = vmatpush2.msra.mxu0 %v6911_v46  ;;  %7277 = vmatpush2.msra.mxu1 %v6975_v54 }
0x2050   :  { %7201 = vmatprep.subr.mxu0 %v6910_v57  ;;  %7278 = vmatprep.subr.mxu1 %v6974_v47 }
0x2051   :  { %7202 = vmatpush2.msra.mxu0 %v6909_v30  ;;  %7279 = vmatpush2.msra.mxu1 %v6973_v56 }
0x2052   :  { %7203 = vmatprep.subr.mxu0 %v6908_v29  ;;  %7280 = vmatprep.subr.mxu1 %v6972_v49 }
0x2053   :  { %7204 = vmatpush2.msra.mxu0 %v6907_v58  ;;  %7281 = vmatpush2.msra.mxu1 %v6971_v26 }
0x2054   :  { %7205 = vmatprep.subr.mxu0 %v6906_v43  ;;  %7282 = vmatprep.subr.mxu1 %v6970_v38 }
0x2055   :  { %7206 = vmatpush2.msra.mxu0 %v6905_v36  ;;  %7283 = vmatpush2.msra.mxu1 %v6969_v51 }
0x2056   :  { %7207 = vmatprep.subr.mxu0 %v6904_v25  ;;  %7284 = vmatprep.subr.mxu1 %v6968_v35  ;;  %v6989_v25 = vld [vmem:[%s14049_s13] sm:$0x3]  ;;  %s9366_s13 = smov [#allocation2]  }
0x2057   :  { %7208 = vmatpush2.msra.mxu0 %v6903_v62  ;;  %7285 = vmatpush2.msra.mxu1 %v6967_v23  ;;  %v6994_v23 = vrot.slane %v6989_v25, %v9670_v33  ;;  %s7322_s28 = sshll.u32 %s9366_s13, 4  ;;  %s7323_s28 = int_to_ptr.vmem [resolvable:$true] %s7322_s28 }
0x2058   :  { %7209 = vmatprep.subr.mxu0 %v6902_v59  ;;  %7286 = vmatprep.subr.mxu1 %v6966_v28  ;;  %v6998_v59 = vrot.slane %v6989_v25, %v9673_v34  ;;  %s9342_s29 = scalar_lea.vmem %s7323_s28, 512  ;;  %p9347_p1 = scmp.lt.s32.totalorder %s7323_s28, %s7323_s28 }
0x2059   :  { %7210 = vmatpush2.msra.mxu0 %v6901_v2  ;;  %7287 = vmatpush2.msra.mxu1 %v6965_v3  ;;  %p9343_p0 = scmp.ne.s32.totalorder %s7323_s28, %s9342_s29  ;;  %p9348_p2 = scmp.lt.s32.totalorder %s9342_s29, %s9342_s29 }
0x205a   :  { %7211 = vmatprep.subr.mxu0 %v6900_v7  ;;  %7288 = vmatprep.subr.mxu1 %v6964_v8 }
0x205b   :  { %v6629_v17 = vpop.f32.mrf.mxu0  ;;  %v6706_v18 = vpop.f32.mrf.mxu1  ;;  %7212 = vmatpush2.msra.mxu0 %v6899_v9  ;;  %7289 = vmatpush2.msra.mxu1 %v6963_v32  ;;  %p9349_p3 = por %p9348_p2, %p9347_p1 }
0x205c   :  { %7213 = vmatprep.subr.mxu0 %v6898_v12  ;;  %7290 = vmatprep.subr.mxu1 %v6962_v13  ;;  %v6630_v20 = vadd.f32 %v6629_v17, %v6388_v10  ;;  %v6707_v21 = vadd.f32 %v6706_v18, %v6396_v11 }
0x205d   :  { %v6631_v40 = vpop.f32.mrf.mxu0  ;;  %v6708_v27 = vpop.f32.mrf.mxu1  ;;  %7214 = vmatpush2.msra.mxu0 %v6897_v16  ;;  %7291 = vmatpush2.msra.mxu1 %v6961_v48  ;;  %p9350_p4 = pnand %p9349_p3, %p9343_p0 }
0x205e   :  { %v6632_v55 = vadd.f32 %v6631_v40, %v6392_v14  ;;  %v6709_v24 = vadd.f32 %v6708_v27, %v6400_v15  ;;  %7215 = vmatprep.subr.mxu0 %v6896_v45  ;;  %7292 = vmatprep.subr.mxu1 %v6960_v39  ;;  %v6721_v46 = vmax.f32 %v6630_v20, 0.0  ;;  %v6723_v54 = vmax.f32 %v6707_v21, 0.0 }
0x205f   :  { %v6635_v50 = vpop.f32.mrf.mxu0  ;;  %v6712_v41 = vpop.f32.mrf.mxu1  ;;  %7216 = vmatpush2.msra.mxu0 %v6895_v19  ;;  %7293 = vmatpush2.msra.mxu1 %v6959_v1 }
0x2060   :  { %v6722_v44 = vmax.f32 %v6632_v55, 0.0  ;;  %v6724_v52 = vmax.f32 %v6709_v24, 0.0  ;;  %7217 = vmatprep.subr.mxu0 %v6894_v4  ;;  %7294 = vmatprep.subr.mxu1 %v6958_v53  ;;  %v6636_v57 = vadd.f32 %v6635_v50, %v6388_v10  ;;  %v6713_v47 = vadd.f32 %v6712_v41, %v6396_v11 }
0x2061   :  { %v6637_v30 = vpop.f32.mrf.mxu0  ;;  %v6714_v56 = vpop.f32.mrf.mxu1  ;;  %7218 = vmatpush2.msra.mxu0 %v6893_v37  ;;  %7295 = vmatpush2.msra.mxu1 %v6957_v42 }
0x2062   :  { %v6638_v29 = vadd.f32 %v6637_v30, %v6392_v14  ;;  %v6715_v49 = vadd.f32 %v6714_v56, %v6400_v15  ;;  %7219 = vmatprep.mubr.f32.mxu0 %v6722_v44  ;;  %7296 = vmatprep.mubr.f32.mxu1 %v6724_v52  ;;  %v6729_v43 = vmax.f32 %v6636_v57, 0.0  ;;  %v6731_v38 = vmax.f32 %v6713_v47, 0.0 }
0x2063   :  { %7220 = vmatmul.mubr.f32.vlgmr.msra.gmra.mxu0 %v6721_v46  ;;  %7297 = vmatmul.mubr.f32.vlgmr.msra.gmra.mxu1 %v6723_v54 }
0x2064   :  { %v6730_v58 = vmax.f32 %v6638_v29, 0.0  ;;  %v6732_v26 = vmax.f32 %v6715_v49, 0.0 }
0x2066   :  { %7225 = vmatprep.mubr.f32.mxu0 %v6730_v58  ;;  %7302 = vmatprep.mubr.f32.mxu1 %v6732_v26 }
0x2067   :  { %7226 = vmatmul.mubr.f32.gmra.mxu0 %v6729_v43  ;;  %7303 = vmatmul.mubr.f32.gmra.mxu1 %v6731_v38 }
0x20e0   :  { %v7067_v36 = vpop.f32.mrf.mxu0  ;;  %v7144_v51 = vpop.f32.mrf.mxu1 }
0x20e1   :  { %v7068_v0 = vadd.f32 %v7067_v36, %v6994_v23 }
0x20e2   :  { %v7069_v35 = vpop.f32.mrf.mxu0  ;;  %v7146_v62 = vpop.f32.mrf.mxu1 }
0x20e3   :  { %v7070_v2 = vadd.f32 %v7069_v35, %v6998_v59  ;;  %v7145_v6 = vadd.f32 %v7144_v51, %v7068_v0 }
0x20e5   :  { %v7147_v32 = vadd.f32 %v7146_v62, %v7070_v2 }
0x20e6   :  { %v7073_v28 = vpop.f32.mrf.mxu0  ;;  %v7150_v63 = vpop.f32.mrf.mxu1 }
0x20e7   :  { %v7074_v7 = vadd.f32 %v7073_v28, %v6994_v23 }
0x20e8   :  { %v7075_v3 = vpop.f32.mrf.mxu0  ;;  %v7152_v5 = vpop.f32.mrf.mxu1 }
0x20e9   :  { %v7076_v10 = vadd.f32 %v7075_v3, %v6998_v59  ;;  %v7151_v14 = vadd.f32 %v7150_v63, %v7074_v7 }
0x20eb   :  { %v7153_v48 = vadd.f32 %v7152_v5, %v7076_v10 }
0x2123   :  { %v7221_v8 = vpop.f32.mrf.mxu0  ;;  %v7298_v9 = vpop.f32.mrf.mxu1 }
0x2124   :  { %v7222_v11 = vadd.f32 %v7221_v8, %v7145_v6 }
0x2125   :  { %v7223_v12 = vpop.f32.mrf.mxu0  ;;  %v7300_v13 = vpop.f32.mrf.mxu1 }
0x2126   :  { %v7299_v15 = vadd.f32 %v7298_v9, %v7222_v11  ;;  %v7224_v33 = vadd.f32 %v7223_v12, %v7147_v32 }
0x2127   :  { %v7227_v16 = vpop.f32.mrf.mxu0  ;;  %v7304_v34 = vpop.f32.mrf.mxu1 }
0x2128   :  { %v7309_v17 = vadd.f32 %v7299_v15, %v12396_v31  ;;  %v7301_v18 = vadd.f32 %v7300_v13, %v7224_v33  ;;  %v7228_v45 = vadd.f32 %v7227_v16, %v7151_v14 }
0x2129   :  { %v7229_v39 = vpop.f32.mrf.mxu0  ;;  %v7306_v21 = vpop.f32.mrf.mxu1 }
0x212a   :  { %7313 = vst [vmem:[#allocation2] sm:$0xff] %v7309_v17  ;;  %v7310_v19 = vadd.f32 %v7301_v18, %v12398_v22  ;;  %v7305_v1 = vadd.f32 %v7304_v34, %v7228_v45  ;;  %v7230_v20 = vadd.f32 %v7229_v39, %v7153_v48 }
0x212c   :  { %7314 = vst [vmem:[#allocation2 + $0x8] sm:$0xff] %v7310_v19  ;;  %v7311_v40 = vadd.f32 %v7305_v1, %v12409_v60  ;;  %v7307_v27 = vadd.f32 %v7306_v21, %v7230_v20 }
0x212e   :  { %7315 = vst [vmem:[#allocation2 + $0x10] sm:$0xff] %v7311_v40  ;;  %v7312_v4 = vadd.f32 %v7307_v27, %v12411_v61 }
0x2130   :  { %7316 = vst [vmem:[#allocation2 + $0x18] sm:$0xff] %v7312_v4 }
0x2131   :  { %9353 = shalt.err (!%p9350_p4)
}
0x2132   :  { %s9367_s30 = smov 256   ;;  %s9368_s4 = smov 16  }
0x2133   :  { %7328 = dma.vmem_to_hbm [thread:$0]  %s7323_s28, 512, %s14050_s14, [#allocation3], %s9367_s30, %s9367_s30, %s9368_s4  }
0x2134   :  { %9362 = dma.done.wait [#allocation3], 512  }
0x2135   :  { %9363 = vsyncadd [#allocation3], 4294966784 }
0x2136   :  { %7332 = vsyncpa [#allocation3], 1 }

</bundles_post_ra>
